<compile_context>
chip_gen: v6e
topology: v6e:2x2x1
jax: 0.10.0
libtpu: 0.0.40
codegen_flags: <defaults>
</compile_context>

<pallas_src>
import functools

import jax
import jax.numpy as jnp
from jax.experimental import pallas as pl
from jax.experimental.pallas import tpu as pltpu

_MIB = 1024 * 1024


def _round_up(x, m):
    return ((x + m - 1) // m) * m


def _cdiv(a, b):
    return -(-a // b)


def _vmem_capacity_bytes():
    """Per-core VMEM capacity; conservative 64 MiB (v7x) if the query fails."""
    try:
        cap = int(getattr(pltpu.get_tpu_info(), "vmem_capacity_bytes", 0))
    except Exception:
        cap = 0
    if cap <= 0:
        cap = 64 * _MIB
    return cap


def _pick_tm(m, tm_max):
    """Row-panel size: as large as allowed, but >=2 grid steps when M permits
    so the 'parallel' M axis can split across both v7x TensorCores."""
    mr = _round_up(m, 8)
    if mr <= 256:
        return mr
    half = _round_up(_cdiv(m, 2), 8)
    return min(tm_max, half)


def _divisor_tile(rows, tm_max):
    """Largest 128-multiple tile <= tm_max that divides `rows` (rows % 128 == 0)."""
    t = min((max(tm_max, 128) // 128) * 128, rows)
    while rows % t:
        t -= 128
    return max(t, 128)


def _prep(x, rows, cols, dtype):
    """Cast to the (narrow) compute dtype and zero-pad to (rows, cols)."""
    x = x.astype(dtype)
    r, c = x.shape
    if (r, c) != (rows, cols):
        x = jnp.pad(x, ((0, rows - r), (0, cols - c)))
    return x


# ----------------------------------------------------------------------------
# Fused chain kernels: row-panel of the left operand, all right operands fully
# VMEM-resident.  Intermediates never leave the chip; accumulation is f32 and
# intermediates are re-narrowed to the compute dtype before the next MXU pass.
# ----------------------------------------------------------------------------
def _mm1_kernel(a_ref, w_ref, o_ref):
    o_ref[...] = jnp.dot(
        a_ref[...], w_ref[...], preferred_element_type=jnp.float32
    ).astype(o_ref.dtype)


def _mm2_kernel(a_ref, c_ref, d_ref, o_ref):
    t = jnp.dot(a_ref[...], c_ref[...], preferred_element_type=jnp.float32)
    t = t.astype(c_ref.dtype)
    o_ref[...] = jnp.dot(
        t, d_ref[...], preferred_element_type=jnp.float32
    ).astype(o_ref.dtype)


def _mm3_kernel(a_ref, b_ref, c_ref, d_ref, o_ref):
    t = jnp.dot(a_ref[...], b_ref[...], preferred_element_type=jnp.float32)
    t = t.astype(b_ref.dtype)
    t = jnp.dot(t, c_ref[...], preferred_element_type=jnp.float32)
    t = t.astype(c_ref.dtype)
    o_ref[...] = jnp.dot(
        t, d_ref[...], preferred_element_type=jnp.float32
    ).astype(o_ref.dtype)


_CHAIN_KERNELS = {1: _mm1_kernel, 2: _mm2_kernel, 3: _mm3_kernel}


@functools.partial(
    jax.jit,
    static_argnames=("tm", "single_buffer", "out_dtype", "vmem_limit_bytes"),
)
def _fused_chain(x, *rhs, tm, single_buffer, out_dtype, vmem_limit_bytes):
    """(((x @ rhs[0]) @ rhs[1]) ...) with rhs fully resident in VMEM."""
    kernel = _CHAIN_KERNELS[len(rhs)]
    m, k0 = x.shape
    n = rhs[-1].shape[1]
    grid_m = m // tm

    in_specs = [pl.BlockSpec((tm, k0), lambda i: (i, 0))]
    for r in rhs:
        if single_buffer:
            # Constant index_map -> never re-fetched; one buffer halves the
            # resident footprint of the weight chain.
            spec = pl.BlockSpec(r.shape, lambda i: (0, 0),
                                pipeline_mode=pl.Buffered(1))
        else:
            spec = pl.BlockSpec(r.shape, lambda i: (0, 0))
        in_specs.append(spec)

    dims = [k0] + [r.shape[1] for r in rhs]
    flops = 2 * m * sum(dims[i] * dims[i + 1] for i in range(len(rhs)))
    bytes_accessed = (
        x.size * x.dtype.itemsize
        + sum(r.size * r.dtype.itemsize for r in rhs)
        + m * n * jnp.dtype(out_dtype).itemsize
    )

    return pl.pallas_call(
        kernel,
        out_shape=jax.ShapeDtypeStruct((m, n), out_dtype),
        grid_spec=pltpu.PrefetchScalarGridSpec(
            num_scalar_prefetch=0,
            grid=(grid_m,),
            in_specs=in_specs,
            out_specs=pl.BlockSpec((tm, n), lambda i: (i, 0)),  # lane-dense slab
        ),
        compiler_params=pltpu.CompilerParams(
            dimension_semantics=("parallel",),
            vmem_limit_bytes=vmem_limit_bytes,
        ),
        cost_estimate=pl.CostEstimate(
            flops=flops, transcendentals=0, bytes_accessed=bytes_accessed
        ),
    )(x, *rhs)


def _run_fused_chain(x, *rhs, tm, out_dtype, vmem_limit_bytes):
    try:
        return _fused_chain(x, *rhs, tm=tm, single_buffer=True,
                            out_dtype=out_dtype,
                            vmem_limit_bytes=vmem_limit_bytes)
    except Exception:
        # pipeline_mode / single-buffering unsupported on this build: retry
        # with default double-buffering of the resident operands.
        return _fused_chain(x, *rhs, tm=tm, single_buffer=False,
                            out_dtype=out_dtype,
                            vmem_limit_bytes=vmem_limit_bytes)


# ----------------------------------------------------------------------------
# Tiled matmul (fallback for operands too large to keep resident in VMEM).
# ----------------------------------------------------------------------------
def _tiled_matmul_kernel(a_ref, b_ref, o_ref, acc_ref):
    @pl.when(pl.program_id(2) == 0)
    def _():
        acc_ref[...] = jnp.zeros_like(acc_ref)

    acc_ref[...] += jnp.dot(a_ref[...], b_ref[...],
                            preferred_element_type=jnp.float32)

    @pl.when(pl.program_id(2) == pl.num_programs(2) - 1)
    def _():
        o_ref[...] = acc_ref[...].astype(o_ref.dtype)


@functools.partial(
    jax.jit, static_argnames=("tm", "tn", "tk", "out_dtype", "vmem_limit_bytes"))
def _tiled_matmul(a, b, *, tm, tn, tk, out_dtype, vmem_limit_bytes):
    m, k = a.shape
    _, n = b.shape
    return pl.pallas_call(
        _tiled_matmul_kernel,
        out_shape=jax.ShapeDtypeStruct((m, n), out_dtype),
        grid_spec=pltpu.PrefetchScalarGridSpec(
            num_scalar_prefetch=0,
            grid=(m // tm, n // tn, k // tk),
            in_specs=[
                pl.BlockSpec((tm, tk), lambda i, j, kk: (i, kk)),
                pl.BlockSpec((tk, tn), lambda i, j, kk: (kk, j)),
            ],
            out_specs=pl.BlockSpec((tm, tn), lambda i, j, kk: (i, j)),
            scratch_shapes=[pltpu.VMEM((tm, tn), jnp.float32)],
        ),
        compiler_params=pltpu.CompilerParams(
            dimension_semantics=("parallel", "parallel", "arbitrary"),
            vmem_limit_bytes=vmem_limit_bytes,
        ),
        cost_estimate=pl.CostEstimate(
            flops=2 * m * n * k,
            transcendentals=0,
            bytes_accessed=(a.size * a.dtype.itemsize
                            + b.size * b.dtype.itemsize
                            + m * n * jnp.dtype(out_dtype).itemsize),
        ),
    )(a, b)


def _pallas_matmul(a, b, *, out_dtype, vmem_limit_bytes, tiles):
    m, k = a.shape
    k2, n = b.shape
    assert k == k2, (a.shape, b.shape)
    tm, tn, tk = tiles
    tm = min(tm, _round_up(m, 8))
    tn = min(tn, _round_up(n, 128))
    tk = min(tk, _round_up(k, 128))
    mp, kp, np_ = _round_up(m, tm), _round_up(k, tk), _round_up(n, tn)
    a = _prep(a, mp, kp, a.dtype)
    b = _prep(b, kp, np_, b.dtype)
    out = _tiled_matmul(a, b, tm=tm, tn=tn, tk=tk, out_dtype=out_dtype,
                        vmem_limit_bytes=vmem_limit_bytes)
    if (mp, np_) != (m, n):
        out = out[:m, :n]
    return out


# ----------------------------------------------------------------------------
# Public entry point: Pallas equivalent of ThreeMM.forward.
# ----------------------------------------------------------------------------
def three_mm(input1, input2, input3, input4, *, tm=512,
             compute_dtype=jnp.bfloat16):
    M, K1 = input1.shape
    K1b, K2 = input2.shape
    K2b, K3 = input3.shape
    K3b, N = input4.shape
    assert K1 == K1b and K2 == K2b and K3 == K3b

    out_dtype = input1.dtype
    cd = jnp.dtype(compute_dtype)
    cds = cd.itemsize

    capacity = _vmem_capacity_bytes()
    vmem_limit = int(capacity * 0.80)   # ~51 MiB on v7x, ~102 MiB on v5e/v6e
    budget = int(capacity * 0.60)       # fused-path gate, keeps ~20% headroom

    # Lane/contraction dims zero-padded to 128 multiples (exact for matmul).
    K1p, K2p, K3p, Np = (_round_up(d, 128) for d in (K1, K2, K3, N))
    tm_eff = _pick_tm(M, tm)
    Mp = _round_up(M, tm_eff)
    tw = _divisor_tile(K1p, tm)

    a_p = _prep(input1, Mp, K1p, cd)
    b_p = _prep(input2, K1p, K2p, cd)
    c_p = _prep(input3, K2p, K3p, cd)
    d_p = _prep(input4, K3p, Np, cd)

    # FLOP comparison: chained ((A@B)@C)@D vs hoisted A @ ((B@C)@D).
    chained_flops = Mp * (K1p * K2p + K2p * K3p + K3p * Np)
    hoisted_flops = K1p * K2p * K3p + K1p * K3p * Np + Mp * K1p * Np
    prefer_hoist = hoisted_flops < chained_flops

    # VMEM footprints: resident RHS single-buffered, panels double-buffered,
    # on-chip intermediates in f32 + compute dtype.
    est_chain3 = (2 * tm_eff * K1p * cds
                  + (K1p * K2p + K2p * K3p + K3p * Np) * cds
                  + 2 * tm_eff * Np * 4
                  + tm_eff * (K2p + K3p) * (4 + cds))
    est_w = (2 * tw * K2p * cds
             + (K2p * K3p + K3p * Np) * cds
             + 2 * tw * Np * cds
             + tw * K3p * (4 + cds))
    est_aw = (2 * tm_eff * K1p * cds
              + K1p * Np * cds
              + 2 * tm_eff * Np * 4)
    est_chain2 = (2 * tm_eff * K2p * cds
                  + (K2p * K3p + K3p * Np) * cds
                  + 2 * tm_eff * Np * 4
                  + tm_eff * K3p * (4 + cds))

    chain3_fits = est_chain3 <= budget
    hoist_fits = est_w <= budget

    strategies = []
    if prefer_hoist:
        if hoist_fits:
            strategies.append("hoist")
        if chain3_fits:
            strategies.append("chain3")
    else:
        if chain3_fits:
            strategies.append("chain3")
        if hoist_fits:
            strategies.append("hoist")
    strategies.append("fallback")

    # Bigger fallback tiles on 128 MiB parts (v5e/v6e), conservative on v7x.
    tiles = (512, 1024, 1024) if capacity >= 96 * _MIB else (512, 512, 512)

    out = None
    last_err = None
    for strat in strategies:
        try:
            if strat == "chain3":
                out = _run_fused_chain(a_p, b_p, c_p, d_p, tm=tm_eff,
                                       out_dtype=out_dtype,
                                       vmem_limit_bytes=vmem_limit)
            elif strat == "hoist":
                # M-independent W = (B@C)@D computed once; per-panel work is A @ W.
                w = _run_fused_chain(b_p, c_p, d_p, tm=tw,
                                     out_dtype=compute_dtype,
                                     vmem_limit_bytes=vmem_limit)
                if est_aw <= budget:
                    out = _run_fused_chain(a_p, w, tm=tm_eff,
                                           out_dtype=out_dtype,
                                           vmem_limit_bytes=vmem_limit)
                else:
                    out = _pallas_matmul(a_p, w, out_dtype=out_dtype,
                                         vmem_limit_bytes=vmem_limit, tiles=tiles)
            else:
                # Partially fused fallback: only ONE HBM intermediate (out1);
                # (out1@C)@D stays fused whenever C/D fit in VMEM.
                out1 = _pallas_matmul(a_p, b_p, out_dtype=compute_dtype,
                                      vmem_limit_bytes=vmem_limit, tiles=tiles)
                if est_chain2 <= budget:
                    out = _run_fused_chain(out1, c_p, d_p, tm=tm_eff,
                                           out_dtype=out_dtype,
                                           vmem_limit_bytes=vmem_limit)
                else:
                    out2 = _pallas_matmul(out1, c_p, out_dtype=compute_dtype,
                                          vmem_limit_bytes=vmem_limit, tiles=tiles)
                    out = _pallas_matmul(out2, d_p, out_dtype=out_dtype,
                                         vmem_limit_bytes=vmem_limit, tiles=tiles)
            break
        except Exception as e:   # graceful degradation (lowering / VMEM OOM)
            last_err = e
            out = None
    if out is None:
        raise last_err

    if out.shape != (M, N):
        out = out[:M, :N]
    return out


def _rel_err(x, ref):
    x = x.astype(jnp.float32)
    ref = ref.astype(jnp.float32)
    return float(jnp.linalg.norm(x - ref) / (jnp.linalg.norm(ref) + 1e-30))


def _ref_mm(a, b):
    return jnp.matmul(a, b, precision=jax.lax.Precision.HIGHEST)


if __name__ == "__main__":
    key = jax.random.PRNGKey(0)
    k1, k2, k3, k4 = jax.random.split(key, 4)

    # Small, tile-aligned shapes; tm is capped so the M grid has >=2 panels
    # (keeps both v7x TensorCores busy).
    M, K1, K2, K3, N = 512, 256, 128, 256, 384
    input1 = jax.random.normal(k1, (M, K1), dtype=jnp.float32)
    input2 = jax.random.normal(k2, (K1, K2), dtype=jnp.float32)
    input3 = jax.random.normal(k3, (K2, K3), dtype=jnp.float32)
    input4 = jax.random.normal(k4, (K3, N), dtype=jnp.float32)

    out = jax.block_until_ready(three_mm(input1, input2, input3, input4))
    ref = _ref_mm(_ref_mm(_ref_mm(input1, input2), input3), input4)
    assert out.shape == ref.shape, (out.shape, ref.shape)
    err = _rel_err(out, ref)
    assert err < 2e-2, f"relative error too large: {err}"

    # Ragged (non-128-multiple) shapes exercise padding + the hoisted-W path.
    r1 = jax.random.normal(k1, (200, 100), dtype=jnp.float32)
    r2 = jax.random.normal(k2, (100, 72), dtype=jnp.float32)
    r3 = jax.random.normal(k3, (72, 56), dtype=jnp.float32)
    r4 = jax.random.normal(k4, (56, 40), dtype=jnp.float32)
    rout = jax.block_until_ready(three_mm(r1, r2, r3, r4))
    rref = _ref_mm(_ref_mm(_ref_mm(r1, r2), r3), r4)
    assert rout.shape == rref.shape, (rout.shape, rref.shape)
    rerr = _rel_err(rout, rref)
    assert rerr < 2e-2, f"relative error too large (ragged): {rerr}"

    print("KERNEL_OK")
</pallas_src>

<mosaic_0001>
module attributes {stable_mosaic.version = 11 : i64} {
  func.func @_mm3_kernel(%arg0: i32, %arg1: memref<256x256xbf16, #tpu.memory_space<vmem>>, %arg2: memref<256x128xbf16, #tpu.memory_space<vmem>>, %arg3: memref<128x256xbf16, #tpu.memory_space<vmem>>, %arg4: memref<256x384xbf16, #tpu.memory_space<vmem>>, %arg5: memref<256x384xf32, #tpu.memory_space<vmem>>) attributes {dimension_semantics = [#tpu.dimension_semantics<parallel>], iteration_bounds = array<i64: 2>, scalar_prefetch = 0 : i64, scratch_operands = 0 : i64, tpu.core_type = #tpu.core_type<tc>, window_params = [{transform_indices = @transform_0, window_bounds = array<i64: 256, 256>}, {pipeline_mode = #tpu.pipeline_mode<synchronous>, transform_indices = @transform_1, window_bounds = array<i64: 256, 128>}, {pipeline_mode = #tpu.pipeline_mode<synchronous>, transform_indices = @transform_2, window_bounds = array<i64: 128, 256>}, {pipeline_mode = #tpu.pipeline_mode<synchronous>, transform_indices = @transform_3, window_bounds = array<i64: 256, 384>}, {transform_indices = @transform_4, window_bounds = array<i64: 256, 384>}]} {
    %c0 = arith.constant 0 : index
    %c0_0 = arith.constant 0 : index
    %0 = vector.load %arg1[%c0, %c0_0] : memref<256x256xbf16, #tpu.memory_space<vmem>>, vector<256x256xbf16>
    %c0_1 = arith.constant 0 : index
    %c0_2 = arith.constant 0 : index
    %1 = vector.load %arg2[%c0_1, %c0_2] : memref<256x128xbf16, #tpu.memory_space<vmem>>, vector<256x128xbf16>
    %cst = arith.constant dense<0.000000e+00> : vector<256x128xf32>
    %2 = tpu.matmul %0, %1, %cst {dimension_numbers = #tpu.dot_dimension_numbers<[1], [0], [0], [1], [0, 0, 1, 1], [], []>} : vector<256x256xbf16>, vector<256x128xbf16>, vector<256x128xf32> -> vector<256x128xf32>
    %3 = arith.truncf %2 : vector<256x128xf32> to vector<256x128xbf16>
    %c0_3 = arith.constant 0 : index
    %c0_4 = arith.constant 0 : index
    %4 = vector.load %arg3[%c0_3, %c0_4] : memref<128x256xbf16, #tpu.memory_space<vmem>>, vector<128x256xbf16>
    %cst_5 = arith.constant dense<0.000000e+00> : vector<256x256xf32>
    %5 = tpu.matmul %3, %4, %cst_5 {dimension_numbers = #tpu.dot_dimension_numbers<[1], [0], [0], [1], [0, 0, 1, 1], [], []>} : vector<256x128xbf16>, vector<128x256xbf16>, vector<256x256xf32> -> vector<256x256xf32>
    %6 = arith.truncf %5 : vector<256x256xf32> to vector<256x256xbf16>
    %c0_6 = arith.constant 0 : index
    %c0_7 = arith.constant 0 : index
    %7 = vector.load %arg4[%c0_6, %c0_7] : memref<256x384xbf16, #tpu.memory_space<vmem>>, vector<256x384xbf16>
    %cst_8 = arith.constant dense<0.000000e+00> : vector<256x384xf32>
    %8 = tpu.matmul %6, %7, %cst_8 {dimension_numbers = #tpu.dot_dimension_numbers<[1], [0], [0], [1], [0, 0, 1, 1], [], []>} : vector<256x256xbf16>, vector<256x384xbf16>, vector<256x384xf32> -> vector<256x384xf32>
    %c0_9 = arith.constant 0 : index
    %c0_10 = arith.constant 0 : index
    %9 = vector.load %arg5[%c0_9, %c0_10] : memref<256x384xf32, #tpu.memory_space<vmem>>, vector<256x384xf32>
    tpu.vector_store %arg5[%c0_9, %c0_10], %8 {strides = array<i32>} : memref<256x384xf32, #tpu.memory_space<vmem>>, vector<256x384xf32>,
    return
  }
  func.func @transform_0(%arg0: i32) -> (i32, i32) {
    %c0_i32 = arith.constant 0 : i32
    %c0_i32_0 = arith.constant 0 : i32
    return %arg0, %c0_i32 : i32, i32
  }
  func.func @transform_1(%arg0: i32) -> (i32, i32) {
    %c0_i32 = arith.constant 0 : i32
    %c0_i32_0 = arith.constant 0 : i32
    %c0_i32_1 = arith.constant 0 : i32
    return %c0_i32, %c0_i32_0 : i32, i32
  }
  func.func @transform_2(%arg0: i32) -> (i32, i32) {
    %c0_i32 = arith.constant 0 : i32
    %c0_i32_0 = arith.constant 0 : i32
    %c0_i32_1 = arith.constant 0 : i32
    return %c0_i32, %c0_i32_0 : i32, i32
  }
  func.func @transform_3(%arg0: i32) -> (i32, i32) {
    %c0_i32 = arith.constant 0 : i32
    %c0_i32_0 = arith.constant 0 : i32
    %c0_i32_1 = arith.constant 0 : i32
    return %c0_i32, %c0_i32_0 : i32, i32
  }
  func.func @transform_4(%arg0: i32) -> (i32, i32) {
    %c0_i32 = arith.constant 0 : i32
    %c0_i32_0 = arith.constant 0 : i32
    return %arg0, %c0_i32 : i32, i32
  }
}

module attributes {stable_mosaic.version = 11 : i64} {
  func.func @_mm3_kernel(%arg0: i32, %arg1: memref<256x256xbf16, #tpu.memory_space<vmem>>, %arg2: memref<256x128xbf16, #tpu.memory_space<vmem>>, %arg3: memref<128x256xbf16, #tpu.memory_space<vmem>>, %arg4: memref<256x384xbf16, #tpu.memory_space<vmem>>, %arg5: memref<256x384xf32, #tpu.memory_space<vmem>>) attributes {dimension_semantics = [#tpu.dimension_semantics<parallel>], iteration_bounds = array<i64: 2>, scalar_prefetch = 0 : i64, scratch_operands = 0 : i64, tpu.core_type = #tpu.core_type<tc>, window_params = [{transform_indices = @transform_0, window_bounds = array<i64: 256, 256>}, {pipeline_mode = #tpu.pipeline_mode<synchronous>, transform_indices = @transform_1, window_bounds = array<i64: 256, 128>}, {pipeline_mode = #tpu.pipeline_mode<synchronous>, transform_indices = @transform_2, window_bounds = array<i64: 128, 256>}, {pipeline_mode = #tpu.pipeline_mode<synchronous>, transform_indices = @transform_3, window_bounds = array<i64: 256, 384>}, {transform_indices = @transform_4, window_bounds = array<i64: 256, 384>}]} {
    %c0 = arith.constant 0 : index
    %c0_0 = arith.constant 0 : index
    %0 = vector.load %arg1[%c0, %c0_0] : memref<256x256xbf16, #tpu.memory_space<vmem>>, vector<256x256xbf16>
    %c0_1 = arith.constant 0 : index
    %c0_2 = arith.constant 0 : index
    %1 = vector.load %arg2[%c0_1, %c0_2] : memref<256x128xbf16, #tpu.memory_space<vmem>>, vector<256x128xbf16>
    %cst = arith.constant dense<0.000000e+00> : vector<256x128xf32>
    %2 = tpu.matmul %0, %1, %cst {dimension_numbers = #tpu.dot_dimension_numbers<[1], [0], [0], [1], [0, 0, 1, 1], [], []>} : vector<256x256xbf16>, vector<256x128xbf16>, vector<256x128xf32> -> vector<256x128xf32>
    %3 = arith.truncf %2 : vector<256x128xf32> to vector<256x128xbf16>
    %c0_3 = arith.constant 0 : index
    %c0_4 = arith.constant 0 : index
    %4 = vector.load %arg3[%c0_3, %c0_4] : memref<128x256xbf16, #tpu.memory_space<vmem>>, vector<128x256xbf16>
    %cst_5 = arith.constant dense<0.000000e+00> : vector<256x256xf32>
    %5 = tpu.matmul %3, %4, %cst_5 {dimension_numbers = #tpu.dot_dimension_numbers<[1], [0], [0], [1], [0, 0, 1, 1], [], []>} : vector<256x128xbf16>, vector<128x256xbf16>, vector<256x256xf32> -> vector<256x256xf32>
    %6 = arith.truncf %5 : vector<256x256xf32> to vector<256x256xbf16>
    %c0_6 = arith.constant 0 : index
    %c0_7 = arith.constant 0 : index
    %7 = vector.load %arg4[%c0_6, %c0_7] : memref<256x384xbf16, #tpu.memory_space<vmem>>, vector<256x384xbf16>
    %cst_8 = arith.constant dense<0.000000e+00> : vector<256x384xf32>
    %8 = tpu.matmul %6, %7, %cst_8 {dimension_numbers = #tpu.dot_dimension_numbers<[1], [0], [0], [1], [0, 0, 1, 1], [], []>} : vector<256x256xbf16>, vector<256x384xbf16>, vector<256x384xf32> -> vector<256x384xf32>
    %c0_9 = arith.constant 0 : index
    %c0_10 = arith.constant 0 : index
    %9 = vector.load %arg5[%c0_9, %c0_10] : memref<256x384xf32, #tpu.memory_space<vmem>>, vector<256x384xf32>
    tpu.vector_store %arg5[%c0_9, %c0_10], %8 {strides = array<i32>} : memref<256x384xf32, #tpu.memory_space<vmem>>, vector<256x384xf32>,
    return
  }
  func.func @transform_0(%arg0: i32) -> (i32, i32) {
    %c0_i32 = arith.constant 0 : i32
    %c0_i32_0 = arith.constant 0 : i32
    return %arg0, %c0_i32 : i32, i32
  }
  func.func @transform_1(%arg0: i32) -> (i32, i32) {
    %c0_i32 = arith.constant 0 : i32
    %c0_i32_0 = arith.constant 0 : i32
    %c0_i32_1 = arith.constant 0 : i32
    return %c0_i32, %c0_i32_0 : i32, i32
  }
  func.func @transform_2(%arg0: i32) -> (i32, i32) {
    %c0_i32 = arith.constant 0 : i32
    %c0_i32_0 = arith.constant 0 : i32
    %c0_i32_1 = arith.constant 0 : i32
    return %c0_i32, %c0_i32_0 : i32, i32
  }
  func.func @transform_3(%arg0: i32) -> (i32, i32) {
    %c0_i32 = arith.constant 0 : i32
    %c0_i32_0 = arith.constant 0 : i32
    %c0_i32_1 = arith.constant 0 : i32
    return %c0_i32, %c0_i32_0 : i32, i32
  }
  func.func @transform_4(%arg0: i32) -> (i32, i32) {
    %c0_i32 = arith.constant 0 : i32
    %c0_i32_0 = arith.constant 0 : i32
    return %arg0, %c0_i32 : i32, i32
  }
}

module attributes {stable_mosaic.version = 11 : i64} {
  func.func @_mm2_kernel(%arg0: i32, %arg1: memref<256x128xbf16, #tpu.memory_space<vmem>>, %arg2: memref<128x256xbf16, #tpu.memory_space<vmem>>, %arg3: memref<256x384xbf16, #tpu.memory_space<vmem>>, %arg4: memref<256x384xbf16, #tpu.memory_space<vmem>>) attributes {dimension_semantics = [#tpu.dimension_semantics<parallel>], iteration_bounds = array<i64: 1>, scalar_prefetch = 0 : i64, scratch_operands = 0 : i64, tpu.core_type = #tpu.core_type<tc>, window_params = [{transform_indices = @transform_0, window_bounds = array<i64: 256, 128>}, {pipeline_mode = #tpu.pipeline_mode<synchronous>, transform_indices = @transform_1, window_bounds = array<i64: 128, 256>}, {pipeline_mode = #tpu.pipeline_mode<synchronous>, transform_indices = @transform_2, window_bounds = array<i64: 256, 384>}, {transform_indices = @transform_3, window_bounds = array<i64: 256, 384>}]} {
    %c0 = arith.constant 0 : index
    %c0_0 = arith.constant 0 : index
    %0 = vector.load %arg1[%c0, %c0_0] : memref<256x128xbf16, #tpu.memory_space<vmem>>, vector<256x128xbf16>
    %c0_1 = arith.constant 0 : index
    %c0_2 = arith.constant 0 : index
    %1 = vector.load %arg2[%c0_1, %c0_2] : memref<128x256xbf16, #tpu.memory_space<vmem>>, vector<128x256xbf16>
    %cst = arith.constant dense<0.000000e+00> : vector<256x256xf32>
    %2 = tpu.matmul %0, %1, %cst {dimension_numbers = #tpu.dot_dimension_numbers<[1], [0], [0], [1], [0, 0, 1, 1], [], []>} : vector<256x128xbf16>, vector<128x256xbf16>, vector<256x256xf32> -> vector<256x256xf32>
    %3 = arith.truncf %2 : vector<256x256xf32> to vector<256x256xbf16>
    %c0_3 = arith.constant 0 : index
    %c0_4 = arith.constant 0 : index
    %4 = vector.load %arg3[%c0_3, %c0_4] : memref<256x384xbf16, #tpu.memory_space<vmem>>, vector<256x384xbf16>
    %cst_5 = arith.constant dense<0.000000e+00> : vector<256x384xf32>
    %5 = tpu.matmul %3, %4, %cst_5 {dimension_numbers = #tpu.dot_dimension_numbers<[1], [0], [0], [1], [0, 0, 1, 1], [], []>} : vector<256x256xbf16>, vector<256x384xbf16>, vector<256x384xf32> -> vector<256x384xf32>
    %6 = arith.truncf %5 : vector<256x384xf32> to vector<256x384xbf16>
    %c0_6 = arith.constant 0 : index
    %c0_7 = arith.constant 0 : index
    %7 = vector.load %arg4[%c0_6, %c0_7] : memref<256x384xbf16, #tpu.memory_space<vmem>>, vector<256x384xbf16>
    tpu.vector_store %arg4[%c0_6, %c0_7], %6 {strides = array<i32>} : memref<256x384xbf16, #tpu.memory_space<vmem>>, vector<256x384xbf16>,
    return
  }
  func.func @transform_0(%arg0: i32) -> (i32, i32) {
    %c0_i32 = arith.constant 0 : i32
    %c0_i32_0 = arith.constant 0 : i32
    return %arg0, %c0_i32 : i32, i32
  }
  func.func @transform_1(%arg0: i32) -> (i32, i32) {
    %c0_i32 = arith.constant 0 : i32
    %c0_i32_0 = arith.constant 0 : i32
    %c0_i32_1 = arith.constant 0 : i32
    return %c0_i32, %c0_i32_0 : i32, i32
  }
  func.func @transform_2(%arg0: i32) -> (i32, i32) {
    %c0_i32 = arith.constant 0 : i32
    %c0_i32_0 = arith.constant 0 : i32
    %c0_i32_1 = arith.constant 0 : i32
    return %c0_i32, %c0_i32_0 : i32, i32
  }
  func.func @transform_3(%arg0: i32) -> (i32, i32) {
    %c0_i32 = arith.constant 0 : i32
    %c0_i32_0 = arith.constant 0 : i32
    return %arg0, %c0_i32 : i32, i32
  }
}

module attributes {stable_mosaic.version = 11 : i64} {
  func.func @_mm2_kernel(%arg0: i32, %arg1: memref<256x128xbf16, #tpu.memory_space<vmem>>, %arg2: memref<128x256xbf16, #tpu.memory_space<vmem>>, %arg3: memref<256x384xbf16, #tpu.memory_space<vmem>>, %arg4: memref<256x384xbf16, #tpu.memory_space<vmem>>) attributes {dimension_semantics = [#tpu.dimension_semantics<parallel>], iteration_bounds = array<i64: 1>, scalar_prefetch = 0 : i64, scratch_operands = 0 : i64, tpu.core_type = #tpu.core_type<tc>, window_params = [{transform_indices = @transform_0, window_bounds = array<i64: 256, 128>}, {pipeline_mode = #tpu.pipeline_mode<synchronous>, transform_indices = @transform_1, window_bounds = array<i64: 128, 256>}, {pipeline_mode = #tpu.pipeline_mode<synchronous>, transform_indices = @transform_2, window_bounds = array<i64: 256, 384>}, {transform_indices = @transform_3, window_bounds = array<i64: 256, 384>}]} {
    %c0 = arith.constant 0 : index
    %c0_0 = arith.constant 0 : index
    %0 = vector.load %arg1[%c0, %c0_0] : memref<256x128xbf16, #tpu.memory_space<vmem>>, vector<256x128xbf16>
    %c0_1 = arith.constant 0 : index
    %c0_2 = arith.constant 0 : index
    %1 = vector.load %arg2[%c0_1, %c0_2] : memref<128x256xbf16, #tpu.memory_space<vmem>>, vector<128x256xbf16>
    %cst = arith.constant dense<0.000000e+00> : vector<256x256xf32>
    %2 = tpu.matmul %0, %1, %cst {dimension_numbers = #tpu.dot_dimension_numbers<[1], [0], [0], [1], [0, 0, 1, 1], [], []>} : vector<256x128xbf16>, vector<128x256xbf16>, vector<256x256xf32> -> vector<256x256xf32>
    %3 = arith.truncf %2 : vector<256x256xf32> to vector<256x256xbf16>
    %c0_3 = arith.constant 0 : index
    %c0_4 = arith.constant 0 : index
    %4 = vector.load %arg3[%c0_3, %c0_4] : memref<256x384xbf16, #tpu.memory_space<vmem>>, vector<256x384xbf16>
    %cst_5 = arith.constant dense<0.000000e+00> : vector<256x384xf32>
    %5 = tpu.matmul %3, %4, %cst_5 {dimension_numbers = #tpu.dot_dimension_numbers<[1], [0], [0], [1], [0, 0, 1, 1], [], []>} : vector<256x256xbf16>, vector<256x384xbf16>, vector<256x384xf32> -> vector<256x384xf32>
    %6 = arith.truncf %5 : vector<256x384xf32> to vector<256x384xbf16>
    %c0_6 = arith.constant 0 : index
    %c0_7 = arith.constant 0 : index
    %7 = vector.load %arg4[%c0_6, %c0_7] : memref<256x384xbf16, #tpu.memory_space<vmem>>, vector<256x384xbf16>
    tpu.vector_store %arg4[%c0_6, %c0_7], %6 {strides = array<i32>} : memref<256x384xbf16, #tpu.memory_space<vmem>>, vector<256x384xbf16>,
    return
  }
  func.func @transform_0(%arg0: i32) -> (i32, i32) {
    %c0_i32 = arith.constant 0 : i32
    %c0_i32_0 = arith.constant 0 : i32
    return %arg0, %c0_i32 : i32, i32
  }
  func.func @transform_1(%arg0: i32) -> (i32, i32) {
    %c0_i32 = arith.constant 0 : i32
    %c0_i32_0 = arith.constant 0 : i32
    %c0_i32_1 = arith.constant 0 : i32
    return %c0_i32, %c0_i32_0 : i32, i32
  }
  func.func @transform_2(%arg0: i32) -> (i32, i32) {
    %c0_i32 = arith.constant 0 : i32
    %c0_i32_0 = arith.constant 0 : i32
    %c0_i32_1 = arith.constant 0 : i32
    return %c0_i32, %c0_i32_0 : i32, i32
  }
  func.func @transform_3(%arg0: i32) -> (i32, i32) {
    %c0_i32 = arith.constant 0 : i32
    %c0_i32_0 = arith.constant 0 : i32
    return %arg0, %c0_i32 : i32, i32
  }
}

module attributes {stable_mosaic.version = 11 : i64} {
  func.func @_tiled_matmul_kernel(%arg0: i32, %arg1: i32, %arg2: i32, %arg3: memref<512x256xbf16, #tpu.memory_space<vmem>>, %arg4: memref<256x128xbf16, #tpu.memory_space<vmem>>, %arg5: memref<512x128xbf16, #tpu.memory_space<vmem>>, %arg6: memref<512x128xf32, #tpu.memory_space<vmem>>) attributes {dimension_semantics = [#tpu.dimension_semantics<parallel>, #tpu.dimension_semantics<parallel>, #tpu.dimension_semantics<arbitrary>], iteration_bounds = array<i64: 1, 1, 1>, scalar_prefetch = 0 : i64, scratch_operands = 1 : i64, tpu.core_type = #tpu.core_type<tc>, window_params = [{transform_indices = @transform_0, window_bounds = array<i64: 512, 256>}, {transform_indices = @transform_1, window_bounds = array<i64: 256, 128>}, {transform_indices = @transform_2, window_bounds = array<i64: 512, 128>}]} {
    %c0_i32 = arith.constant 0 : i32
    %0 = arith.cmpi eq, %arg2, %c0_i32 : i32
    %1 = arith.extui %0 : i1 to i32
    %c0_i32_0 = arith.constant 0 : i32
    %2 = arith.cmpi ne, %1, %c0_i32_0 : i32
    scf.if %2 {
      %cst_10 = arith.constant 0.000000e+00 : f32
      %12 = vector.broadcast %cst_10 : f32 to vector<512x128xf32>
      %c0_11 = arith.constant 0 : index
      %c0_12 = arith.constant 0 : index
      %13 = vector.load %arg6[%c0_11, %c0_12] : memref<512x128xf32, #tpu.memory_space<vmem>>, vector<512x128xf32>
      tpu.vector_store %arg6[%c0_11, %c0_12], %12 {strides = array<i32>} : memref<512x128xf32, #tpu.memory_space<vmem>>, vector<512x128xf32>,
    } else {
    }
    %c0 = arith.constant 0 : index
    %c0_1 = arith.constant 0 : index
    %3 = vector.load %arg6[%c0, %c0_1] : memref<512x128xf32, #tpu.memory_space<vmem>>, vector<512x128xf32>
    %c0_2 = arith.constant 0 : index
    %c0_3 = arith.constant 0 : index
    %4 = vector.load %arg3[%c0_2, %c0_3] : memref<512x256xbf16, #tpu.memory_space<vmem>>, vector<512x256xbf16>
    %c0_4 = arith.constant 0 : index
    %c0_5 = arith.constant 0 : index
    %5 = vector.load %arg4[%c0_4, %c0_5] : memref<256x128xbf16, #tpu.memory_space<vmem>>, vector<256x128xbf16>
    %cst = arith.constant dense<0.000000e+00> : vector<512x128xf32>
    %6 = tpu.matmul %4, %5, %cst {dimension_numbers = #tpu.dot_dimension_numbers<[1], [0], [0], [1], [0, 0, 1, 1], [], []>} : vector<512x256xbf16>, vector<256x128xbf16>, vector<512x128xf32> -> vector<512x128xf32>
    %7 = arith.addf %3, %6 : vector<512x128xf32>
    %c0_6 = arith.constant 0 : index
    %c0_7 = arith.constant 0 : index
    %8 = vector.load %arg6[%c0_6, %c0_7] : memref<512x128xf32, #tpu.memory_space<vmem>>, vector<512x128xf32>
    tpu.vector_store %arg6[%c0_6, %c0_7], %7 {strides = array<i32>} : memref<512x128xf32, #tpu.memory_space<vmem>>, vector<512x128xf32>,
    %c0_i32_8 = arith.constant 0 : i32
    %9 = arith.cmpi eq, %arg2, %c0_i32_8 : i32
    %10 = arith.extui %9 : i1 to i32
    %c0_i32_9 = arith.constant 0 : i32
    %11 = arith.cmpi ne, %10, %c0_i32_9 : i32
    scf.if %11 {
      %c0_10 = arith.constant 0 : index
      %c0_11 = arith.constant 0 : index
      %12 = vector.load %arg6[%c0_10, %c0_11] : memref<512x128xf32, #tpu.memory_space<vmem>>, vector<512x128xf32>
      %13 = arith.truncf %12 : vector<512x128xf32> to vector<512x128xbf16>
      %c0_12 = arith.constant 0 : index
      %c0_13 = arith.constant 0 : index
      %14 = vector.load %arg5[%c0_12, %c0_13] : memref<512x128xbf16, #tpu.memory_space<vmem>>, vector<512x128xbf16>
      tpu.vector_store %arg5[%c0_12, %c0_13], %13 {strides = array<i32>} : memref<512x128xbf16, #tpu.memory_space<vmem>>, vector<512x128xbf16>,
    } else {
    }
    return
  }
  func.func @transform_0(%arg0: i32, %arg1: i32, %arg2: i32) -> (i32, i32) {
    %c0_i32 = arith.constant 0 : i32
    return %arg0, %arg2 : i32, i32
  }
  func.func @transform_1(%arg0: i32, %arg1: i32, %arg2: i32) -> (i32, i32) {
    %c0_i32 = arith.constant 0 : i32
    return %arg2, %arg1 : i32, i32
  }
  func.func @transform_2(%arg0: i32, %arg1: i32, %arg2: i32) -> (i32, i32) {
    %c0_i32 = arith.constant 0 : i32
    return %arg0, %arg1 : i32, i32
  }
}

</mosaic_0001>

<bundles_post_ra>
// kernel: _fused_chain.1
= control target key start
LH: loop header
LB: loop body
LE: loop exit
PB: predicated region body
PF: predicated region fallthrough
CT: control target
= control target key end

     0   :  { %9 = vsyncpa [#allocation3], 0  ;;  %s3142_s0 = inlined_call_operand.hbm [shape: bf16[512,256], index: 0, kind: input, shape index: {}]   ;;  %s3143_s1 = inlined_call_operand.hbm [shape: bf16[256,128], index: 1, kind: input, shape index: {}]   ;;  %s3144_s2 = inlined_call_operand.hbm [shape: bf16[128,256], index: 2, kind: input, shape index: {}]   ;;  %s3145_s3 = inlined_call_operand.hbm [shape: bf16[256,384], index: 3, kind: input, shape index: {}]   ;;  %s3146_s4 = inlined_call_operand.hbm [shape: f32[512,384], index: 4, kind: output, shape index: {}]  }
   0x1   :  { %11 = vsyncpa [#allocation3 + $0x1], 0 }
   0x2   :  { %12 = vsyncpa [#allocation6], 0 }
   0x3   :  { %13 = vsyncpa [#allocation9], 0 }
   0x4   :  { %14 = vsyncpa [#allocation4], 0 }
   0x5   :  { %16 = vsyncpa [#allocation4 + $0x1], 0  ;;  %s2786_s15 = smov 0   ;;  %s2788_s16 = smov 0  }
   0x6   :  { %s2790_s17 = smov 0   ;;  %s2792_s18 = smov 0  }
   0x7 LB: > { %s2807_s19 = sadd.s32 4294967295, %s2745_s18   ;;  %s1969_s20 = sadd.s32 4294967294, %s2745_s18   ;;  %s2745_s18 = sphi %s2792_s18, %s3170_s18   ;;  %s2741_s17 = sphi %s2790_s17, %s3169_s17   ;;  %s2737_s16 = sphi %s2788_s16, %s3168_s16   ;;  %s2733_s15 = sphi %s2786_s15, %s3167_s15  }
   0x8   : > { %p42_p0 = scmp.ne.s32.totalorder %s2737_s16, %s2733_s15  ;;  %p3147_p1 = scmp.eq.s32.totalorder %s2807_s19, 0 }
   0x9   : > { %p135_p3 = scmp.eq.s32.totalorder %s1969_s20, 1  ;;  %p1970_p5 = scmp.ge.s32.totalorder %s2745_s18, 1 }
   0xa   : > { %p2816_p4 = por %p3147_p1, %p42_p0  ;;  %p142_p7 = scmp.lt.s32.totalorder %s2745_s18, 3 }
   0xb   : > { %p2821_p6 = por %p135_p3, %p42_p0  ;;  %s2747_s24 = smov [#allocation5]  }
   0xc   : > { %s3151_s21 = scalar_select %p2816_p4, 1, 0 }
   0xd   : > { %s3152_s22 = scalar_select %p2821_p6, 1, 0 }
   0xe   : > { %p2826_p8 = pnand %p1970_p5, %p142_p7  ;;  %s154_s25 = sshll.u32 %s2747_s24, 4  ;;  %s155_s25 = int_to_ptr.vmem [resolvable:$true] %s154_s25 }
   0xf   : > { %s2748_s27 = smov [#allocation7]   ;;  %s2578_s29 = scalar_lea.vmem %s155_s25, 2048 }
  0x10   : > { %s3153_s23 = scalar_select %p2826_p8, 1, 0 }
  0x11   : > { %p2345_p9 = pneg %p2826_p8  ;;  %s167_s28 = sshll.u32 %s2748_s27, 4  ;;  %s168_s28 = int_to_ptr.vmem [resolvable:$true] %s167_s28 }
  0x12   : > { %p2579_p13 = scmp.ne.s32.totalorder %s155_s25, %s2578_s29  ;;  %p2586_p5 = scmp.lt.s32.totalorder %s155_s25, %s155_s25 }
  0x13   : > { %p2835_p11 = pnand %p2345_p9, %p3147_p1  ;;  %p2587_p7 = scmp.lt.s32.totalorder %s2578_s29, %s2578_s29 }
  0x15   : > { %p2569_p12 = pneg %p2835_p11  ;;  %p2588_p10 = por %p2587_p7, %p2586_p5 }
  0x17   : > { %p2581_p0 = pnand %p2579_p13, %p2569_p12 }
  0x19   : > { %p2582_p3 = pneg %p2581_p0 }
  0x1b   : > { %p2589_p9 = pnand %p2588_p10, %p2582_p3 }
  0x1d   : > { %2592 = shalt.err (!%p2589_p9)
}
  0x1e   : > { %s2749_s30 = smov 64   ;;  %s2750_s5 = smov 4  }
  0x1f   : > { %2348 = dma.hbm_to_vmem [thread:$0]  (!%p2835_p11), %s3143_s1, 2048, %s155_s25, [#allocation6], %s2749_s30, %s2749_s30, %s2750_s5  }
  0x20   : > { %s2604_s8 = scalar_lea.vmem %s168_s28, 2048  ;;  %p2612_p2 = scmp.lt.s32.totalorder %s168_s28, %s168_s28 }
  0x21   : > { %p2605_p1 = scmp.ne.s32.totalorder %s168_s28, %s2604_s8  ;;  %p2613_p6 = scmp.lt.s32.totalorder %s2604_s8, %s2604_s8 }
  0x23   : > { %p2607_p13 = pnand %p2605_p1, %p2569_p12  ;;  %p2614_p5 = por %p2613_p6, %p2612_p2 }
  0x25   : > { %p2608_p0 = pneg %p2607_p13 }
  0x27   : > { %p2615_p10 = pnand %p2614_p5, %p2608_p0 }
  0x29   : > { %2618 = shalt.err (!%p2615_p10)
}
  0x2a   : > { %s2751_s9 = smov 128   ;;  %s2752_s10 = smov 8  }
  0x2b   : > { %2351 = dma.hbm_to_vmem [thread:$0]  (!%p2835_p11), %s3144_s2, 2048, %s168_s28, [#allocation6], %s2751_s9, %s2751_s9, %s2752_s10  }
  0x2c   : > { %s2753_s13 = smov [#allocation8]  }
  0x2d   : > { %s180_s14 = sshll.u32 %s2753_s13, 4  ;;  %s181_s14 = int_to_ptr.vmem [resolvable:$true] %s180_s14 }
  0x2e   : > { %s2630_s20 = scalar_lea.vmem %s181_s14, 6144  ;;  %p2638_p3 = scmp.lt.s32.totalorder %s181_s14, %s181_s14 }
  0x2f   : > { %p2631_p1 = scmp.ne.s32.totalorder %s181_s14, %s2630_s20  ;;  %p2639_p7 = scmp.lt.s32.totalorder %s2630_s20, %s2630_s20 }
  0x31   : > { %p2633_p2 = pnand %p2631_p1, %p2569_p12  ;;  %p2640_p9 = por %p2639_p7, %p2638_p3 }
  0x33   : > { %p2634_p6 = pneg %p2633_p2 }
  0x35   : > { %p2641_p13 = pnand %p2640_p9, %p2634_p6 }
  0x37   : > { %2644 = shalt.err (!%p2641_p13)
}
  0x38   : > { %s2754_s24 = smov 192   ;;  %s2755_s25 = smov 12  }
  0x39   : > { %2354 = dma.hbm_to_vmem [thread:$0]  (!%p2835_p11), %s3145_s3, 6144, %s181_s14, [#allocation9], %s2754_s24, %s2754_s24, %s2755_s25  }
  0x3a   : > { %s2869_s29 = sadd.s32 1, %s2745_s18   ;;  %s29_s5 = sadd.s32 1, %s2741_s17 }
  0x3b   : > { %s26_s30 = ssub.s32 %s2745_s18, %s2869_s29  ;;  %p36_p0 = scmp.ne.s32.totalorder %s2741_s17, %s2737_s16 }
  0x3c   : > { %p27_p12 = scmp.eq.s32.totalorder %s26_s30, 0  ;;  %p37_p5 = scmp.eq.s32.totalorder %s2745_s18, 0 }
  0x3d   : > { %p2366_p10 = scmp.lt.s32.totalorder %s2745_s18, 2  ;;  %p3155_p2 = scmp.eq.s32.totalorder %s2807_s19, 1 }
  0x3e   : > { %s2879_s6 = scalar_select %p27_p12, %s2741_s17, %s29_s5  }
  0x3f   : > { %p38_p1 = por %p37_p5, %p36_p0  ;;  %p2883_p6 = por %p3155_p2, %p36_p0 }
  0x40   : > { %s194_s26 = sand.u32 1, %s2741_s17   ;;  %s2102_s8 = sshll.u32 %s2745_s18, 12 }
  0x41   : > { %s3156_s7 = scalar_select %p2883_p6, 1, 0 }
  0x42   : > { %s1975_s11 = sshll.u32 %s194_s26, 8  ;;  %s2892_s14 = scalar_lea.hbm %s3142_s0, %s2102_s8 }
  0x43   : > { %s198_s20 = scalar_lea.vmem [#allocation2], %s1975_s11  ;;  %p2894_p11 = pnand %p2366_p10, %p38_p1 }
  0x44   : > { %s206_s24 = sshll.u32 %s198_s20, 4  ;;  %s2900_s27 = scalar_lea.sflag [#allocation3], %s194_s26  ;;  %s2898_s24 = int_to_ptr.vmem [resolvable:$true] %s206_s24 }
  0x45   : > { %s2645_s28 = scalar_lea.hbm %s2892_s14, 4096  ;;  %p2647_p7 = pneg %p2894_p11 }
  0x46   : > { %p2646_p3 = scmp.ne.s32.totalorder %s2892_s14, %s2645_s28  ;;  %s2650_s8 = scalar_lea.hbm %s3142_s0, 8192 }
  0x47   : > { %p2651_p12 = scmp.lt.s32.totalorder %s2892_s14, %s3142_s0  ;;  %p2652_p0 = scmp.lt.s32.totalorder %s2650_s8, %s2645_s28 }
  0x48   : > { %p2648_p9 = pnand %p2647_p7, %p2646_p3 }
  0x49   : > { %p2653_p5 = por %p2652_p0, %p2651_p12 }
  0x4a   : > { %p2649_p13 = pneg %p2648_p9 }
  0x4c   : > { %p2654_p10 = pnand %p2653_p5, %p2649_p13 }
  0x4e   : > { %2657 = shalt.err (!%p2654_p10)
}
  0x4f   : > { %s2658_s26 = scalar_lea.vmem %s2898_s24, 4096  ;;  %s2756_s13 = smov [#allocation2]  }
  0x50   : > { %p2659_p1 = scmp.ne.s32.totalorder %s2898_s24, %s2658_s26  ;;  %s2663_s20 = sshll.u32 %s2756_s13, 4  ;;  %s2664_s20 = int_to_ptr.vmem [resolvable:$false] %s2663_s20 }
  0x51   : > { %s2665_s30 = scalar_lea.vmem %s2664_s20, 8192  ;;  %p2666_p9 = scmp.lt.s32.totalorder %s2898_s24, %s2664_s20 }
  0x52   : > { %p2661_p2 = pnand %p2659_p1, %p2647_p7  ;;  %p2667_p6 = scmp.lt.s32.totalorder %s2665_s30, %s2658_s26 }
  0x54   : > { %p2662_p3 = pneg %p2661_p2  ;;  %p2668_p4 = por %p2667_p6, %p2666_p9 }
  0x56   : > { %p2669_p8 = pnand %p2668_p4, %p2662_p3 }
  0x58   : > { %2672 = shalt.err (!%p2669_p8)
}
  0x59   : > { %2358 = dma.hbm_to_vmem [thread:$0]  (!%p2894_p11), %s2892_s14, 4096, %s2898_s24, %s2900_s27, %s2751_s9, %s2751_s9, %s2752_s10  }
  0x5a   : > { %p3158_p7 = scmp.ne.s32.totalorder %s3153_s23, 0 }
  0x5b   : > { %s2927_s28 = sand.u32 (!%p3158_p7), 1, %s2737_s16   ;;  %p3159_p4 = scmp.ne.s32.totalorder (!%p3158_p7), %s3151_s21, 0 }
  0x5c   : > { %218 = sbr.rel (%p3158_p7) target bundleno = 878 (0x36e), region = 36  ;;  %s1980_s5 = sshll.u32 (!%p3158_p7), %s2927_s28, 8 }
  0x5d   : > { %s221_s8 = scalar_lea.sflag (!%p3158_p7), [#allocation3], %s2927_s28  ;;  %s2931_s11 = scalar_lea.vmem (!%p3158_p7), [#allocation2], %s1980_s5 }
  0x61   : > { %2716 = dma.done.wait (%p3159_p4), %s221_s8, 4096  }
  0x62   : > { %2718 = vsyncadd (%p3159_p4), %s221_s8, 4294963200  ;;  %p3160_p8 = scmp.eq.s32.totalorder %s2807_s19, 0 }
  0x64   : > { %2720 = dma.done.wait (%p3160_p8), [#allocation6], 4096   ;;  %p3161_p6 = pmov %p3160_p8 }
  0x66   : > { %2722 = vsyncadd (%p3161_p6), [#allocation6], 4294963200  ;;  %p3162_p11 = pmov %p3161_p6 }
  0x67   : > { %p3163_p13 = pmov %p3161_p6 }
  0x68   : > { %2724 = dma.done.wait (%p3162_p11), [#allocation9], 6144  }
  0x69   : > { %2726 = vsyncadd (%p3163_p13), [#allocation9], 4294961152  ;;  %v2415_v0 = vld [vmem:[#allocation5 + $0x78] sm:$0xff]   ;;  %v2417_v2 = vld [vmem:[#allocation5 + $0x70] sm:$0xff]   ;;  %v2757_v53 = vmov 0   ;;  %s2327_s21 = smul.u32 768, %s2927_s28 }
  0x6a   : > { %v2416_v1 = vld [vmem:[#allocation5 + $0x38] sm:$0xff]   ;;  %2103 = vmatprep.subr.bf16.mxu0 %v2415_v0  ;;  %v2418_v3 = vld [vmem:[#allocation5 + $0x30] sm:$0xff]   ;;  %v2419_v4 = vld [vmem:[#allocation5 + $0x68] sm:$0xff]   ;;  %889 = vmatprep.mubr.bf16.mxu1 %v2757_v53  ;;  %s2328_s9 = smul.u32 12288, %s2807_s19  ;;  %s1853_s19 = scalar_lea.sflag [#allocation4], %s2927_s28 }
  0x6b   : > { %2104 = vmatpush3.bf16.msra.mxu0 %v2416_v1  ;;  %v2420_v5 = vld [vmem:[#allocation5 + $0x28] sm:$0xff]   ;;  %v2421_v6 = vld [vmem:[#allocation5 + $0x60] sm:$0xff]   ;;  %v2423_v8 = vld [vmem:[#allocation5 + $0x58] sm:$0xff]   ;;  %s2994_s23 = scalar_lea.vmem [#allocation10], %s2327_s21  ;;  %p3164_p0 = scmp.ne.s32.totalorder %s3156_s7, 0 }
  0x6c   : > { %2105 = vmatprep.subr.bf16.mxu0 %v2417_v2  ;;  %v2422_v7 = vld [vmem:[#allocation5 + $0x20] sm:$0xff]   ;;  %v2424_v9 = vld [vmem:[#allocation5 + $0x18] sm:$0xff]   ;;  %v2425_v10 = vld [vmem:[#allocation5 + $0x50] sm:$0xff]   ;;  %s1867_s10 = sshll.u32 %s2994_s23, 4  ;;  %s3095_s25 = scalar_lea.hbm %s3146_s4, %s2328_s9  ;;  %s3097_s10 = int_to_ptr.vmem [resolvable:$true] %s1867_s10 }
  0x6d   : > { %v2433_v11 = vld [vmem:[%s2931_s11 + $0x4] ss:$8 sps:$4 sm:$0xff]   ;;  %v2426_v12 = vld [vmem:[#allocation5 + $0x10] sm:$0xff]   ;;  %v2431_v17 = vld [vmem:[%s2931_s11] ss:$8 sps:$4 sm:$0xff]   ;;  %s2673_s27 = scalar_lea.vmem %s3097_s10, 12288 }
  0x6e   : > { %616 = vmatprep.mubr.bf16.mxu0 %v2433_v11  ;;  %v2427_v13 = vld [vmem:[#allocation5 + $0x48] sm:$0xff]   ;;  %v2429_v15 = vld [vmem:[#allocation5 + $0x40] sm:$0xff]   ;;  %v2434_v18 = vld [vmem:[%s2931_s11 + $0x14] ss:$8 sps:$4 sm:$0xff]   ;;  %p2674_p12 = scmp.ne.s32.totalorder %s3097_s10, %s2673_s27  ;;  %s2758_s12 = smov [#allocation10]  }
  0x6f   : > { %2106 = vmatpush3.bf16.msra.mxu0 %v2418_v3  ;;  %v2428_v14 = vld [vmem:[#allocation5 + $0x8] sm:$0xff]   ;;  %v2430_v16 = vld [vmem:[#allocation5] sm:$0xff]   ;;  %v2436_v19 = vld [vmem:[%s2931_s11 + $0x10] ss:$8 sps:$4 sm:$0xff]   ;;  %s2677_s26 = sshll.u32 %s2758_s12, 4  ;;  %s2678_s26 = int_to_ptr.vmem [resolvable:$false] %s2677_s26 }
  0x70   : > { %2107 = vmatprep.subr.bf16.mxu0 %v2419_v4  ;;  %v2479_v20 = vld [vmem:[#allocation7 + $0x74] ss:$8 sps:$4 sm:$0xff]   ;;  %v2481_v21 = vld [vmem:[#allocation7 + $0x70] ss:$8 sps:$4 sm:$0xff]   ;;  %v2437_v22 = vld [vmem:[%s2931_s11 + $0x24] ss:$8 sps:$4 sm:$0xff]   ;;  %p2675_p5 = pnand %p2674_p12, %p3164_p0  ;;  %p2680_p1 = scmp.lt.s32.totalorder %s3097_s10, %s2678_s26 }
  0x71   : > { %v2482_v23 = vld [vmem:[#allocation7 + $0x64] ss:$8 sps:$4 sm:$0xff]   ;;  %857 = vmatprep.subr.bf16.mxu1 %v2479_v20  ;;  %v2484_v24 = vld [vmem:[#allocation7 + $0x60] ss:$8 sps:$4 sm:$0xff]   ;;  %v2485_v25 = vld [vmem:[#allocation7 + $0x54] ss:$8 sps:$4 sm:$0xff]  }
  0x72   : > { %858 = vmatpush1.bf16.msra.mxu1 %v2481_v21  ;;  %v2487_v26 = vld [vmem:[#allocation7 + $0x50] ss:$8 sps:$4 sm:$0xff]   ;;  %v2439_v27 = vld [vmem:[%s2931_s11 + $0x20] ss:$8 sps:$4 sm:$0xff]   ;;  %v2488_v28 = vld [vmem:[#allocation7 + $0x44] ss:$8 sps:$4 sm:$0xff]   ;;  %p2676_p10 = pneg %p2675_p5 }
  0x73   : > { %2108 = vmatpush3.bf16.msra.mxu0 %v2420_v5  ;;  %859 = vmatprep.subr.bf16.mxu1 %v2482_v23  ;;  %v2440_v29 = vld [vmem:[%s2931_s11 + $0x34] ss:$8 sps:$4 sm:$0xff]   ;;  %v2490_v30 = vld [vmem:[#allocation7 + $0x40] ss:$8 sps:$4 sm:$0xff]   ;;  %v2493_v32 = vld [vmem:[#allocation7 + $0x30] ss:$8 sps:$4 sm:$0xff]  }
  0x74   : > { %2109 = vmatprep.subr.bf16.mxu0 %v2421_v6  ;;  %v2491_v31 = vld [vmem:[#allocation7 + $0x34] ss:$8 sps:$4 sm:$0xff]   ;;  %v2442_v33 = vld [vmem:[%s2931_s11 + $0x30] ss:$8 sps:$4 sm:$0xff]   ;;  %v2494_v34 = vld [vmem:[#allocation7 + $0x24] ss:$8 sps:$4 sm:$0xff]  }
  0x75   : > { %v2443_v35 = vld [vmem:[%s2931_s11 + $0x44] ss:$8 sps:$4 sm:$0xff]   ;;  %v2445_v36 = vld [vmem:[%s2931_s11 + $0x40] ss:$8 sps:$4 sm:$0xff]   ;;  %v2446_v37 = vld [vmem:[%s2931_s11 + $0x54] ss:$8 sps:$4 sm:$0xff]  }
  0x76   : > { %860 = vmatpush1.bf16.msra.mxu1 %v2484_v24  ;;  %v2448_v38 = vld [vmem:[%s2931_s11 + $0x50] ss:$8 sps:$4 sm:$0xff]   ;;  %v2449_v39 = vld [vmem:[%s2931_s11 + $0x64] ss:$8 sps:$4 sm:$0xff]   ;;  %v2451_v40 = vld [vmem:[%s2931_s11 + $0x60] ss:$8 sps:$4 sm:$0xff]  }
  0x77   : > { %2110 = vmatpush3.bf16.msra.mxu0 %v2422_v7  ;;  %861 = vmatprep.subr.bf16.mxu1 %v2485_v25  ;;  %v2452_v41 = vld [vmem:[%s2931_s11 + $0x74] ss:$8 sps:$4 sm:$0xff]   ;;  %v2454_v42 = vld [vmem:[%s2931_s11 + $0x70] ss:$8 sps:$4 sm:$0xff]   ;;  %v2455_v43 = vld [vmem:[%s2931_s11 + $0x84] ss:$8 sps:$4 sm:$0xff]  }
  0x78   : > { %2111 = vmatprep.subr.bf16.mxu0 %v2423_v8  ;;  %v2457_v44 = vld [vmem:[%s2931_s11 + $0x80] ss:$8 sps:$4 sm:$0xff]   ;;  %v2458_v45 = vld [vmem:[%s2931_s11 + $0x94] ss:$8 sps:$4 sm:$0xff]   ;;  %v2499_v48 = vld [vmem:[#allocation7 + $0x10] ss:$8 sps:$4 sm:$0xff]  }
  0x79   : > { %v2496_v46 = vld [vmem:[#allocation7 + $0x20] ss:$8 sps:$4 sm:$0xff]   ;;  %v2497_v47 = vld [vmem:[#allocation7 + $0x14] ss:$8 sps:$4 sm:$0xff]   ;;  %v2460_v49 = vld [vmem:[%s2931_s11 + $0x90] ss:$8 sps:$4 sm:$0xff]  }
  0x7a   : > { %862 = vmatpush1.bf16.msra.mxu1 %v2487_v26  ;;  %v2461_v50 = vld [vmem:[%s2931_s11 + $0xa4] ss:$8 sps:$4 sm:$0xff]   ;;  %v2502_v52 = vld [vmem:[#allocation7] ss:$8 sps:$4 sm:$0xff]   ;;  %v2464_v55 = vld [vmem:[%s2931_s11 + $0xb4] ss:$8 sps:$4 sm:$0xff]  }
  0x7b   : > { %2112 = vmatpush3.bf16.msra.mxu0 %v2424_v9  ;;  %863 = vmatprep.subr.bf16.mxu1 %v2488_v28  ;;  %v2500_v51 = vld [vmem:[#allocation7 + $0x4] ss:$8 sps:$4 sm:$0xff]   ;;  %v2463_v54 = vld [vmem:[%s2931_s11 + $0xa0] ss:$8 sps:$4 sm:$0xff]   ;;  %v2466_v56 = vld [vmem:[%s2931_s11 + $0xb0] ss:$8 sps:$4 sm:$0xff]  }
  0x7c   : > { %2113 = vmatprep.subr.bf16.mxu0 %v2425_v10  ;;  %v2467_v57 = vld [vmem:[%s2931_s11 + $0xc4] ss:$8 sps:$4 sm:$0xff]   ;;  %v2469_v58 = vld [vmem:[%s2931_s11 + $0xc0] ss:$8 sps:$4 sm:$0xff]   ;;  %v2470_v59 = vld [vmem:[%s2931_s11 + $0xd4] ss:$8 sps:$4 sm:$0xff]  }
  0x7d   : > { %v2472_v60 = vld [vmem:[%s2931_s11 + $0xd0] ss:$8 sps:$4 sm:$0xff]   ;;  %v2473_v61 = vld [vmem:[%s2931_s11 + $0xe4] ss:$8 sps:$4 sm:$0xff]   ;;  %v2475_v62 = vld [vmem:[%s2931_s11 + $0xe0] ss:$8 sps:$4 sm:$0xff]  }
  0x7e   : > { %864 = vmatpush1.bf16.msra.mxu1 %v2490_v30  ;;  %v2476_v63 = vld [vmem:[%s2931_s11 + $0xf4] ss:$8 sps:$4 sm:$0xff]   ;;  %v2478_v0 = vld [vmem:[%s2931_s11 + $0xf0] ss:$8 sps:$4 sm:$0xff]   ;;  %v2516_v8 = vld [vmem:[#allocation8 + $0x60] ss:$12 sps:$4 sm:$0xff]  }
  0x7f   : > { %2114 = vmatpush3.bf16.msra.mxu0 %v2426_v12  ;;  %865 = vmatprep.subr.bf16.mxu1 %v2491_v31  ;;  %v2503_v1 = vld [vmem:[#allocation8 + $0x170] ss:$12 sps:$4 sm:$0xff]   ;;  %v2505_v2 = vld [vmem:[#allocation8 + $0xa8] ss:$12 sps:$4 sm:$0xff]   ;;  %v2507_v3 = vld [vmem:[#allocation8 + $0xac] ss:$12 sps:$4 sm:$0xff]  }
  0x80   : > { %2115 = vmatprep.subr.bf16.mxu0 %v2427_v13  ;;  %v2508_v4 = vld [vmem:[#allocation8 + $0x90] ss:$12 sps:$4 sm:$0xff]   ;;  %v2510_v5 = vld [vmem:[#allocation8 + $0x94] ss:$12 sps:$4 sm:$0xff]   ;;  %v2513_v6 = vld [vmem:[#allocation8 + $0x78] ss:$12 sps:$4 sm:$0xff]  }
  0x81   : > { %v2515_v7 = vld [vmem:[#allocation8 + $0x7c] ss:$12 sps:$4 sm:$0xff]   ;;  %v2518_v9 = vld [vmem:[#allocation8 + $0x64] ss:$12 sps:$4 sm:$0xff]   ;;  %v2523_v11 = vld [vmem:[#allocation8 + $0x4c] ss:$12 sps:$4 sm:$0xff]  }
  0x82   : > { %866 = vmatpush1.bf16.msra.mxu1 %v2493_v32  ;;  %v2521_v10 = vld [vmem:[#allocation8 + $0x48] ss:$12 sps:$4 sm:$0xff]   ;;  %v2524_v13 = vld [vmem:[#allocation8 + $0x30] ss:$12 sps:$4 sm:$0xff]   ;;  %v2511_v26 = vld [vmem:[#allocation8 + $0x158] ss:$12 sps:$4 sm:$0xff]  }
  0x83   : > { %2116 = vmatpush3.bf16.msra.mxu0 %v2428_v14  ;;  %867 = vmatprep.subr.bf16.mxu1 %v2494_v34  ;;  %v2526_v14 = vld [vmem:[#allocation8 + $0x34] ss:$12 sps:$4 sm:$0xff]   ;;  %v2504_v24 = vld [vmem:[#allocation8 + $0xb0] ss:$12 sps:$4 sm:$0xff]   ;;  %v2512_v31 = vld [vmem:[#allocation8 + $0x98] ss:$12 sps:$4 sm:$0xff]  }
  0x84   : > { %2117 = vmatprep.subr.bf16.mxu0 %v2429_v15  ;;  %v2519_v32 = vld [vmem:[#allocation8 + $0x140] ss:$12 sps:$4 sm:$0xff]   ;;  %s2679_s13 = scalar_lea.vmem %s2678_s26, 24576 }
  0x85   : > { %p2681_p2 = scmp.lt.s32.totalorder %s2679_s13, %s2673_s27 }
  0x86   : > { %868 = vmatpush1.bf16.msra.mxu1 %v2496_v46  ;;  %v2528_v46 = vld [vmem:[#allocation8 + $0x68] ss:$12 sps:$4 sm:$0xff]  }
  0x87   : > { %2118 = vmatpush3.bf16.msra.mxu0 %v2430_v16  ;;  %869 = vmatprep.subr.bf16.mxu1 %v2497_v47  ;;  %v2535_v47 = vld [vmem:[#allocation8 + $0x110] ss:$12 sps:$4 sm:$0xff]   ;;  %p2682_p3 = por %p2681_p2, %p2680_p1 }
  0x88   : > { %1402 = vmatprep.subr.bf16.mxu0 %v2507_v3 }
  0x89   : > { %p2683_p9 = pnand %p2682_p3, %p2676_p10 }
  0x8a   : > { %617 = vmatmul.mubr.bf16.vlgmr.msra.gmra.mxu0 %v2431_v17  ;;  %870 = vmatpush1.bf16.msra.mxu1 %v2499_v48  ;;  %v2529_v17 = vld [vmem:[#allocation8 + $0x18] ss:$12 sps:$4 sm:$0xff]  }
  0x8b   : > { %624 = vmatprep.mubr.bf16.mxu0 %v2434_v18  ;;  %871 = vmatprep.subr.bf16.mxu1 %v2500_v51  ;;  %v2531_v18 = vld [vmem:[#allocation8 + $0x1c] ss:$12 sps:$4 sm:$0xff]   ;;  %v2545_v48 = vld [vmem:[#allocation8 + $0x138] ss:$12 sps:$4 sm:$0xff]  }
  0x8c   : > { %1403 = vmatpush1.bf16.msra.mxu0 %v2505_v2  ;;  %v2558_v2 = vld [vmem:[#allocation8 + $0xf4] ss:$12 sps:$4 sm:$0xff]  }
  0x8d   : > { %1404 = vmatprep.subr.bf16.mxu0 %v2510_v5 }
  0x8e   : > { %872 = vmatpush1.bf16.msra.mxu1 %v2502_v52 }
  0x8f   : > { %2215 = vmatprep.subr.bf16.mxu1 %v2503_v1 }
  0x90   : > { %1405 = vmatpush1.bf16.msra.mxu0 %v2508_v4 }
  0x91   : > { %1406 = vmatprep.subr.bf16.mxu0 %v2515_v7 }
  0x92   : > { %625 = vmatmul.mubr.bf16.gmra.mxu0 %v2436_v19  ;;  %v2534_v19 = vld [vmem:[#allocation8 + $0x4] ss:$12 sps:$4 sm:$0xff]  }
  0x93   : > { %632 = vmatprep.mubr.bf16.mxu0 %v2437_v22 }
  0x94   : > { %1407 = vmatpush1.bf16.msra.mxu0 %v2513_v6  ;;  %v2552_v6 = vld [vmem:[#allocation8 + $0x20] ss:$12 sps:$4 sm:$0xff]  }
  0x95   : > { %1408 = vmatprep.subr.bf16.mxu0 %v2518_v9  ;;  %v2559_v9 = vld [vmem:[#allocation8 + $0xc8] ss:$12 sps:$4 sm:$0xff]  }
  0x98   : > { %1409 = vmatpush1.bf16.msra.mxu0 %v2516_v8  ;;  %v2556_v8 = vld [vmem:[#allocation8 + $0xf0] ss:$12 sps:$4 sm:$0xff]  }
  0x99   : > { %1410 = vmatprep.subr.bf16.mxu0 %v2523_v11  ;;  %v2563_v11 = vld [vmem:[#allocation8 + $0xdc] ss:$12 sps:$4 sm:$0xff]  }
  0x9a   : > { %633 = vmatmul.mubr.bf16.gmra.mxu0 %v2439_v27  ;;  %v2532_v27 = vld [vmem:[#allocation8] ss:$12 sps:$4 sm:$0xff]  }
  0x9b   : > { %640 = vmatprep.mubr.bf16.mxu0 %v2440_v29  ;;  %v2539_v29 = vld [vmem:[#allocation8 + $0x16c] ss:$12 sps:$4 sm:$0xff]  }
  0x9c   : > { %1411 = vmatpush1.bf16.msra.mxu0 %v2521_v10 }
  0x9d   : > { %1412 = vmatprep.subr.bf16.mxu0 %v2526_v14  ;;  %v2561_v14 = vld [vmem:[#allocation8 + $0xd8] ss:$12 sps:$4 sm:$0xff]  }
  0xa0   : > { %1413 = vmatpush1.bf16.msra.mxu0 %v2524_v13  ;;  %v2560_v13 = vld [vmem:[#allocation8 + $0x8] ss:$12 sps:$4 sm:$0xff]  }
  0xa1   : > { %1414 = vmatprep.subr.bf16.mxu0 %v2531_v18 }
  0xa2   : > { %641 = vmatmul.mubr.bf16.gmra.mxu0 %v2442_v33  ;;  %v2537_v33 = vld [vmem:[#allocation8 + $0x168] ss:$12 sps:$4 sm:$0xff]  }
  0xa3   : > { %648 = vmatprep.mubr.bf16.mxu0 %v2443_v35  ;;  %v2542_v35 = vld [vmem:[#allocation8 + $0x154] ss:$12 sps:$4 sm:$0xff]  }
  0xa4   : > { %1415 = vmatpush1.bf16.msra.mxu0 %v2529_v17 }
  0xa5   : > { %1416 = vmatprep.subr.bf16.mxu0 %v2534_v19 }
  0xa8   : > { %1417 = vmatpush1.bf16.msra.mxu0 %v2532_v27 }
  0xa9   : > { %1418 = vmatprep.subr.bf16.mxu0 %v2539_v29 }
  0xaa   : > { %649 = vmatmul.mubr.bf16.gmra.mxu0 %v2445_v36 }
  0xab   : > { %656 = vmatprep.mubr.bf16.mxu0 %v2446_v37 }
  0xac   : > { %1419 = vmatpush2.bf16.msra.mxu0 %v2537_v33 }
  0xad   : > { %1420 = vmatprep.subr.bf16.mxu0 %v2542_v35 }
  0xb2   : > { %657 = vmatmul.mubr.bf16.gmra.mxu0 %v2448_v38 }
  0xb3   : > { %664 = vmatprep.mubr.bf16.mxu0 %v2449_v39  ;;  %v2520_v39 = vld [vmem:[#allocation8 + $0x80] ss:$12 sps:$4 sm:$0xff]  }
  0xba   : > { %665 = vmatmul.mubr.bf16.gmra.mxu0 %v2451_v40 }
  0xbb   : > { %672 = vmatprep.mubr.bf16.mxu0 %v2452_v41  ;;  %v2527_v41 = vld [vmem:[#allocation8 + $0x128] ss:$12 sps:$4 sm:$0xff]  }
  0xc2   : > { %673 = vmatmul.mubr.bf16.gmra.mxu0 %v2454_v42  ;;  %v2540_v42 = vld [vmem:[#allocation8 + $0x150] ss:$12 sps:$4 sm:$0xff]  }
  0xc3   : > { %680 = vmatprep.mubr.bf16.mxu0 %v2455_v43  ;;  %1421 = vmatpush2.bf16.msra.mxu0 %v2540_v42 }
  0xca   : > { %681 = vmatmul.mubr.bf16.gmra.mxu0 %v2457_v44  ;;  %v2547_v44 = vld [vmem:[#allocation8 + $0x13c] ss:$12 sps:$4 sm:$0xff]  }
  0xcb   : > { %688 = vmatprep.mubr.bf16.mxu0 %v2458_v45  ;;  %1422 = vmatprep.subr.bf16.mxu0 %v2547_v44 }
  0xcc   : > { %1423 = vmatpush2.bf16.msra.mxu0 %v2545_v48 }
  0xd2   : > { %689 = vmatmul.mubr.bf16.gmra.mxu0 %v2460_v49 }
  0xd3   : > { %696 = vmatprep.mubr.bf16.mxu0 %v2461_v50  ;;  %v2550_v50 = vld [vmem:[#allocation8 + $0x124] ss:$12 sps:$4 sm:$0xff]  }
  0xd4   : > { %1424 = vmatprep.subr.bf16.mxu0 %v2550_v50  ;;  %v2564_v50 = vld [vmem:[#allocation8 + $0xc0] ss:$12 sps:$4 sm:$0xff]  }
  0xda   : > { %697 = vmatmul.mubr.bf16.gmra.mxu0 %v2463_v54 }
  0xdb   : > { %704 = vmatprep.mubr.bf16.mxu0 %v2464_v55  ;;  %v2536_v55 = vld [vmem:[#allocation8 + $0x50] ss:$12 sps:$4 sm:$0xff]  }
  0xe2   : > { %705 = vmatmul.mubr.bf16.gmra.mxu0 %v2466_v56 }
  0xe3   : > { %712 = vmatprep.mubr.bf16.mxu0 %v2467_v57  ;;  %v2543_v57 = vld [vmem:[#allocation8 + $0xf8] ss:$12 sps:$4 sm:$0xff]  }
  0xea   : > { %713 = vmatmul.mubr.bf16.gmra.mxu0 %v2469_v58  ;;  %v2548_v58 = vld [vmem:[#allocation8 + $0x120] ss:$12 sps:$4 sm:$0xff]  }
  0xeb   : > { %720 = vmatprep.mubr.bf16.mxu0 %v2470_v59  ;;  %1425 = vmatpush2.bf16.msra.mxu0 %v2548_v58 }
  0xf2   : > { %721 = vmatmul.mubr.bf16.gmra.mxu0 %v2472_v60  ;;  %v2555_v60 = vld [vmem:[#allocation8 + $0x10c] ss:$12 sps:$4 sm:$0xff]  }
  0xf3   : > { %728 = vmatprep.mubr.bf16.mxu0 %v2473_v61  ;;  %1426 = vmatprep.subr.bf16.mxu0 %v2555_v60 }
  0xfa   : > { %729 = vmatmul.mubr.bf16.gmra.mxu0 %v2475_v62  ;;  %v2544_v62 = vld [vmem:[#allocation8 + $0x38] ss:$12 sps:$4 sm:$0xff]  }
  0xfb   : > { %736 = vmatprep.mubr.bf16.mxu0 %v2476_v63  ;;  %v2551_v63 = vld [vmem:[#allocation8 + $0xe0] ss:$12 sps:$4 sm:$0xff]  }
 0x102   : > { %737 = vmatmul.mubr.bf16.gmra.mxu0 %v2478_v0  ;;  %v2553_v0 = vld [vmem:[#allocation8 + $0x108] ss:$12 sps:$4 sm:$0xff]  }
 0x103   : > { %1427 = vmatpush2.bf16.msra.mxu0 %v2553_v0 }
 0x104   : > { %1428 = vmatprep.subr.bf16.mxu0 %v2558_v2 }
 0x107   : > { %1429 = vmatpush2.bf16.msra.mxu0 %v2556_v8 }
 0x108   : > { %1430 = vmatprep.subr.bf16.mxu0 %v2563_v11 }
 0x10b   : > { %1431 = vmatpush2.bf16.msra.mxu0 %v2561_v14 }
 0x14a   : > { %v2119_v12 = vpop.f32.mrf.mxu0 }
 0x14c   : > { %v2120_v15 = vpop.f32.mrf.mxu0 }
 0x14d   : > { %v2121_v21 = vadd.f32 %v2120_v15, %v2119_v12 }
 0x14e   : > { %v2122_v16 = vpop.f32.mrf.mxu0 }
 0x150   : > { %v2123_v20 = vpop.f32.mrf.mxu0 }
 0x151   : > { %v2124_v22 = vadd.f32 %v2123_v20, %v2122_v16 }
 0x152   : > { %v2125_v23 = vpop.f32.mrf.mxu0 }
 0x153   : > { %v745_v25 = vpack.c.bf16 %v2124_v22, %v2121_v21 }
 0x154   : > { %v2126_v28 = vpop.f32.mrf.mxu0 }
 0x155   : > { %890 = vmatmul.mubr.bf16.vlgmr.msra.gmra.mxu1 %v745_v25  ;;  %v2127_v36 = vadd.f32 %v2126_v28, %v2125_v23 }
 0x156   : > { %v2128_v30 = vpop.f32.mrf.mxu0  ;;  %899 = vmatprep.mubr.bf16.mxu1 %v2757_v53  ;;  %2216 = vmatpush3.bf16.msra.mxu1 %v2504_v24 }
 0x157   : > { %2217 = vmatprep.subr.bf16.mxu1 %v2511_v26 }
 0x158   : > { %v2129_v34 = vpop.f32.mrf.mxu0 }
 0x159   : > { %v2130_v37 = vadd.f32 %v2129_v34, %v2128_v30 }
 0x15a   : > { %v2131_v38 = vpop.f32.mrf.mxu0  ;;  %2218 = vmatpush3.bf16.msra.mxu1 %v2512_v31 }
 0x15b   : > { %v746_v40 = vpack.c.bf16 %v2130_v37, %v2127_v36  ;;  %2219 = vmatprep.subr.bf16.mxu1 %v2519_v32 }
 0x15c   : > { %v2132_v43 = vpop.f32.mrf.mxu0 }
 0x15d   : > { %900 = vmatmul.mubr.bf16.gmra.mxu1 %v746_v40  ;;  %v2133_v51 = vadd.f32 %v2132_v43, %v2131_v38 }
 0x15e   : > { %v2134_v45 = vpop.f32.mrf.mxu0  ;;  %909 = vmatprep.mubr.bf16.mxu1 %v2757_v53  ;;  %2220 = vmatpush3.bf16.msra.mxu1 %v2520_v39 }
 0x15f   : > { %2221 = vmatprep.subr.bf16.mxu1 %v2527_v41 }
 0x160   : > { %v2135_v49 = vpop.f32.mrf.mxu0 }
 0x161   : > { %v2136_v52 = vadd.f32 %v2135_v49, %v2134_v45 }
 0x162   : > { %v2137_v54 = vpop.f32.mrf.mxu0  ;;  %2222 = vmatpush3.bf16.msra.mxu1 %v2528_v46 }
 0x163   : > { %v747_v56 = vpack.c.bf16 %v2136_v52, %v2133_v51  ;;  %2223 = vmatprep.subr.bf16.mxu1 %v2535_v47  ;;  %v2566_v51 = vld [vmem:[#allocation8 + $0xc4] ss:$12 sps:$4 sm:$0xff]  }
 0x164   : > { %v2138_v59 = vpop.f32.mrf.mxu0  ;;  %1432 = vmatprep.subr.bf16.mxu0 %v2566_v51 }
 0x165   : > { %910 = vmatmul.mubr.bf16.gmra.mxu1 %v747_v56  ;;  %v2139_v3 = vadd.f32 %v2138_v59, %v2137_v54  ;;  %1433 = vmatpush2.bf16.msra.mxu0 %v2564_v50 }
 0x166   : > { %v2140_v61 = vpop.f32.mrf.mxu0  ;;  %919 = vmatprep.mubr.bf16.mxu1 %v2757_v53  ;;  %2224 = vmatpush3.bf16.msra.mxu1 %v2536_v55 }
 0x167   : > { %2225 = vmatprep.subr.bf16.mxu1 %v2543_v57 }
 0x168   : > { %v2141_v1 = vpop.f32.mrf.mxu0 }
 0x169   : > { %v2142_v4 = vadd.f32 %v2141_v1, %v2140_v61 }
 0x16a   : > { %v2143_v5 = vpop.f32.mrf.mxu0  ;;  %2226 = vmatpush3.bf16.msra.mxu1 %v2544_v62 }
 0x16b   : > { %v748_v7 = vpack.c.bf16 %v2142_v4, %v2139_v3  ;;  %2227 = vmatprep.subr.bf16.mxu1 %v2551_v63 }
 0x16c   : > { %v2144_v10 = vpop.f32.mrf.mxu0 }
 0x16d   : > { %920 = vmatmul.mubr.bf16.gmra.mxu1 %v748_v7  ;;  %v2145_v16 = vadd.f32 %v2144_v10, %v2143_v5 }
 0x16e   : > { %v2146_v12 = vpop.f32.mrf.mxu0  ;;  %929 = vmatprep.mubr.bf16.mxu1 %v2757_v53  ;;  %2228 = vmatpush3.bf16.msra.mxu1 %v2552_v6 }
 0x16f   : > { %2229 = vmatprep.subr.bf16.mxu1 %v2559_v9 }
 0x170   : > { %v2147_v15 = vpop.f32.mrf.mxu0 }
 0x171   : > { %v2148_v17 = vadd.f32 %v2147_v15, %v2146_v12 }
 0x172   : > { %v2149_v18 = vpop.f32.mrf.mxu0  ;;  %2230 = vmatpush3.bf16.msra.mxu1 %v2560_v13 }
 0x173   : > { %v749_v19 = vpack.c.bf16 %v2148_v17, %v2145_v16 }
 0x174   : > { %v2150_v20 = vpop.f32.mrf.mxu0 }
 0x175   : > { %930 = vmatmul.mubr.bf16.gmra.mxu1 %v749_v19  ;;  %v2151_v23 = vadd.f32 %v2150_v20, %v2149_v18 }
 0x176   : > { %v2152_v21 = vpop.f32.mrf.mxu0  ;;  %939 = vmatprep.mubr.bf16.mxu1 %v2757_v53 }
 0x178   : > { %v2153_v22 = vpop.f32.mrf.mxu0 }
 0x179   : > { %v2154_v24 = vadd.f32 %v2153_v22, %v2152_v21 }
 0x17a   : > { %v2155_v25 = vpop.f32.mrf.mxu0 }
 0x17b   : > { %v750_v26 = vpack.c.bf16 %v2154_v24, %v2151_v23 }
 0x17c   : > { %v2156_v27 = vpop.f32.mrf.mxu0 }
 0x17d   : > { %940 = vmatmul.mubr.bf16.gmra.mxu1 %v750_v26  ;;  %v2157_v30 = vadd.f32 %v2156_v27, %v2155_v25 }
 0x17e   : > { %v2158_v28 = vpop.f32.mrf.mxu0  ;;  %949 = vmatprep.mubr.bf16.mxu1 %v2757_v53 }
 0x180   : > { %v2159_v29 = vpop.f32.mrf.mxu0 }
 0x181   : > { %v2160_v31 = vadd.f32 %v2159_v29, %v2158_v28 }
 0x182   : > { %v2161_v32 = vpop.f32.mrf.mxu0 }
 0x183   : > { %v751_v33 = vpack.c.bf16 %v2160_v31, %v2157_v30 }
 0x184   : > { %v2162_v34 = vpop.f32.mrf.mxu0 }
 0x185   : > { %950 = vmatmul.mubr.bf16.gmra.mxu1 %v751_v33  ;;  %v2163_v37 = vadd.f32 %v2162_v34, %v2161_v32 }
 0x186   : > { %v2164_v35 = vpop.f32.mrf.mxu0  ;;  %959 = vmatprep.mubr.bf16.mxu1 %v2757_v53 }
 0x188   : > { %v2165_v36 = vpop.f32.mrf.mxu0 }
 0x189   : > { %v2166_v38 = vadd.f32 %v2165_v36, %v2164_v35 }
 0x18a   : > { %v2167_v39 = vpop.f32.mrf.mxu0 }
 0x18b   : > { %v752_v40 = vpack.c.bf16 %v2166_v38, %v2163_v37 }
 0x18c   : > { %v2168_v41 = vpop.f32.mrf.mxu0 }
 0x18d   : > { %960 = vmatmul.mubr.bf16.gmra.mxu1 %v752_v40  ;;  %v2169_v44 = vadd.f32 %v2168_v41, %v2167_v39 }
 0x18e   : > { %v2170_v42 = vpop.f32.mrf.mxu0  ;;  %969 = vmatprep.mubr.bf16.mxu1 %v2757_v53 }
 0x190   : > { %v2171_v43 = vpop.f32.mrf.mxu0 }
 0x191   : > { %v2172_v45 = vadd.f32 %v2171_v43, %v2170_v42 }
 0x192   : > { %v2173_v46 = vpop.f32.mrf.mxu0 }
 0x193   : > { %v753_v47 = vpack.c.bf16 %v2172_v45, %v2169_v44 }
 0x194   : > { %v2174_v48 = vpop.f32.mrf.mxu0 }
 0x195   : > { %970 = vmatmul.mubr.bf16.gmra.mxu1 %v753_v47  ;;  %v2175_v54 = vadd.f32 %v2174_v48, %v2173_v46 }
 0x196   : > { %v2176_v49 = vpop.f32.mrf.mxu0  ;;  %979 = vmatprep.mubr.bf16.mxu1 %v2757_v53 }
 0x198   : > { %v2177_v52 = vpop.f32.mrf.mxu0 }
 0x199   : > { %v2178_v55 = vadd.f32 %v2177_v52, %v2176_v49 }
 0x19a   : > { %v2179_v56 = vpop.f32.mrf.mxu0 }
 0x19b   : > { %v754_v57 = vpack.c.bf16 %v2178_v55, %v2175_v54 }
 0x19c   : > { %v2180_v58 = vpop.f32.mrf.mxu0 }
 0x19d   : > { %980 = vmatmul.mubr.bf16.gmra.mxu1 %v754_v57  ;;  %v2181_v61 = vadd.f32 %v2180_v58, %v2179_v56 }
 0x19e   : > { %v2182_v59 = vpop.f32.mrf.mxu0  ;;  %989 = vmatprep.mubr.bf16.mxu1 %v2757_v53 }
 0x1a0   : > { %v2183_v60 = vpop.f32.mrf.mxu0 }
 0x1a1   : > { %v2184_v62 = vadd.f32 %v2183_v60, %v2182_v59 }
 0x1a2   : > { %v2185_v63 = vpop.f32.mrf.mxu0 }
 0x1a3   : > { %v755_v0 = vpack.c.bf16 %v2184_v62, %v2181_v61 }
 0x1a4   : > { %v2186_v1 = vpop.f32.mrf.mxu0 }
 0x1a5   : > { %990 = vmatmul.mubr.bf16.gmra.mxu1 %v755_v0  ;;  %v2187_v4 = vadd.f32 %v2186_v1, %v2185_v63 }
 0x1a6   : > { %v2188_v2 = vpop.f32.mrf.mxu0  ;;  %999 = vmatprep.mubr.bf16.mxu1 %v2757_v53 }
 0x1a8   : > { %v2189_v3 = vpop.f32.mrf.mxu0 }
 0x1a9   : > { %v2190_v5 = vadd.f32 %v2189_v3, %v2188_v2 }
 0x1aa   : > { %v2191_v6 = vpop.f32.mrf.mxu0 }
 0x1ab   : > { %v756_v7 = vpack.c.bf16 %v2190_v5, %v2187_v4 }
 0x1ac   : > { %v2192_v8 = vpop.f32.mrf.mxu0 }
 0x1ad   : > { %1000 = vmatmul.mubr.bf16.gmra.mxu1 %v756_v7  ;;  %v2193_v11 = vadd.f32 %v2192_v8, %v2191_v6 }
 0x1ae   : > { %v2194_v9 = vpop.f32.mrf.mxu0  ;;  %1009 = vmatprep.mubr.bf16.mxu1 %v2757_v53 }
 0x1b0   : > { %v2195_v10 = vpop.f32.mrf.mxu0 }
 0x1b1   : > { %v2196_v12 = vadd.f32 %v2195_v10, %v2194_v9 }
 0x1b2   : > { %v2197_v13 = vpop.f32.mrf.mxu0 }
 0x1b3   : > { %v757_v14 = vpack.c.bf16 %v2196_v12, %v2193_v11 }
 0x1b4   : > { %v2198_v15 = vpop.f32.mrf.mxu0 }
 0x1b5   : > { %1010 = vmatmul.mubr.bf16.gmra.mxu1 %v757_v14  ;;  %v2199_v18 = vadd.f32 %v2198_v15, %v2197_v13 }
 0x1b6   : > { %v2200_v16 = vpop.f32.mrf.mxu0  ;;  %1019 = vmatprep.mubr.bf16.mxu1 %v2757_v53 }
 0x1b8   : > { %v2201_v17 = vpop.f32.mrf.mxu0 }
 0x1b9   : > { %v2202_v19 = vadd.f32 %v2201_v17, %v2200_v16 }
 0x1ba   : > { %v2203_v20 = vpop.f32.mrf.mxu0 }
 0x1bb   : > { %v758_v21 = vpack.c.bf16 %v2202_v19, %v2199_v18 }
 0x1bc   : > { %v2204_v22 = vpop.f32.mrf.mxu0 }
 0x1bd   : > { %1020 = vmatmul.mubr.bf16.gmra.mxu1 %v758_v21  ;;  %v2205_v25 = vadd.f32 %v2204_v22, %v2203_v20 }
 0x1be   : > { %v2206_v23 = vpop.f32.mrf.mxu0  ;;  %1029 = vmatprep.mubr.bf16.mxu1 %v2757_v53 }
 0x1c0   : > { %v2207_v24 = vpop.f32.mrf.mxu0 }
 0x1c1   : > { %v2208_v26 = vadd.f32 %v2207_v24, %v2206_v23 }
 0x1c2   : > { %v2209_v27 = vpop.f32.mrf.mxu0 }
 0x1c3   : > { %v759_v28 = vpack.c.bf16 %v2208_v26, %v2205_v25 }
 0x1c4   : > { %v2210_v29 = vpop.f32.mrf.mxu0 }
 0x1c5   : > { %1030 = vmatmul.mubr.bf16.gmra.mxu1 %v759_v28  ;;  %v2211_v32 = vadd.f32 %v2210_v29, %v2209_v27 }
 0x1c6   : > { %v2212_v30 = vpop.f32.mrf.mxu0  ;;  %1039 = vmatprep.mubr.bf16.mxu1 %v2757_v53 }
 0x1c8   : > { %v2213_v31 = vpop.f32.mrf.mxu0 }
 0x1c9   : > { %v2214_v33 = vadd.f32 %v2213_v31, %v2212_v30 }
 0x1cb   : > { %v760_v34 = vpack.c.bf16 %v2214_v33, %v2211_v32 }
 0x1cd   : > { %1040 = vmatmul.mubr.bf16.gmra.mxu1 %v760_v34 }
 0x215   : > { %v891_v35 = vpop.f32.mrf.mxu1 }
 0x217   : > { %v893_v36 = vpop.f32.mrf.mxu1 }
 0x219   : > { %v895_v37 = vpop.f32.mrf.mxu1 }
 0x21a   : > { %v1050_v40 = vpack.c.bf16 %v895_v37, %v891_v35 }
 0x21b   : > { %v897_v38 = vpop.f32.mrf.mxu1 }
 0x21c   : > { %v1051_v39 = vpack.c.bf16 %v897_v38, %v893_v36 }
 0x21d   : > { %v901_v41 = vpop.f32.mrf.mxu1 }
 0x21e   : > { %1434 = vmatprep.mubr.bf16.mxu0 %v1051_v39  ;;  %1627 = vmatprep.mubr.bf16.mxu1 %v1051_v39 }
 0x21f   : > { %v903_v42 = vpop.f32.mrf.mxu1  ;;  %1435 = vmatmul.mubr.bf16.vlgmr.msra.gmra.mxu0 %v1050_v40  ;;  %1628 = vmatmul.mubr.bf16.vlgmr.msra.gmra.mxu1 %v1050_v40 }
 0x221   : > { %v905_v43 = vpop.f32.mrf.mxu1 }
 0x222   : > { %v1052_v45 = vpack.c.bf16 %v905_v43, %v901_v41 }
 0x223   : > { %v907_v44 = vpop.f32.mrf.mxu1 }
 0x224   : > { %v1053_v53 = vpack.c.bf16 %v907_v44, %v903_v42 }
 0x225   : > { %v911_v46 = vpop.f32.mrf.mxu1 }
 0x226   : > { %1444 = vmatprep.mubr.bf16.mxu0 %v1053_v53  ;;  %1635 = vmatprep.mubr.bf16.mxu1 %v1053_v53 }
 0x227   : > { %v913_v47 = vpop.f32.mrf.mxu1  ;;  %1445 = vmatmul.mubr.bf16.gmra.mxu0 %v1052_v45  ;;  %1636 = vmatmul.mubr.bf16.gmra.mxu1 %v1052_v45 }
 0x229   : > { %v915_v48 = vpop.f32.mrf.mxu1 }
 0x22a   : > { %v1054_v51 = vpack.c.bf16 %v915_v48, %v911_v46 }
 0x22b   : > { %v917_v49 = vpop.f32.mrf.mxu1 }
 0x22c   : > { %v1055_v50 = vpack.c.bf16 %v917_v49, %v913_v47 }
 0x22d   : > { %v921_v52 = vpop.f32.mrf.mxu1 }
 0x22e   : > { %1454 = vmatprep.mubr.bf16.mxu0 %v1055_v50  ;;  %1643 = vmatprep.mubr.bf16.mxu1 %v1055_v50 }
 0x22f   : > { %v923_v54 = vpop.f32.mrf.mxu1  ;;  %1455 = vmatmul.mubr.bf16.gmra.mxu0 %v1054_v51  ;;  %1644 = vmatmul.mubr.bf16.gmra.mxu1 %v1054_v51 }
 0x231   : > { %v925_v55 = vpop.f32.mrf.mxu1 }
 0x232   : > { %v1056_v58 = vpack.c.bf16 %v925_v55, %v921_v52 }
 0x233   : > { %v927_v56 = vpop.f32.mrf.mxu1 }
 0x234   : > { %v1057_v57 = vpack.c.bf16 %v927_v56, %v923_v54 }
 0x235   : > { %v931_v59 = vpop.f32.mrf.mxu1 }
 0x236   : > { %1464 = vmatprep.mubr.bf16.mxu0 %v1057_v57  ;;  %1651 = vmatprep.mubr.bf16.mxu1 %v1057_v57 }
 0x237   : > { %v933_v60 = vpop.f32.mrf.mxu1  ;;  %1465 = vmatmul.mubr.bf16.gmra.mxu0 %v1056_v58  ;;  %1652 = vmatmul.mubr.bf16.gmra.mxu1 %v1056_v58 }
 0x239   : > { %v935_v61 = vpop.f32.mrf.mxu1 }
 0x23a   : > { %v1058_v0 = vpack.c.bf16 %v935_v61, %v931_v59 }
 0x23b   : > { %v937_v62 = vpop.f32.mrf.mxu1 }
 0x23c   : > { %v1059_v63 = vpack.c.bf16 %v937_v62, %v933_v60 }
 0x23d   : > { %v941_v1 = vpop.f32.mrf.mxu1 }
 0x23e   : > { %1474 = vmatprep.mubr.bf16.mxu0 %v1059_v63  ;;  %1659 = vmatprep.mubr.bf16.mxu1 %v1059_v63 }
 0x23f   : > { %v943_v2 = vpop.f32.mrf.mxu1  ;;  %1475 = vmatmul.mubr.bf16.gmra.mxu0 %v1058_v0  ;;  %1660 = vmatmul.mubr.bf16.gmra.mxu1 %v1058_v0 }
 0x241   : > { %v945_v3 = vpop.f32.mrf.mxu1 }
 0x242   : > { %v1060_v6 = vpack.c.bf16 %v945_v3, %v941_v1 }
 0x243   : > { %v947_v4 = vpop.f32.mrf.mxu1 }
 0x244   : > { %v1061_v5 = vpack.c.bf16 %v947_v4, %v943_v2 }
 0x245   : > { %v951_v7 = vpop.f32.mrf.mxu1 }
 0x246   : > { %1484 = vmatprep.mubr.bf16.mxu0 %v1061_v5  ;;  %1667 = vmatprep.mubr.bf16.mxu1 %v1061_v5 }
 0x247   : > { %v953_v8 = vpop.f32.mrf.mxu1  ;;  %1485 = vmatmul.mubr.bf16.gmra.mxu0 %v1060_v6  ;;  %1668 = vmatmul.mubr.bf16.gmra.mxu1 %v1060_v6 }
 0x249   : > { %v955_v9 = vpop.f32.mrf.mxu1 }
 0x24a   : > { %v1062_v12 = vpack.c.bf16 %v955_v9, %v951_v7 }
 0x24b   : > { %v957_v10 = vpop.f32.mrf.mxu1 }
 0x24c   : > { %v1063_v11 = vpack.c.bf16 %v957_v10, %v953_v8 }
 0x24d   : > { %v961_v13 = vpop.f32.mrf.mxu1 }
 0x24e   : > { %1494 = vmatprep.mubr.bf16.mxu0 %v1063_v11  ;;  %1675 = vmatprep.mubr.bf16.mxu1 %v1063_v11 }
 0x24f   : > { %v963_v14 = vpop.f32.mrf.mxu1  ;;  %1495 = vmatmul.mubr.bf16.gmra.mxu0 %v1062_v12  ;;  %1676 = vmatmul.mubr.bf16.gmra.mxu1 %v1062_v12 }
 0x251   : > { %v965_v15 = vpop.f32.mrf.mxu1 }
 0x252   : > { %v1064_v18 = vpack.c.bf16 %v965_v15, %v961_v13 }
 0x253   : > { %v967_v16 = vpop.f32.mrf.mxu1 }
 0x254   : > { %v1065_v17 = vpack.c.bf16 %v967_v16, %v963_v14 }
 0x255   : > { %v971_v19 = vpop.f32.mrf.mxu1 }
 0x256   : > { %1504 = vmatprep.mubr.bf16.mxu0 %v1065_v17  ;;  %1683 = vmatprep.mubr.bf16.mxu1 %v1065_v17 }
 0x257   : > { %v973_v20 = vpop.f32.mrf.mxu1  ;;  %1505 = vmatmul.mubr.bf16.gmra.mxu0 %v1064_v18  ;;  %1684 = vmatmul.mubr.bf16.gmra.mxu1 %v1064_v18 }
 0x259   : > { %v975_v21 = vpop.f32.mrf.mxu1 }
 0x25a   : > { %v1066_v24 = vpack.c.bf16 %v975_v21, %v971_v19 }
 0x25b   : > { %v977_v22 = vpop.f32.mrf.mxu1 }
 0x25c   : > { %v1067_v23 = vpack.c.bf16 %v977_v22, %v973_v20 }
 0x25d   : > { %v981_v25 = vpop.f32.mrf.mxu1 }
 0x25e   : > { %1514 = vmatprep.mubr.bf16.mxu0 %v1067_v23  ;;  %1691 = vmatprep.mubr.bf16.mxu1 %v1067_v23 }
 0x25f   : > { %v983_v26 = vpop.f32.mrf.mxu1  ;;  %1515 = vmatmul.mubr.bf16.gmra.mxu0 %v1066_v24  ;;  %1692 = vmatmul.mubr.bf16.gmra.mxu1 %v1066_v24 }
 0x261   : > { %v985_v27 = vpop.f32.mrf.mxu1 }
 0x262   : > { %v1068_v30 = vpack.c.bf16 %v985_v27, %v981_v25 }
 0x263   : > { %v987_v28 = vpop.f32.mrf.mxu1 }
 0x264   : > { %v1069_v29 = vpack.c.bf16 %v987_v28, %v983_v26 }
 0x265   : > { %v991_v31 = vpop.f32.mrf.mxu1 }
 0x266   : > { %1524 = vmatprep.mubr.bf16.mxu0 %v1069_v29  ;;  %1699 = vmatprep.mubr.bf16.mxu1 %v1069_v29 }
 0x267   : > { %v993_v32 = vpop.f32.mrf.mxu1  ;;  %1525 = vmatmul.mubr.bf16.gmra.mxu0 %v1068_v30  ;;  %1700 = vmatmul.mubr.bf16.gmra.mxu1 %v1068_v30 }
 0x269   : > { %v995_v33 = vpop.f32.mrf.mxu1 }
 0x26a   : > { %v1070_v36 = vpack.c.bf16 %v995_v33, %v991_v31 }
 0x26b   : > { %v997_v34 = vpop.f32.mrf.mxu1 }
 0x26c   : > { %v1071_v35 = vpack.c.bf16 %v997_v34, %v993_v32 }
 0x26d   : > { %v1001_v37 = vpop.f32.mrf.mxu1 }
 0x26e   : > { %1534 = vmatprep.mubr.bf16.mxu0 %v1071_v35  ;;  %1707 = vmatprep.mubr.bf16.mxu1 %v1071_v35 }
 0x26f   : > { %v1003_v38 = vpop.f32.mrf.mxu1  ;;  %1535 = vmatmul.mubr.bf16.gmra.mxu0 %v1070_v36  ;;  %1708 = vmatmul.mubr.bf16.gmra.mxu1 %v1070_v36 }
 0x271   : > { %v1005_v39 = vpop.f32.mrf.mxu1 }
 0x272   : > { %v1072_v42 = vpack.c.bf16 %v1005_v39, %v1001_v37 }
 0x273   : > { %v1007_v40 = vpop.f32.mrf.mxu1 }
 0x274   : > { %v1073_v41 = vpack.c.bf16 %v1007_v40, %v1003_v38 }
 0x275   : > { %v1011_v43 = vpop.f32.mrf.mxu1 }
 0x276   : > { %1544 = vmatprep.mubr.bf16.mxu0 %v1073_v41  ;;  %1715 = vmatprep.mubr.bf16.mxu1 %v1073_v41 }
 0x277   : > { %v1013_v44 = vpop.f32.mrf.mxu1  ;;  %1545 = vmatmul.mubr.bf16.gmra.mxu0 %v1072_v42  ;;  %1716 = vmatmul.mubr.bf16.gmra.mxu1 %v1072_v42 }
 0x279   : > { %v1015_v53 = vpop.f32.mrf.mxu1 }
 0x27a   : > { %v1074_v47 = vpack.c.bf16 %v1015_v53, %v1011_v43 }
 0x27b   : > { %v1017_v45 = vpop.f32.mrf.mxu1 }
 0x27c   : > { %v1075_v46 = vpack.c.bf16 %v1017_v45, %v1013_v44 }
 0x27d   : > { %v1021_v48 = vpop.f32.mrf.mxu1 }
 0x27e   : > { %1554 = vmatprep.mubr.bf16.mxu0 %v1075_v46  ;;  %1723 = vmatprep.mubr.bf16.mxu1 %v1075_v46 }
 0x27f   : > { %v1023_v49 = vpop.f32.mrf.mxu1  ;;  %1555 = vmatmul.mubr.bf16.gmra.mxu0 %v1074_v47  ;;  %1724 = vmatmul.mubr.bf16.gmra.mxu1 %v1074_v47 }
 0x281   : > { %v1025_v50 = vpop.f32.mrf.mxu1 }
 0x282   : > { %v1076_v54 = vpack.c.bf16 %v1025_v50, %v1021_v48 }
 0x283   : > { %v1027_v51 = vpop.f32.mrf.mxu1 }
 0x284   : > { %v1077_v52 = vpack.c.bf16 %v1027_v51, %v1023_v49 }
 0x285   : > { %v1031_v55 = vpop.f32.mrf.mxu1 }
 0x286   : > { %1564 = vmatprep.mubr.bf16.mxu0 %v1077_v52  ;;  %1731 = vmatprep.mubr.bf16.mxu1 %v1077_v52 }
 0x287   : > { %v1033_v56 = vpop.f32.mrf.mxu1  ;;  %1565 = vmatmul.mubr.bf16.gmra.mxu0 %v1076_v54  ;;  %1732 = vmatmul.mubr.bf16.gmra.mxu1 %v1076_v54 }
 0x289   : > { %v1035_v57 = vpop.f32.mrf.mxu1 }
 0x28a   : > { %v1078_v60 = vpack.c.bf16 %v1035_v57, %v1031_v55 }
 0x28b   : > { %v1037_v58 = vpop.f32.mrf.mxu1 }
 0x28c   : > { %v1079_v59 = vpack.c.bf16 %v1037_v58, %v1033_v56 }
 0x28d   : > { %v1041_v61 = vpop.f32.mrf.mxu1 }
 0x28e   : > { %1574 = vmatprep.mubr.bf16.mxu0 %v1079_v59  ;;  %1739 = vmatprep.mubr.bf16.mxu1 %v1079_v59 }
 0x28f   : > { %v1043_v62 = vpop.f32.mrf.mxu1  ;;  %1575 = vmatmul.mubr.bf16.gmra.mxu0 %v1078_v60  ;;  %1740 = vmatmul.mubr.bf16.gmra.mxu1 %v1078_v60 }
 0x291   : > { %v1045_v63 = vpop.f32.mrf.mxu1 }
 0x292   : > { %v1080_v2 = vpack.c.bf16 %v1045_v63, %v1041_v61 }
 0x293   : > { %v1047_v0 = vpop.f32.mrf.mxu1 }
 0x294   : > { %v1081_v1 = vpack.c.bf16 %v1047_v0, %v1043_v62 }
 0x296   : > { %1584 = vmatprep.mubr.bf16.mxu0 %v1081_v1  ;;  %1747 = vmatprep.mubr.bf16.mxu1 %v1081_v1 }
 0x297   : > { %1585 = vmatmul.mubr.bf16.gmra.mxu0 %v1080_v2  ;;  %1748 = vmatmul.mubr.bf16.gmra.mxu1 %v1080_v2 }
 0x2df   : > { %v1436_v3 = vpop.f32.mrf.mxu0  ;;  %v2231_v4 = vpop.f32.mrf.mxu1 }
 0x2e0   : > { %1756 = vst [vmem:[%s2994_s23] sm:$0xff] %v1436_v3 }
 0x2e1   : > { %v1438_v5 = vpop.f32.mrf.mxu0  ;;  %v2232_v6 = vpop.f32.mrf.mxu1 }
 0x2e2   : > { %1757 = vst [vmem:[%s2994_s23 + $0x8] sm:$0xff] %v1438_v5  ;;  %v2233_v7 = vadd.f32 %v2232_v6, %v2231_v4 }
 0x2e3   : > { %v1440_v8 = vpop.f32.mrf.mxu0  ;;  %v2234_v9 = vpop.f32.mrf.mxu1 }
 0x2e4   : > { %1758 = vst [vmem:[%s2994_s23 + $0x10] sm:$0xff] %v2233_v7  ;;  %1759 = vst [vmem:[%s2994_s23 + $0x18] sm:$0xff] %v1440_v8 }
 0x2e5   : > { %v1442_v10 = vpop.f32.mrf.mxu0  ;;  %v2235_v11 = vpop.f32.mrf.mxu1 }
 0x2e6   : > { %1760 = vst [vmem:[%s2994_s23 + $0x20] sm:$0xff] %v1442_v10  ;;  %v2236_v12 = vadd.f32 %v2235_v11, %v2234_v9 }
 0x2e7   : > { %v1446_v13 = vpop.f32.mrf.mxu0  ;;  %v2237_v14 = vpop.f32.mrf.mxu1 }
 0x2e8   : > { %1761 = vst [vmem:[%s2994_s23 + $0x28] sm:$0xff] %v2236_v12  ;;  %1762 = vst [vmem:[%s2994_s23 + $0x30] sm:$0xff] %v1446_v13 }
 0x2e9   : > { %v1448_v15 = vpop.f32.mrf.mxu0  ;;  %v2238_v16 = vpop.f32.mrf.mxu1 }
 0x2ea   : > { %1763 = vst [vmem:[%s2994_s23 + $0x38] sm:$0xff] %v1448_v15  ;;  %v2239_v17 = vadd.f32 %v2238_v16, %v2237_v14 }
 0x2eb   : > { %v1450_v18 = vpop.f32.mrf.mxu0  ;;  %v2240_v19 = vpop.f32.mrf.mxu1 }
 0x2ec   : > { %1764 = vst [vmem:[%s2994_s23 + $0x40] sm:$0xff] %v2239_v17  ;;  %1765 = vst [vmem:[%s2994_s23 + $0x48] sm:$0xff] %v1450_v18 }
 0x2ed   : > { %v1452_v20 = vpop.f32.mrf.mxu0  ;;  %v2241_v21 = vpop.f32.mrf.mxu1 }
 0x2ee   : > { %1766 = vst [vmem:[%s2994_s23 + $0x50] sm:$0xff] %v1452_v20  ;;  %v2242_v22 = vadd.f32 %v2241_v21, %v2240_v19 }
 0x2ef   : > { %v1456_v23 = vpop.f32.mrf.mxu0  ;;  %v2243_v24 = vpop.f32.mrf.mxu1 }
 0x2f0   : > { %1767 = vst [vmem:[%s2994_s23 + $0x58] sm:$0xff] %v2242_v22  ;;  %1768 = vst [vmem:[%s2994_s23 + $0x60] sm:$0xff] %v1456_v23 }
 0x2f1   : > { %v1458_v25 = vpop.f32.mrf.mxu0  ;;  %v2244_v26 = vpop.f32.mrf.mxu1 }
 0x2f2   : > { %1769 = vst [vmem:[%s2994_s23 + $0x68] sm:$0xff] %v1458_v25  ;;  %v2245_v27 = vadd.f32 %v2244_v26, %v2243_v24 }
 0x2f3   : > { %v1460_v28 = vpop.f32.mrf.mxu0  ;;  %v2246_v29 = vpop.f32.mrf.mxu1 }
 0x2f4   : > { %1770 = vst [vmem:[%s2994_s23 + $0x70] sm:$0xff] %v2245_v27  ;;  %1771 = vst [vmem:[%s2994_s23 + $0x78] sm:$0xff] %v1460_v28 }
 0x2f5   : > { %v1462_v30 = vpop.f32.mrf.mxu0  ;;  %v2247_v31 = vpop.f32.mrf.mxu1 }
 0x2f6   : > { %1772 = vst [vmem:[%s2994_s23 + $0x80] sm:$0xff] %v1462_v30  ;;  %v2248_v32 = vadd.f32 %v2247_v31, %v2246_v29 }
 0x2f7   : > { %v1466_v33 = vpop.f32.mrf.mxu0  ;;  %v2249_v34 = vpop.f32.mrf.mxu1 }
 0x2f8   : > { %1773 = vst [vmem:[%s2994_s23 + $0x88] sm:$0xff] %v2248_v32  ;;  %1774 = vst [vmem:[%s2994_s23 + $0x90] sm:$0xff] %v1466_v33 }
 0x2f9   : > { %v1468_v35 = vpop.f32.mrf.mxu0  ;;  %v2250_v36 = vpop.f32.mrf.mxu1 }
 0x2fa   : > { %1775 = vst [vmem:[%s2994_s23 + $0x98] sm:$0xff] %v1468_v35  ;;  %v2251_v37 = vadd.f32 %v2250_v36, %v2249_v34 }
 0x2fb   : > { %v1470_v38 = vpop.f32.mrf.mxu0  ;;  %v2252_v39 = vpop.f32.mrf.mxu1 }
 0x2fc   : > { %1776 = vst [vmem:[%s2994_s23 + $0xa0] sm:$0xff] %v2251_v37  ;;  %1777 = vst [vmem:[%s2994_s23 + $0xa8] sm:$0xff] %v1470_v38 }
 0x2fd   : > { %v1472_v40 = vpop.f32.mrf.mxu0  ;;  %v2253_v41 = vpop.f32.mrf.mxu1 }
 0x2fe   : > { %1778 = vst [vmem:[%s2994_s23 + $0xb0] sm:$0xff] %v1472_v40  ;;  %v2254_v42 = vadd.f32 %v2253_v41, %v2252_v39 }
 0x2ff   : > { %v1476_v43 = vpop.f32.mrf.mxu0  ;;  %v2255_v44 = vpop.f32.mrf.mxu1 }
 0x300   : > { %1779 = vst [vmem:[%s2994_s23 + $0xb8] sm:$0xff] %v2254_v42  ;;  %1780 = vst [vmem:[%s2994_s23 + $0xc0] sm:$0xff] %v1476_v43 }
 0x301   : > { %v1478_v53 = vpop.f32.mrf.mxu0  ;;  %v2256_v45 = vpop.f32.mrf.mxu1 }
 0x302   : > { %1781 = vst [vmem:[%s2994_s23 + $0xc8] sm:$0xff] %v1478_v53  ;;  %v2257_v46 = vadd.f32 %v2256_v45, %v2255_v44 }
 0x303   : > { %v1480_v47 = vpop.f32.mrf.mxu0  ;;  %v2258_v48 = vpop.f32.mrf.mxu1 }
 0x304   : > { %1782 = vst [vmem:[%s2994_s23 + $0xd0] sm:$0xff] %v2257_v46  ;;  %1783 = vst [vmem:[%s2994_s23 + $0xd8] sm:$0xff] %v1480_v47 }
 0x305   : > { %v1482_v49 = vpop.f32.mrf.mxu0  ;;  %v2259_v50 = vpop.f32.mrf.mxu1 }
 0x306   : > { %1784 = vst [vmem:[%s2994_s23 + $0xe0] sm:$0xff] %v1482_v49  ;;  %v2260_v51 = vadd.f32 %v2259_v50, %v2258_v48 }
 0x307   : > { %v1486_v52 = vpop.f32.mrf.mxu0  ;;  %v2261_v54 = vpop.f32.mrf.mxu1 }
 0x308   : > { %1785 = vst [vmem:[%s2994_s23 + $0xe8] sm:$0xff] %v2260_v51  ;;  %1786 = vst [vmem:[%s2994_s23 + $0xf0] sm:$0xff] %v1486_v52 }
 0x309   : > { %v1488_v55 = vpop.f32.mrf.mxu0  ;;  %v2262_v56 = vpop.f32.mrf.mxu1 }
 0x30a   : > { %1787 = vst [vmem:[%s2994_s23 + $0xf8] sm:$0xff] %v1488_v55  ;;  %v2263_v57 = vadd.f32 %v2262_v56, %v2261_v54 }
 0x30b   : > { %v1490_v58 = vpop.f32.mrf.mxu0  ;;  %v2264_v59 = vpop.f32.mrf.mxu1 }
 0x30c   : > { %1788 = vst [vmem:[%s2994_s23 + $0x100] sm:$0xff] %v2263_v57  ;;  %1789 = vst [vmem:[%s2994_s23 + $0x108] sm:$0xff] %v1490_v58 }
 0x30d   : > { %v1492_v60 = vpop.f32.mrf.mxu0  ;;  %v2265_v61 = vpop.f32.mrf.mxu1 }
 0x30e   : > { %1790 = vst [vmem:[%s2994_s23 + $0x110] sm:$0xff] %v1492_v60  ;;  %v2266_v62 = vadd.f32 %v2265_v61, %v2264_v59 }
 0x30f   : > { %v1496_v63 = vpop.f32.mrf.mxu0  ;;  %v2267_v0 = vpop.f32.mrf.mxu1 }
 0x310   : > { %1791 = vst [vmem:[%s2994_s23 + $0x118] sm:$0xff] %v2266_v62  ;;  %1792 = vst [vmem:[%s2994_s23 + $0x120] sm:$0xff] %v1496_v63 }
 0x311   : > { %v1498_v1 = vpop.f32.mrf.mxu0  ;;  %v2268_v2 = vpop.f32.mrf.mxu1 }
 0x312   : > { %1793 = vst [vmem:[%s2994_s23 + $0x128] sm:$0xff] %v1498_v1  ;;  %v2269_v3 = vadd.f32 %v2268_v2, %v2267_v0 }
 0x313   : > { %v1500_v4 = vpop.f32.mrf.mxu0  ;;  %v2270_v5 = vpop.f32.mrf.mxu1 }
 0x314   : > { %1794 = vst [vmem:[%s2994_s23 + $0x130] sm:$0xff] %v2269_v3  ;;  %1795 = vst [vmem:[%s2994_s23 + $0x138] sm:$0xff] %v1500_v4 }
 0x315   : > { %v1502_v6 = vpop.f32.mrf.mxu0  ;;  %v2271_v7 = vpop.f32.mrf.mxu1 }
 0x316   : > { %1796 = vst [vmem:[%s2994_s23 + $0x140] sm:$0xff] %v1502_v6  ;;  %v2272_v8 = vadd.f32 %v2271_v7, %v2270_v5 }
 0x317   : > { %v1506_v9 = vpop.f32.mrf.mxu0  ;;  %v2273_v10 = vpop.f32.mrf.mxu1 }
 0x318   : > { %1797 = vst [vmem:[%s2994_s23 + $0x148] sm:$0xff] %v2272_v8  ;;  %1798 = vst [vmem:[%s2994_s23 + $0x150] sm:$0xff] %v1506_v9 }
 0x319   : > { %v1508_v11 = vpop.f32.mrf.mxu0  ;;  %v2274_v12 = vpop.f32.mrf.mxu1 }
 0x31a   : > { %1799 = vst [vmem:[%s2994_s23 + $0x158] sm:$0xff] %v1508_v11  ;;  %v2275_v13 = vadd.f32 %v2274_v12, %v2273_v10 }
 0x31b   : > { %v1510_v14 = vpop.f32.mrf.mxu0  ;;  %v2276_v15 = vpop.f32.mrf.mxu1 }
 0x31c   : > { %1800 = vst [vmem:[%s2994_s23 + $0x160] sm:$0xff] %v2275_v13  ;;  %1801 = vst [vmem:[%s2994_s23 + $0x168] sm:$0xff] %v1510_v14 }
 0x31d   : > { %v1512_v16 = vpop.f32.mrf.mxu0  ;;  %v2277_v17 = vpop.f32.mrf.mxu1 }
 0x31e   : > { %1802 = vst [vmem:[%s2994_s23 + $0x170] sm:$0xff] %v1512_v16  ;;  %v2278_v18 = vadd.f32 %v2277_v17, %v2276_v15 }
 0x31f   : > { %v1516_v19 = vpop.f32.mrf.mxu0  ;;  %v2279_v20 = vpop.f32.mrf.mxu1 }
 0x320   : > { %1803 = vst [vmem:[%s2994_s23 + $0x178] sm:$0xff] %v2278_v18  ;;  %1804 = vst [vmem:[%s2994_s23 + $0x180] sm:$0xff] %v1516_v19 }
 0x321   : > { %v1518_v21 = vpop.f32.mrf.mxu0  ;;  %v2280_v22 = vpop.f32.mrf.mxu1 }
 0x322   : > { %1805 = vst [vmem:[%s2994_s23 + $0x188] sm:$0xff] %v1518_v21  ;;  %v2281_v23 = vadd.f32 %v2280_v22, %v2279_v20 }
 0x323   : > { %v1520_v24 = vpop.f32.mrf.mxu0  ;;  %v2282_v25 = vpop.f32.mrf.mxu1 }
 0x324   : > { %1806 = vst [vmem:[%s2994_s23 + $0x190] sm:$0xff] %v2281_v23  ;;  %1807 = vst [vmem:[%s2994_s23 + $0x198] sm:$0xff] %v1520_v24 }
 0x325   : > { %v1522_v26 = vpop.f32.mrf.mxu0  ;;  %v2283_v27 = vpop.f32.mrf.mxu1 }
 0x326   : > { %1808 = vst [vmem:[%s2994_s23 + $0x1a0] sm:$0xff] %v1522_v26  ;;  %v2284_v28 = vadd.f32 %v2283_v27, %v2282_v25 }
 0x327   : > { %v1526_v29 = vpop.f32.mrf.mxu0  ;;  %v2285_v30 = vpop.f32.mrf.mxu1 }
 0x328   : > { %1809 = vst [vmem:[%s2994_s23 + $0x1a8] sm:$0xff] %v2284_v28  ;;  %1810 = vst [vmem:[%s2994_s23 + $0x1b0] sm:$0xff] %v1526_v29 }
 0x329   : > { %v1528_v31 = vpop.f32.mrf.mxu0  ;;  %v2286_v32 = vpop.f32.mrf.mxu1 }
 0x32a   : > { %1811 = vst [vmem:[%s2994_s23 + $0x1b8] sm:$0xff] %v1528_v31  ;;  %v2287_v33 = vadd.f32 %v2286_v32, %v2285_v30 }
 0x32b   : > { %v1530_v34 = vpop.f32.mrf.mxu0  ;;  %v2288_v35 = vpop.f32.mrf.mxu1 }
 0x32c   : > { %1812 = vst [vmem:[%s2994_s23 + $0x1c0] sm:$0xff] %v2287_v33  ;;  %1813 = vst [vmem:[%s2994_s23 + $0x1c8] sm:$0xff] %v1530_v34 }
 0x32d   : > { %v1532_v36 = vpop.f32.mrf.mxu0  ;;  %v2289_v37 = vpop.f32.mrf.mxu1 }
 0x32e   : > { %1814 = vst [vmem:[%s2994_s23 + $0x1d0] sm:$0xff] %v1532_v36  ;;  %v2290_v38 = vadd.f32 %v2289_v37, %v2288_v35 }
 0x32f   : > { %v1536_v39 = vpop.f32.mrf.mxu0  ;;  %v2291_v40 = vpop.f32.mrf.mxu1 }
 0x330   : > { %1815 = vst [vmem:[%s2994_s23 + $0x1d8] sm:$0xff] %v2290_v38  ;;  %1816 = vst [vmem:[%s2994_s23 + $0x1e0] sm:$0xff] %v1536_v39 }
 0x331   : > { %v1538_v41 = vpop.f32.mrf.mxu0  ;;  %v2292_v42 = vpop.f32.mrf.mxu1 }
 0x332   : > { %1817 = vst [vmem:[%s2994_s23 + $0x1e8] sm:$0xff] %v1538_v41  ;;  %v2293_v43 = vadd.f32 %v2292_v42, %v2291_v40 }
 0x333   : > { %v1540_v44 = vpop.f32.mrf.mxu0  ;;  %v2294_v53 = vpop.f32.mrf.mxu1 }
 0x334   : > { %1818 = vst [vmem:[%s2994_s23 + $0x1f0] sm:$0xff] %v2293_v43  ;;  %1819 = vst [vmem:[%s2994_s23 + $0x1f8] sm:$0xff] %v1540_v44 }
 0x335   : > { %v1542_v45 = vpop.f32.mrf.mxu0  ;;  %v2295_v46 = vpop.f32.mrf.mxu1 }
 0x336   : > { %1820 = vst [vmem:[%s2994_s23 + $0x200] sm:$0xff] %v1542_v45  ;;  %v2296_v47 = vadd.f32 %v2295_v46, %v2294_v53 }
 0x337   : > { %v1546_v48 = vpop.f32.mrf.mxu0  ;;  %v2297_v49 = vpop.f32.mrf.mxu1 }
 0x338   : > { %1821 = vst [vmem:[%s2994_s23 + $0x208] sm:$0xff] %v2296_v47  ;;  %1822 = vst [vmem:[%s2994_s23 + $0x210] sm:$0xff] %v1546_v48 }
 0x339   : > { %v1548_v50 = vpop.f32.mrf.mxu0  ;;  %v2298_v51 = vpop.f32.mrf.mxu1 }
 0x33a   : > { %1823 = vst [vmem:[%s2994_s23 + $0x218] sm:$0xff] %v1548_v50  ;;  %v2299_v52 = vadd.f32 %v2298_v51, %v2297_v49 }
 0x33b   : > { %v1550_v54 = vpop.f32.mrf.mxu0  ;;  %v2300_v55 = vpop.f32.mrf.mxu1 }
 0x33c   : > { %1824 = vst [vmem:[%s2994_s23 + $0x220] sm:$0xff] %v2299_v52  ;;  %1825 = vst [vmem:[%s2994_s23 + $0x228] sm:$0xff] %v1550_v54 }
 0x33d   : > { %v1552_v56 = vpop.f32.mrf.mxu0  ;;  %v2301_v57 = vpop.f32.mrf.mxu1 }
 0x33e   : > { %1826 = vst [vmem:[%s2994_s23 + $0x230] sm:$0xff] %v1552_v56  ;;  %v2302_v58 = vadd.f32 %v2301_v57, %v2300_v55 }
 0x33f   : > { %v1556_v59 = vpop.f32.mrf.mxu0  ;;  %v2303_v60 = vpop.f32.mrf.mxu1 }
 0x340   : > { %1827 = vst [vmem:[%s2994_s23 + $0x238] sm:$0xff] %v2302_v58  ;;  %1828 = vst [vmem:[%s2994_s23 + $0x240] sm:$0xff] %v1556_v59 }
 0x341   : > { %v1558_v61 = vpop.f32.mrf.mxu0  ;;  %v2304_v62 = vpop.f32.mrf.mxu1 }
 0x342   : > { %1829 = vst [vmem:[%s2994_s23 + $0x248] sm:$0xff] %v1558_v61  ;;  %v2305_v63 = vadd.f32 %v2304_v62, %v2303_v60 }
 0x343   : > { %v1560_v0 = vpop.f32.mrf.mxu0  ;;  %v2306_v1 = vpop.f32.mrf.mxu1 }
 0x344   : > { %1830 = vst [vmem:[%s2994_s23 + $0x250] sm:$0xff] %v2305_v63  ;;  %1831 = vst [vmem:[%s2994_s23 + $0x258] sm:$0xff] %v1560_v0 }
 0x345   : > { %v1562_v2 = vpop.f32.mrf.mxu0  ;;  %v2307_v3 = vpop.f32.mrf.mxu1 }
 0x346   : > { %1832 = vst [vmem:[%s2994_s23 + $0x260] sm:$0xff] %v1562_v2  ;;  %v2308_v4 = vadd.f32 %v2307_v3, %v2306_v1 }
 0x347   : > { %v1566_v5 = vpop.f32.mrf.mxu0  ;;  %v2309_v6 = vpop.f32.mrf.mxu1 }
 0x348   : > { %1833 = vst [vmem:[%s2994_s23 + $0x268] sm:$0xff] %v2308_v4  ;;  %1834 = vst [vmem:[%s2994_s23 + $0x270] sm:$0xff] %v1566_v5 }
 0x349   : > { %v1568_v7 = vpop.f32.mrf.mxu0  ;;  %v2310_v8 = vpop.f32.mrf.mxu1 }
 0x34a   : > { %1835 = vst [vmem:[%s2994_s23 + $0x278] sm:$0xff] %v1568_v7  ;;  %v2311_v9 = vadd.f32 %v2310_v8, %v2309_v6 }
 0x34b   : > { %v1570_v10 = vpop.f32.mrf.mxu0  ;;  %v2312_v11 = vpop.f32.mrf.mxu1 }
 0x34c   : > { %1836 = vst [vmem:[%s2994_s23 + $0x280] sm:$0xff] %v2311_v9  ;;  %1837 = vst [vmem:[%s2994_s23 + $0x288] sm:$0xff] %v1570_v10 }
 0x34d   : > { %v1572_v12 = vpop.f32.mrf.mxu0  ;;  %v2313_v13 = vpop.f32.mrf.mxu1 }
 0x34e   : > { %1838 = vst [vmem:[%s2994_s23 + $0x290] sm:$0xff] %v1572_v12  ;;  %v2314_v14 = vadd.f32 %v2313_v13, %v2312_v11 }
 0x34f   : > { %v1576_v15 = vpop.f32.mrf.mxu0  ;;  %v2315_v16 = vpop.f32.mrf.mxu1 }
 0x350   : > { %1839 = vst [vmem:[%s2994_s23 + $0x298] sm:$0xff] %v2314_v14  ;;  %1840 = vst [vmem:[%s2994_s23 + $0x2a0] sm:$0xff] %v1576_v15 }
 0x351   : > { %v1578_v17 = vpop.f32.mrf.mxu0  ;;  %v2316_v18 = vpop.f32.mrf.mxu1 }
 0x352   : > { %1841 = vst [vmem:[%s2994_s23 + $0x2a8] sm:$0xff] %v1578_v17  ;;  %v2317_v19 = vadd.f32 %v2316_v18, %v2315_v16 }
 0x353   : > { %v1580_v20 = vpop.f32.mrf.mxu0  ;;  %v2318_v21 = vpop.f32.mrf.mxu1 }
 0x354   : > { %1842 = vst [vmem:[%s2994_s23 + $0x2b0] sm:$0xff] %v2317_v19  ;;  %1843 = vst [vmem:[%s2994_s23 + $0x2b8] sm:$0xff] %v1580_v20 }
 0x355   : > { %v1582_v22 = vpop.f32.mrf.mxu0  ;;  %v2319_v23 = vpop.f32.mrf.mxu1 }
 0x356   : > { %1844 = vst [vmem:[%s2994_s23 + $0x2c0] sm:$0xff] %v1582_v22  ;;  %v2320_v24 = vadd.f32 %v2319_v23, %v2318_v21 }
 0x357   : > { %v1586_v25 = vpop.f32.mrf.mxu0  ;;  %v2321_v26 = vpop.f32.mrf.mxu1 }
 0x358   : > { %1845 = vst [vmem:[%s2994_s23 + $0x2c8] sm:$0xff] %v2320_v24  ;;  %1846 = vst [vmem:[%s2994_s23 + $0x2d0] sm:$0xff] %v1586_v25 }
 0x359   : > { %v1588_v27 = vpop.f32.mrf.mxu0  ;;  %v2322_v28 = vpop.f32.mrf.mxu1 }
 0x35a   : > { %1847 = vst [vmem:[%s2994_s23 + $0x2d8] sm:$0xff] %v1588_v27  ;;  %v2323_v29 = vadd.f32 %v2322_v28, %v2321_v26 }
 0x35b   : > { %v1590_v30 = vpop.f32.mrf.mxu0  ;;  %v2324_v31 = vpop.f32.mrf.mxu1 }
 0x35c   : > { %1848 = vst [vmem:[%s2994_s23 + $0x2e0] sm:$0xff] %v2323_v29  ;;  %1849 = vst [vmem:[%s2994_s23 + $0x2e8] sm:$0xff] %v1590_v30 }
 0x35d   : > { %v1592_v32 = vpop.f32.mrf.mxu0  ;;  %v2325_v33 = vpop.f32.mrf.mxu1 }
 0x35e   : > { %1850 = vst [vmem:[%s2994_s23 + $0x2f0] sm:$0xff] %v1592_v32  ;;  %v2326_v34 = vadd.f32 %v2325_v33, %v2324_v31 }
 0x360   : > { %1851 = vst [vmem:[%s2994_s23 + $0x2f8] sm:$0xff] %v2326_v34 }
 0x361   : > { %2686 = shalt.err (!%p2683_p9)
}
 0x362   : > { %s2687_s20 = scalar_lea.hbm %s3095_s25, 12288  ;;  %s2691_s8 = scalar_lea.hbm %s3146_s4, 24576 }
 0x363   : > { %p2688_p7 = scmp.ne.s32.totalorder %s3095_s25, %s2687_s20  ;;  %p2692_p6 = scmp.lt.s32.totalorder %s3095_s25, %s3146_s4 }
 0x364   : > { %p2693_p11 = scmp.lt.s32.totalorder %s2691_s8, %s2687_s20 }
 0x365   : > { %p2689_p4 = pnand %p2688_p7, %p3164_p0 }
 0x366   : > { %p2694_p13 = por %p2693_p11, %p2692_p6 }
 0x367   : > { %p2690_p8 = pneg %p2689_p4 }
 0x369   : > { %p2695_p12 = pnand %p2694_p13, %p2690_p8 }
 0x36b   : > { %2698 = shalt.err (!%p2695_p12)
}
 0x36c   : > { %s2759_s23 = smov 384   ;;  %s2760_s9 = smov 24  }
 0x36d   : > { %2343 = dma.vmem_to_hbm [thread:$0]  (%p3164_p0), %s3097_s10, 12288, %s3095_s25, %s1853_s19, %s2759_s23, %s2759_s23, %s2760_s9  }
 0x36e PF: > { %s1882_s14 = sand.u32 1, %s2733_s15   ;;  %p3165_p5 = scmp.ne.s32.totalorder %s3152_s22, 0 }
 0x36f   : > { %p3166_p10 = scmp.ge.s32.totalorder %s2745_s18, 2  ;;  %s1883_s24 = scalar_lea.sflag [#allocation4], %s1882_s14 }
 0x371   : > { %p2360_p1 = pnand %p3166_p10, %p3165_p5 }
 0x373   : > { %p2361_p2 = pneg %p2360_p1 }
 0x375   : > { %2728 = dma.done.wait (%p2361_p2), %s1883_s24, 12288  }
 0x376   : > { %2730 = vsyncadd (%p2361_p2), %s1883_s24, 4294955008  ;;  %p19_p3 = scmp.ge.s32.totalorder %s2869_s29, 4   ;;  %s3167_s15 = smov %s2737_s16 }
 0x377   : > { %s3168_s16 = smov %s2741_s17  ;;  %s3169_s17 = smov %s2879_s6 }
 0x378   : > { %s3170_s18 = smov %s2869_s29  ;;  %21 = sbr.rel (!%p19_p3) target bundleno = 7 (0x7), region = 93 }
 0x37d   :  { %1888 = vsyncpa [#allocation3], 1 }
 0x37e   :  { %1890 = vsyncpa [#allocation3 + $0x1], 1 }
 0x37f   :  { %1891 = vsyncpa [#allocation6], 1 }
 0x380   :  { %1892 = vsyncpa [#allocation9], 1 }
 0x381   :  { %1893 = vsyncpa [#allocation4], 1 }
 0x382   :  { %1895 = vsyncpa [#allocation4 + $0x1], 1 }

// kernel: _fused_chain.1
= control target key start
LH: loop header
LB: loop body
LE: loop exit
PB: predicated region body
PF: predicated region fallthrough
CT: control target
= control target key end

     0   :  { %9 = vsyncpa [#allocation3], 0  ;;  %s3142_s0 = inlined_call_operand.hbm [shape: bf16[512,256], index: 0, kind: input, shape index: {}]   ;;  %s3143_s1 = inlined_call_operand.hbm [shape: bf16[256,128], index: 1, kind: input, shape index: {}]   ;;  %s3144_s2 = inlined_call_operand.hbm [shape: bf16[128,256], index: 2, kind: input, shape index: {}]   ;;  %s3145_s3 = inlined_call_operand.hbm [shape: bf16[256,384], index: 3, kind: input, shape index: {}]   ;;  %s3146_s4 = inlined_call_operand.hbm [shape: f32[512,384], index: 4, kind: output, shape index: {}]  }
   0x1   :  { %11 = vsyncpa [#allocation3 + $0x1], 0 }
   0x2   :  { %12 = vsyncpa [#allocation6], 0 }
   0x3   :  { %13 = vsyncpa [#allocation9], 0 }
   0x4   :  { %14 = vsyncpa [#allocation4], 0 }
   0x5   :  { %16 = vsyncpa [#allocation4 + $0x1], 0  ;;  %s2786_s15 = smov 0   ;;  %s2788_s16 = smov 0  }
   0x6   :  { %s2790_s17 = smov 0   ;;  %s2792_s18 = smov 0  }
   0x7 LB: > { %s2807_s19 = sadd.s32 4294967295, %s2745_s18   ;;  %s1969_s20 = sadd.s32 4294967294, %s2745_s18   ;;  %s2745_s18 = sphi %s2792_s18, %s3170_s18   ;;  %s2741_s17 = sphi %s2790_s17, %s3169_s17   ;;  %s2737_s16 = sphi %s2788_s16, %s3168_s16   ;;  %s2733_s15 = sphi %s2786_s15, %s3167_s15  }
   0x8   : > { %p42_p0 = scmp.ne.s32.totalorder %s2737_s16, %s2733_s15  ;;  %p3147_p1 = scmp.eq.s32.totalorder %s2807_s19, 0 }
   0x9   : > { %p135_p3 = scmp.eq.s32.totalorder %s1969_s20, 1  ;;  %p1970_p5 = scmp.ge.s32.totalorder %s2745_s18, 1 }
   0xa   : > { %p2816_p4 = por %p3147_p1, %p42_p0  ;;  %p142_p7 = scmp.lt.s32.totalorder %s2745_s18, 3 }
   0xb   : > { %p2821_p6 = por %p135_p3, %p42_p0  ;;  %s2747_s24 = smov [#allocation5]  }
   0xc   : > { %s3151_s21 = scalar_select %p2816_p4, 1, 0 }
   0xd   : > { %s3152_s22 = scalar_select %p2821_p6, 1, 0 }
   0xe   : > { %p2826_p8 = pnand %p1970_p5, %p142_p7  ;;  %s154_s25 = sshll.u32 %s2747_s24, 4  ;;  %s155_s25 = int_to_ptr.vmem [resolvable:$true] %s154_s25 }
   0xf   : > { %s2748_s27 = smov [#allocation7]   ;;  %s2578_s29 = scalar_lea.vmem %s155_s25, 2048 }
  0x10   : > { %s3153_s23 = scalar_select %p2826_p8, 1, 0 }
  0x11   : > { %p2345_p9 = pneg %p2826_p8  ;;  %s167_s28 = sshll.u32 %s2748_s27, 4  ;;  %s168_s28 = int_to_ptr.vmem [resolvable:$true] %s167_s28 }
  0x12   : > { %p2579_p13 = scmp.ne.s32.totalorder %s155_s25, %s2578_s29  ;;  %p2586_p5 = scmp.lt.s32.totalorder %s155_s25, %s155_s25 }
  0x13   : > { %p2835_p11 = pnand %p2345_p9, %p3147_p1  ;;  %p2587_p7 = scmp.lt.s32.totalorder %s2578_s29, %s2578_s29 }
  0x15   : > { %p2569_p12 = pneg %p2835_p11  ;;  %p2588_p10 = por %p2587_p7, %p2586_p5 }
  0x17   : > { %p2581_p0 = pnand %p2579_p13, %p2569_p12 }
  0x19   : > { %p2582_p3 = pneg %p2581_p0 }
  0x1b   : > { %p2589_p9 = pnand %p2588_p10, %p2582_p3 }
  0x1d   : > { %2592 = shalt.err (!%p2589_p9)
}
  0x1e   : > { %s2749_s30 = smov 64   ;;  %s2750_s5 = smov 4  }
  0x1f   : > { %2348 = dma.hbm_to_vmem [thread:$0]  (!%p2835_p11), %s3143_s1, 2048, %s155_s25, [#allocation6], %s2749_s30, %s2749_s30, %s2750_s5  }
  0x20   : > { %s2604_s8 = scalar_lea.vmem %s168_s28, 2048  ;;  %p2612_p2 = scmp.lt.s32.totalorder %s168_s28, %s168_s28 }
  0x21   : > { %p2605_p1 = scmp.ne.s32.totalorder %s168_s28, %s2604_s8  ;;  %p2613_p6 = scmp.lt.s32.totalorder %s2604_s8, %s2604_s8 }
  0x23   : > { %p2607_p13 = pnand %p2605_p1, %p2569_p12  ;;  %p2614_p5 = por %p2613_p6, %p2612_p2 }
  0x25   : > { %p2608_p0 = pneg %p2607_p13 }
  0x27   : > { %p2615_p10 = pnand %p2614_p5, %p2608_p0 }
  0x29   : > { %2618 = shalt.err (!%p2615_p10)
}
  0x2a   : > { %s2751_s9 = smov 128   ;;  %s2752_s10 = smov 8  }
  0x2b   : > { %2351 = dma.hbm_to_vmem [thread:$0]  (!%p2835_p11), %s3144_s2, 2048, %s168_s28, [#allocation6], %s2751_s9, %s2751_s9, %s2752_s10  }
  0x2c   : > { %s2753_s13 = smov [#allocation8]  }
  0x2d   : > { %s180_s14 = sshll.u32 %s2753_s13, 4  ;;  %s181_s14 = int_to_ptr.vmem [resolvable:$true] %s180_s14 }
  0x2e   : > { %s2630_s20 = scalar_lea.vmem %s181_s14, 6144  ;;  %p2638_p3 = scmp.lt.s32.totalorder %s181_s14, %s181_s14 }
  0x2f   : > { %p2631_p1 = scmp.ne.s32.totalorder %s181_s14, %s2630_s20  ;;  %p2639_p7 = scmp.lt.s32.totalorder %s2630_s20, %s2630_s20 }
  0x31   : > { %p2633_p2 = pnand %p2631_p1, %p2569_p12  ;;  %p2640_p9 = por %p2639_p7, %p2638_p3 }
  0x33   : > { %p2634_p6 = pneg %p2633_p2 }
  0x35   : > { %p2641_p13 = pnand %p2640_p9, %p2634_p6 }
  0x37   : > { %2644 = shalt.err (!%p2641_p13)
}
  0x38   : > { %s2754_s24 = smov 192   ;;  %s2755_s25 = smov 12  }
  0x39   : > { %2354 = dma.hbm_to_vmem [thread:$0]  (!%p2835_p11), %s3145_s3, 6144, %s181_s14, [#allocation9], %s2754_s24, %s2754_s24, %s2755_s25  }
  0x3a   : > { %s2869_s29 = sadd.s32 1, %s2745_s18   ;;  %s29_s5 = sadd.s32 1, %s2741_s17 }
  0x3b   : > { %s26_s30 = ssub.s32 %s2745_s18, %s2869_s29  ;;  %p36_p0 = scmp.ne.s32.totalorder %s2741_s17, %s2737_s16 }
  0x3c   : > { %p27_p12 = scmp.eq.s32.totalorder %s26_s30, 0  ;;  %p37_p5 = scmp.eq.s32.totalorder %s2745_s18, 0 }
  0x3d   : > { %p2366_p10 = scmp.lt.s32.totalorder %s2745_s18, 2  ;;  %p3155_p2 = scmp.eq.s32.totalorder %s2807_s19, 1 }
  0x3e   : > { %s2879_s6 = scalar_select %p27_p12, %s2741_s17, %s29_s5  }
  0x3f   : > { %p38_p1 = por %p37_p5, %p36_p0  ;;  %p2883_p6 = por %p3155_p2, %p36_p0 }
  0x40   : > { %s194_s26 = sand.u32 1, %s2741_s17   ;;  %s2102_s8 = sshll.u32 %s2745_s18, 12 }
  0x41   : > { %s3156_s7 = scalar_select %p2883_p6, 1, 0 }
  0x42   : > { %s1975_s11 = sshll.u32 %s194_s26, 8  ;;  %s2892_s14 = scalar_lea.hbm %s3142_s0, %s2102_s8 }
  0x43   : > { %s198_s20 = scalar_lea.vmem [#allocation2], %s1975_s11  ;;  %p2894_p11 = pnand %p2366_p10, %p38_p1 }
  0x44   : > { %s206_s24 = sshll.u32 %s198_s20, 4  ;;  %s2900_s27 = scalar_lea.sflag [#allocation3], %s194_s26  ;;  %s2898_s24 = int_to_ptr.vmem [resolvable:$true] %s206_s24 }
  0x45   : > { %s2645_s28 = scalar_lea.hbm %s2892_s14, 4096  ;;  %p2647_p7 = pneg %p2894_p11 }
  0x46   : > { %p2646_p3 = scmp.ne.s32.totalorder %s2892_s14, %s2645_s28  ;;  %s2650_s8 = scalar_lea.hbm %s3142_s0, 8192 }
  0x47   : > { %p2651_p12 = scmp.lt.s32.totalorder %s2892_s14, %s3142_s0  ;;  %p2652_p0 = scmp.lt.s32.totalorder %s2650_s8, %s2645_s28 }
  0x48   : > { %p2648_p9 = pnand %p2647_p7, %p2646_p3 }
  0x49   : > { %p2653_p5 = por %p2652_p0, %p2651_p12 }
  0x4a   : > { %p2649_p13 = pneg %p2648_p9 }
  0x4c   : > { %p2654_p10 = pnand %p2653_p5, %p2649_p13 }
  0x4e   : > { %2657 = shalt.err (!%p2654_p10)
}
  0x4f   : > { %s2658_s26 = scalar_lea.vmem %s2898_s24, 4096  ;;  %s2756_s13 = smov [#allocation2]  }
  0x50   : > { %p2659_p1 = scmp.ne.s32.totalorder %s2898_s24, %s2658_s26  ;;  %s2663_s20 = sshll.u32 %s2756_s13, 4  ;;  %s2664_s20 = int_to_ptr.vmem [resolvable:$false] %s2663_s20 }
  0x51   : > { %s2665_s30 = scalar_lea.vmem %s2664_s20, 8192  ;;  %p2666_p9 = scmp.lt.s32.totalorder %s2898_s24, %s2664_s20 }
  0x52   : > { %p2661_p2 = pnand %p2659_p1, %p2647_p7  ;;  %p2667_p6 = scmp.lt.s32.totalorder %s2665_s30, %s2658_s26 }
  0x54   : > { %p2662_p3 = pneg %p2661_p2  ;;  %p2668_p4 = por %p2667_p6, %p2666_p9 }
  0x56   : > { %p2669_p8 = pnand %p2668_p4, %p2662_p3 }
  0x58   : > { %2672 = shalt.err (!%p2669_p8)
}
  0x59   : > { %2358 = dma.hbm_to_vmem [thread:$0]  (!%p2894_p11), %s2892_s14, 4096, %s2898_s24, %s2900_s27, %s2751_s9, %s2751_s9, %s2752_s10  }
  0x5a   : > { %p3158_p7 = scmp.ne.s32.totalorder %s3153_s23, 0 }
  0x5b   : > { %s2927_s28 = sand.u32 (!%p3158_p7), 1, %s2737_s16   ;;  %p3159_p4 = scmp.ne.s32.totalorder (!%p3158_p7), %s3151_s21, 0 }
  0x5c   : > { %218 = sbr.rel (%p3158_p7) target bundleno = 878 (0x36e), region = 36  ;;  %s1980_s5 = sshll.u32 (!%p3158_p7), %s2927_s28, 8 }
  0x5d   : > { %s221_s8 = scalar_lea.sflag (!%p3158_p7), [#allocation3], %s2927_s28  ;;  %s2931_s11 = scalar_lea.vmem (!%p3158_p7), [#allocation2], %s1980_s5 }
  0x61   : > { %2716 = dma.done.wait (%p3159_p4), %s221_s8, 4096  }
  0x62   : > { %2718 = vsyncadd (%p3159_p4), %s221_s8, 4294963200  ;;  %p3160_p8 = scmp.eq.s32.totalorder %s2807_s19, 0 }
  0x64   : > { %2720 = dma.done.wait (%p3160_p8), [#allocation6], 4096   ;;  %p3161_p6 = pmov %p3160_p8 }
  0x66   : > { %2722 = vsyncadd (%p3161_p6), [#allocation6], 4294963200  ;;  %p3162_p11 = pmov %p3161_p6 }
  0x67   : > { %p3163_p13 = pmov %p3161_p6 }
  0x68   : > { %2724 = dma.done.wait (%p3162_p11), [#allocation9], 6144  }
  0x69   : > { %2726 = vsyncadd (%p3163_p13), [#allocation9], 4294961152  ;;  %v2415_v0 = vld [vmem:[#allocation5 + $0x78] sm:$0xff]   ;;  %v2417_v2 = vld [vmem:[#allocation5 + $0x70] sm:$0xff]   ;;  %v2757_v53 = vmov 0   ;;  %s2327_s21 = smul.u32 768, %s2927_s28 }
  0x6a   : > { %v2416_v1 = vld [vmem:[#allocation5 + $0x38] sm:$0xff]   ;;  %2103 = vmatprep.subr.bf16.mxu0 %v2415_v0  ;;  %v2418_v3 = vld [vmem:[#allocation5 + $0x30] sm:$0xff]   ;;  %v2419_v4 = vld [vmem:[#allocation5 + $0x68] sm:$0xff]   ;;  %889 = vmatprep.mubr.bf16.mxu1 %v2757_v53  ;;  %s2328_s9 = smul.u32 12288, %s2807_s19  ;;  %s1853_s19 = scalar_lea.sflag [#allocation4], %s2927_s28 }
  0x6b   : > { %2104 = vmatpush3.bf16.msra.mxu0 %v2416_v1  ;;  %v2420_v5 = vld [vmem:[#allocation5 + $0x28] sm:$0xff]   ;;  %v2421_v6 = vld [vmem:[#allocation5 + $0x60] sm:$0xff]   ;;  %v2423_v8 = vld [vmem:[#allocation5 + $0x58] sm:$0xff]   ;;  %s2994_s23 = scalar_lea.vmem [#allocation10], %s2327_s21  ;;  %p3164_p0 = scmp.ne.s32.totalorder %s3156_s7, 0 }
  0x6c   : > { %2105 = vmatprep.subr.bf16.mxu0 %v2417_v2  ;;  %v2422_v7 = vld [vmem:[#allocation5 + $0x20] sm:$0xff]   ;;  %v2424_v9 = vld [vmem:[#allocation5 + $0x18] sm:$0xff]   ;;  %v2425_v10 = vld [vmem:[#allocation5 + $0x50] sm:$0xff]   ;;  %s1867_s10 = sshll.u32 %s2994_s23, 4  ;;  %s3095_s25 = scalar_lea.hbm %s3146_s4, %s2328_s9  ;;  %s3097_s10 = int_to_ptr.vmem [resolvable:$true] %s1867_s10 }
  0x6d   : > { %v2433_v11 = vld [vmem:[%s2931_s11 + $0x4] ss:$8 sps:$4 sm:$0xff]   ;;  %v2426_v12 = vld [vmem:[#allocation5 + $0x10] sm:$0xff]   ;;  %v2431_v17 = vld [vmem:[%s2931_s11] ss:$8 sps:$4 sm:$0xff]   ;;  %s2673_s27 = scalar_lea.vmem %s3097_s10, 12288 }
  0x6e   : > { %616 = vmatprep.mubr.bf16.mxu0 %v2433_v11  ;;  %v2427_v13 = vld [vmem:[#allocation5 + $0x48] sm:$0xff]   ;;  %v2429_v15 = vld [vmem:[#allocation5 + $0x40] sm:$0xff]   ;;  %v2434_v18 = vld [vmem:[%s2931_s11 + $0x14] ss:$8 sps:$4 sm:$0xff]   ;;  %p2674_p12 = scmp.ne.s32.totalorder %s3097_s10, %s2673_s27  ;;  %s2758_s12 = smov [#allocation10]  }
  0x6f   : > { %2106 = vmatpush3.bf16.msra.mxu0 %v2418_v3  ;;  %v2428_v14 = vld [vmem:[#allocation5 + $0x8] sm:$0xff]   ;;  %v2430_v16 = vld [vmem:[#allocation5] sm:$0xff]   ;;  %v2436_v19 = vld [vmem:[%s2931_s11 + $0x10] ss:$8 sps:$4 sm:$0xff]   ;;  %s2677_s26 = sshll.u32 %s2758_s12, 4  ;;  %s2678_s26 = int_to_ptr.vmem [resolvable:$false] %s2677_s26 }
  0x70   : > { %2107 = vmatprep.subr.bf16.mxu0 %v2419_v4  ;;  %v2479_v20 = vld [vmem:[#allocation7 + $0x74] ss:$8 sps:$4 sm:$0xff]   ;;  %v2481_v21 = vld [vmem:[#allocation7 + $0x70] ss:$8 sps:$4 sm:$0xff]   ;;  %v2437_v22 = vld [vmem:[%s2931_s11 + $0x24] ss:$8 sps:$4 sm:$0xff]   ;;  %p2675_p5 = pnand %p2674_p12, %p3164_p0  ;;  %p2680_p1 = scmp.lt.s32.totalorder %s3097_s10, %s2678_s26 }
  0x71   : > { %v2482_v23 = vld [vmem:[#allocation7 + $0x64] ss:$8 sps:$4 sm:$0xff]   ;;  %857 = vmatprep.subr.bf16.mxu1 %v2479_v20  ;;  %v2484_v24 = vld [vmem:[#allocation7 + $0x60] ss:$8 sps:$4 sm:$0xff]   ;;  %v2485_v25 = vld [vmem:[#allocation7 + $0x54] ss:$8 sps:$4 sm:$0xff]  }
  0x72   : > { %858 = vmatpush1.bf16.msra.mxu1 %v2481_v21  ;;  %v2487_v26 = vld [vmem:[#allocation7 + $0x50] ss:$8 sps:$4 sm:$0xff]   ;;  %v2439_v27 = vld [vmem:[%s2931_s11 + $0x20] ss:$8 sps:$4 sm:$0xff]   ;;  %v2488_v28 = vld [vmem:[#allocation7 + $0x44] ss:$8 sps:$4 sm:$0xff]   ;;  %p2676_p10 = pneg %p2675_p5 }
  0x73   : > { %2108 = vmatpush3.bf16.msra.mxu0 %v2420_v5  ;;  %859 = vmatprep.subr.bf16.mxu1 %v2482_v23  ;;  %v2440_v29 = vld [vmem:[%s2931_s11 + $0x34] ss:$8 sps:$4 sm:$0xff]   ;;  %v2490_v30 = vld [vmem:[#allocation7 + $0x40] ss:$8 sps:$4 sm:$0xff]   ;;  %v2493_v32 = vld [vmem:[#allocation7 + $0x30] ss:$8 sps:$4 sm:$0xff]  }
  0x74   : > { %2109 = vmatprep.subr.bf16.mxu0 %v2421_v6  ;;  %v2491_v31 = vld [vmem:[#allocation7 + $0x34] ss:$8 sps:$4 sm:$0xff]   ;;  %v2442_v33 = vld [vmem:[%s2931_s11 + $0x30] ss:$8 sps:$4 sm:$0xff]   ;;  %v2494_v34 = vld [vmem:[#allocation7 + $0x24] ss:$8 sps:$4 sm:$0xff]  }
  0x75   : > { %v2443_v35 = vld [vmem:[%s2931_s11 + $0x44] ss:$8 sps:$4 sm:$0xff]   ;;  %v2445_v36 = vld [vmem:[%s2931_s11 + $0x40] ss:$8 sps:$4 sm:$0xff]   ;;  %v2446_v37 = vld [vmem:[%s2931_s11 + $0x54] ss:$8 sps:$4 sm:$0xff]  }
  0x76   : > { %860 = vmatpush1.bf16.msra.mxu1 %v2484_v24  ;;  %v2448_v38 = vld [vmem:[%s2931_s11 + $0x50] ss:$8 sps:$4 sm:$0xff]   ;;  %v2449_v39 = vld [vmem:[%s2931_s11 + $0x64] ss:$8 sps:$4 sm:$0xff]   ;;  %v2451_v40 = vld [vmem:[%s2931_s11 + $0x60] ss:$8 sps:$4 sm:$0xff]  }
  0x77   : > { %2110 = vmatpush3.bf16.msra.mxu0 %v2422_v7  ;;  %861 = vmatprep.subr.bf16.mxu1 %v2485_v25  ;;  %v2452_v41 = vld [vmem:[%s2931_s11 + $0x74] ss:$8 sps:$4 sm:$0xff]   ;;  %v2454_v42 = vld [vmem:[%s2931_s11 + $0x70] ss:$8 sps:$4 sm:$0xff]   ;;  %v2455_v43 = vld [vmem:[%s2931_s11 + $0x84] ss:$8 sps:$4 sm:$0xff]  }
  0x78   : > { %2111 = vmatprep.subr.bf16.mxu0 %v2423_v8  ;;  %v2457_v44 = vld [vmem:[%s2931_s11 + $0x80] ss:$8 sps:$4 sm:$0xff]   ;;  %v2458_v45 = vld [vmem:[%s2931_s11 + $0x94] ss:$8 sps:$4 sm:$0xff]   ;;  %v2499_v48 = vld [vmem:[#allocation7 + $0x10] ss:$8 sps:$4 sm:$0xff]  }
  0x79   : > { %v2496_v46 = vld [vmem:[#allocation7 + $0x20] ss:$8 sps:$4 sm:$0xff]   ;;  %v2497_v47 = vld [vmem:[#allocation7 + $0x14] ss:$8 sps:$4 sm:$0xff]   ;;  %v2460_v49 = vld [vmem:[%s2931_s11 + $0x90] ss:$8 sps:$4 sm:$0xff]  }
  0x7a   : > { %862 = vmatpush1.bf16.msra.mxu1 %v2487_v26  ;;  %v2461_v50 = vld [vmem:[%s2931_s11 + $0xa4] ss:$8 sps:$4 sm:$0xff]   ;;  %v2502_v52 = vld [vmem:[#allocation7] ss:$8 sps:$4 sm:$0xff]   ;;  %v2464_v55 = vld [vmem:[%s2931_s11 + $0xb4] ss:$8 sps:$4 sm:$0xff]  }
  0x7b   : > { %2112 = vmatpush3.bf16.msra.mxu0 %v2424_v9  ;;  %863 = vmatprep.subr.bf16.mxu1 %v2488_v28  ;;  %v2500_v51 = vld [vmem:[#allocation7 + $0x4] ss:$8 sps:$4 sm:$0xff]   ;;  %v2463_v54 = vld [vmem:[%s2931_s11 + $0xa0] ss:$8 sps:$4 sm:$0xff]   ;;  %v2466_v56 = vld [vmem:[%s2931_s11 + $0xb0] ss:$8 sps:$4 sm:$0xff]  }
  0x7c   : > { %2113 = vmatprep.subr.bf16.mxu0 %v2425_v10  ;;  %v2467_v57 = vld [vmem:[%s2931_s11 + $0xc4] ss:$8 sps:$4 sm:$0xff]   ;;  %v2469_v58 = vld [vmem:[%s2931_s11 + $0xc0] ss:$8 sps:$4 sm:$0xff]   ;;  %v2470_v59 = vld [vmem:[%s2931_s11 + $0xd4] ss:$8 sps:$4 sm:$0xff]  }
  0x7d   : > { %v2472_v60 = vld [vmem:[%s2931_s11 + $0xd0] ss:$8 sps:$4 sm:$0xff]   ;;  %v2473_v61 = vld [vmem:[%s2931_s11 + $0xe4] ss:$8 sps:$4 sm:$0xff]   ;;  %v2475_v62 = vld [vmem:[%s2931_s11 + $0xe0] ss:$8 sps:$4 sm:$0xff]  }
  0x7e   : > { %864 = vmatpush1.bf16.msra.mxu1 %v2490_v30  ;;  %v2476_v63 = vld [vmem:[%s2931_s11 + $0xf4] ss:$8 sps:$4 sm:$0xff]   ;;  %v2478_v0 = vld [vmem:[%s2931_s11 + $0xf0] ss:$8 sps:$4 sm:$0xff]   ;;  %v2516_v8 = vld [vmem:[#allocation8 + $0x60] ss:$12 sps:$4 sm:$0xff]  }
  0x7f   : > { %2114 = vmatpush3.bf16.msra.mxu0 %v2426_v12  ;;  %865 = vmatprep.subr.bf16.mxu1 %v2491_v31  ;;  %v2503_v1 = vld [vmem:[#allocation8 + $0x170] ss:$12 sps:$4 sm:$0xff]   ;;  %v2505_v2 = vld [vmem:[#allocation8 + $0xa8] ss:$12 sps:$4 sm:$0xff]   ;;  %v2507_v3 = vld [vmem:[#allocation8 + $0xac] ss:$12 sps:$4 sm:$0xff]  }
  0x80   : > { %2115 = vmatprep.subr.bf16.mxu0 %v2427_v13  ;;  %v2508_v4 = vld [vmem:[#allocation8 + $0x90] ss:$12 sps:$4 sm:$0xff]   ;;  %v2510_v5 = vld [vmem:[#allocation8 + $0x94] ss:$12 sps:$4 sm:$0xff]   ;;  %v2513_v6 = vld [vmem:[#allocation8 + $0x78] ss:$12 sps:$4 sm:$0xff]  }
  0x81   : > { %v2515_v7 = vld [vmem:[#allocation8 + $0x7c] ss:$12 sps:$4 sm:$0xff]   ;;  %v2518_v9 = vld [vmem:[#allocation8 + $0x64] ss:$12 sps:$4 sm:$0xff]   ;;  %v2523_v11 = vld [vmem:[#allocation8 + $0x4c] ss:$12 sps:$4 sm:$0xff]  }
  0x82   : > { %866 = vmatpush1.bf16.msra.mxu1 %v2493_v32  ;;  %v2521_v10 = vld [vmem:[#allocation8 + $0x48] ss:$12 sps:$4 sm:$0xff]   ;;  %v2524_v13 = vld [vmem:[#allocation8 + $0x30] ss:$12 sps:$4 sm:$0xff]   ;;  %v2511_v26 = vld [vmem:[#allocation8 + $0x158] ss:$12 sps:$4 sm:$0xff]  }
  0x83   : > { %2116 = vmatpush3.bf16.msra.mxu0 %v2428_v14  ;;  %867 = vmatprep.subr.bf16.mxu1 %v2494_v34  ;;  %v2526_v14 = vld [vmem:[#allocation8 + $0x34] ss:$12 sps:$4 sm:$0xff]   ;;  %v2504_v24 = vld [vmem:[#allocation8 + $0xb0] ss:$12 sps:$4 sm:$0xff]   ;;  %v2512_v31 = vld [vmem:[#allocation8 + $0x98] ss:$12 sps:$4 sm:$0xff]  }
  0x84   : > { %2117 = vmatprep.subr.bf16.mxu0 %v2429_v15  ;;  %v2519_v32 = vld [vmem:[#allocation8 + $0x140] ss:$12 sps:$4 sm:$0xff]   ;;  %s2679_s13 = scalar_lea.vmem %s2678_s26, 24576 }
  0x85   : > { %p2681_p2 = scmp.lt.s32.totalorder %s2679_s13, %s2673_s27 }
  0x86   : > { %868 = vmatpush1.bf16.msra.mxu1 %v2496_v46  ;;  %v2528_v46 = vld [vmem:[#allocation8 + $0x68] ss:$12 sps:$4 sm:$0xff]  }
  0x87   : > { %2118 = vmatpush3.bf16.msra.mxu0 %v2430_v16  ;;  %869 = vmatprep.subr.bf16.mxu1 %v2497_v47  ;;  %v2535_v47 = vld [vmem:[#allocation8 + $0x110] ss:$12 sps:$4 sm:$0xff]   ;;  %p2682_p3 = por %p2681_p2, %p2680_p1 }
  0x88   : > { %1402 = vmatprep.subr.bf16.mxu0 %v2507_v3 }
  0x89   : > { %p2683_p9 = pnand %p2682_p3, %p2676_p10 }
  0x8a   : > { %617 = vmatmul.mubr.bf16.vlgmr.msra.gmra.mxu0 %v2431_v17  ;;  %870 = vmatpush1.bf16.msra.mxu1 %v2499_v48  ;;  %v2529_v17 = vld [vmem:[#allocation8 + $0x18] ss:$12 sps:$4 sm:$0xff]  }
  0x8b   : > { %624 = vmatprep.mubr.bf16.mxu0 %v2434_v18  ;;  %871 = vmatprep.subr.bf16.mxu1 %v2500_v51  ;;  %v2531_v18 = vld [vmem:[#allocation8 + $0x1c] ss:$12 sps:$4 sm:$0xff]   ;;  %v2545_v48 = vld [vmem:[#allocation8 + $0x138] ss:$12 sps:$4 sm:$0xff]  }
  0x8c   : > { %1403 = vmatpush1.bf16.msra.mxu0 %v2505_v2  ;;  %v2558_v2 = vld [vmem:[#allocation8 + $0xf4] ss:$12 sps:$4 sm:$0xff]  }
  0x8d   : > { %1404 = vmatprep.subr.bf16.mxu0 %v2510_v5 }
  0x8e   : > { %872 = vmatpush1.bf16.msra.mxu1 %v2502_v52 }
  0x8f   : > { %2215 = vmatprep.subr.bf16.mxu1 %v2503_v1 }
  0x90   : > { %1405 = vmatpush1.bf16.msra.mxu0 %v2508_v4 }
  0x91   : > { %1406 = vmatprep.subr.bf16.mxu0 %v2515_v7 }
  0x92   : > { %625 = vmatmul.mubr.bf16.gmra.mxu0 %v2436_v19  ;;  %v2534_v19 = vld [vmem:[#allocation8 + $0x4] ss:$12 sps:$4 sm:$0xff]  }
  0x93   : > { %632 = vmatprep.mubr.bf16.mxu0 %v2437_v22 }
  0x94   : > { %1407 = vmatpush1.bf16.msra.mxu0 %v2513_v6  ;;  %v2552_v6 = vld [vmem:[#allocation8 + $0x20] ss:$12 sps:$4 sm:$0xff]  }
  0x95   : > { %1408 = vmatprep.subr.bf16.mxu0 %v2518_v9  ;;  %v2559_v9 = vld [vmem:[#allocation8 + $0xc8] ss:$12 sps:$4 sm:$0xff]  }
  0x98   : > { %1409 = vmatpush1.bf16.msra.mxu0 %v2516_v8  ;;  %v2556_v8 = vld [vmem:[#allocation8 + $0xf0] ss:$12 sps:$4 sm:$0xff]  }
  0x99   : > { %1410 = vmatprep.subr.bf16.mxu0 %v2523_v11  ;;  %v2563_v11 = vld [vmem:[#allocation8 + $0xdc] ss:$12 sps:$4 sm:$0xff]  }
  0x9a   : > { %633 = vmatmul.mubr.bf16.gmra.mxu0 %v2439_v27  ;;  %v2532_v27 = vld [vmem:[#allocation8] ss:$12 sps:$4 sm:$0xff]  }
  0x9b   : > { %640 = vmatprep.mubr.bf16.mxu0 %v2440_v29  ;;  %v2539_v29 = vld [vmem:[#allocation8 + $0x16c] ss:$12 sps:$4 sm:$0xff]  }
  0x9c   : > { %1411 = vmatpush1.bf16.msra.mxu0 %v2521_v10 }
  0x9d   : > { %1412 = vmatprep.subr.bf16.mxu0 %v2526_v14  ;;  %v2561_v14 = vld [vmem:[#allocation8 + $0xd8] ss:$12 sps:$4 sm:$0xff]  }
  0xa0   : > { %1413 = vmatpush1.bf16.msra.mxu0 %v2524_v13  ;;  %v2560_v13 = vld [vmem:[#allocation8 + $0x8] ss:$12 sps:$4 sm:$0xff]  }
  0xa1   : > { %1414 = vmatprep.subr.bf16.mxu0 %v2531_v18 }
  0xa2   : > { %641 = vmatmul.mubr.bf16.gmra.mxu0 %v2442_v33  ;;  %v2537_v33 = vld [vmem:[#allocation8 + $0x168] ss:$12 sps:$4 sm:$0xff]  }
  0xa3   : > { %648 = vmatprep.mubr.bf16.mxu0 %v2443_v35  ;;  %v2542_v35 = vld [vmem:[#allocation8 + $0x154] ss:$12 sps:$4 sm:$0xff]  }
  0xa4   : > { %1415 = vmatpush1.bf16.msra.mxu0 %v2529_v17 }
  0xa5   : > { %1416 = vmatprep.subr.bf16.mxu0 %v2534_v19 }
  0xa8   : > { %1417 = vmatpush1.bf16.msra.mxu0 %v2532_v27 }
  0xa9   : > { %1418 = vmatprep.subr.bf16.mxu0 %v2539_v29 }
  0xaa   : > { %649 = vmatmul.mubr.bf16.gmra.mxu0 %v2445_v36 }
  0xab   : > { %656 = vmatprep.mubr.bf16.mxu0 %v2446_v37 }
  0xac   : > { %1419 = vmatpush2.bf16.msra.mxu0 %v2537_v33 }
  0xad   : > { %1420 = vmatprep.subr.bf16.mxu0 %v2542_v35 }
  0xb2   : > { %657 = vmatmul.mubr.bf16.gmra.mxu0 %v2448_v38 }
  0xb3   : > { %664 = vmatprep.mubr.bf16.mxu0 %v2449_v39  ;;  %v2520_v39 = vld [vmem:[#allocation8 + $0x80] ss:$12 sps:$4 sm:$0xff]  }
  0xba   : > { %665 = vmatmul.mubr.bf16.gmra.mxu0 %v2451_v40 }
  0xbb   : > { %672 = vmatprep.mubr.bf16.mxu0 %v2452_v41  ;;  %v2527_v41 = vld [vmem:[#allocation8 + $0x128] ss:$12 sps:$4 sm:$0xff]  }
  0xc2   : > { %673 = vmatmul.mubr.bf16.gmra.mxu0 %v2454_v42  ;;  %v2540_v42 = vld [vmem:[#allocation8 + $0x150] ss:$12 sps:$4 sm:$0xff]  }
  0xc3   : > { %680 = vmatprep.mubr.bf16.mxu0 %v2455_v43  ;;  %1421 = vmatpush2.bf16.msra.mxu0 %v2540_v42 }
  0xca   : > { %681 = vmatmul.mubr.bf16.gmra.mxu0 %v2457_v44  ;;  %v2547_v44 = vld [vmem:[#allocation8 + $0x13c] ss:$12 sps:$4 sm:$0xff]  }
  0xcb   : > { %688 = vmatprep.mubr.bf16.mxu0 %v2458_v45  ;;  %1422 = vmatprep.subr.bf16.mxu0 %v2547_v44 }
  0xcc   : > { %1423 = vmatpush2.bf16.msra.mxu0 %v2545_v48 }
  0xd2   : > { %689 = vmatmul.mubr.bf16.gmra.mxu0 %v2460_v49 }
  0xd3   : > { %696 = vmatprep.mubr.bf16.mxu0 %v2461_v50  ;;  %v2550_v50 = vld [vmem:[#allocation8 + $0x124] ss:$12 sps:$4 sm:$0xff]  }
  0xd4   : > { %1424 = vmatprep.subr.bf16.mxu0 %v2550_v50  ;;  %v2564_v50 = vld [vmem:[#allocation8 + $0xc0] ss:$12 sps:$4 sm:$0xff]  }
  0xda   : > { %697 = vmatmul.mubr.bf16.gmra.mxu0 %v2463_v54 }
  0xdb   : > { %704 = vmatprep.mubr.bf16.mxu0 %v2464_v55  ;;  %v2536_v55 = vld [vmem:[#allocation8 + $0x50] ss:$12 sps:$4 sm:$0xff]  }
  0xe2   : > { %705 = vmatmul.mubr.bf16.gmra.mxu0 %v2466_v56 }
  0xe3   : > { %712 = vmatprep.mubr.bf16.mxu0 %v2467_v57  ;;  %v2543_v57 = vld [vmem:[#allocation8 + $0xf8] ss:$12 sps:$4 sm:$0xff]  }
  0xea   : > { %713 = vmatmul.mubr.bf16.gmra.mxu0 %v2469_v58  ;;  %v2548_v58 = vld [vmem:[#allocation8 + $0x120] ss:$12 sps:$4 sm:$0xff]  }
  0xeb   : > { %720 = vmatprep.mubr.bf16.mxu0 %v2470_v59  ;;  %1425 = vmatpush2.bf16.msra.mxu0 %v2548_v58 }
  0xf2   : > { %721 = vmatmul.mubr.bf16.gmra.mxu0 %v2472_v60  ;;  %v2555_v60 = vld [vmem:[#allocation8 + $0x10c] ss:$12 sps:$4 sm:$0xff]  }
  0xf3   : > { %728 = vmatprep.mubr.bf16.mxu0 %v2473_v61  ;;  %1426 = vmatprep.subr.bf16.mxu0 %v2555_v60 }
  0xfa   : > { %729 = vmatmul.mubr.bf16.gmra.mxu0 %v2475_v62  ;;  %v2544_v62 = vld [vmem:[#allocation8 + $0x38] ss:$12 sps:$4 sm:$0xff]  }
  0xfb   : > { %736 = vmatprep.mubr.bf16.mxu0 %v2476_v63  ;;  %v2551_v63 = vld [vmem:[#allocation8 + $0xe0] ss:$12 sps:$4 sm:$0xff]  }
 0x102   : > { %737 = vmatmul.mubr.bf16.gmra.mxu0 %v2478_v0  ;;  %v2553_v0 = vld [vmem:[#allocation8 + $0x108] ss:$12 sps:$4 sm:$0xff]  }
 0x103   : > { %1427 = vmatpush2.bf16.msra.mxu0 %v2553_v0 }
 0x104   : > { %1428 = vmatprep.subr.bf16.mxu0 %v2558_v2 }
 0x107   : > { %1429 = vmatpush2.bf16.msra.mxu0 %v2556_v8 }
 0x108   : > { %1430 = vmatprep.subr.bf16.mxu0 %v2563_v11 }
 0x10b   : > { %1431 = vmatpush2.bf16.msra.mxu0 %v2561_v14 }
 0x14a   : > { %v2119_v12 = vpop.f32.mrf.mxu0 }
 0x14c   : > { %v2120_v15 = vpop.f32.mrf.mxu0 }
 0x14d   : > { %v2121_v21 = vadd.f32 %v2120_v15, %v2119_v12 }
 0x14e   : > { %v2122_v16 = vpop.f32.mrf.mxu0 }
 0x150   : > { %v2123_v20 = vpop.f32.mrf.mxu0 }
 0x151   : > { %v2124_v22 = vadd.f32 %v2123_v20, %v2122_v16 }
 0x152   : > { %v2125_v23 = vpop.f32.mrf.mxu0 }
 0x153   : > { %v745_v25 = vpack.c.bf16 %v2124_v22, %v2121_v21 }
 0x154   : > { %v2126_v28 = vpop.f32.mrf.mxu0 }
 0x155   : > { %890 = vmatmul.mubr.bf16.vlgmr.msra.gmra.mxu1 %v745_v25  ;;  %v2127_v36 = vadd.f32 %v2126_v28, %v2125_v23 }
 0x156   : > { %v2128_v30 = vpop.f32.mrf.mxu0  ;;  %899 = vmatprep.mubr.bf16.mxu1 %v2757_v53  ;;  %2216 = vmatpush3.bf16.msra.mxu1 %v2504_v24 }
 0x157   : > { %2217 = vmatprep.subr.bf16.mxu1 %v2511_v26 }
 0x158   : > { %v2129_v34 = vpop.f32.mrf.mxu0 }
 0x159   : > { %v2130_v37 = vadd.f32 %v2129_v34, %v2128_v30 }
 0x15a   : > { %v2131_v38 = vpop.f32.mrf.mxu0  ;;  %2218 = vmatpush3.bf16.msra.mxu1 %v2512_v31 }
 0x15b   : > { %v746_v40 = vpack.c.bf16 %v2130_v37, %v2127_v36  ;;  %2219 = vmatprep.subr.bf16.mxu1 %v2519_v32 }
 0x15c   : > { %v2132_v43 = vpop.f32.mrf.mxu0 }
 0x15d   : > { %900 = vmatmul.mubr.bf16.gmra.mxu1 %v746_v40  ;;  %v2133_v51 = vadd.f32 %v2132_v43, %v2131_v38 }
 0x15e   : > { %v2134_v45 = vpop.f32.mrf.mxu0  ;;  %909 = vmatprep.mubr.bf16.mxu1 %v2757_v53  ;;  %2220 = vmatpush3.bf16.msra.mxu1 %v2520_v39 }
 0x15f   : > { %2221 = vmatprep.subr.bf16.mxu1 %v2527_v41 }
 0x160   : > { %v2135_v49 = vpop.f32.mrf.mxu0 }
 0x161   : > { %v2136_v52 = vadd.f32 %v2135_v49, %v2134_v45 }
 0x162   : > { %v2137_v54 = vpop.f32.mrf.mxu0  ;;  %2222 = vmatpush3.bf16.msra.mxu1 %v2528_v46 }
 0x163   : > { %v747_v56 = vpack.c.bf16 %v2136_v52, %v2133_v51  ;;  %2223 = vmatprep.subr.bf16.mxu1 %v2535_v47  ;;  %v2566_v51 = vld [vmem:[#allocation8 + $0xc4] ss:$12 sps:$4 sm:$0xff]  }
 0x164   : > { %v2138_v59 = vpop.f32.mrf.mxu0  ;;  %1432 = vmatprep.subr.bf16.mxu0 %v2566_v51 }
 0x165   : > { %910 = vmatmul.mubr.bf16.gmra.mxu1 %v747_v56  ;;  %v2139_v3 = vadd.f32 %v2138_v59, %v2137_v54  ;;  %1433 = vmatpush2.bf16.msra.mxu0 %v2564_v50 }
 0x166   : > { %v2140_v61 = vpop.f32.mrf.mxu0  ;;  %919 = vmatprep.mubr.bf16.mxu1 %v2757_v53  ;;  %2224 = vmatpush3.bf16.msra.mxu1 %v2536_v55 }
 0x167   : > { %2225 = vmatprep.subr.bf16.mxu1 %v2543_v57 }
 0x168   : > { %v2141_v1 = vpop.f32.mrf.mxu0 }
 0x169   : > { %v2142_v4 = vadd.f32 %v2141_v1, %v2140_v61 }
 0x16a   : > { %v2143_v5 = vpop.f32.mrf.mxu0  ;;  %2226 = vmatpush3.bf16.msra.mxu1 %v2544_v62 }
 0x16b   : > { %v748_v7 = vpack.c.bf16 %v2142_v4, %v2139_v3  ;;  %2227 = vmatprep.subr.bf16.mxu1 %v2551_v63 }
 0x16c   : > { %v2144_v10 = vpop.f32.mrf.mxu0 }
 0x16d   : > { %920 = vmatmul.mubr.bf16.gmra.mxu1 %v748_v7  ;;  %v2145_v16 = vadd.f32 %v2144_v10, %v2143_v5 }
 0x16e   : > { %v2146_v12 = vpop.f32.mrf.mxu0  ;;  %929 = vmatprep.mubr.bf16.mxu1 %v2757_v53  ;;  %2228 = vmatpush3.bf16.msra.mxu1 %v2552_v6 }
 0x16f   : > { %2229 = vmatprep.subr.bf16.mxu1 %v2559_v9 }
 0x170   : > { %v2147_v15 = vpop.f32.mrf.mxu0 }
 0x171   : > { %v2148_v17 = vadd.f32 %v2147_v15, %v2146_v12 }
 0x172   : > { %v2149_v18 = vpop.f32.mrf.mxu0  ;;  %2230 = vmatpush3.bf16.msra.mxu1 %v2560_v13 }
 0x173   : > { %v749_v19 = vpack.c.bf16 %v2148_v17, %v2145_v16 }
 0x174   : > { %v2150_v20 = vpop.f32.mrf.mxu0 }
 0x175   : > { %930 = vmatmul.mubr.bf16.gmra.mxu1 %v749_v19  ;;  %v2151_v23 = vadd.f32 %v2150_v20, %v2149_v18 }
 0x176   : > { %v2152_v21 = vpop.f32.mrf.mxu0  ;;  %939 = vmatprep.mubr.bf16.mxu1 %v2757_v53 }
 0x178   : > { %v2153_v22 = vpop.f32.mrf.mxu0 }
 0x179   : > { %v2154_v24 = vadd.f32 %v2153_v22, %v2152_v21 }
 0x17a   : > { %v2155_v25 = vpop.f32.mrf.mxu0 }
 0x17b   : > { %v750_v26 = vpack.c.bf16 %v2154_v24, %v2151_v23 }
 0x17c   : > { %v2156_v27 = vpop.f32.mrf.mxu0 }
 0x17d   : > { %940 = vmatmul.mubr.bf16.gmra.mxu1 %v750_v26  ;;  %v2157_v30 = vadd.f32 %v2156_v27, %v2155_v25 }
 0x17e   : > { %v2158_v28 = vpop.f32.mrf.mxu0  ;;  %949 = vmatprep.mubr.bf16.mxu1 %v2757_v53 }
 0x180   : > { %v2159_v29 = vpop.f32.mrf.mxu0 }
 0x181   : > { %v2160_v31 = vadd.f32 %v2159_v29, %v2158_v28 }
 0x182   : > { %v2161_v32 = vpop.f32.mrf.mxu0 }
 0x183   : > { %v751_v33 = vpack.c.bf16 %v2160_v31, %v2157_v30 }
 0x184   : > { %v2162_v34 = vpop.f32.mrf.mxu0 }
 0x185   : > { %950 = vmatmul.mubr.bf16.gmra.mxu1 %v751_v33  ;;  %v2163_v37 = vadd.f32 %v2162_v34, %v2161_v32 }
 0x186   : > { %v2164_v35 = vpop.f32.mrf.mxu0  ;;  %959 = vmatprep.mubr.bf16.mxu1 %v2757_v53 }
 0x188   : > { %v2165_v36 = vpop.f32.mrf.mxu0 }
 0x189   : > { %v2166_v38 = vadd.f32 %v2165_v36, %v2164_v35 }
 0x18a   : > { %v2167_v39 = vpop.f32.mrf.mxu0 }
 0x18b   : > { %v752_v40 = vpack.c.bf16 %v2166_v38, %v2163_v37 }
 0x18c   : > { %v2168_v41 = vpop.f32.mrf.mxu0 }
 0x18d   : > { %960 = vmatmul.mubr.bf16.gmra.mxu1 %v752_v40  ;;  %v2169_v44 = vadd.f32 %v2168_v41, %v2167_v39 }
 0x18e   : > { %v2170_v42 = vpop.f32.mrf.mxu0  ;;  %969 = vmatprep.mubr.bf16.mxu1 %v2757_v53 }
 0x190   : > { %v2171_v43 = vpop.f32.mrf.mxu0 }
 0x191   : > { %v2172_v45 = vadd.f32 %v2171_v43, %v2170_v42 }
 0x192   : > { %v2173_v46 = vpop.f32.mrf.mxu0 }
 0x193   : > { %v753_v47 = vpack.c.bf16 %v2172_v45, %v2169_v44 }
 0x194   : > { %v2174_v48 = vpop.f32.mrf.mxu0 }
 0x195   : > { %970 = vmatmul.mubr.bf16.gmra.mxu1 %v753_v47  ;;  %v2175_v54 = vadd.f32 %v2174_v48, %v2173_v46 }
 0x196   : > { %v2176_v49 = vpop.f32.mrf.mxu0  ;;  %979 = vmatprep.mubr.bf16.mxu1 %v2757_v53 }
 0x198   : > { %v2177_v52 = vpop.f32.mrf.mxu0 }
 0x199   : > { %v2178_v55 = vadd.f32 %v2177_v52, %v2176_v49 }
 0x19a   : > { %v2179_v56 = vpop.f32.mrf.mxu0 }
 0x19b   : > { %v754_v57 = vpack.c.bf16 %v2178_v55, %v2175_v54 }
 0x19c   : > { %v2180_v58 = vpop.f32.mrf.mxu0 }
 0x19d   : > { %980 = vmatmul.mubr.bf16.gmra.mxu1 %v754_v57  ;;  %v2181_v61 = vadd.f32 %v2180_v58, %v2179_v56 }
 0x19e   : > { %v2182_v59 = vpop.f32.mrf.mxu0  ;;  %989 = vmatprep.mubr.bf16.mxu1 %v2757_v53 }
 0x1a0   : > { %v2183_v60 = vpop.f32.mrf.mxu0 }
 0x1a1   : > { %v2184_v62 = vadd.f32 %v2183_v60, %v2182_v59 }
 0x1a2   : > { %v2185_v63 = vpop.f32.mrf.mxu0 }
 0x1a3   : > { %v755_v0 = vpack.c.bf16 %v2184_v62, %v2181_v61 }
 0x1a4   : > { %v2186_v1 = vpop.f32.mrf.mxu0 }
 0x1a5   : > { %990 = vmatmul.mubr.bf16.gmra.mxu1 %v755_v0  ;;  %v2187_v4 = vadd.f32 %v2186_v1, %v2185_v63 }
 0x1a6   : > { %v2188_v2 = vpop.f32.mrf.mxu0  ;;  %999 = vmatprep.mubr.bf16.mxu1 %v2757_v53 }
 0x1a8   : > { %v2189_v3 = vpop.f32.mrf.mxu0 }
 0x1a9   : > { %v2190_v5 = vadd.f32 %v2189_v3, %v2188_v2 }
 0x1aa   : > { %v2191_v6 = vpop.f32.mrf.mxu0 }
 0x1ab   : > { %v756_v7 = vpack.c.bf16 %v2190_v5, %v2187_v4 }
 0x1ac   : > { %v2192_v8 = vpop.f32.mrf.mxu0 }
 0x1ad   : > { %1000 = vmatmul.mubr.bf16.gmra.mxu1 %v756_v7  ;;  %v2193_v11 = vadd.f32 %v2192_v8, %v2191_v6 }
 0x1ae   : > { %v2194_v9 = vpop.f32.mrf.mxu0  ;;  %1009 = vmatprep.mubr.bf16.mxu1 %v2757_v53 }
 0x1b0   : > { %v2195_v10 = vpop.f32.mrf.mxu0 }
 0x1b1   : > { %v2196_v12 = vadd.f32 %v2195_v10, %v2194_v9 }
 0x1b2   : > { %v2197_v13 = vpop.f32.mrf.mxu0 }
 0x1b3   : > { %v757_v14 = vpack.c.bf16 %v2196_v12, %v2193_v11 }
 0x1b4   : > { %v2198_v15 = vpop.f32.mrf.mxu0 }
 0x1b5   : > { %1010 = vmatmul.mubr.bf16.gmra.mxu1 %v757_v14  ;;  %v2199_v18 = vadd.f32 %v2198_v15, %v2197_v13 }
 0x1b6   : > { %v2200_v16 = vpop.f32.mrf.mxu0  ;;  %1019 = vmatprep.mubr.bf16.mxu1 %v2757_v53 }
 0x1b8   : > { %v2201_v17 = vpop.f32.mrf.mxu0 }
 0x1b9   : > { %v2202_v19 = vadd.f32 %v2201_v17, %v2200_v16 }
 0x1ba   : > { %v2203_v20 = vpop.f32.mrf.mxu0 }
 0x1bb   : > { %v758_v21 = vpack.c.bf16 %v2202_v19, %v2199_v18 }
 0x1bc   : > { %v2204_v22 = vpop.f32.mrf.mxu0 }
 0x1bd   : > { %1020 = vmatmul.mubr.bf16.gmra.mxu1 %v758_v21  ;;  %v2205_v25 = vadd.f32 %v2204_v22, %v2203_v20 }
 0x1be   : > { %v2206_v23 = vpop.f32.mrf.mxu0  ;;  %1029 = vmatprep.mubr.bf16.mxu1 %v2757_v53 }
 0x1c0   : > { %v2207_v24 = vpop.f32.mrf.mxu0 }
 0x1c1   : > { %v2208_v26 = vadd.f32 %v2207_v24, %v2206_v23 }
 0x1c2   : > { %v2209_v27 = vpop.f32.mrf.mxu0 }
 0x1c3   : > { %v759_v28 = vpack.c.bf16 %v2208_v26, %v2205_v25 }
 0x1c4   : > { %v2210_v29 = vpop.f32.mrf.mxu0 }
 0x1c5   : > { %1030 = vmatmul.mubr.bf16.gmra.mxu1 %v759_v28  ;;  %v2211_v32 = vadd.f32 %v2210_v29, %v2209_v27 }
 0x1c6   : > { %v2212_v30 = vpop.f32.mrf.mxu0  ;;  %1039 = vmatprep.mubr.bf16.mxu1 %v2757_v53 }
 0x1c8   : > { %v2213_v31 = vpop.f32.mrf.mxu0 }
 0x1c9   : > { %v2214_v33 = vadd.f32 %v2213_v31, %v2212_v30 }
 0x1cb   : > { %v760_v34 = vpack.c.bf16 %v2214_v33, %v2211_v32 }
 0x1cd   : > { %1040 = vmatmul.mubr.bf16.gmra.mxu1 %v760_v34 }
 0x215   : > { %v891_v35 = vpop.f32.mrf.mxu1 }
 0x217   : > { %v893_v36 = vpop.f32.mrf.mxu1 }
 0x219   : > { %v895_v37 = vpop.f32.mrf.mxu1 }
 0x21a   : > { %v1050_v40 = vpack.c.bf16 %v895_v37, %v891_v35 }
 0x21b   : > { %v897_v38 = vpop.f32.mrf.mxu1 }
 0x21c   : > { %v1051_v39 = vpack.c.bf16 %v897_v38, %v893_v36 }
 0x21d   : > { %v901_v41 = vpop.f32.mrf.mxu1 }
 0x21e   : > { %1434 = vmatprep.mubr.bf16.mxu0 %v1051_v39  ;;  %1627 = vmatprep.mubr.bf16.mxu1 %v1051_v39 }
 0x21f   : > { %v903_v42 = vpop.f32.mrf.mxu1  ;;  %1435 = vmatmul.mubr.bf16.vlgmr.msra.gmra.mxu0 %v1050_v40  ;;  %1628 = vmatmul.mubr.bf16.vlgmr.msra.gmra.mxu1 %v1050_v40 }
 0x221   : > { %v905_v43 = vpop.f32.mrf.mxu1 }
 0x222   : > { %v1052_v45 = vpack.c.bf16 %v905_v43, %v901_v41 }
 0x223   : > { %v907_v44 = vpop.f32.mrf.mxu1 }
 0x224   : > { %v1053_v53 = vpack.c.bf16 %v907_v44, %v903_v42 }
 0x225   : > { %v911_v46 = vpop.f32.mrf.mxu1 }
 0x226   : > { %1444 = vmatprep.mubr.bf16.mxu0 %v1053_v53  ;;  %1635 = vmatprep.mubr.bf16.mxu1 %v1053_v53 }
 0x227   : > { %v913_v47 = vpop.f32.mrf.mxu1  ;;  %1445 = vmatmul.mubr.bf16.gmra.mxu0 %v1052_v45  ;;  %1636 = vmatmul.mubr.bf16.gmra.mxu1 %v1052_v45 }
 0x229   : > { %v915_v48 = vpop.f32.mrf.mxu1 }
 0x22a   : > { %v1054_v51 = vpack.c.bf16 %v915_v48, %v911_v46 }
 0x22b   : > { %v917_v49 = vpop.f32.mrf.mxu1 }
 0x22c   : > { %v1055_v50 = vpack.c.bf16 %v917_v49, %v913_v47 }
 0x22d   : > { %v921_v52 = vpop.f32.mrf.mxu1 }
 0x22e   : > { %1454 = vmatprep.mubr.bf16.mxu0 %v1055_v50  ;;  %1643 = vmatprep.mubr.bf16.mxu1 %v1055_v50 }
 0x22f   : > { %v923_v54 = vpop.f32.mrf.mxu1  ;;  %1455 = vmatmul.mubr.bf16.gmra.mxu0 %v1054_v51  ;;  %1644 = vmatmul.mubr.bf16.gmra.mxu1 %v1054_v51 }
 0x231   : > { %v925_v55 = vpop.f32.mrf.mxu1 }
 0x232   : > { %v1056_v58 = vpack.c.bf16 %v925_v55, %v921_v52 }
 0x233   : > { %v927_v56 = vpop.f32.mrf.mxu1 }
 0x234   : > { %v1057_v57 = vpack.c.bf16 %v927_v56, %v923_v54 }
 0x235   : > { %v931_v59 = vpop.f32.mrf.mxu1 }
 0x236   : > { %1464 = vmatprep.mubr.bf16.mxu0 %v1057_v57  ;;  %1651 = vmatprep.mubr.bf16.mxu1 %v1057_v57 }
 0x237   : > { %v933_v60 = vpop.f32.mrf.mxu1  ;;  %1465 = vmatmul.mubr.bf16.gmra.mxu0 %v1056_v58  ;;  %1652 = vmatmul.mubr.bf16.gmra.mxu1 %v1056_v58 }
 0x239   : > { %v935_v61 = vpop.f32.mrf.mxu1 }
 0x23a   : > { %v1058_v0 = vpack.c.bf16 %v935_v61, %v931_v59 }
 0x23b   : > { %v937_v62 = vpop.f32.mrf.mxu1 }
 0x23c   : > { %v1059_v63 = vpack.c.bf16 %v937_v62, %v933_v60 }
 0x23d   : > { %v941_v1 = vpop.f32.mrf.mxu1 }
 0x23e   : > { %1474 = vmatprep.mubr.bf16.mxu0 %v1059_v63  ;;  %1659 = vmatprep.mubr.bf16.mxu1 %v1059_v63 }
 0x23f   : > { %v943_v2 = vpop.f32.mrf.mxu1  ;;  %1475 = vmatmul.mubr.bf16.gmra.mxu0 %v1058_v0  ;;  %1660 = vmatmul.mubr.bf16.gmra.mxu1 %v1058_v0 }
 0x241   : > { %v945_v3 = vpop.f32.mrf.mxu1 }
 0x242   : > { %v1060_v6 = vpack.c.bf16 %v945_v3, %v941_v1 }
 0x243   : > { %v947_v4 = vpop.f32.mrf.mxu1 }
 0x244   : > { %v1061_v5 = vpack.c.bf16 %v947_v4, %v943_v2 }
 0x245   : > { %v951_v7 = vpop.f32.mrf.mxu1 }
 0x246   : > { %1484 = vmatprep.mubr.bf16.mxu0 %v1061_v5  ;;  %1667 = vmatprep.mubr.bf16.mxu1 %v1061_v5 }
 0x247   : > { %v953_v8 = vpop.f32.mrf.mxu1  ;;  %1485 = vmatmul.mubr.bf16.gmra.mxu0 %v1060_v6  ;;  %1668 = vmatmul.mubr.bf16.gmra.mxu1 %v1060_v6 }
 0x249   : > { %v955_v9 = vpop.f32.mrf.mxu1 }
 0x24a   : > { %v1062_v12 = vpack.c.bf16 %v955_v9, %v951_v7 }
 0x24b   : > { %v957_v10 = vpop.f32.mrf.mxu1 }
 0x24c   : > { %v1063_v11 = vpack.c.bf16 %v957_v10, %v953_v8 }
 0x24d   : > { %v961_v13 = vpop.f32.mrf.mxu1 }
 0x24e   : > { %1494 = vmatprep.mubr.bf16.mxu0 %v1063_v11  ;;  %1675 = vmatprep.mubr.bf16.mxu1 %v1063_v11 }
 0x24f   : > { %v963_v14 = vpop.f32.mrf.mxu1  ;;  %1495 = vmatmul.mubr.bf16.gmra.mxu0 %v1062_v12  ;;  %1676 = vmatmul.mubr.bf16.gmra.mxu1 %v1062_v12 }
 0x251   : > { %v965_v15 = vpop.f32.mrf.mxu1 }
 0x252   : > { %v1064_v18 = vpack.c.bf16 %v965_v15, %v961_v13 }
 0x253   : > { %v967_v16 = vpop.f32.mrf.mxu1 }
 0x254   : > { %v1065_v17 = vpack.c.bf16 %v967_v16, %v963_v14 }
 0x255   : > { %v971_v19 = vpop.f32.mrf.mxu1 }
 0x256   : > { %1504 = vmatprep.mubr.bf16.mxu0 %v1065_v17  ;;  %1683 = vmatprep.mubr.bf16.mxu1 %v1065_v17 }
 0x257   : > { %v973_v20 = vpop.f32.mrf.mxu1  ;;  %1505 = vmatmul.mubr.bf16.gmra.mxu0 %v1064_v18  ;;  %1684 = vmatmul.mubr.bf16.gmra.mxu1 %v1064_v18 }
 0x259   : > { %v975_v21 = vpop.f32.mrf.mxu1 }
 0x25a   : > { %v1066_v24 = vpack.c.bf16 %v975_v21, %v971_v19 }
 0x25b   : > { %v977_v22 = vpop.f32.mrf.mxu1 }
 0x25c   : > { %v1067_v23 = vpack.c.bf16 %v977_v22, %v973_v20 }
 0x25d   : > { %v981_v25 = vpop.f32.mrf.mxu1 }
 0x25e   : > { %1514 = vmatprep.mubr.bf16.mxu0 %v1067_v23  ;;  %1691 = vmatprep.mubr.bf16.mxu1 %v1067_v23 }
 0x25f   : > { %v983_v26 = vpop.f32.mrf.mxu1  ;;  %1515 = vmatmul.mubr.bf16.gmra.mxu0 %v1066_v24  ;;  %1692 = vmatmul.mubr.bf16.gmra.mxu1 %v1066_v24 }
 0x261   : > { %v985_v27 = vpop.f32.mrf.mxu1 }
 0x262   : > { %v1068_v30 = vpack.c.bf16 %v985_v27, %v981_v25 }
 0x263   : > { %v987_v28 = vpop.f32.mrf.mxu1 }
 0x264   : > { %v1069_v29 = vpack.c.bf16 %v987_v28, %v983_v26 }
 0x265   : > { %v991_v31 = vpop.f32.mrf.mxu1 }
 0x266   : > { %1524 = vmatprep.mubr.bf16.mxu0 %v1069_v29  ;;  %1699 = vmatprep.mubr.bf16.mxu1 %v1069_v29 }
 0x267   : > { %v993_v32 = vpop.f32.mrf.mxu1  ;;  %1525 = vmatmul.mubr.bf16.gmra.mxu0 %v1068_v30  ;;  %1700 = vmatmul.mubr.bf16.gmra.mxu1 %v1068_v30 }
 0x269   : > { %v995_v33 = vpop.f32.mrf.mxu1 }
 0x26a   : > { %v1070_v36 = vpack.c.bf16 %v995_v33, %v991_v31 }
 0x26b   : > { %v997_v34 = vpop.f32.mrf.mxu1 }
 0x26c   : > { %v1071_v35 = vpack.c.bf16 %v997_v34, %v993_v32 }
 0x26d   : > { %v1001_v37 = vpop.f32.mrf.mxu1 }
 0x26e   : > { %1534 = vmatprep.mubr.bf16.mxu0 %v1071_v35  ;;  %1707 = vmatprep.mubr.bf16.mxu1 %v1071_v35 }
 0x26f   : > { %v1003_v38 = vpop.f32.mrf.mxu1  ;;  %1535 = vmatmul.mubr.bf16.gmra.mxu0 %v1070_v36  ;;  %1708 = vmatmul.mubr.bf16.gmra.mxu1 %v1070_v36 }
 0x271   : > { %v1005_v39 = vpop.f32.mrf.mxu1 }
 0x272   : > { %v1072_v42 = vpack.c.bf16 %v1005_v39, %v1001_v37 }
 0x273   : > { %v1007_v40 = vpop.f32.mrf.mxu1 }
 0x274   : > { %v1073_v41 = vpack.c.bf16 %v1007_v40, %v1003_v38 }
 0x275   : > { %v1011_v43 = vpop.f32.mrf.mxu1 }
 0x276   : > { %1544 = vmatprep.mubr.bf16.mxu0 %v1073_v41  ;;  %1715 = vmatprep.mubr.bf16.mxu1 %v1073_v41 }
 0x277   : > { %v1013_v44 = vpop.f32.mrf.mxu1  ;;  %1545 = vmatmul.mubr.bf16.gmra.mxu0 %v1072_v42  ;;  %1716 = vmatmul.mubr.bf16.gmra.mxu1 %v1072_v42 }
 0x279   : > { %v1015_v53 = vpop.f32.mrf.mxu1 }
 0x27a   : > { %v1074_v47 = vpack.c.bf16 %v1015_v53, %v1011_v43 }
 0x27b   : > { %v1017_v45 = vpop.f32.mrf.mxu1 }
 0x27c   : > { %v1075_v46 = vpack.c.bf16 %v1017_v45, %v1013_v44 }
 0x27d   : > { %v1021_v48 = vpop.f32.mrf.mxu1 }
 0x27e   : > { %1554 = vmatprep.mubr.bf16.mxu0 %v1075_v46  ;;  %1723 = vmatprep.mubr.bf16.mxu1 %v1075_v46 }
 0x27f   : > { %v1023_v49 = vpop.f32.mrf.mxu1  ;;  %1555 = vmatmul.mubr.bf16.gmra.mxu0 %v1074_v47  ;;  %1724 = vmatmul.mubr.bf16.gmra.mxu1 %v1074_v47 }
 0x281   : > { %v1025_v50 = vpop.f32.mrf.mxu1 }
 0x282   : > { %v1076_v54 = vpack.c.bf16 %v1025_v50, %v1021_v48 }
 0x283   : > { %v1027_v51 = vpop.f32.mrf.mxu1 }
 0x284   : > { %v1077_v52 = vpack.c.bf16 %v1027_v51, %v1023_v49 }
 0x285   : > { %v1031_v55 = vpop.f32.mrf.mxu1 }
 0x286   : > { %1564 = vmatprep.mubr.bf16.mxu0 %v1077_v52  ;;  %1731 = vmatprep.mubr.bf16.mxu1 %v1077_v52 }
 0x287   : > { %v1033_v56 = vpop.f32.mrf.mxu1  ;;  %1565 = vmatmul.mubr.bf16.gmra.mxu0 %v1076_v54  ;;  %1732 = vmatmul.mubr.bf16.gmra.mxu1 %v1076_v54 }
 0x289   : > { %v1035_v57 = vpop.f32.mrf.mxu1 }
 0x28a   : > { %v1078_v60 = vpack.c.bf16 %v1035_v57, %v1031_v55 }
 0x28b   : > { %v1037_v58 = vpop.f32.mrf.mxu1 }
 0x28c   : > { %v1079_v59 = vpack.c.bf16 %v1037_v58, %v1033_v56 }
 0x28d   : > { %v1041_v61 = vpop.f32.mrf.mxu1 }
 0x28e   : > { %1574 = vmatprep.mubr.bf16.mxu0 %v1079_v59  ;;  %1739 = vmatprep.mubr.bf16.mxu1 %v1079_v59 }
 0x28f   : > { %v1043_v62 = vpop.f32.mrf.mxu1  ;;  %1575 = vmatmul.mubr.bf16.gmra.mxu0 %v1078_v60  ;;  %1740 = vmatmul.mubr.bf16.gmra.mxu1 %v1078_v60 }
 0x291   : > { %v1045_v63 = vpop.f32.mrf.mxu1 }
 0x292   : > { %v1080_v2 = vpack.c.bf16 %v1045_v63, %v1041_v61 }
 0x293   : > { %v1047_v0 = vpop.f32.mrf.mxu1 }
 0x294   : > { %v1081_v1 = vpack.c.bf16 %v1047_v0, %v1043_v62 }
 0x296   : > { %1584 = vmatprep.mubr.bf16.mxu0 %v1081_v1  ;;  %1747 = vmatprep.mubr.bf16.mxu1 %v1081_v1 }
 0x297   : > { %1585 = vmatmul.mubr.bf16.gmra.mxu0 %v1080_v2  ;;  %1748 = vmatmul.mubr.bf16.gmra.mxu1 %v1080_v2 }
 0x2df   : > { %v1436_v3 = vpop.f32.mrf.mxu0  ;;  %v2231_v4 = vpop.f32.mrf.mxu1 }
 0x2e0   : > { %1756 = vst [vmem:[%s2994_s23] sm:$0xff] %v1436_v3 }
 0x2e1   : > { %v1438_v5 = vpop.f32.mrf.mxu0  ;;  %v2232_v6 = vpop.f32.mrf.mxu1 }
 0x2e2   : > { %1757 = vst [vmem:[%s2994_s23 + $0x8] sm:$0xff] %v1438_v5  ;;  %v2233_v7 = vadd.f32 %v2232_v6, %v2231_v4 }
 0x2e3   : > { %v1440_v8 = vpop.f32.mrf.mxu0  ;;  %v2234_v9 = vpop.f32.mrf.mxu1 }
 0x2e4   : > { %1758 = vst [vmem:[%s2994_s23 + $0x10] sm:$0xff] %v2233_v7  ;;  %1759 = vst [vmem:[%s2994_s23 + $0x18] sm:$0xff] %v1440_v8 }
 0x2e5   : > { %v1442_v10 = vpop.f32.mrf.mxu0  ;;  %v2235_v11 = vpop.f32.mrf.mxu1 }
 0x2e6   : > { %1760 = vst [vmem:[%s2994_s23 + $0x20] sm:$0xff] %v1442_v10  ;;  %v2236_v12 = vadd.f32 %v2235_v11, %v2234_v9 }
 0x2e7   : > { %v1446_v13 = vpop.f32.mrf.mxu0  ;;  %v2237_v14 = vpop.f32.mrf.mxu1 }
 0x2e8   : > { %1761 = vst [vmem:[%s2994_s23 + $0x28] sm:$0xff] %v2236_v12  ;;  %1762 = vst [vmem:[%s2994_s23 + $0x30] sm:$0xff] %v1446_v13 }
 0x2e9   : > { %v1448_v15 = vpop.f32.mrf.mxu0  ;;  %v2238_v16 = vpop.f32.mrf.mxu1 }
 0x2ea   : > { %1763 = vst [vmem:[%s2994_s23 + $0x38] sm:$0xff] %v1448_v15  ;;  %v2239_v17 = vadd.f32 %v2238_v16, %v2237_v14 }
 0x2eb   : > { %v1450_v18 = vpop.f32.mrf.mxu0  ;;  %v2240_v19 = vpop.f32.mrf.mxu1 }
 0x2ec   : > { %1764 = vst [vmem:[%s2994_s23 + $0x40] sm:$0xff] %v2239_v17  ;;  %1765 = vst [vmem:[%s2994_s23 + $0x48] sm:$0xff] %v1450_v18 }
 0x2ed   : > { %v1452_v20 = vpop.f32.mrf.mxu0  ;;  %v2241_v21 = vpop.f32.mrf.mxu1 }
 0x2ee   : > { %1766 = vst [vmem:[%s2994_s23 + $0x50] sm:$0xff] %v1452_v20  ;;  %v2242_v22 = vadd.f32 %v2241_v21, %v2240_v19 }
 0x2ef   : > { %v1456_v23 = vpop.f32.mrf.mxu0  ;;  %v2243_v24 = vpop.f32.mrf.mxu1 }
 0x2f0   : > { %1767 = vst [vmem:[%s2994_s23 + $0x58] sm:$0xff] %v2242_v22  ;;  %1768 = vst [vmem:[%s2994_s23 + $0x60] sm:$0xff] %v1456_v23 }
 0x2f1   : > { %v1458_v25 = vpop.f32.mrf.mxu0  ;;  %v2244_v26 = vpop.f32.mrf.mxu1 }
 0x2f2   : > { %1769 = vst [vmem:[%s2994_s23 + $0x68] sm:$0xff] %v1458_v25  ;;  %v2245_v27 = vadd.f32 %v2244_v26, %v2243_v24 }
 0x2f3   : > { %v1460_v28 = vpop.f32.mrf.mxu0  ;;  %v2246_v29 = vpop.f32.mrf.mxu1 }
 0x2f4   : > { %1770 = vst [vmem:[%s2994_s23 + $0x70] sm:$0xff] %v2245_v27  ;;  %1771 = vst [vmem:[%s2994_s23 + $0x78] sm:$0xff] %v1460_v28 }
 0x2f5   : > { %v1462_v30 = vpop.f32.mrf.mxu0  ;;  %v2247_v31 = vpop.f32.mrf.mxu1 }
 0x2f6   : > { %1772 = vst [vmem:[%s2994_s23 + $0x80] sm:$0xff] %v1462_v30  ;;  %v2248_v32 = vadd.f32 %v2247_v31, %v2246_v29 }
 0x2f7   : > { %v1466_v33 = vpop.f32.mrf.mxu0  ;;  %v2249_v34 = vpop.f32.mrf.mxu1 }
 0x2f8   : > { %1773 = vst [vmem:[%s2994_s23 + $0x88] sm:$0xff] %v2248_v32  ;;  %1774 = vst [vmem:[%s2994_s23 + $0x90] sm:$0xff] %v1466_v33 }
 0x2f9   : > { %v1468_v35 = vpop.f32.mrf.mxu0  ;;  %v2250_v36 = vpop.f32.mrf.mxu1 }
 0x2fa   : > { %1775 = vst [vmem:[%s2994_s23 + $0x98] sm:$0xff] %v1468_v35  ;;  %v2251_v37 = vadd.f32 %v2250_v36, %v2249_v34 }
 0x2fb   : > { %v1470_v38 = vpop.f32.mrf.mxu0  ;;  %v2252_v39 = vpop.f32.mrf.mxu1 }
 0x2fc   : > { %1776 = vst [vmem:[%s2994_s23 + $0xa0] sm:$0xff] %v2251_v37  ;;  %1777 = vst [vmem:[%s2994_s23 + $0xa8] sm:$0xff] %v1470_v38 }
 0x2fd   : > { %v1472_v40 = vpop.f32.mrf.mxu0  ;;  %v2253_v41 = vpop.f32.mrf.mxu1 }
 0x2fe   : > { %1778 = vst [vmem:[%s2994_s23 + $0xb0] sm:$0xff] %v1472_v40  ;;  %v2254_v42 = vadd.f32 %v2253_v41, %v2252_v39 }
 0x2ff   : > { %v1476_v43 = vpop.f32.mrf.mxu0  ;;  %v2255_v44 = vpop.f32.mrf.mxu1 }
 0x300   : > { %1779 = vst [vmem:[%s2994_s23 + $0xb8] sm:$0xff] %v2254_v42  ;;  %1780 = vst [vmem:[%s2994_s23 + $0xc0] sm:$0xff] %v1476_v43 }
 0x301   : > { %v1478_v53 = vpop.f32.mrf.mxu0  ;;  %v2256_v45 = vpop.f32.mrf.mxu1 }
 0x302   : > { %1781 = vst [vmem:[%s2994_s23 + $0xc8] sm:$0xff] %v1478_v53  ;;  %v2257_v46 = vadd.f32 %v2256_v45, %v2255_v44 }
 0x303   : > { %v1480_v47 = vpop.f32.mrf.mxu0  ;;  %v2258_v48 = vpop.f32.mrf.mxu1 }
 0x304   : > { %1782 = vst [vmem:[%s2994_s23 + $0xd0] sm:$0xff] %v2257_v46  ;;  %1783 = vst [vmem:[%s2994_s23 + $0xd8] sm:$0xff] %v1480_v47 }
 0x305   : > { %v1482_v49 = vpop.f32.mrf.mxu0  ;;  %v2259_v50 = vpop.f32.mrf.mxu1 }
 0x306   : > { %1784 = vst [vmem:[%s2994_s23 + $0xe0] sm:$0xff] %v1482_v49  ;;  %v2260_v51 = vadd.f32 %v2259_v50, %v2258_v48 }
 0x307   : > { %v1486_v52 = vpop.f32.mrf.mxu0  ;;  %v2261_v54 = vpop.f32.mrf.mxu1 }
 0x308   : > { %1785 = vst [vmem:[%s2994_s23 + $0xe8] sm:$0xff] %v2260_v51  ;;  %1786 = vst [vmem:[%s2994_s23 + $0xf0] sm:$0xff] %v1486_v52 }
 0x309   : > { %v1488_v55 = vpop.f32.mrf.mxu0  ;;  %v2262_v56 = vpop.f32.mrf.mxu1 }
 0x30a   : > { %1787 = vst [vmem:[%s2994_s23 + $0xf8] sm:$0xff] %v1488_v55  ;;  %v2263_v57 = vadd.f32 %v2262_v56, %v2261_v54 }
 0x30b   : > { %v1490_v58 = vpop.f32.mrf.mxu0  ;;  %v2264_v59 = vpop.f32.mrf.mxu1 }
 0x30c   : > { %1788 = vst [vmem:[%s2994_s23 + $0x100] sm:$0xff] %v2263_v57  ;;  %1789 = vst [vmem:[%s2994_s23 + $0x108] sm:$0xff] %v1490_v58 }
 0x30d   : > { %v1492_v60 = vpop.f32.mrf.mxu0  ;;  %v2265_v61 = vpop.f32.mrf.mxu1 }
 0x30e   : > { %1790 = vst [vmem:[%s2994_s23 + $0x110] sm:$0xff] %v1492_v60  ;;  %v2266_v62 = vadd.f32 %v2265_v61, %v2264_v59 }
 0x30f   : > { %v1496_v63 = vpop.f32.mrf.mxu0  ;;  %v2267_v0 = vpop.f32.mrf.mxu1 }
 0x310   : > { %1791 = vst [vmem:[%s2994_s23 + $0x118] sm:$0xff] %v2266_v62  ;;  %1792 = vst [vmem:[%s2994_s23 + $0x120] sm:$0xff] %v1496_v63 }
 0x311   : > { %v1498_v1 = vpop.f32.mrf.mxu0  ;;  %v2268_v2 = vpop.f32.mrf.mxu1 }
 0x312   : > { %1793 = vst [vmem:[%s2994_s23 + $0x128] sm:$0xff] %v1498_v1  ;;  %v2269_v3 = vadd.f32 %v2268_v2, %v2267_v0 }
 0x313   : > { %v1500_v4 = vpop.f32.mrf.mxu0  ;;  %v2270_v5 = vpop.f32.mrf.mxu1 }
 0x314   : > { %1794 = vst [vmem:[%s2994_s23 + $0x130] sm:$0xff] %v2269_v3  ;;  %1795 = vst [vmem:[%s2994_s23 + $0x138] sm:$0xff] %v1500_v4 }
 0x315   : > { %v1502_v6 = vpop.f32.mrf.mxu0  ;;  %v2271_v7 = vpop.f32.mrf.mxu1 }
 0x316   : > { %1796 = vst [vmem:[%s2994_s23 + $0x140] sm:$0xff] %v1502_v6  ;;  %v2272_v8 = vadd.f32 %v2271_v7, %v2270_v5 }
 0x317   : > { %v1506_v9 = vpop.f32.mrf.mxu0  ;;  %v2273_v10 = vpop.f32.mrf.mxu1 }
 0x318   : > { %1797 = vst [vmem:[%s2994_s23 + $0x148] sm:$0xff] %v2272_v8  ;;  %1798 = vst [vmem:[%s2994_s23 + $0x150] sm:$0xff] %v1506_v9 }
 0x319   : > { %v1508_v11 = vpop.f32.mrf.mxu0  ;;  %v2274_v12 = vpop.f32.mrf.mxu1 }
 0x31a   : > { %1799 = vst [vmem:[%s2994_s23 + $0x158] sm:$0xff] %v1508_v11  ;;  %v2275_v13 = vadd.f32 %v2274_v12, %v2273_v10 }
 0x31b   : > { %v1510_v14 = vpop.f32.mrf.mxu0  ;;  %v2276_v15 = vpop.f32.mrf.mxu1 }
 0x31c   : > { %1800 = vst [vmem:[%s2994_s23 + $0x160] sm:$0xff] %v2275_v13  ;;  %1801 = vst [vmem:[%s2994_s23 + $0x168] sm:$0xff] %v1510_v14 }
 0x31d   : > { %v1512_v16 = vpop.f32.mrf.mxu0  ;;  %v2277_v17 = vpop.f32.mrf.mxu1 }
 0x31e   : > { %1802 = vst [vmem:[%s2994_s23 + $0x170] sm:$0xff] %v1512_v16  ;;  %v2278_v18 = vadd.f32 %v2277_v17, %v2276_v15 }
 0x31f   : > { %v1516_v19 = vpop.f32.mrf.mxu0  ;;  %v2279_v20 = vpop.f32.mrf.mxu1 }
 0x320   : > { %1803 = vst [vmem:[%s2994_s23 + $0x178] sm:$0xff] %v2278_v18  ;;  %1804 = vst [vmem:[%s2994_s23 + $0x180] sm:$0xff] %v1516_v19 }
 0x321   : > { %v1518_v21 = vpop.f32.mrf.mxu0  ;;  %v2280_v22 = vpop.f32.mrf.mxu1 }
 0x322   : > { %1805 = vst [vmem:[%s2994_s23 + $0x188] sm:$0xff] %v1518_v21  ;;  %v2281_v23 = vadd.f32 %v2280_v22, %v2279_v20 }
 0x323   : > { %v1520_v24 = vpop.f32.mrf.mxu0  ;;  %v2282_v25 = vpop.f32.mrf.mxu1 }
 0x324   : > { %1806 = vst [vmem:[%s2994_s23 + $0x190] sm:$0xff] %v2281_v23  ;;  %1807 = vst [vmem:[%s2994_s23 + $0x198] sm:$0xff] %v1520_v24 }
 0x325   : > { %v1522_v26 = vpop.f32.mrf.mxu0  ;;  %v2283_v27 = vpop.f32.mrf.mxu1 }
 0x326   : > { %1808 = vst [vmem:[%s2994_s23 + $0x1a0] sm:$0xff] %v1522_v26  ;;  %v2284_v28 = vadd.f32 %v2283_v27, %v2282_v25 }
 0x327   : > { %v1526_v29 = vpop.f32.mrf.mxu0  ;;  %v2285_v30 = vpop.f32.mrf.mxu1 }
 0x328   : > { %1809 = vst [vmem:[%s2994_s23 + $0x1a8] sm:$0xff] %v2284_v28  ;;  %1810 = vst [vmem:[%s2994_s23 + $0x1b0] sm:$0xff] %v1526_v29 }
 0x329   : > { %v1528_v31 = vpop.f32.mrf.mxu0  ;;  %v2286_v32 = vpop.f32.mrf.mxu1 }
 0x32a   : > { %1811 = vst [vmem:[%s2994_s23 + $0x1b8] sm:$0xff] %v1528_v31  ;;  %v2287_v33 = vadd.f32 %v2286_v32, %v2285_v30 }
 0x32b   : > { %v1530_v34 = vpop.f32.mrf.mxu0  ;;  %v2288_v35 = vpop.f32.mrf.mxu1 }
 0x32c   : > { %1812 = vst [vmem:[%s2994_s23 + $0x1c0] sm:$0xff] %v2287_v33  ;;  %1813 = vst [vmem:[%s2994_s23 + $0x1c8] sm:$0xff] %v1530_v34 }
 0x32d   : > { %v1532_v36 = vpop.f32.mrf.mxu0  ;;  %v2289_v37 = vpop.f32.mrf.mxu1 }
 0x32e   : > { %1814 = vst [vmem:[%s2994_s23 + $0x1d0] sm:$0xff] %v1532_v36  ;;  %v2290_v38 = vadd.f32 %v2289_v37, %v2288_v35 }
 0x32f   : > { %v1536_v39 = vpop.f32.mrf.mxu0  ;;  %v2291_v40 = vpop.f32.mrf.mxu1 }
 0x330   : > { %1815 = vst [vmem:[%s2994_s23 + $0x1d8] sm:$0xff] %v2290_v38  ;;  %1816 = vst [vmem:[%s2994_s23 + $0x1e0] sm:$0xff] %v1536_v39 }
 0x331   : > { %v1538_v41 = vpop.f32.mrf.mxu0  ;;  %v2292_v42 = vpop.f32.mrf.mxu1 }
 0x332   : > { %1817 = vst [vmem:[%s2994_s23 + $0x1e8] sm:$0xff] %v1538_v41  ;;  %v2293_v43 = vadd.f32 %v2292_v42, %v2291_v40 }
 0x333   : > { %v1540_v44 = vpop.f32.mrf.mxu0  ;;  %v2294_v53 = vpop.f32.mrf.mxu1 }
 0x334   : > { %1818 = vst [vmem:[%s2994_s23 + $0x1f0] sm:$0xff] %v2293_v43  ;;  %1819 = vst [vmem:[%s2994_s23 + $0x1f8] sm:$0xff] %v1540_v44 }
 0x335   : > { %v1542_v45 = vpop.f32.mrf.mxu0  ;;  %v2295_v46 = vpop.f32.mrf.mxu1 }
 0x336   : > { %1820 = vst [vmem:[%s2994_s23 + $0x200] sm:$0xff] %v1542_v45  ;;  %v2296_v47 = vadd.f32 %v2295_v46, %v2294_v53 }
 0x337   : > { %v1546_v48 = vpop.f32.mrf.mxu0  ;;  %v2297_v49 = vpop.f32.mrf.mxu1 }
 0x338   : > { %1821 = vst [vmem:[%s2994_s23 + $0x208] sm:$0xff] %v2296_v47  ;;  %1822 = vst [vmem:[%s2994_s23 + $0x210] sm:$0xff] %v1546_v48 }
 0x339   : > { %v1548_v50 = vpop.f32.mrf.mxu0  ;;  %v2298_v51 = vpop.f32.mrf.mxu1 }
 0x33a   : > { %1823 = vst [vmem:[%s2994_s23 + $0x218] sm:$0xff] %v1548_v50  ;;  %v2299_v52 = vadd.f32 %v2298_v51, %v2297_v49 }
 0x33b   : > { %v1550_v54 = vpop.f32.mrf.mxu0  ;;  %v2300_v55 = vpop.f32.mrf.mxu1 }
 0x33c   : > { %1824 = vst [vmem:[%s2994_s23 + $0x220] sm:$0xff] %v2299_v52  ;;  %1825 = vst [vmem:[%s2994_s23 + $0x228] sm:$0xff] %v1550_v54 }
 0x33d   : > { %v1552_v56 = vpop.f32.mrf.mxu0  ;;  %v2301_v57 = vpop.f32.mrf.mxu1 }
 0x33e   : > { %1826 = vst [vmem:[%s2994_s23 + $0x230] sm:$0xff] %v1552_v56  ;;  %v2302_v58 = vadd.f32 %v2301_v57, %v2300_v55 }
 0x33f   : > { %v1556_v59 = vpop.f32.mrf.mxu0  ;;  %v2303_v60 = vpop.f32.mrf.mxu1 }
 0x340   : > { %1827 = vst [vmem:[%s2994_s23 + $0x238] sm:$0xff] %v2302_v58  ;;  %1828 = vst [vmem:[%s2994_s23 + $0x240] sm:$0xff] %v1556_v59 }
 0x341   : > { %v1558_v61 = vpop.f32.mrf.mxu0  ;;  %v2304_v62 = vpop.f32.mrf.mxu1 }
 0x342   : > { %1829 = vst [vmem:[%s2994_s23 + $0x248] sm:$0xff] %v1558_v61  ;;  %v2305_v63 = vadd.f32 %v2304_v62, %v2303_v60 }
 0x343   : > { %v1560_v0 = vpop.f32.mrf.mxu0  ;;  %v2306_v1 = vpop.f32.mrf.mxu1 }
 0x344   : > { %1830 = vst [vmem:[%s2994_s23 + $0x250] sm:$0xff] %v2305_v63  ;;  %1831 = vst [vmem:[%s2994_s23 + $0x258] sm:$0xff] %v1560_v0 }
 0x345   : > { %v1562_v2 = vpop.f32.mrf.mxu0  ;;  %v2307_v3 = vpop.f32.mrf.mxu1 }
 0x346   : > { %1832 = vst [vmem:[%s2994_s23 + $0x260] sm:$0xff] %v1562_v2  ;;  %v2308_v4 = vadd.f32 %v2307_v3, %v2306_v1 }
 0x347   : > { %v1566_v5 = vpop.f32.mrf.mxu0  ;;  %v2309_v6 = vpop.f32.mrf.mxu1 }
 0x348   : > { %1833 = vst [vmem:[%s2994_s23 + $0x268] sm:$0xff] %v2308_v4  ;;  %1834 = vst [vmem:[%s2994_s23 + $0x270] sm:$0xff] %v1566_v5 }
 0x349   : > { %v1568_v7 = vpop.f32.mrf.mxu0  ;;  %v2310_v8 = vpop.f32.mrf.mxu1 }
 0x34a   : > { %1835 = vst [vmem:[%s2994_s23 + $0x278] sm:$0xff] %v1568_v7  ;;  %v2311_v9 = vadd.f32 %v2310_v8, %v2309_v6 }
 0x34b   : > { %v1570_v10 = vpop.f32.mrf.mxu0  ;;  %v2312_v11 = vpop.f32.mrf.mxu1 }
 0x34c   : > { %1836 = vst [vmem:[%s2994_s23 + $0x280] sm:$0xff] %v2311_v9  ;;  %1837 = vst [vmem:[%s2994_s23 + $0x288] sm:$0xff] %v1570_v10 }
 0x34d   : > { %v1572_v12 = vpop.f32.mrf.mxu0  ;;  %v2313_v13 = vpop.f32.mrf.mxu1 }
 0x34e   : > { %1838 = vst [vmem:[%s2994_s23 + $0x290] sm:$0xff] %v1572_v12  ;;  %v2314_v14 = vadd.f32 %v2313_v13, %v2312_v11 }
 0x34f   : > { %v1576_v15 = vpop.f32.mrf.mxu0  ;;  %v2315_v16 = vpop.f32.mrf.mxu1 }
 0x350   : > { %1839 = vst [vmem:[%s2994_s23 + $0x298] sm:$0xff] %v2314_v14  ;;  %1840 = vst [vmem:[%s2994_s23 + $0x2a0] sm:$0xff] %v1576_v15 }
 0x351   : > { %v1578_v17 = vpop.f32.mrf.mxu0  ;;  %v2316_v18 = vpop.f32.mrf.mxu1 }
 0x352   : > { %1841 = vst [vmem:[%s2994_s23 + $0x2a8] sm:$0xff] %v1578_v17  ;;  %v2317_v19 = vadd.f32 %v2316_v18, %v2315_v16 }
 0x353   : > { %v1580_v20 = vpop.f32.mrf.mxu0  ;;  %v2318_v21 = vpop.f32.mrf.mxu1 }
 0x354   : > { %1842 = vst [vmem:[%s2994_s23 + $0x2b0] sm:$0xff] %v2317_v19  ;;  %1843 = vst [vmem:[%s2994_s23 + $0x2b8] sm:$0xff] %v1580_v20 }
 0x355   : > { %v1582_v22 = vpop.f32.mrf.mxu0  ;;  %v2319_v23 = vpop.f32.mrf.mxu1 }
 0x356   : > { %1844 = vst [vmem:[%s2994_s23 + $0x2c0] sm:$0xff] %v1582_v22  ;;  %v2320_v24 = vadd.f32 %v2319_v23, %v2318_v21 }
 0x357   : > { %v1586_v25 = vpop.f32.mrf.mxu0  ;;  %v2321_v26 = vpop.f32.mrf.mxu1 }
 0x358   : > { %1845 = vst [vmem:[%s2994_s23 + $0x2c8] sm:$0xff] %v2320_v24  ;;  %1846 = vst [vmem:[%s2994_s23 + $0x2d0] sm:$0xff] %v1586_v25 }
 0x359   : > { %v1588_v27 = vpop.f32.mrf.mxu0  ;;  %v2322_v28 = vpop.f32.mrf.mxu1 }
 0x35a   : > { %1847 = vst [vmem:[%s2994_s23 + $0x2d8] sm:$0xff] %v1588_v27  ;;  %v2323_v29 = vadd.f32 %v2322_v28, %v2321_v26 }
 0x35b   : > { %v1590_v30 = vpop.f32.mrf.mxu0  ;;  %v2324_v31 = vpop.f32.mrf.mxu1 }
 0x35c   : > { %1848 = vst [vmem:[%s2994_s23 + $0x2e0] sm:$0xff] %v2323_v29  ;;  %1849 = vst [vmem:[%s2994_s23 + $0x2e8] sm:$0xff] %v1590_v30 }
 0x35d   : > { %v1592_v32 = vpop.f32.mrf.mxu0  ;;  %v2325_v33 = vpop.f32.mrf.mxu1 }
 0x35e   : > { %1850 = vst [vmem:[%s2994_s23 + $0x2f0] sm:$0xff] %v1592_v32  ;;  %v2326_v34 = vadd.f32 %v2325_v33, %v2324_v31 }
 0x360   : > { %1851 = vst [vmem:[%s2994_s23 + $0x2f8] sm:$0xff] %v2326_v34 }
 0x361   : > { %2686 = shalt.err (!%p2683_p9)
}
 0x362   : > { %s2687_s20 = scalar_lea.hbm %s3095_s25, 12288  ;;  %s2691_s8 = scalar_lea.hbm %s3146_s4, 24576 }
 0x363   : > { %p2688_p7 = scmp.ne.s32.totalorder %s3095_s25, %s2687_s20  ;;  %p2692_p6 = scmp.lt.s32.totalorder %s3095_s25, %s3146_s4 }
 0x364   : > { %p2693_p11 = scmp.lt.s32.totalorder %s2691_s8, %s2687_s20 }
 0x365   : > { %p2689_p4 = pnand %p2688_p7, %p3164_p0 }
 0x366   : > { %p2694_p13 = por %p2693_p11, %p2692_p6 }
 0x367   : > { %p2690_p8 = pneg %p2689_p4 }
 0x369   : > { %p2695_p12 = pnand %p2694_p13, %p2690_p8 }
 0x36b   : > { %2698 = shalt.err (!%p2695_p12)
}
 0x36c   : > { %s2759_s23 = smov 384   ;;  %s2760_s9 = smov 24  }
 0x36d   : > { %2343 = dma.vmem_to_hbm [thread:$0]  (%p3164_p0), %s3097_s10, 12288, %s3095_s25, %s1853_s19, %s2759_s23, %s2759_s23, %s2760_s9  }
 0x36e PF: > { %s1882_s14 = sand.u32 1, %s2733_s15   ;;  %p3165_p5 = scmp.ne.s32.totalorder %s3152_s22, 0 }
 0x36f   : > { %p3166_p10 = scmp.ge.s32.totalorder %s2745_s18, 2  ;;  %s1883_s24 = scalar_lea.sflag [#allocation4], %s1882_s14 }
 0x371   : > { %p2360_p1 = pnand %p3166_p10, %p3165_p5 }
 0x373   : > { %p2361_p2 = pneg %p2360_p1 }
 0x375   : > { %2728 = dma.done.wait (%p2361_p2), %s1883_s24, 12288  }
 0x376   : > { %2730 = vsyncadd (%p2361_p2), %s1883_s24, 4294955008  ;;  %p19_p3 = scmp.ge.s32.totalorder %s2869_s29, 4   ;;  %s3167_s15 = smov %s2737_s16 }
 0x377   : > { %s3168_s16 = smov %s2741_s17  ;;  %s3169_s17 = smov %s2879_s6 }
 0x378   : > { %s3170_s18 = smov %s2869_s29  ;;  %21 = sbr.rel (!%p19_p3) target bundleno = 7 (0x7), region = 93 }
 0x37d   :  { %1888 = vsyncpa [#allocation3], 1 }
 0x37e   :  { %1890 = vsyncpa [#allocation3 + $0x1], 1 }
 0x37f   :  { %1891 = vsyncpa [#allocation6], 1 }
 0x380   :  { %1892 = vsyncpa [#allocation9], 1 }
 0x381   :  { %1893 = vsyncpa [#allocation4], 1 }
 0x382   :  { %1895 = vsyncpa [#allocation4 + $0x1], 1 }

// kernel: _fused_chain.1
= control target key start
LH: loop header
LB: loop body
LE: loop exit
PB: predicated region body
PF: predicated region fallthrough
CT: control target
= control target key end

     0   :  { %8 = vsyncpa [#allocation3], 0  ;;  %s2220_s0 = inlined_call_operand.hbm [shape: bf16[256,128], index: 0, kind: input, shape index: {}]   ;;  %s2221_s1 = inlined_call_operand.hbm [shape: bf16[128,256], index: 1, kind: input, shape index: {}]   ;;  %s2222_s2 = inlined_call_operand.hbm [shape: bf16[256,384], index: 2, kind: input, shape index: {}]   ;;  %s2223_s3 = inlined_call_operand.hbm [shape: bf16[256,384], index: 3, kind: output, shape index: {}]  }
   0x1   :  { %9 = vsyncpa [#allocation6], 0 }
   0x2   :  { %10 = vsyncpa [#allocation4], 0  ;;  %s2119_s12 = smov [#allocation5]  }
   0x3   :  { %s28_s13 = sshll.u32 %s2119_s12, 4  ;;  %s29_s13 = int_to_ptr.vmem [resolvable:$true] %s28_s13 }
   0x4   :  { %s2041_s14 = scalar_lea.vmem %s29_s13, 2048  ;;  %p2046_p1 = scmp.lt.s32.totalorder %s29_s13, %s29_s13 }
   0x5   :  { %p2042_p0 = scmp.ne.s32.totalorder %s29_s13, %s2041_s14  ;;  %p2047_p2 = scmp.lt.s32.totalorder %s2041_s14, %s2041_s14 }
   0x7   :  { %p2048_p3 = por %p2047_p2, %p2046_p1 }
   0x9   :  { %p2049_p4 = pnand %p2048_p3, %p2042_p0 }
   0xb   :  { %2052 = shalt.err (!%p2049_p4)
}
   0xc   :  { %s2120_s15 = smov 128   ;;  %s2121_s16 = smov 8  }
   0xd   :  { %34 = dma.hbm_to_vmem [thread:$0]  %s2221_s1, 2048, %s29_s13, [#allocation6], %s2120_s15, %s2120_s15, %s2121_s16  }
   0xe   :  { %s2122_s19 = smov [#allocation2]  }
   0xf   :  { %s16_s20 = sshll.u32 %s2122_s19, 4  ;;  %s17_s20 = int_to_ptr.vmem [resolvable:$true] %s16_s20 }
  0x10   :  { %s2061_s21 = scalar_lea.vmem %s17_s20, 2048  ;;  %p2066_p6 = scmp.lt.s32.totalorder %s17_s20, %s17_s20 }
  0x11   :  { %p2062_p5 = scmp.ne.s32.totalorder %s17_s20, %s2061_s21  ;;  %p2067_p7 = scmp.lt.s32.totalorder %s2061_s21, %s2061_s21 }
  0x13   :  { %p2068_p8 = por %p2067_p7, %p2066_p6 }
  0x15   :  { %p2069_p9 = pnand %p2068_p8, %p2062_p5 }
  0x17   :  { %2072 = shalt.err (!%p2069_p9)
}
  0x18   :  { %s2123_s22 = smov 64   ;;  %s2124_s23 = smov 4  }
  0x19   :  { %22 = dma.hbm_to_vmem [thread:$0]  %s2220_s0, 2048, %s17_s20, [#allocation3], %s2123_s22, %s2123_s22, %s2124_s23  }
  0x1a   :  { %s2125_s26 = smov [#allocation7]  }
  0x1b   :  { %s40_s27 = sshll.u32 %s2125_s26, 4  ;;  %s41_s27 = int_to_ptr.vmem [resolvable:$true] %s40_s27 }
  0x1c   :  { %s2081_s1 = scalar_lea.vmem %s41_s27, 6144  ;;  %p2086_p11 = scmp.lt.s32.totalorder %s41_s27, %s41_s27 }
  0x1d   :  { %p2082_p10 = scmp.ne.s32.totalorder %s41_s27, %s2081_s1  ;;  %p2087_p12 = scmp.lt.s32.totalorder %s2081_s1, %s2081_s1 }
  0x1f   :  { %p2088_p13 = por %p2087_p12, %p2086_p11 }
  0x21   :  { %p2089_p0 = pnand %p2088_p13, %p2082_p10 }
  0x23   :  { %2092 = shalt.err (!%p2089_p0)
}
  0x24   :  { %s2126_s28 = smov 192   ;;  %s2127_s29 = smov 12  }
  0x25   :  { %46 = dma.hbm_to_vmem [thread:$0]  %s2222_s2, 6144, %s41_s27, [#allocation6], %s2126_s28, %s2126_s28, %s2127_s29  }
  0x26   :  { %2113 = dma.done.wait [#allocation3], 2048  }
  0x27   :  { %2114 = vsyncadd [#allocation3], 4294965248 }
  0x28   :  { %2115 = dma.done.wait [#allocation6], 8192  }
  0x29   :  { %2116 = vsyncadd [#allocation6], 4294959104  ;;  %v2128_v0 = vmov 0   ;;  %v1929_v1 = vld [vmem:[#allocation5 + $0x74] ss:$8 sps:$4 sm:$0xff]   ;;  %v1953_v19 = vld [vmem:[#allocation2] sm:$0xff]  }
  0x2a   :  { %313 = vmatprep.mubr.bf16.mxu0 %v2128_v0  ;;  %393 = vmatprep.mubr.bf16.mxu1 %v2128_v0  ;;  %v1931_v2 = vld [vmem:[#allocation5 + $0x70] ss:$8 sps:$4 sm:$0xff]   ;;  %v1932_v3 = vld [vmem:[#allocation5 + $0x64] ss:$8 sps:$4 sm:$0xff]   ;;  %v1934_v4 = vld [vmem:[#allocation5 + $0x60] ss:$8 sps:$4 sm:$0xff]  }
  0x2b   :  { %281 = vmatprep.subr.bf16.mxu0 %v1929_v1  ;;  %1902 = vmatprep.subr.bf16.mxu1 %v1929_v1  ;;  %v1935_v5 = vld [vmem:[#allocation5 + $0x54] ss:$8 sps:$4 sm:$0xff]   ;;  %v1937_v6 = vld [vmem:[#allocation5 + $0x50] ss:$8 sps:$4 sm:$0xff]   ;;  %v1938_v7 = vld [vmem:[#allocation5 + $0x44] ss:$8 sps:$4 sm:$0xff]  }
  0x2c   :  { %282 = vmatpush1.bf16.msra.mxu0 %v1931_v2  ;;  %1910 = vmatpush1.bf16.msra.mxu1 %v1931_v2  ;;  %v1940_v8 = vld [vmem:[#allocation5 + $0x40] ss:$8 sps:$4 sm:$0xff]   ;;  %v1941_v9 = vld [vmem:[#allocation5 + $0x34] ss:$8 sps:$4 sm:$0xff]   ;;  %v1943_v10 = vld [vmem:[#allocation5 + $0x30] ss:$8 sps:$4 sm:$0xff]  }
  0x2d   :  { %283 = vmatprep.subr.bf16.mxu0 %v1932_v3  ;;  %1903 = vmatprep.subr.bf16.mxu1 %v1932_v3  ;;  %v1944_v11 = vld [vmem:[#allocation5 + $0x24] ss:$8 sps:$4 sm:$0xff]   ;;  %v1946_v12 = vld [vmem:[#allocation5 + $0x20] ss:$8 sps:$4 sm:$0xff]   ;;  %v1947_v13 = vld [vmem:[#allocation5 + $0x14] ss:$8 sps:$4 sm:$0xff]  }
  0x2e   :  { %v1949_v14 = vld [vmem:[#allocation5 + $0x10] ss:$8 sps:$4 sm:$0xff]   ;;  %v1950_v15 = vld [vmem:[#allocation5 + $0x4] ss:$8 sps:$4 sm:$0xff]   ;;  %v1952_v16 = vld [vmem:[#allocation5] ss:$8 sps:$4 sm:$0xff]  }
  0x2f   :  { %v1969_v17 = vld [vmem:[#allocation7 + $0x170] ss:$12 sps:$4 sm:$0xff]   ;;  %v1972_v18 = vld [vmem:[#allocation7 + $0xac] ss:$12 sps:$4 sm:$0xff]   ;;  %v1961_v20 = vld [vmem:[#allocation2 + $0x40] sm:$0xff]   ;;  %s2129_s0 = smov [#allocation8]  }
  0x30   :  { %284 = vmatpush1.bf16.msra.mxu0 %v1934_v4  ;;  %1911 = vmatpush1.bf16.msra.mxu1 %v1934_v4  ;;  %v1970_v21 = vld [vmem:[#allocation7 + $0xa8] ss:$12 sps:$4 sm:$0xff]   ;;  %v1973_v22 = vld [vmem:[#allocation7 + $0xb0] ss:$12 sps:$4 sm:$0xff]   ;;  %v1977_v24 = vld [vmem:[#allocation7 + $0x158] ss:$12 sps:$4 sm:$0xff]  }
  0x31   :  { %285 = vmatprep.subr.bf16.mxu0 %v1935_v5  ;;  %1904 = vmatprep.subr.bf16.mxu1 %v1935_v5  ;;  %v1976_v23 = vld [vmem:[#allocation7 + $0x94] ss:$12 sps:$4 sm:$0xff]   ;;  %v1974_v25 = vld [vmem:[#allocation7 + $0x90] ss:$12 sps:$4 sm:$0xff]   ;;  %v1954_v27 = vld [vmem:[#allocation2 + $0x8] sm:$0xff]   ;;  %s1569_s2 = sshll.u32 %s2129_s0, 4  ;;  %s1570_s2 = int_to_ptr.vmem [resolvable:$true] %s1569_s2 }
  0x32   :  { %v1980_v26 = vld [vmem:[#allocation7 + $0x7c] ss:$12 sps:$4 sm:$0xff]   ;;  %v1981_v28 = vld [vmem:[#allocation7 + $0x98] ss:$12 sps:$4 sm:$0xff]   ;;  %v1985_v29 = vld [vmem:[#allocation7 + $0x140] ss:$12 sps:$4 sm:$0xff]   ;;  %p2098_p2 = scmp.lt.s32.totalorder %s1570_s2, %s1570_s2 }
  0x33   :  { %v1962_v30 = vld [vmem:[#allocation2 + $0x48] sm:$0xff]   ;;  %v1978_v31 = vld [vmem:[#allocation7 + $0x78] ss:$12 sps:$4 sm:$0xff]   ;;  %v1955_v36 = vld [vmem:[#allocation2 + $0x10] sm:$0xff]   ;;  %s2093_s5 = scalar_lea.vmem %s1570_s2, 6144 }
  0x34   :  { %286 = vmatpush1.bf16.msra.mxu0 %v1937_v6  ;;  %1912 = vmatpush1.bf16.msra.mxu1 %v1937_v6  ;;  %v1984_v32 = vld [vmem:[#allocation7 + $0x64] ss:$12 sps:$4 sm:$0xff]   ;;  %v1989_v33 = vld [vmem:[#allocation7 + $0x80] ss:$12 sps:$4 sm:$0xff]   ;;  %v1993_v34 = vld [vmem:[#allocation7 + $0x128] ss:$12 sps:$4 sm:$0xff]   ;;  %p2094_p1 = scmp.ne.s32.totalorder %s1570_s2, %s2093_s5  ;;  %p2099_p3 = scmp.lt.s32.totalorder %s2093_s5, %s2093_s5 }
  0x35   :  { %287 = vmatprep.subr.bf16.mxu0 %v1938_v7  ;;  %1905 = vmatprep.subr.bf16.mxu1 %v1938_v7  ;;  %v1982_v35 = vld [vmem:[#allocation7 + $0x60] ss:$12 sps:$4 sm:$0xff]   ;;  %v1963_v37 = vld [vmem:[#allocation2 + $0x50] sm:$0xff]   ;;  %v2009_v44 = vld [vmem:[#allocation7 + $0xf8] ss:$12 sps:$4 sm:$0xff]  }
  0x36   :  { %v1997_v38 = vld [vmem:[#allocation7 + $0x68] ss:$12 sps:$4 sm:$0xff]   ;;  %v1988_v39 = vld [vmem:[#allocation7 + $0x4c] ss:$12 sps:$4 sm:$0xff]   ;;  %v2001_v40 = vld [vmem:[#allocation7 + $0x110] ss:$12 sps:$4 sm:$0xff]   ;;  %p2100_p4 = por %p2099_p3, %p2098_p2 }
  0x37   :  { %v1986_v41 = vld [vmem:[#allocation7 + $0x48] ss:$12 sps:$4 sm:$0xff]   ;;  %v2005_v42 = vld [vmem:[#allocation7 + $0x50] ss:$12 sps:$4 sm:$0xff]   ;;  %v2013_v47 = vld [vmem:[#allocation7 + $0x38] ss:$12 sps:$4 sm:$0xff]  }
  0x38   :  { %288 = vmatpush1.bf16.msra.mxu0 %v1940_v8  ;;  %1913 = vmatpush1.bf16.msra.mxu1 %v1940_v8  ;;  %v1992_v43 = vld [vmem:[#allocation7 + $0x34] ss:$12 sps:$4 sm:$0xff]   ;;  %v1990_v45 = vld [vmem:[#allocation7 + $0x30] ss:$12 sps:$4 sm:$0xff]   ;;  %v1994_v51 = vld [vmem:[#allocation7 + $0x18] ss:$12 sps:$4 sm:$0xff]   ;;  %p2101_p5 = pnand %p2100_p4, %p2094_p1 }
  0x39   :  { %289 = vmatprep.subr.bf16.mxu0 %v1941_v9  ;;  %1906 = vmatprep.subr.bf16.mxu1 %v1941_v9  ;;  %v1996_v46 = vld [vmem:[#allocation7 + $0x1c] ss:$12 sps:$4 sm:$0xff]   ;;  %v2017_v50 = vld [vmem:[#allocation7 + $0xe0] ss:$12 sps:$4 sm:$0xff]   ;;  %v2000_v52 = vld [vmem:[#allocation7 + $0x4] ss:$12 sps:$4 sm:$0xff]  }
  0x3a   :  { %v1956_v48 = vld [vmem:[#allocation2 + $0x18] sm:$0xff]   ;;  %v2021_v53 = vld [vmem:[#allocation7 + $0x20] ss:$12 sps:$4 sm:$0xff]   ;;  %v2002_v58 = vld [vmem:[#allocation7 + $0x168] ss:$12 sps:$4 sm:$0xff]  }
  0x3b   :  { %v1964_v49 = vld [vmem:[#allocation2 + $0x58] sm:$0xff]   ;;  %v1998_v54 = vld [vmem:[#allocation7] ss:$12 sps:$4 sm:$0xff]   ;;  %v2016_v2 = vld [vmem:[#allocation7 + $0x124] ss:$12 sps:$4 sm:$0xff]  }
  0x3c   :  { %290 = vmatpush1.bf16.msra.mxu0 %v1943_v10  ;;  %1914 = vmatpush1.bf16.msra.mxu1 %v1943_v10  ;;  %v2004_v55 = vld [vmem:[#allocation7 + $0x16c] ss:$12 sps:$4 sm:$0xff]   ;;  %v1957_v56 = vld [vmem:[#allocation2 + $0x20] sm:$0xff]   ;;  %v2006_v60 = vld [vmem:[#allocation7 + $0x150] ss:$12 sps:$4 sm:$0xff]  }
  0x3d   :  { %291 = vmatprep.subr.bf16.mxu0 %v1944_v11  ;;  %1907 = vmatprep.subr.bf16.mxu1 %v1944_v11  ;;  %v1965_v57 = vld [vmem:[#allocation2 + $0x60] sm:$0xff]   ;;  %v2012_v61 = vld [vmem:[#allocation7 + $0x13c] ss:$12 sps:$4 sm:$0xff]   ;;  %v2020_v4 = vld [vmem:[#allocation7 + $0x10c] ss:$12 sps:$4 sm:$0xff]  }
  0x3e   :  { %v2008_v59 = vld [vmem:[#allocation7 + $0x154] ss:$12 sps:$4 sm:$0xff]   ;;  %v1958_v62 = vld [vmem:[#allocation2 + $0x28] sm:$0xff]   ;;  %v2010_v1 = vld [vmem:[#allocation7 + $0x138] ss:$12 sps:$4 sm:$0xff]  }
  0x3f   :  { %v1966_v63 = vld [vmem:[#allocation2 + $0x68] sm:$0xff]   ;;  %v1959_v5 = vld [vmem:[#allocation2 + $0x30] sm:$0xff]   ;;  %v1960_v10 = vld [vmem:[#allocation2 + $0x38] sm:$0xff]  }
  0x40   :  { %292 = vmatpush1.bf16.msra.mxu0 %v1946_v12  ;;  %1915 = vmatpush1.bf16.msra.mxu1 %v1946_v12  ;;  %v2014_v3 = vld [vmem:[#allocation7 + $0x120] ss:$12 sps:$4 sm:$0xff]   ;;  %v1967_v6 = vld [vmem:[#allocation2 + $0x70] sm:$0xff]   ;;  %v1968_v11 = vld [vmem:[#allocation2 + $0x78] sm:$0xff]  }
  0x41   :  { %293 = vmatprep.subr.bf16.mxu0 %v1947_v13  ;;  %1908 = vmatprep.subr.bf16.mxu1 %v1947_v13  ;;  %v2018_v7 = vld [vmem:[#allocation7 + $0x108] ss:$12 sps:$4 sm:$0xff]   ;;  %v2022_v9 = vld [vmem:[#allocation7 + $0xf0] ss:$12 sps:$4 sm:$0xff]  }
  0x42   :  { %v2024_v8 = vld [vmem:[#allocation7 + $0xf4] ss:$12 sps:$4 sm:$0xff]   ;;  %v2028_v13 = vld [vmem:[#allocation7 + $0xdc] ss:$12 sps:$4 sm:$0xff]  }
  0x43   :  { %v2025_v12 = vld [vmem:[#allocation7 + $0xc8] ss:$12 sps:$4 sm:$0xff]  }
  0x44   :  { %294 = vmatpush1.bf16.msra.mxu0 %v1949_v14  ;;  %1916 = vmatpush1.bf16.msra.mxu1 %v1949_v14  ;;  %v2026_v14 = vld [vmem:[#allocation7 + $0xd8] ss:$12 sps:$4 sm:$0xff]  }
  0x45   :  { %295 = vmatprep.subr.bf16.mxu0 %v1950_v15  ;;  %1909 = vmatprep.subr.bf16.mxu1 %v1950_v15  ;;  %v2029_v15 = vld [vmem:[#allocation7 + $0x8] ss:$12 sps:$4 sm:$0xff]  }
  0x48   :  { %296 = vmatpush1.bf16.msra.mxu0 %v1952_v16  ;;  %1917 = vmatpush1.bf16.msra.mxu1 %v1952_v16  ;;  %v2032_v16 = vld [vmem:[#allocation7 + $0xc4] ss:$12 sps:$4 sm:$0xff]  }
  0x49   :  { %1790 = vmatprep.subr.bf16.mxu0 %v1969_v17  ;;  %826 = vmatprep.subr.bf16.mxu1 %v1972_v18  ;;  %v2030_v17 = vld [vmem:[#allocation7 + $0xc0] ss:$12 sps:$4 sm:$0xff]  }
  0x4b   :  { %314 = vmatmul.mubr.bf16.vlgmr.msra.gmra.mxu0 %v1953_v19  ;;  %394 = vmatmul.mubr.bf16.vlgmr.msra.gmra.mxu1 %v1961_v20 }
  0x4c   :  { %323 = vmatprep.mubr.bf16.mxu0 %v2128_v0  ;;  %403 = vmatprep.mubr.bf16.mxu1 %v2128_v0 }
  0x4d   :  { %1791 = vmatpush3.bf16.msra.mxu0 %v1973_v22  ;;  %827 = vmatpush1.bf16.msra.mxu1 %v1970_v21 }
  0x4e   :  { %828 = vmatprep.subr.bf16.mxu1 %v1976_v23  ;;  %1792 = vmatprep.subr.bf16.mxu0 %v1977_v24 }
  0x51   :  { %829 = vmatpush1.bf16.msra.mxu1 %v1974_v25  ;;  %1793 = vmatpush3.bf16.msra.mxu0 %v1981_v28 }
  0x52   :  { %830 = vmatprep.subr.bf16.mxu1 %v1980_v26  ;;  %1794 = vmatprep.subr.bf16.mxu0 %v1985_v29 }
  0x53   :  { %324 = vmatmul.mubr.bf16.gmra.mxu0 %v1954_v27  ;;  %404 = vmatmul.mubr.bf16.gmra.mxu1 %v1962_v30 }
  0x54   :  { %333 = vmatprep.mubr.bf16.mxu0 %v2128_v0  ;;  %413 = vmatprep.mubr.bf16.mxu1 %v2128_v0 }
  0x55   :  { %831 = vmatpush1.bf16.msra.mxu1 %v1978_v31  ;;  %1795 = vmatpush3.bf16.msra.mxu0 %v1989_v33 }
  0x56   :  { %832 = vmatprep.subr.bf16.mxu1 %v1984_v32  ;;  %1796 = vmatprep.subr.bf16.mxu0 %v1993_v34 }
  0x59   :  { %833 = vmatpush1.bf16.msra.mxu1 %v1982_v35  ;;  %1797 = vmatpush3.bf16.msra.mxu0 %v1997_v38 }
  0x5a   :  { %834 = vmatprep.subr.bf16.mxu1 %v1988_v39  ;;  %1798 = vmatprep.subr.bf16.mxu0 %v2001_v40 }
  0x5b   :  { %334 = vmatmul.mubr.bf16.gmra.mxu0 %v1955_v36  ;;  %414 = vmatmul.mubr.bf16.gmra.mxu1 %v1963_v37 }
  0x5c   :  { %343 = vmatprep.mubr.bf16.mxu0 %v2128_v0  ;;  %423 = vmatprep.mubr.bf16.mxu1 %v2128_v0 }
  0x5d   :  { %835 = vmatpush1.bf16.msra.mxu1 %v1986_v41  ;;  %1799 = vmatpush3.bf16.msra.mxu0 %v2005_v42 }
  0x5e   :  { %836 = vmatprep.subr.bf16.mxu1 %v1992_v43  ;;  %1800 = vmatprep.subr.bf16.mxu0 %v2009_v44 }
  0x61   :  { %837 = vmatpush1.bf16.msra.mxu1 %v1990_v45  ;;  %1801 = vmatpush3.bf16.msra.mxu0 %v2013_v47 }
  0x62   :  { %838 = vmatprep.subr.bf16.mxu1 %v1996_v46  ;;  %1802 = vmatprep.subr.bf16.mxu0 %v2017_v50 }
  0x63   :  { %344 = vmatmul.mubr.bf16.gmra.mxu0 %v1956_v48  ;;  %424 = vmatmul.mubr.bf16.gmra.mxu1 %v1964_v49 }
  0x64   :  { %353 = vmatprep.mubr.bf16.mxu0 %v2128_v0  ;;  %433 = vmatprep.mubr.bf16.mxu1 %v2128_v0 }
  0x65   :  { %839 = vmatpush1.bf16.msra.mxu1 %v1994_v51  ;;  %1803 = vmatpush3.bf16.msra.mxu0 %v2021_v53 }
  0x66   :  { %840 = vmatprep.subr.bf16.mxu1 %v2000_v52  ;;  %1804 = vmatprep.subr.bf16.mxu0 %v2025_v12 }
  0x69   :  { %841 = vmatpush1.bf16.msra.mxu1 %v1998_v54  ;;  %1805 = vmatpush3.bf16.msra.mxu0 %v2029_v15 }
  0x6a   :  { %842 = vmatprep.subr.bf16.mxu1 %v2004_v55 }
  0x6b   :  { %354 = vmatmul.mubr.bf16.gmra.mxu0 %v1957_v56  ;;  %434 = vmatmul.mubr.bf16.gmra.mxu1 %v1965_v57 }
  0x6c   :  { %363 = vmatprep.mubr.bf16.mxu0 %v2128_v0  ;;  %443 = vmatprep.mubr.bf16.mxu1 %v2128_v0 }
  0x6d   :  { %843 = vmatpush2.bf16.msra.mxu1 %v2002_v58 }
  0x6e   :  { %844 = vmatprep.subr.bf16.mxu1 %v2008_v59 }
  0x71   :  { %845 = vmatpush2.bf16.msra.mxu1 %v2006_v60 }
  0x72   :  { %846 = vmatprep.subr.bf16.mxu1 %v2012_v61 }
  0x73   :  { %364 = vmatmul.mubr.bf16.gmra.mxu0 %v1958_v62  ;;  %444 = vmatmul.mubr.bf16.gmra.mxu1 %v1966_v63 }
  0x74   :  { %373 = vmatprep.mubr.bf16.mxu0 %v2128_v0  ;;  %453 = vmatprep.mubr.bf16.mxu1 %v2128_v0 }
  0x75   :  { %847 = vmatpush2.bf16.msra.mxu1 %v2010_v1 }
  0x76   :  { %848 = vmatprep.subr.bf16.mxu1 %v2016_v2 }
  0x79   :  { %849 = vmatpush2.bf16.msra.mxu1 %v2014_v3 }
  0x7a   :  { %850 = vmatprep.subr.bf16.mxu1 %v2020_v4 }
  0x7b   :  { %374 = vmatmul.mubr.bf16.gmra.mxu0 %v1959_v5  ;;  %454 = vmatmul.mubr.bf16.gmra.mxu1 %v1967_v6 }
  0x7c   :  { %383 = vmatprep.mubr.bf16.mxu0 %v2128_v0  ;;  %463 = vmatprep.mubr.bf16.mxu1 %v2128_v0 }
  0x7d   :  { %851 = vmatpush2.bf16.msra.mxu1 %v2018_v7 }
  0x7e   :  { %852 = vmatprep.subr.bf16.mxu1 %v2024_v8 }
  0x81   :  { %853 = vmatpush2.bf16.msra.mxu1 %v2022_v9 }
  0x82   :  { %854 = vmatprep.subr.bf16.mxu1 %v2028_v13 }
  0x83   :  { %384 = vmatmul.mubr.bf16.gmra.mxu0 %v1960_v10  ;;  %464 = vmatmul.mubr.bf16.gmra.mxu1 %v1968_v11 }
  0x85   :  { %855 = vmatpush2.bf16.msra.mxu1 %v2026_v14 }
  0x86   :  { %856 = vmatprep.subr.bf16.mxu1 %v2032_v16 }
  0x89   :  { %857 = vmatpush2.bf16.msra.mxu1 %v2030_v17 }
 0x10b   :  { %v315_v0 = vpop.f32.mrf.mxu0  ;;  %v2178_v18 = vpop.f32.mrf.mxu1 }
 0x10d   :  { %v317_v19 = vpop.f32.mrf.mxu0  ;;  %v2180_v20 = vpop.f32.mrf.mxu1 }
 0x10f   :  { %v319_v21 = vpop.f32.mrf.mxu0  ;;  %v2182_v22 = vpop.f32.mrf.mxu1 }
 0x110   :  { %v474_v26 = vpack.c.bf16 %v319_v21, %v315_v0 }
 0x111   :  { %v321_v23 = vpop.f32.mrf.mxu0  ;;  %v2184_v24 = vpop.f32.mrf.mxu1 }
 0x112   :  { %v475_v25 = vpack.c.bf16 %v321_v23, %v317_v19  ;;  %v491_v19 = vpack.c.bf16 %v2184_v24, %v2180_v20 }
 0x113   :  { %v325_v27 = vpop.f32.mrf.mxu0  ;;  %v2186_v28 = vpop.f32.mrf.mxu1 }
 0x114   :  { %858 = vmatprep.mubr.bf16.mxu1 %v475_v25  ;;  %1051 = vmatprep.mubr.bf16.mxu0 %v475_v25 }
 0x115   :  { %v327_v29 = vpop.f32.mrf.mxu0  ;;  %859 = vmatmul.mubr.bf16.vlgmr.msra.gmra.mxu1 %v474_v26  ;;  %1052 = vmatmul.mubr.bf16.vlgmr.msra.gmra.mxu0 %v474_v26  ;;  %v2188_v31 = vpop.f32.mrf.mxu1 }
 0x117   :  { %v329_v30 = vpop.f32.mrf.mxu0  ;;  %v2190_v36 = vpop.f32.mrf.mxu1 }
 0x118   :  { %v476_v34 = vpack.c.bf16 %v329_v30, %v325_v27  ;;  %v490_v27 = vpack.c.bf16 %v2182_v22, %v2178_v18  ;;  %v492_v30 = vpack.c.bf16 %v2190_v36, %v2186_v28 }
 0x119   :  { %v331_v32 = vpop.f32.mrf.mxu0  ;;  %v2192_v39 = vpop.f32.mrf.mxu1 }
 0x11a   :  { %v477_v33 = vpack.c.bf16 %v331_v32, %v327_v29  ;;  %v493_v26 = vpack.c.bf16 %v2192_v39, %v2188_v31 }
 0x11b   :  { %v335_v35 = vpop.f32.mrf.mxu0  ;;  %v2194_v44 = vpop.f32.mrf.mxu1 }
 0x11c   :  { %868 = vmatprep.mubr.bf16.mxu1 %v477_v33  ;;  %1059 = vmatprep.mubr.bf16.mxu0 %v477_v33 }
 0x11d   :  { %v337_v37 = vpop.f32.mrf.mxu0  ;;  %869 = vmatmul.mubr.bf16.gmra.mxu1 %v476_v34  ;;  %1060 = vmatmul.mubr.bf16.gmra.mxu0 %v476_v34  ;;  %v2196_v47 = vpop.f32.mrf.mxu1 }
 0x11f   :  { %v339_v38 = vpop.f32.mrf.mxu0  ;;  %v2198_v52 = vpop.f32.mrf.mxu1 }
 0x120   :  { %v478_v42 = vpack.c.bf16 %v339_v38, %v335_v35  ;;  %v494_v18 = vpack.c.bf16 %v2198_v52, %v2194_v44 }
 0x121   :  { %v341_v40 = vpop.f32.mrf.mxu0  ;;  %v421_v55 = vpop.f32.mrf.mxu1 }
 0x122   :  { %v479_v41 = vpack.c.bf16 %v341_v40, %v337_v37  ;;  %v495_v24 = vpack.c.bf16 %v421_v55, %v2196_v47 }
 0x123   :  { %v345_v43 = vpop.f32.mrf.mxu0  ;;  %v2200_v60 = vpop.f32.mrf.mxu1 }
 0x124   :  { %878 = vmatprep.mubr.bf16.mxu1 %v479_v41  ;;  %1067 = vmatprep.mubr.bf16.mxu0 %v479_v41 }
 0x125   :  { %v347_v45 = vpop.f32.mrf.mxu0  ;;  %879 = vmatmul.mubr.bf16.gmra.mxu1 %v478_v42  ;;  %1068 = vmatmul.mubr.bf16.gmra.mxu0 %v478_v42  ;;  %v427_v63 = vpop.f32.mrf.mxu1 }
 0x127   :  { %v349_v46 = vpop.f32.mrf.mxu0  ;;  %v429_v5 = vpop.f32.mrf.mxu1 }
 0x128   :  { %v480_v50 = vpack.c.bf16 %v349_v46, %v345_v43  ;;  %v496_v37 = vpack.c.bf16 %v429_v5, %v2200_v60 }
 0x129   :  { %v351_v48 = vpop.f32.mrf.mxu0  ;;  %v431_v8 = vpop.f32.mrf.mxu1 }
 0x12a   :  { %v481_v49 = vpack.c.bf16 %v351_v48, %v347_v45  ;;  %v497_v33 = vpack.c.bf16 %v431_v8, %v427_v63 }
 0x12b   :  { %v355_v51 = vpop.f32.mrf.mxu0  ;;  %v435_v13 = vpop.f32.mrf.mxu1 }
 0x12c   :  { %888 = vmatprep.mubr.bf16.mxu1 %v481_v49  ;;  %1075 = vmatprep.mubr.bf16.mxu0 %v481_v49 }
 0x12d   :  { %v357_v53 = vpop.f32.mrf.mxu0  ;;  %889 = vmatmul.mubr.bf16.gmra.mxu1 %v480_v50  ;;  %1076 = vmatmul.mubr.bf16.gmra.mxu0 %v480_v50  ;;  %v437_v16 = vpop.f32.mrf.mxu1 }
 0x12f   :  { %v359_v54 = vpop.f32.mrf.mxu0  ;;  %v439_v23 = vpop.f32.mrf.mxu1 }
 0x130   :  { %v482_v58 = vpack.c.bf16 %v359_v54, %v355_v51  ;;  %v498_v39 = vpack.c.bf16 %v439_v23, %v435_v13 }
 0x131   :  { %v361_v56 = vpop.f32.mrf.mxu0  ;;  %v441_v25 = vpop.f32.mrf.mxu1 }
 0x132   :  { %v483_v57 = vpack.c.bf16 %v361_v56, %v357_v53  ;;  %v499_v35 = vpack.c.bf16 %v441_v25, %v437_v16 }
 0x133   :  { %v365_v59 = vpop.f32.mrf.mxu0  ;;  %v445_v29 = vpop.f32.mrf.mxu1 }
 0x134   :  { %898 = vmatprep.mubr.bf16.mxu1 %v483_v57  ;;  %1083 = vmatprep.mubr.bf16.mxu0 %v483_v57 }
 0x135   :  { %v367_v61 = vpop.f32.mrf.mxu0  ;;  %899 = vmatmul.mubr.bf16.gmra.mxu1 %v482_v58  ;;  %1084 = vmatmul.mubr.bf16.gmra.mxu0 %v482_v58  ;;  %v447_v20 = vpop.f32.mrf.mxu1 }
 0x137   :  { %v369_v62 = vpop.f32.mrf.mxu0  ;;  %v449_v32 = vpop.f32.mrf.mxu1 }
 0x138   :  { %v484_v3 = vpack.c.bf16 %v369_v62, %v365_v59  ;;  %v500_v43 = vpack.c.bf16 %v449_v32, %v445_v29 }
 0x139   :  { %v371_v1 = vpop.f32.mrf.mxu0  ;;  %v451_v31 = vpop.f32.mrf.mxu1 }
 0x13a   :  { %v485_v2 = vpack.c.bf16 %v371_v1, %v367_v61  ;;  %v501_v38 = vpack.c.bf16 %v451_v31, %v447_v20 }
 0x13b   :  { %v375_v4 = vpop.f32.mrf.mxu0  ;;  %v455_v22 = vpop.f32.mrf.mxu1 }
 0x13c   :  { %908 = vmatprep.mubr.bf16.mxu1 %v485_v2  ;;  %1091 = vmatprep.mubr.bf16.mxu0 %v485_v2 }
 0x13d   :  { %v377_v6 = vpop.f32.mrf.mxu0  ;;  %909 = vmatmul.mubr.bf16.gmra.mxu1 %v484_v3  ;;  %1092 = vmatmul.mubr.bf16.gmra.mxu0 %v484_v3  ;;  %v457_v34 = vpop.f32.mrf.mxu1 }
 0x13f   :  { %v379_v7 = vpop.f32.mrf.mxu0  ;;  %v459_v28 = vpop.f32.mrf.mxu1 }
 0x140   :  { %v486_v11 = vpack.c.bf16 %v379_v7, %v375_v4  ;;  %v502_v47 = vpack.c.bf16 %v459_v28, %v455_v22 }
 0x141   :  { %v381_v9 = vpop.f32.mrf.mxu0  ;;  %v461_v36 = vpop.f32.mrf.mxu1 }
 0x142   :  { %v487_v10 = vpack.c.bf16 %v381_v9, %v377_v6  ;;  %v503_v42 = vpack.c.bf16 %v461_v36, %v457_v34 }
 0x143   :  { %v385_v12 = vpop.f32.mrf.mxu0  ;;  %v465_v40 = vpop.f32.mrf.mxu1 }
 0x144   :  { %918 = vmatprep.mubr.bf16.mxu1 %v487_v10  ;;  %1099 = vmatprep.mubr.bf16.mxu0 %v487_v10 }
 0x145   :  { %v387_v14 = vpop.f32.mrf.mxu0  ;;  %919 = vmatmul.mubr.bf16.gmra.mxu1 %v486_v11  ;;  %1100 = vmatmul.mubr.bf16.gmra.mxu0 %v486_v11  ;;  %v467_v41 = vpop.f32.mrf.mxu1 }
 0x147   :  { %v389_v15 = vpop.f32.mrf.mxu0  ;;  %v469_v44 = vpop.f32.mrf.mxu1 }
 0x148   :  { %v488_v21 = vpack.c.bf16 %v389_v15, %v385_v12  ;;  %v504_v48 = vpack.c.bf16 %v469_v44, %v465_v40 }
 0x149   :  { %v391_v17 = vpop.f32.mrf.mxu0  ;;  %v471_v45 = vpop.f32.mrf.mxu1 }
 0x14a   :  { %v489_v0 = vpack.c.bf16 %v391_v17, %v387_v14  ;;  %v505_v46 = vpack.c.bf16 %v471_v45, %v467_v41 }
 0x14c   :  { %928 = vmatprep.mubr.bf16.mxu1 %v489_v0  ;;  %1107 = vmatprep.mubr.bf16.mxu0 %v489_v0 }
 0x14d   :  { %929 = vmatmul.mubr.bf16.gmra.mxu1 %v488_v21  ;;  %1108 = vmatmul.mubr.bf16.gmra.mxu0 %v488_v21 }
 0x14e   :  { %938 = vmatprep.mubr.bf16.mxu1 %v491_v19  ;;  %1115 = vmatprep.mubr.bf16.mxu0 %v491_v19 }
 0x155   :  { %939 = vmatmul.mubr.bf16.gmra.mxu1 %v490_v27  ;;  %1116 = vmatmul.mubr.bf16.gmra.mxu0 %v490_v27 }
 0x156   :  { %948 = vmatprep.mubr.bf16.mxu1 %v493_v26  ;;  %1123 = vmatprep.mubr.bf16.mxu0 %v493_v26 }
 0x15d   :  { %949 = vmatmul.mubr.bf16.gmra.mxu1 %v492_v30  ;;  %1124 = vmatmul.mubr.bf16.gmra.mxu0 %v492_v30 }
 0x15e   :  { %958 = vmatprep.mubr.bf16.mxu1 %v495_v24  ;;  %1131 = vmatprep.mubr.bf16.mxu0 %v495_v24 }
 0x165   :  { %959 = vmatmul.mubr.bf16.gmra.mxu1 %v494_v18  ;;  %1132 = vmatmul.mubr.bf16.gmra.mxu0 %v494_v18 }
 0x166   :  { %968 = vmatprep.mubr.bf16.mxu1 %v497_v33  ;;  %1139 = vmatprep.mubr.bf16.mxu0 %v497_v33 }
 0x16d   :  { %969 = vmatmul.mubr.bf16.gmra.mxu1 %v496_v37  ;;  %1140 = vmatmul.mubr.bf16.gmra.mxu0 %v496_v37 }
 0x16e   :  { %978 = vmatprep.mubr.bf16.mxu1 %v499_v35  ;;  %1147 = vmatprep.mubr.bf16.mxu0 %v499_v35 }
 0x175   :  { %979 = vmatmul.mubr.bf16.gmra.mxu1 %v498_v39  ;;  %1148 = vmatmul.mubr.bf16.gmra.mxu0 %v498_v39 }
 0x176   :  { %988 = vmatprep.mubr.bf16.mxu1 %v501_v38  ;;  %1155 = vmatprep.mubr.bf16.mxu0 %v501_v38 }
 0x17d   :  { %989 = vmatmul.mubr.bf16.gmra.mxu1 %v500_v43  ;;  %1156 = vmatmul.mubr.bf16.gmra.mxu0 %v500_v43 }
 0x17e   :  { %998 = vmatprep.mubr.bf16.mxu1 %v503_v42  ;;  %1163 = vmatprep.mubr.bf16.mxu0 %v503_v42 }
 0x185   :  { %999 = vmatmul.mubr.bf16.gmra.mxu1 %v502_v47  ;;  %1164 = vmatmul.mubr.bf16.gmra.mxu0 %v502_v47 }
 0x186   :  { %1008 = vmatprep.mubr.bf16.mxu1 %v505_v46  ;;  %1171 = vmatprep.mubr.bf16.mxu0 %v505_v46 }
 0x18d   :  { %1009 = vmatmul.mubr.bf16.gmra.mxu1 %v504_v48  ;;  %1172 = vmatmul.mubr.bf16.gmra.mxu0 %v504_v48 }
 0x1d5   :  { %v860_v49 = vpop.f32.mrf.mxu1  ;;  %v1806_v50 = vpop.f32.mrf.mxu0 }
 0x1d7   :  { %v862_v51 = vpop.f32.mrf.mxu1  ;;  %v1807_v52 = vpop.f32.mrf.mxu0 }
 0x1d8   :  { %v1726_v53 = vpack.c.bf16 %v862_v51, %v860_v49  ;;  %v1808_v54 = vadd.f32 %v1807_v52, %v1806_v50 }
 0x1d9   :  { %v864_v55 = vpop.f32.mrf.mxu1  ;;  %v1809_v56 = vpop.f32.mrf.mxu0 }
 0x1da   :  { %1500 = vst [vmem:[#allocation8] sm:$0xff] %v1726_v53  ;;  %v1727_v57 = vpack.c.bf16 %v1808_v54, %v1808_v54 }
 0x1db   :  { %v866_v58 = vpop.f32.mrf.mxu1  ;;  %v1810_v59 = vpop.f32.mrf.mxu0 }
 0x1dc   :  { %1501 = vst [vmem:[#allocation8 + $0x8] sm:$0xf] %v1727_v57  ;;  %v1728_v60 = vpack.c.bf16 %v866_v58, %v864_v55  ;;  %v1811_v61 = vadd.f32 %v1810_v59, %v1809_v56 }
 0x1dd   :  { %v870_v62 = vpop.f32.mrf.mxu1  ;;  %v1812_v63 = vpop.f32.mrf.mxu0 }
 0x1de   :  { %1502 = vst [vmem:[#allocation8 + $0xc] sm:$0xff] %v1728_v60  ;;  %v1729_v1 = vpack.c.bf16 %v1811_v61, %v1811_v61 }
 0x1df   :  { %v872_v2 = vpop.f32.mrf.mxu1  ;;  %v1813_v3 = vpop.f32.mrf.mxu0 }
 0x1e0   :  { %1503 = vst [vmem:[#allocation8 + $0x14] sm:$0xf] %v1729_v1  ;;  %v1730_v4 = vpack.c.bf16 %v872_v2, %v870_v62  ;;  %v1814_v5 = vadd.f32 %v1813_v3, %v1812_v63 }
 0x1e1   :  { %v874_v6 = vpop.f32.mrf.mxu1  ;;  %v1815_v7 = vpop.f32.mrf.mxu0 }
 0x1e2   :  { %1504 = vst [vmem:[#allocation8 + $0x18] sm:$0xff] %v1730_v4  ;;  %v1731_v8 = vpack.c.bf16 %v1814_v5, %v1814_v5 }
 0x1e3   :  { %v876_v9 = vpop.f32.mrf.mxu1  ;;  %v1816_v10 = vpop.f32.mrf.mxu0 }
 0x1e4   :  { %1505 = vst [vmem:[#allocation8 + $0x20] sm:$0xf] %v1731_v8  ;;  %v1732_v11 = vpack.c.bf16 %v876_v9, %v874_v6  ;;  %v1817_v12 = vadd.f32 %v1816_v10, %v1815_v7 }
 0x1e5   :  { %v880_v13 = vpop.f32.mrf.mxu1  ;;  %v1818_v14 = vpop.f32.mrf.mxu0 }
 0x1e6   :  { %1506 = vst [vmem:[#allocation8 + $0x24] sm:$0xff] %v1732_v11  ;;  %v1733_v15 = vpack.c.bf16 %v1817_v12, %v1817_v12 }
 0x1e7   :  { %v882_v16 = vpop.f32.mrf.mxu1  ;;  %v1819_v17 = vpop.f32.mrf.mxu0 }
 0x1e8   :  { %1507 = vst [vmem:[#allocation8 + $0x2c] sm:$0xf] %v1733_v15  ;;  %v1734_v0 = vpack.c.bf16 %v882_v16, %v880_v13  ;;  %v1820_v19 = vadd.f32 %v1819_v17, %v1818_v14 }
 0x1e9   :  { %v884_v21 = vpop.f32.mrf.mxu1  ;;  %v1821_v23 = vpop.f32.mrf.mxu0 }
 0x1ea   :  { %1508 = vst [vmem:[#allocation8 + $0x30] sm:$0xff] %v1734_v0  ;;  %v1735_v25 = vpack.c.bf16 %v1820_v19, %v1820_v19 }
 0x1eb   :  { %v886_v26 = vpop.f32.mrf.mxu1  ;;  %v1822_v27 = vpop.f32.mrf.mxu0 }
 0x1ec   :  { %1509 = vst [vmem:[#allocation8 + $0x38] sm:$0xf] %v1735_v25  ;;  %v1736_v29 = vpack.c.bf16 %v886_v26, %v884_v21  ;;  %v1823_v20 = vadd.f32 %v1822_v27, %v1821_v23 }
 0x1ed   :  { %v890_v24 = vpop.f32.mrf.mxu1  ;;  %v1824_v30 = vpop.f32.mrf.mxu0 }
 0x1ee   :  { %1510 = vst [vmem:[#allocation8 + $0x3c] sm:$0xff] %v1736_v29  ;;  %v1737_v32 = vpack.c.bf16 %v1823_v20, %v1823_v20 }
 0x1ef   :  { %v892_v31 = vpop.f32.mrf.mxu1  ;;  %v1825_v33 = vpop.f32.mrf.mxu0 }
 0x1f0   :  { %1511 = vst [vmem:[#allocation8 + $0x44] sm:$0xf] %v1737_v32  ;;  %v1738_v18 = vpack.c.bf16 %v892_v31, %v890_v24  ;;  %v1826_v22 = vadd.f32 %v1825_v33, %v1824_v30 }
 0x1f1   :  { %v894_v34 = vpop.f32.mrf.mxu1  ;;  %v1827_v35 = vpop.f32.mrf.mxu0 }
 0x1f2   :  { %1512 = vst [vmem:[#allocation8 + $0x48] sm:$0xff] %v1738_v18  ;;  %v1739_v37 = vpack.c.bf16 %v1826_v22, %v1826_v22 }
 0x1f3   :  { %v896_v28 = vpop.f32.mrf.mxu1  ;;  %v1828_v36 = vpop.f32.mrf.mxu0 }
 0x1f4   :  { %1513 = vst [vmem:[#allocation8 + $0x50] sm:$0xf] %v1739_v37  ;;  %v1740_v38 = vpack.c.bf16 %v896_v28, %v894_v34  ;;  %v1829_v39 = vadd.f32 %v1828_v36, %v1827_v35 }
 0x1f5   :  { %v900_v40 = vpop.f32.mrf.mxu1  ;;  %v1830_v41 = vpop.f32.mrf.mxu0 }
 0x1f6   :  { %1514 = vst [vmem:[#allocation8 + $0x54] sm:$0xff] %v1740_v38  ;;  %v1741_v42 = vpack.c.bf16 %v1829_v39, %v1829_v39 }
 0x1f7   :  { %v902_v43 = vpop.f32.mrf.mxu1  ;;  %v1831_v44 = vpop.f32.mrf.mxu0 }
 0x1f8   :  { %1515 = vst [vmem:[#allocation8 + $0x5c] sm:$0xf] %v1741_v42  ;;  %v1742_v45 = vpack.c.bf16 %v902_v43, %v900_v40  ;;  %v1832_v46 = vadd.f32 %v1831_v44, %v1830_v41 }
 0x1f9   :  { %v904_v47 = vpop.f32.mrf.mxu1  ;;  %v1833_v48 = vpop.f32.mrf.mxu0 }
 0x1fa   :  { %1516 = vst [vmem:[#allocation8 + $0x60] sm:$0xff] %v1742_v45  ;;  %v1743_v49 = vpack.c.bf16 %v1832_v46, %v1832_v46 }
 0x1fb   :  { %v906_v50 = vpop.f32.mrf.mxu1  ;;  %v1834_v51 = vpop.f32.mrf.mxu0 }
 0x1fc   :  { %1517 = vst [vmem:[#allocation8 + $0x68] sm:$0xf] %v1743_v49  ;;  %v1744_v52 = vpack.c.bf16 %v906_v50, %v904_v47  ;;  %v1835_v53 = vadd.f32 %v1834_v51, %v1833_v48 }
 0x1fd   :  { %v910_v54 = vpop.f32.mrf.mxu1  ;;  %v1836_v55 = vpop.f32.mrf.mxu0 }
 0x1fe   :  { %1518 = vst [vmem:[#allocation8 + $0x6c] sm:$0xff] %v1744_v52  ;;  %v1745_v56 = vpack.c.bf16 %v1835_v53, %v1835_v53 }
 0x1ff   :  { %v912_v57 = vpop.f32.mrf.mxu1  ;;  %v1837_v58 = vpop.f32.mrf.mxu0 }
 0x200   :  { %1519 = vst [vmem:[#allocation8 + $0x74] sm:$0xf] %v1745_v56  ;;  %v1746_v59 = vpack.c.bf16 %v912_v57, %v910_v54  ;;  %v1838_v60 = vadd.f32 %v1837_v58, %v1836_v55 }
 0x201   :  { %v914_v61 = vpop.f32.mrf.mxu1  ;;  %v1839_v62 = vpop.f32.mrf.mxu0 }
 0x202   :  { %1520 = vst [vmem:[#allocation8 + $0x78] sm:$0xff] %v1746_v59  ;;  %v1747_v63 = vpack.c.bf16 %v1838_v60, %v1838_v60 }
 0x203   :  { %v916_v1 = vpop.f32.mrf.mxu1  ;;  %v1840_v2 = vpop.f32.mrf.mxu0 }
 0x204   :  { %1521 = vst [vmem:[#allocation8 + $0x80] sm:$0xf] %v1747_v63  ;;  %v1748_v3 = vpack.c.bf16 %v916_v1, %v914_v61  ;;  %v1841_v4 = vadd.f32 %v1840_v2, %v1839_v62 }
 0x205   :  { %v920_v5 = vpop.f32.mrf.mxu1  ;;  %v1842_v6 = vpop.f32.mrf.mxu0 }
 0x206   :  { %1522 = vst [vmem:[#allocation8 + $0x84] sm:$0xff] %v1748_v3  ;;  %v1749_v7 = vpack.c.bf16 %v1841_v4, %v1841_v4 }
 0x207   :  { %v922_v8 = vpop.f32.mrf.mxu1  ;;  %v1843_v9 = vpop.f32.mrf.mxu0 }
 0x208   :  { %1523 = vst [vmem:[#allocation8 + $0x8c] sm:$0xf] %v1749_v7  ;;  %v1750_v10 = vpack.c.bf16 %v922_v8, %v920_v5  ;;  %v1844_v11 = vadd.f32 %v1843_v9, %v1842_v6 }
 0x209   :  { %v924_v12 = vpop.f32.mrf.mxu1  ;;  %v1845_v13 = vpop.f32.mrf.mxu0 }
 0x20a   :  { %1524 = vst [vmem:[#allocation8 + $0x90] sm:$0xff] %v1750_v10  ;;  %v1751_v14 = vpack.c.bf16 %v1844_v11, %v1844_v11 }
 0x20b   :  { %v926_v15 = vpop.f32.mrf.mxu1  ;;  %v1846_v16 = vpop.f32.mrf.mxu0 }
 0x20c   :  { %1525 = vst [vmem:[#allocation8 + $0x98] sm:$0xf] %v1751_v14  ;;  %v1752_v17 = vpack.c.bf16 %v926_v15, %v924_v12  ;;  %v1847_v0 = vadd.f32 %v1846_v16, %v1845_v13 }
 0x20d   :  { %v930_v19 = vpop.f32.mrf.mxu1  ;;  %v1848_v21 = vpop.f32.mrf.mxu0 }
 0x20e   :  { %1526 = vst [vmem:[#allocation8 + $0x9c] sm:$0xff] %v1752_v17  ;;  %v1753_v23 = vpack.c.bf16 %v1847_v0, %v1847_v0 }
 0x20f   :  { %v932_v25 = vpop.f32.mrf.mxu1  ;;  %v1849_v26 = vpop.f32.mrf.mxu0 }
 0x210   :  { %1527 = vst [vmem:[#allocation8 + $0xa4] sm:$0xf] %v1753_v23  ;;  %v1754_v27 = vpack.c.bf16 %v932_v25, %v930_v19  ;;  %v1850_v29 = vadd.f32 %v1849_v26, %v1848_v21 }
 0x211   :  { %v934_v20 = vpop.f32.mrf.mxu1  ;;  %v1851_v24 = vpop.f32.mrf.mxu0 }
 0x212   :  { %1528 = vst [vmem:[#allocation8 + $0xa8] sm:$0xff] %v1754_v27  ;;  %v1755_v30 = vpack.c.bf16 %v1850_v29, %v1850_v29 }
 0x213   :  { %v936_v32 = vpop.f32.mrf.mxu1  ;;  %v1852_v31 = vpop.f32.mrf.mxu0 }
 0x214   :  { %1529 = vst [vmem:[#allocation8 + $0xb0] sm:$0xf] %v1755_v30  ;;  %v1756_v33 = vpack.c.bf16 %v936_v32, %v934_v20  ;;  %v1853_v18 = vadd.f32 %v1852_v31, %v1851_v24 }
 0x215   :  { %v940_v22 = vpop.f32.mrf.mxu1  ;;  %v1854_v34 = vpop.f32.mrf.mxu0 }
 0x216   :  { %1530 = vst [vmem:[#allocation8 + $0xb4] sm:$0xff] %v1756_v33  ;;  %v1757_v35 = vpack.c.bf16 %v1853_v18, %v1853_v18 }
 0x217   :  { %v942_v37 = vpop.f32.mrf.mxu1  ;;  %v1855_v28 = vpop.f32.mrf.mxu0 }
 0x218   :  { %1531 = vst [vmem:[#allocation8 + $0xbc] sm:$0xf] %v1757_v35  ;;  %v1758_v36 = vpack.c.bf16 %v942_v37, %v940_v22  ;;  %v1856_v38 = vadd.f32 %v1855_v28, %v1854_v34 }
 0x219   :  { %v944_v39 = vpop.f32.mrf.mxu1  ;;  %v1857_v40 = vpop.f32.mrf.mxu0 }
 0x21a   :  { %1532 = vst [vmem:[#allocation8 + $0xc0] sm:$0xff] %v1758_v36  ;;  %v1759_v41 = vpack.c.bf16 %v1856_v38, %v1856_v38 }
 0x21b   :  { %v946_v42 = vpop.f32.mrf.mxu1  ;;  %v1858_v43 = vpop.f32.mrf.mxu0 }
 0x21c   :  { %1533 = vst [vmem:[#allocation8 + $0xc8] sm:$0xf] %v1759_v41  ;;  %v1760_v44 = vpack.c.bf16 %v946_v42, %v944_v39  ;;  %v1859_v45 = vadd.f32 %v1858_v43, %v1857_v40 }
 0x21d   :  { %v950_v46 = vpop.f32.mrf.mxu1  ;;  %v1860_v47 = vpop.f32.mrf.mxu0 }
 0x21e   :  { %1534 = vst [vmem:[#allocation8 + $0xcc] sm:$0xff] %v1760_v44  ;;  %v1761_v48 = vpack.c.bf16 %v1859_v45, %v1859_v45 }
 0x21f   :  { %v952_v49 = vpop.f32.mrf.mxu1  ;;  %v1861_v50 = vpop.f32.mrf.mxu0 }
 0x220   :  { %1535 = vst [vmem:[#allocation8 + $0xd4] sm:$0xf] %v1761_v48  ;;  %v1762_v51 = vpack.c.bf16 %v952_v49, %v950_v46  ;;  %v1862_v52 = vadd.f32 %v1861_v50, %v1860_v47 }
 0x221   :  { %v954_v53 = vpop.f32.mrf.mxu1  ;;  %v1863_v54 = vpop.f32.mrf.mxu0 }
 0x222   :  { %1536 = vst [vmem:[#allocation8 + $0xd8] sm:$0xff] %v1762_v51  ;;  %v1763_v55 = vpack.c.bf16 %v1862_v52, %v1862_v52 }
 0x223   :  { %v956_v56 = vpop.f32.mrf.mxu1  ;;  %v1864_v57 = vpop.f32.mrf.mxu0 }
 0x224   :  { %1537 = vst [vmem:[#allocation8 + $0xe0] sm:$0xf] %v1763_v55  ;;  %v1764_v58 = vpack.c.bf16 %v956_v56, %v954_v53  ;;  %v1865_v59 = vadd.f32 %v1864_v57, %v1863_v54 }
 0x225   :  { %v960_v60 = vpop.f32.mrf.mxu1  ;;  %v1866_v61 = vpop.f32.mrf.mxu0 }
 0x226   :  { %1538 = vst [vmem:[#allocation8 + $0xe4] sm:$0xff] %v1764_v58  ;;  %v1765_v62 = vpack.c.bf16 %v1865_v59, %v1865_v59 }
 0x227   :  { %v962_v63 = vpop.f32.mrf.mxu1  ;;  %v1867_v1 = vpop.f32.mrf.mxu0 }
 0x228   :  { %1539 = vst [vmem:[#allocation8 + $0xec] sm:$0xf] %v1765_v62  ;;  %v1766_v2 = vpack.c.bf16 %v962_v63, %v960_v60  ;;  %v1868_v3 = vadd.f32 %v1867_v1, %v1866_v61 }
 0x229   :  { %v964_v4 = vpop.f32.mrf.mxu1  ;;  %v1869_v5 = vpop.f32.mrf.mxu0 }
 0x22a   :  { %1540 = vst [vmem:[#allocation8 + $0xf0] sm:$0xff] %v1766_v2  ;;  %v1767_v6 = vpack.c.bf16 %v1868_v3, %v1868_v3 }
 0x22b   :  { %v966_v7 = vpop.f32.mrf.mxu1  ;;  %v1870_v8 = vpop.f32.mrf.mxu0 }
 0x22c   :  { %1541 = vst [vmem:[#allocation8 + $0xf8] sm:$0xf] %v1767_v6  ;;  %v1768_v9 = vpack.c.bf16 %v966_v7, %v964_v4  ;;  %v1871_v10 = vadd.f32 %v1870_v8, %v1869_v5 }
 0x22d   :  { %v970_v11 = vpop.f32.mrf.mxu1  ;;  %v1872_v12 = vpop.f32.mrf.mxu0 }
 0x22e   :  { %1542 = vst [vmem:[#allocation8 + $0xfc] sm:$0xff] %v1768_v9  ;;  %v1769_v13 = vpack.c.bf16 %v1871_v10, %v1871_v10 }
 0x22f   :  { %v972_v14 = vpop.f32.mrf.mxu1  ;;  %v1873_v15 = vpop.f32.mrf.mxu0 }
 0x230   :  { %1543 = vst [vmem:[#allocation8 + $0x104] sm:$0xf] %v1769_v13  ;;  %v1770_v16 = vpack.c.bf16 %v972_v14, %v970_v11  ;;  %v1874_v17 = vadd.f32 %v1873_v15, %v1872_v12 }
 0x231   :  { %v974_v0 = vpop.f32.mrf.mxu1  ;;  %v1875_v19 = vpop.f32.mrf.mxu0 }
 0x232   :  { %1544 = vst [vmem:[#allocation8 + $0x108] sm:$0xff] %v1770_v16  ;;  %v1771_v21 = vpack.c.bf16 %v1874_v17, %v1874_v17 }
 0x233   :  { %v976_v23 = vpop.f32.mrf.mxu1  ;;  %v1876_v25 = vpop.f32.mrf.mxu0 }
 0x234   :  { %1545 = vst [vmem:[#allocation8 + $0x110] sm:$0xf] %v1771_v21  ;;  %v1772_v26 = vpack.c.bf16 %v976_v23, %v974_v0  ;;  %v1877_v27 = vadd.f32 %v1876_v25, %v1875_v19 }
 0x235   :  { %v980_v29 = vpop.f32.mrf.mxu1  ;;  %v1878_v20 = vpop.f32.mrf.mxu0 }
 0x236   :  { %1546 = vst [vmem:[#allocation8 + $0x114] sm:$0xff] %v1772_v26  ;;  %v1773_v24 = vpack.c.bf16 %v1877_v27, %v1877_v27 }
 0x237   :  { %v982_v30 = vpop.f32.mrf.mxu1  ;;  %v1879_v32 = vpop.f32.mrf.mxu0 }
 0x238   :  { %1547 = vst [vmem:[#allocation8 + $0x11c] sm:$0xf] %v1773_v24  ;;  %v1774_v31 = vpack.c.bf16 %v982_v30, %v980_v29  ;;  %v1880_v33 = vadd.f32 %v1879_v32, %v1878_v20 }
 0x239   :  { %v984_v18 = vpop.f32.mrf.mxu1  ;;  %v1881_v22 = vpop.f32.mrf.mxu0 }
 0x23a   :  { %1548 = vst [vmem:[#allocation8 + $0x120] sm:$0xff] %v1774_v31  ;;  %v1775_v34 = vpack.c.bf16 %v1880_v33, %v1880_v33 }
 0x23b   :  { %v986_v35 = vpop.f32.mrf.mxu1  ;;  %v1882_v37 = vpop.f32.mrf.mxu0 }
 0x23c   :  { %1549 = vst [vmem:[#allocation8 + $0x128] sm:$0xf] %v1775_v34  ;;  %v1776_v28 = vpack.c.bf16 %v986_v35, %v984_v18  ;;  %v1883_v36 = vadd.f32 %v1882_v37, %v1881_v22 }
 0x23d   :  { %v990_v38 = vpop.f32.mrf.mxu1  ;;  %v1884_v39 = vpop.f32.mrf.mxu0 }
 0x23e   :  { %1550 = vst [vmem:[#allocation8 + $0x12c] sm:$0xff] %v1776_v28  ;;  %v1777_v40 = vpack.c.bf16 %v1883_v36, %v1883_v36 }
 0x23f   :  { %v992_v41 = vpop.f32.mrf.mxu1  ;;  %v1885_v42 = vpop.f32.mrf.mxu0 }
 0x240   :  { %1551 = vst [vmem:[#allocation8 + $0x134] sm:$0xf] %v1777_v40  ;;  %v1778_v43 = vpack.c.bf16 %v992_v41, %v990_v38  ;;  %v1886_v44 = vadd.f32 %v1885_v42, %v1884_v39 }
 0x241   :  { %v994_v45 = vpop.f32.mrf.mxu1  ;;  %v1887_v46 = vpop.f32.mrf.mxu0 }
 0x242   :  { %1552 = vst [vmem:[#allocation8 + $0x138] sm:$0xff] %v1778_v43  ;;  %v1779_v47 = vpack.c.bf16 %v1886_v44, %v1886_v44 }
 0x243   :  { %v996_v48 = vpop.f32.mrf.mxu1  ;;  %v1888_v49 = vpop.f32.mrf.mxu0 }
 0x244   :  { %1553 = vst [vmem:[#allocation8 + $0x140] sm:$0xf] %v1779_v47  ;;  %v1780_v50 = vpack.c.bf16 %v996_v48, %v994_v45  ;;  %v1889_v51 = vadd.f32 %v1888_v49, %v1887_v46 }
 0x245   :  { %v1000_v52 = vpop.f32.mrf.mxu1  ;;  %v1890_v53 = vpop.f32.mrf.mxu0 }
 0x246   :  { %1554 = vst [vmem:[#allocation8 + $0x144] sm:$0xff] %v1780_v50  ;;  %v1781_v54 = vpack.c.bf16 %v1889_v51, %v1889_v51 }
 0x247   :  { %v1002_v55 = vpop.f32.mrf.mxu1  ;;  %v1891_v56 = vpop.f32.mrf.mxu0 }
 0x248   :  { %1555 = vst [vmem:[#allocation8 + $0x14c] sm:$0xf] %v1781_v54  ;;  %v1782_v57 = vpack.c.bf16 %v1002_v55, %v1000_v52  ;;  %v1892_v58 = vadd.f32 %v1891_v56, %v1890_v53 }
 0x249   :  { %v1004_v59 = vpop.f32.mrf.mxu1  ;;  %v1893_v60 = vpop.f32.mrf.mxu0 }
 0x24a   :  { %1556 = vst [vmem:[#allocation8 + $0x150] sm:$0xff] %v1782_v57  ;;  %v1783_v61 = vpack.c.bf16 %v1892_v58, %v1892_v58 }
 0x24b   :  { %v1006_v62 = vpop.f32.mrf.mxu1  ;;  %v1894_v63 = vpop.f32.mrf.mxu0 }
 0x24c   :  { %1557 = vst [vmem:[#allocation8 + $0x158] sm:$0xf] %v1783_v61  ;;  %v1784_v1 = vpack.c.bf16 %v1006_v62, %v1004_v59  ;;  %v1895_v2 = vadd.f32 %v1894_v63, %v1893_v60 }
 0x24d   :  { %v1010_v3 = vpop.f32.mrf.mxu1  ;;  %v1896_v4 = vpop.f32.mrf.mxu0 }
 0x24e   :  { %1558 = vst [vmem:[#allocation8 + $0x15c] sm:$0xff] %v1784_v1  ;;  %v1785_v5 = vpack.c.bf16 %v1895_v2, %v1895_v2 }
 0x24f   :  { %v1012_v6 = vpop.f32.mrf.mxu1  ;;  %v1897_v7 = vpop.f32.mrf.mxu0 }
 0x250   :  { %1559 = vst [vmem:[#allocation8 + $0x164] sm:$0xf] %v1785_v5  ;;  %v1786_v8 = vpack.c.bf16 %v1012_v6, %v1010_v3  ;;  %v1898_v9 = vadd.f32 %v1897_v7, %v1896_v4 }
 0x251   :  { %v1014_v10 = vpop.f32.mrf.mxu1  ;;  %v1899_v11 = vpop.f32.mrf.mxu0 }
 0x252   :  { %1560 = vst [vmem:[#allocation8 + $0x168] sm:$0xff] %v1786_v8  ;;  %v1787_v12 = vpack.c.bf16 %v1898_v9, %v1898_v9 }
 0x253   :  { %v1016_v13 = vpop.f32.mrf.mxu1  ;;  %v1900_v14 = vpop.f32.mrf.mxu0 }
 0x254   :  { %1561 = vst [vmem:[#allocation8 + $0x170] sm:$0xf] %v1787_v12  ;;  %v1788_v15 = vpack.c.bf16 %v1016_v13, %v1014_v10  ;;  %v1901_v16 = vadd.f32 %v1900_v14, %v1899_v11 }
 0x256   :  { %1562 = vst [vmem:[#allocation8 + $0x174] sm:$0xff] %v1788_v15  ;;  %v1789_v17 = vpack.c.bf16 %v1901_v16, %v1901_v16 }
 0x258   :  { %1563 = vst [vmem:[#allocation8 + $0x17c] sm:$0xf] %v1789_v17 }
 0x259   :  { %2104 = shalt.err (!%p2101_p5)
}
 0x25a   :  { %1575 = dma.vmem_to_hbm [thread:$0]  %s1570_s2, 6144, %s2223_s3, [#allocation4], %s2126_s28, %s2126_s28, %s2127_s29  }
 0x25b   :  { %2117 = dma.done.wait [#allocation4], 6144  }
 0x25c   :  { %2118 = vsyncadd [#allocation4], 4294961152 }
 0x25d   :  { %1579 = vsyncpa [#allocation3], 1 }
 0x25e   :  { %1580 = vsyncpa [#allocation6], 1 }
 0x25f   :  { %1581 = vsyncpa [#allocation4], 1 }

// kernel: _fused_chain.1
= control target key start
LH: loop header
LB: loop body
LE: loop exit
PB: predicated region body
PF: predicated region fallthrough
CT: control target
= control target key end

     0   :  { %8 = vsyncpa [#allocation3], 0  ;;  %s2220_s0 = inlined_call_operand.hbm [shape: bf16[256,128], index: 0, kind: input, shape index: {}]   ;;  %s2221_s1 = inlined_call_operand.hbm [shape: bf16[128,256], index: 1, kind: input, shape index: {}]   ;;  %s2222_s2 = inlined_call_operand.hbm [shape: bf16[256,384], index: 2, kind: input, shape index: {}]   ;;  %s2223_s3 = inlined_call_operand.hbm [shape: bf16[256,384], index: 3, kind: output, shape index: {}]  }
   0x1   :  { %9 = vsyncpa [#allocation6], 0 }
   0x2   :  { %10 = vsyncpa [#allocation4], 0  ;;  %s2119_s12 = smov [#allocation5]  }
   0x3   :  { %s28_s13 = sshll.u32 %s2119_s12, 4  ;;  %s29_s13 = int_to_ptr.vmem [resolvable:$true] %s28_s13 }
   0x4   :  { %s2041_s14 = scalar_lea.vmem %s29_s13, 2048  ;;  %p2046_p1 = scmp.lt.s32.totalorder %s29_s13, %s29_s13 }
   0x5   :  { %p2042_p0 = scmp.ne.s32.totalorder %s29_s13, %s2041_s14  ;;  %p2047_p2 = scmp.lt.s32.totalorder %s2041_s14, %s2041_s14 }
   0x7   :  { %p2048_p3 = por %p2047_p2, %p2046_p1 }
   0x9   :  { %p2049_p4 = pnand %p2048_p3, %p2042_p0 }
   0xb   :  { %2052 = shalt.err (!%p2049_p4)
}
   0xc   :  { %s2120_s15 = smov 128   ;;  %s2121_s16 = smov 8  }
   0xd   :  { %34 = dma.hbm_to_vmem [thread:$0]  %s2221_s1, 2048, %s29_s13, [#allocation6], %s2120_s15, %s2120_s15, %s2121_s16  }
   0xe   :  { %s2122_s19 = smov [#allocation2]  }
   0xf   :  { %s16_s20 = sshll.u32 %s2122_s19, 4  ;;  %s17_s20 = int_to_ptr.vmem [resolvable:$true] %s16_s20 }
  0x10   :  { %s2061_s21 = scalar_lea.vmem %s17_s20, 2048  ;;  %p2066_p6 = scmp.lt.s32.totalorder %s17_s20, %s17_s20 }
  0x11   :  { %p2062_p5 = scmp.ne.s32.totalorder %s17_s20, %s2061_s21  ;;  %p2067_p7 = scmp.lt.s32.totalorder %s2061_s21, %s2061_s21 }
  0x13   :  { %p2068_p8 = por %p2067_p7, %p2066_p6 }
  0x15   :  { %p2069_p9 = pnand %p2068_p8, %p2062_p5 }
  0x17   :  { %2072 = shalt.err (!%p2069_p9)
}
  0x18   :  { %s2123_s22 = smov 64   ;;  %s2124_s23 = smov 4  }
  0x19   :  { %22 = dma.hbm_to_vmem [thread:$0]  %s2220_s0, 2048, %s17_s20, [#allocation3], %s2123_s22, %s2123_s22, %s2124_s23  }
  0x1a   :  { %s2125_s26 = smov [#allocation7]  }
  0x1b   :  { %s40_s27 = sshll.u32 %s2125_s26, 4  ;;  %s41_s27 = int_to_ptr.vmem [resolvable:$true] %s40_s27 }
  0x1c   :  { %s2081_s1 = scalar_lea.vmem %s41_s27, 6144  ;;  %p2086_p11 = scmp.lt.s32.totalorder %s41_s27, %s41_s27 }
  0x1d   :  { %p2082_p10 = scmp.ne.s32.totalorder %s41_s27, %s2081_s1  ;;  %p2087_p12 = scmp.lt.s32.totalorder %s2081_s1, %s2081_s1 }
  0x1f   :  { %p2088_p13 = por %p2087_p12, %p2086_p11 }
  0x21   :  { %p2089_p0 = pnand %p2088_p13, %p2082_p10 }
  0x23   :  { %2092 = shalt.err (!%p2089_p0)
}
  0x24   :  { %s2126_s28 = smov 192   ;;  %s2127_s29 = smov 12  }
  0x25   :  { %46 = dma.hbm_to_vmem [thread:$0]  %s2222_s2, 6144, %s41_s27, [#allocation6], %s2126_s28, %s2126_s28, %s2127_s29  }
  0x26   :  { %2113 = dma.done.wait [#allocation3], 2048  }
  0x27   :  { %2114 = vsyncadd [#allocation3], 4294965248 }
  0x28   :  { %2115 = dma.done.wait [#allocation6], 8192  }
  0x29   :  { %2116 = vsyncadd [#allocation6], 4294959104  ;;  %v2128_v0 = vmov 0   ;;  %v1929_v1 = vld [vmem:[#allocation5 + $0x74] ss:$8 sps:$4 sm:$0xff]   ;;  %v1953_v19 = vld [vmem:[#allocation2] sm:$0xff]  }
  0x2a   :  { %313 = vmatprep.mubr.bf16.mxu0 %v2128_v0  ;;  %393 = vmatprep.mubr.bf16.mxu1 %v2128_v0  ;;  %v1931_v2 = vld [vmem:[#allocation5 + $0x70] ss:$8 sps:$4 sm:$0xff]   ;;  %v1932_v3 = vld [vmem:[#allocation5 + $0x64] ss:$8 sps:$4 sm:$0xff]   ;;  %v1934_v4 = vld [vmem:[#allocation5 + $0x60] ss:$8 sps:$4 sm:$0xff]  }
  0x2b   :  { %281 = vmatprep.subr.bf16.mxu0 %v1929_v1  ;;  %1902 = vmatprep.subr.bf16.mxu1 %v1929_v1  ;;  %v1935_v5 = vld [vmem:[#allocation5 + $0x54] ss:$8 sps:$4 sm:$0xff]   ;;  %v1937_v6 = vld [vmem:[#allocation5 + $0x50] ss:$8 sps:$4 sm:$0xff]   ;;  %v1938_v7 = vld [vmem:[#allocation5 + $0x44] ss:$8 sps:$4 sm:$0xff]  }
  0x2c   :  { %282 = vmatpush1.bf16.msra.mxu0 %v1931_v2  ;;  %1910 = vmatpush1.bf16.msra.mxu1 %v1931_v2  ;;  %v1940_v8 = vld [vmem:[#allocation5 + $0x40] ss:$8 sps:$4 sm:$0xff]   ;;  %v1941_v9 = vld [vmem:[#allocation5 + $0x34] ss:$8 sps:$4 sm:$0xff]   ;;  %v1943_v10 = vld [vmem:[#allocation5 + $0x30] ss:$8 sps:$4 sm:$0xff]  }
  0x2d   :  { %283 = vmatprep.subr.bf16.mxu0 %v1932_v3  ;;  %1903 = vmatprep.subr.bf16.mxu1 %v1932_v3  ;;  %v1944_v11 = vld [vmem:[#allocation5 + $0x24] ss:$8 sps:$4 sm:$0xff]   ;;  %v1946_v12 = vld [vmem:[#allocation5 + $0x20] ss:$8 sps:$4 sm:$0xff]   ;;  %v1947_v13 = vld [vmem:[#allocation5 + $0x14] ss:$8 sps:$4 sm:$0xff]  }
  0x2e   :  { %v1949_v14 = vld [vmem:[#allocation5 + $0x10] ss:$8 sps:$4 sm:$0xff]   ;;  %v1950_v15 = vld [vmem:[#allocation5 + $0x4] ss:$8 sps:$4 sm:$0xff]   ;;  %v1952_v16 = vld [vmem:[#allocation5] ss:$8 sps:$4 sm:$0xff]  }
  0x2f   :  { %v1969_v17 = vld [vmem:[#allocation7 + $0x170] ss:$12 sps:$4 sm:$0xff]   ;;  %v1972_v18 = vld [vmem:[#allocation7 + $0xac] ss:$12 sps:$4 sm:$0xff]   ;;  %v1961_v20 = vld [vmem:[#allocation2 + $0x40] sm:$0xff]   ;;  %s2129_s0 = smov [#allocation8]  }
  0x30   :  { %284 = vmatpush1.bf16.msra.mxu0 %v1934_v4  ;;  %1911 = vmatpush1.bf16.msra.mxu1 %v1934_v4  ;;  %v1970_v21 = vld [vmem:[#allocation7 + $0xa8] ss:$12 sps:$4 sm:$0xff]   ;;  %v1973_v22 = vld [vmem:[#allocation7 + $0xb0] ss:$12 sps:$4 sm:$0xff]   ;;  %v1977_v24 = vld [vmem:[#allocation7 + $0x158] ss:$12 sps:$4 sm:$0xff]  }
  0x31   :  { %285 = vmatprep.subr.bf16.mxu0 %v1935_v5  ;;  %1904 = vmatprep.subr.bf16.mxu1 %v1935_v5  ;;  %v1976_v23 = vld [vmem:[#allocation7 + $0x94] ss:$12 sps:$4 sm:$0xff]   ;;  %v1974_v25 = vld [vmem:[#allocation7 + $0x90] ss:$12 sps:$4 sm:$0xff]   ;;  %v1954_v27 = vld [vmem:[#allocation2 + $0x8] sm:$0xff]   ;;  %s1569_s2 = sshll.u32 %s2129_s0, 4  ;;  %s1570_s2 = int_to_ptr.vmem [resolvable:$true] %s1569_s2 }
  0x32   :  { %v1980_v26 = vld [vmem:[#allocation7 + $0x7c] ss:$12 sps:$4 sm:$0xff]   ;;  %v1981_v28 = vld [vmem:[#allocation7 + $0x98] ss:$12 sps:$4 sm:$0xff]   ;;  %v1985_v29 = vld [vmem:[#allocation7 + $0x140] ss:$12 sps:$4 sm:$0xff]   ;;  %p2098_p2 = scmp.lt.s32.totalorder %s1570_s2, %s1570_s2 }
  0x33   :  { %v1962_v30 = vld [vmem:[#allocation2 + $0x48] sm:$0xff]   ;;  %v1978_v31 = vld [vmem:[#allocation7 + $0x78] ss:$12 sps:$4 sm:$0xff]   ;;  %v1955_v36 = vld [vmem:[#allocation2 + $0x10] sm:$0xff]   ;;  %s2093_s5 = scalar_lea.vmem %s1570_s2, 6144 }
  0x34   :  { %286 = vmatpush1.bf16.msra.mxu0 %v1937_v6  ;;  %1912 = vmatpush1.bf16.msra.mxu1 %v1937_v6  ;;  %v1984_v32 = vld [vmem:[#allocation7 + $0x64] ss:$12 sps:$4 sm:$0xff]   ;;  %v1989_v33 = vld [vmem:[#allocation7 + $0x80] ss:$12 sps:$4 sm:$0xff]   ;;  %v1993_v34 = vld [vmem:[#allocation7 + $0x128] ss:$12 sps:$4 sm:$0xff]   ;;  %p2094_p1 = scmp.ne.s32.totalorder %s1570_s2, %s2093_s5  ;;  %p2099_p3 = scmp.lt.s32.totalorder %s2093_s5, %s2093_s5 }
  0x35   :  { %287 = vmatprep.subr.bf16.mxu0 %v1938_v7  ;;  %1905 = vmatprep.subr.bf16.mxu1 %v1938_v7  ;;  %v1982_v35 = vld [vmem:[#allocation7 + $0x60] ss:$12 sps:$4 sm:$0xff]   ;;  %v1963_v37 = vld [vmem:[#allocation2 + $0x50] sm:$0xff]   ;;  %v2009_v44 = vld [vmem:[#allocation7 + $0xf8] ss:$12 sps:$4 sm:$0xff]  }
  0x36   :  { %v1997_v38 = vld [vmem:[#allocation7 + $0x68] ss:$12 sps:$4 sm:$0xff]   ;;  %v1988_v39 = vld [vmem:[#allocation7 + $0x4c] ss:$12 sps:$4 sm:$0xff]   ;;  %v2001_v40 = vld [vmem:[#allocation7 + $0x110] ss:$12 sps:$4 sm:$0xff]   ;;  %p2100_p4 = por %p2099_p3, %p2098_p2 }
  0x37   :  { %v1986_v41 = vld [vmem:[#allocation7 + $0x48] ss:$12 sps:$4 sm:$0xff]   ;;  %v2005_v42 = vld [vmem:[#allocation7 + $0x50] ss:$12 sps:$4 sm:$0xff]   ;;  %v2013_v47 = vld [vmem:[#allocation7 + $0x38] ss:$12 sps:$4 sm:$0xff]  }
  0x38   :  { %288 = vmatpush1.bf16.msra.mxu0 %v1940_v8  ;;  %1913 = vmatpush1.bf16.msra.mxu1 %v1940_v8  ;;  %v1992_v43 = vld [vmem:[#allocation7 + $0x34] ss:$12 sps:$4 sm:$0xff]   ;;  %v1990_v45 = vld [vmem:[#allocation7 + $0x30] ss:$12 sps:$4 sm:$0xff]   ;;  %v1994_v51 = vld [vmem:[#allocation7 + $0x18] ss:$12 sps:$4 sm:$0xff]   ;;  %p2101_p5 = pnand %p2100_p4, %p2094_p1 }
  0x39   :  { %289 = vmatprep.subr.bf16.mxu0 %v1941_v9  ;;  %1906 = vmatprep.subr.bf16.mxu1 %v1941_v9  ;;  %v1996_v46 = vld [vmem:[#allocation7 + $0x1c] ss:$12 sps:$4 sm:$0xff]   ;;  %v2017_v50 = vld [vmem:[#allocation7 + $0xe0] ss:$12 sps:$4 sm:$0xff]   ;;  %v2000_v52 = vld [vmem:[#allocation7 + $0x4] ss:$12 sps:$4 sm:$0xff]  }
  0x3a   :  { %v1956_v48 = vld [vmem:[#allocation2 + $0x18] sm:$0xff]   ;;  %v2021_v53 = vld [vmem:[#allocation7 + $0x20] ss:$12 sps:$4 sm:$0xff]   ;;  %v2002_v58 = vld [vmem:[#allocation7 + $0x168] ss:$12 sps:$4 sm:$0xff]  }
  0x3b   :  { %v1964_v49 = vld [vmem:[#allocation2 + $0x58] sm:$0xff]   ;;  %v1998_v54 = vld [vmem:[#allocation7] ss:$12 sps:$4 sm:$0xff]   ;;  %v2016_v2 = vld [vmem:[#allocation7 + $0x124] ss:$12 sps:$4 sm:$0xff]  }
  0x3c   :  { %290 = vmatpush1.bf16.msra.mxu0 %v1943_v10  ;;  %1914 = vmatpush1.bf16.msra.mxu1 %v1943_v10  ;;  %v2004_v55 = vld [vmem:[#allocation7 + $0x16c] ss:$12 sps:$4 sm:$0xff]   ;;  %v1957_v56 = vld [vmem:[#allocation2 + $0x20] sm:$0xff]   ;;  %v2006_v60 = vld [vmem:[#allocation7 + $0x150] ss:$12 sps:$4 sm:$0xff]  }
  0x3d   :  { %291 = vmatprep.subr.bf16.mxu0 %v1944_v11  ;;  %1907 = vmatprep.subr.bf16.mxu1 %v1944_v11  ;;  %v1965_v57 = vld [vmem:[#allocation2 + $0x60] sm:$0xff]   ;;  %v2012_v61 = vld [vmem:[#allocation7 + $0x13c] ss:$12 sps:$4 sm:$0xff]   ;;  %v2020_v4 = vld [vmem:[#allocation7 + $0x10c] ss:$12 sps:$4 sm:$0xff]  }
  0x3e   :  { %v2008_v59 = vld [vmem:[#allocation7 + $0x154] ss:$12 sps:$4 sm:$0xff]   ;;  %v1958_v62 = vld [vmem:[#allocation2 + $0x28] sm:$0xff]   ;;  %v2010_v1 = vld [vmem:[#allocation7 + $0x138] ss:$12 sps:$4 sm:$0xff]  }
  0x3f   :  { %v1966_v63 = vld [vmem:[#allocation2 + $0x68] sm:$0xff]   ;;  %v1959_v5 = vld [vmem:[#allocation2 + $0x30] sm:$0xff]   ;;  %v1960_v10 = vld [vmem:[#allocation2 + $0x38] sm:$0xff]  }
  0x40   :  { %292 = vmatpush1.bf16.msra.mxu0 %v1946_v12  ;;  %1915 = vmatpush1.bf16.msra.mxu1 %v1946_v12  ;;  %v2014_v3 = vld [vmem:[#allocation7 + $0x120] ss:$12 sps:$4 sm:$0xff]   ;;  %v1967_v6 = vld [vmem:[#allocation2 + $0x70] sm:$0xff]   ;;  %v1968_v11 = vld [vmem:[#allocation2 + $0x78] sm:$0xff]  }
  0x41   :  { %293 = vmatprep.subr.bf16.mxu0 %v1947_v13  ;;  %1908 = vmatprep.subr.bf16.mxu1 %v1947_v13  ;;  %v2018_v7 = vld [vmem:[#allocation7 + $0x108] ss:$12 sps:$4 sm:$0xff]   ;;  %v2022_v9 = vld [vmem:[#allocation7 + $0xf0] ss:$12 sps:$4 sm:$0xff]  }
  0x42   :  { %v2024_v8 = vld [vmem:[#allocation7 + $0xf4] ss:$12 sps:$4 sm:$0xff]   ;;  %v2028_v13 = vld [vmem:[#allocation7 + $0xdc] ss:$12 sps:$4 sm:$0xff]  }
  0x43   :  { %v2025_v12 = vld [vmem:[#allocation7 + $0xc8] ss:$12 sps:$4 sm:$0xff]  }
  0x44   :  { %294 = vmatpush1.bf16.msra.mxu0 %v1949_v14  ;;  %1916 = vmatpush1.bf16.msra.mxu1 %v1949_v14  ;;  %v2026_v14 = vld [vmem:[#allocation7 + $0xd8] ss:$12 sps:$4 sm:$0xff]  }
  0x45   :  { %295 = vmatprep.subr.bf16.mxu0 %v1950_v15  ;;  %1909 = vmatprep.subr.bf16.mxu1 %v1950_v15  ;;  %v2029_v15 = vld [vmem:[#allocation7 + $0x8] ss:$12 sps:$4 sm:$0xff]  }
  0x48   :  { %296 = vmatpush1.bf16.msra.mxu0 %v1952_v16  ;;  %1917 = vmatpush1.bf16.msra.mxu1 %v1952_v16  ;;  %v2032_v16 = vld [vmem:[#allocation7 + $0xc4] ss:$12 sps:$4 sm:$0xff]  }
  0x49   :  { %1790 = vmatprep.subr.bf16.mxu0 %v1969_v17  ;;  %826 = vmatprep.subr.bf16.mxu1 %v1972_v18  ;;  %v2030_v17 = vld [vmem:[#allocation7 + $0xc0] ss:$12 sps:$4 sm:$0xff]  }
  0x4b   :  { %314 = vmatmul.mubr.bf16.vlgmr.msra.gmra.mxu0 %v1953_v19  ;;  %394 = vmatmul.mubr.bf16.vlgmr.msra.gmra.mxu1 %v1961_v20 }
  0x4c   :  { %323 = vmatprep.mubr.bf16.mxu0 %v2128_v0  ;;  %403 = vmatprep.mubr.bf16.mxu1 %v2128_v0 }
  0x4d   :  { %1791 = vmatpush3.bf16.msra.mxu0 %v1973_v22  ;;  %827 = vmatpush1.bf16.msra.mxu1 %v1970_v21 }
  0x4e   :  { %828 = vmatprep.subr.bf16.mxu1 %v1976_v23  ;;  %1792 = vmatprep.subr.bf16.mxu0 %v1977_v24 }
  0x51   :  { %829 = vmatpush1.bf16.msra.mxu1 %v1974_v25  ;;  %1793 = vmatpush3.bf16.msra.mxu0 %v1981_v28 }
  0x52   :  { %830 = vmatprep.subr.bf16.mxu1 %v1980_v26  ;;  %1794 = vmatprep.subr.bf16.mxu0 %v1985_v29 }
  0x53   :  { %324 = vmatmul.mubr.bf16.gmra.mxu0 %v1954_v27  ;;  %404 = vmatmul.mubr.bf16.gmra.mxu1 %v1962_v30 }
  0x54   :  { %333 = vmatprep.mubr.bf16.mxu0 %v2128_v0  ;;  %413 = vmatprep.mubr.bf16.mxu1 %v2128_v0 }
  0x55   :  { %831 = vmatpush1.bf16.msra.mxu1 %v1978_v31  ;;  %1795 = vmatpush3.bf16.msra.mxu0 %v1989_v33 }
  0x56   :  { %832 = vmatprep.subr.bf16.mxu1 %v1984_v32  ;;  %1796 = vmatprep.subr.bf16.mxu0 %v1993_v34 }
  0x59   :  { %833 = vmatpush1.bf16.msra.mxu1 %v1982_v35  ;;  %1797 = vmatpush3.bf16.msra.mxu0 %v1997_v38 }
  0x5a   :  { %834 = vmatprep.subr.bf16.mxu1 %v1988_v39  ;;  %1798 = vmatprep.subr.bf16.mxu0 %v2001_v40 }
  0x5b   :  { %334 = vmatmul.mubr.bf16.gmra.mxu0 %v1955_v36  ;;  %414 = vmatmul.mubr.bf16.gmra.mxu1 %v1963_v37 }
  0x5c   :  { %343 = vmatprep.mubr.bf16.mxu0 %v2128_v0  ;;  %423 = vmatprep.mubr.bf16.mxu1 %v2128_v0 }
  0x5d   :  { %835 = vmatpush1.bf16.msra.mxu1 %v1986_v41  ;;  %1799 = vmatpush3.bf16.msra.mxu0 %v2005_v42 }
  0x5e   :  { %836 = vmatprep.subr.bf16.mxu1 %v1992_v43  ;;  %1800 = vmatprep.subr.bf16.mxu0 %v2009_v44 }
  0x61   :  { %837 = vmatpush1.bf16.msra.mxu1 %v1990_v45  ;;  %1801 = vmatpush3.bf16.msra.mxu0 %v2013_v47 }
  0x62   :  { %838 = vmatprep.subr.bf16.mxu1 %v1996_v46  ;;  %1802 = vmatprep.subr.bf16.mxu0 %v2017_v50 }
  0x63   :  { %344 = vmatmul.mubr.bf16.gmra.mxu0 %v1956_v48  ;;  %424 = vmatmul.mubr.bf16.gmra.mxu1 %v1964_v49 }
  0x64   :  { %353 = vmatprep.mubr.bf16.mxu0 %v2128_v0  ;;  %433 = vmatprep.mubr.bf16.mxu1 %v2128_v0 }
  0x65   :  { %839 = vmatpush1.bf16.msra.mxu1 %v1994_v51  ;;  %1803 = vmatpush3.bf16.msra.mxu0 %v2021_v53 }
  0x66   :  { %840 = vmatprep.subr.bf16.mxu1 %v2000_v52  ;;  %1804 = vmatprep.subr.bf16.mxu0 %v2025_v12 }
  0x69   :  { %841 = vmatpush1.bf16.msra.mxu1 %v1998_v54  ;;  %1805 = vmatpush3.bf16.msra.mxu0 %v2029_v15 }
  0x6a   :  { %842 = vmatprep.subr.bf16.mxu1 %v2004_v55 }
  0x6b   :  { %354 = vmatmul.mubr.bf16.gmra.mxu0 %v1957_v56  ;;  %434 = vmatmul.mubr.bf16.gmra.mxu1 %v1965_v57 }
  0x6c   :  { %363 = vmatprep.mubr.bf16.mxu0 %v2128_v0  ;;  %443 = vmatprep.mubr.bf16.mxu1 %v2128_v0 }
  0x6d   :  { %843 = vmatpush2.bf16.msra.mxu1 %v2002_v58 }
  0x6e   :  { %844 = vmatprep.subr.bf16.mxu1 %v2008_v59 }
  0x71   :  { %845 = vmatpush2.bf16.msra.mxu1 %v2006_v60 }
  0x72   :  { %846 = vmatprep.subr.bf16.mxu1 %v2012_v61 }
  0x73   :  { %364 = vmatmul.mubr.bf16.gmra.mxu0 %v1958_v62  ;;  %444 = vmatmul.mubr.bf16.gmra.mxu1 %v1966_v63 }
  0x74   :  { %373 = vmatprep.mubr.bf16.mxu0 %v2128_v0  ;;  %453 = vmatprep.mubr.bf16.mxu1 %v2128_v0 }
  0x75   :  { %847 = vmatpush2.bf16.msra.mxu1 %v2010_v1 }
  0x76   :  { %848 = vmatprep.subr.bf16.mxu1 %v2016_v2 }
  0x79   :  { %849 = vmatpush2.bf16.msra.mxu1 %v2014_v3 }
  0x7a   :  { %850 = vmatprep.subr.bf16.mxu1 %v2020_v4 }
  0x7b   :  { %374 = vmatmul.mubr.bf16.gmra.mxu0 %v1959_v5  ;;  %454 = vmatmul.mubr.bf16.gmra.mxu1 %v1967_v6 }
  0x7c   :  { %383 = vmatprep.mubr.bf16.mxu0 %v2128_v0  ;;  %463 = vmatprep.mubr.bf16.mxu1 %v2128_v0 }
  0x7d   :  { %851 = vmatpush2.bf16.msra.mxu1 %v2018_v7 }
  0x7e   :  { %852 = vmatprep.subr.bf16.mxu1 %v2024_v8 }
  0x81   :  { %853 = vmatpush2.bf16.msra.mxu1 %v2022_v9 }
  0x82   :  { %854 = vmatprep.subr.bf16.mxu1 %v2028_v13 }
  0x83   :  { %384 = vmatmul.mubr.bf16.gmra.mxu0 %v1960_v10  ;;  %464 = vmatmul.mubr.bf16.gmra.mxu1 %v1968_v11 }
  0x85   :  { %855 = vmatpush2.bf16.msra.mxu1 %v2026_v14 }
  0x86   :  { %856 = vmatprep.subr.bf16.mxu1 %v2032_v16 }
  0x89   :  { %857 = vmatpush2.bf16.msra.mxu1 %v2030_v17 }
 0x10b   :  { %v315_v0 = vpop.f32.mrf.mxu0  ;;  %v2178_v18 = vpop.f32.mrf.mxu1 }
 0x10d   :  { %v317_v19 = vpop.f32.mrf.mxu0  ;;  %v2180_v20 = vpop.f32.mrf.mxu1 }
 0x10f   :  { %v319_v21 = vpop.f32.mrf.mxu0  ;;  %v2182_v22 = vpop.f32.mrf.mxu1 }
 0x110   :  { %v474_v26 = vpack.c.bf16 %v319_v21, %v315_v0 }
 0x111   :  { %v321_v23 = vpop.f32.mrf.mxu0  ;;  %v2184_v24 = vpop.f32.mrf.mxu1 }
 0x112   :  { %v475_v25 = vpack.c.bf16 %v321_v23, %v317_v19  ;;  %v491_v19 = vpack.c.bf16 %v2184_v24, %v2180_v20 }
 0x113   :  { %v325_v27 = vpop.f32.mrf.mxu0  ;;  %v2186_v28 = vpop.f32.mrf.mxu1 }
 0x114   :  { %858 = vmatprep.mubr.bf16.mxu1 %v475_v25  ;;  %1051 = vmatprep.mubr.bf16.mxu0 %v475_v25 }
 0x115   :  { %v327_v29 = vpop.f32.mrf.mxu0  ;;  %859 = vmatmul.mubr.bf16.vlgmr.msra.gmra.mxu1 %v474_v26  ;;  %1052 = vmatmul.mubr.bf16.vlgmr.msra.gmra.mxu0 %v474_v26  ;;  %v2188_v31 = vpop.f32.mrf.mxu1 }
 0x117   :  { %v329_v30 = vpop.f32.mrf.mxu0  ;;  %v2190_v36 = vpop.f32.mrf.mxu1 }
 0x118   :  { %v476_v34 = vpack.c.bf16 %v329_v30, %v325_v27  ;;  %v490_v27 = vpack.c.bf16 %v2182_v22, %v2178_v18  ;;  %v492_v30 = vpack.c.bf16 %v2190_v36, %v2186_v28 }
 0x119   :  { %v331_v32 = vpop.f32.mrf.mxu0  ;;  %v2192_v39 = vpop.f32.mrf.mxu1 }
 0x11a   :  { %v477_v33 = vpack.c.bf16 %v331_v32, %v327_v29  ;;  %v493_v26 = vpack.c.bf16 %v2192_v39, %v2188_v31 }
 0x11b   :  { %v335_v35 = vpop.f32.mrf.mxu0  ;;  %v2194_v44 = vpop.f32.mrf.mxu1 }
 0x11c   :  { %868 = vmatprep.mubr.bf16.mxu1 %v477_v33  ;;  %1059 = vmatprep.mubr.bf16.mxu0 %v477_v33 }
 0x11d   :  { %v337_v37 = vpop.f32.mrf.mxu0  ;;  %869 = vmatmul.mubr.bf16.gmra.mxu1 %v476_v34  ;;  %1060 = vmatmul.mubr.bf16.gmra.mxu0 %v476_v34  ;;  %v2196_v47 = vpop.f32.mrf.mxu1 }
 0x11f   :  { %v339_v38 = vpop.f32.mrf.mxu0  ;;  %v2198_v52 = vpop.f32.mrf.mxu1 }
 0x120   :  { %v478_v42 = vpack.c.bf16 %v339_v38, %v335_v35  ;;  %v494_v18 = vpack.c.bf16 %v2198_v52, %v2194_v44 }
 0x121   :  { %v341_v40 = vpop.f32.mrf.mxu0  ;;  %v421_v55 = vpop.f32.mrf.mxu1 }
 0x122   :  { %v479_v41 = vpack.c.bf16 %v341_v40, %v337_v37  ;;  %v495_v24 = vpack.c.bf16 %v421_v55, %v2196_v47 }
 0x123   :  { %v345_v43 = vpop.f32.mrf.mxu0  ;;  %v2200_v60 = vpop.f32.mrf.mxu1 }
 0x124   :  { %878 = vmatprep.mubr.bf16.mxu1 %v479_v41  ;;  %1067 = vmatprep.mubr.bf16.mxu0 %v479_v41 }
 0x125   :  { %v347_v45 = vpop.f32.mrf.mxu0  ;;  %879 = vmatmul.mubr.bf16.gmra.mxu1 %v478_v42  ;;  %1068 = vmatmul.mubr.bf16.gmra.mxu0 %v478_v42  ;;  %v427_v63 = vpop.f32.mrf.mxu1 }
 0x127   :  { %v349_v46 = vpop.f32.mrf.mxu0  ;;  %v429_v5 = vpop.f32.mrf.mxu1 }
 0x128   :  { %v480_v50 = vpack.c.bf16 %v349_v46, %v345_v43  ;;  %v496_v37 = vpack.c.bf16 %v429_v5, %v2200_v60 }
 0x129   :  { %v351_v48 = vpop.f32.mrf.mxu0  ;;  %v431_v8 = vpop.f32.mrf.mxu1 }
 0x12a   :  { %v481_v49 = vpack.c.bf16 %v351_v48, %v347_v45  ;;  %v497_v33 = vpack.c.bf16 %v431_v8, %v427_v63 }
 0x12b   :  { %v355_v51 = vpop.f32.mrf.mxu0  ;;  %v435_v13 = vpop.f32.mrf.mxu1 }
 0x12c   :  { %888 = vmatprep.mubr.bf16.mxu1 %v481_v49  ;;  %1075 = vmatprep.mubr.bf16.mxu0 %v481_v49 }
 0x12d   :  { %v357_v53 = vpop.f32.mrf.mxu0  ;;  %889 = vmatmul.mubr.bf16.gmra.mxu1 %v480_v50  ;;  %1076 = vmatmul.mubr.bf16.gmra.mxu0 %v480_v50  ;;  %v437_v16 = vpop.f32.mrf.mxu1 }
 0x12f   :  { %v359_v54 = vpop.f32.mrf.mxu0  ;;  %v439_v23 = vpop.f32.mrf.mxu1 }
 0x130   :  { %v482_v58 = vpack.c.bf16 %v359_v54, %v355_v51  ;;  %v498_v39 = vpack.c.bf16 %v439_v23, %v435_v13 }
 0x131   :  { %v361_v56 = vpop.f32.mrf.mxu0  ;;  %v441_v25 = vpop.f32.mrf.mxu1 }
 0x132   :  { %v483_v57 = vpack.c.bf16 %v361_v56, %v357_v53  ;;  %v499_v35 = vpack.c.bf16 %v441_v25, %v437_v16 }
 0x133   :  { %v365_v59 = vpop.f32.mrf.mxu0  ;;  %v445_v29 = vpop.f32.mrf.mxu1 }
 0x134   :  { %898 = vmatprep.mubr.bf16.mxu1 %v483_v57  ;;  %1083 = vmatprep.mubr.bf16.mxu0 %v483_v57 }
 0x135   :  { %v367_v61 = vpop.f32.mrf.mxu0  ;;  %899 = vmatmul.mubr.bf16.gmra.mxu1 %v482_v58  ;;  %1084 = vmatmul.mubr.bf16.gmra.mxu0 %v482_v58  ;;  %v447_v20 = vpop.f32.mrf.mxu1 }
 0x137   :  { %v369_v62 = vpop.f32.mrf.mxu0  ;;  %v449_v32 = vpop.f32.mrf.mxu1 }
 0x138   :  { %v484_v3 = vpack.c.bf16 %v369_v62, %v365_v59  ;;  %v500_v43 = vpack.c.bf16 %v449_v32, %v445_v29 }
 0x139   :  { %v371_v1 = vpop.f32.mrf.mxu0  ;;  %v451_v31 = vpop.f32.mrf.mxu1 }
 0x13a   :  { %v485_v2 = vpack.c.bf16 %v371_v1, %v367_v61  ;;  %v501_v38 = vpack.c.bf16 %v451_v31, %v447_v20 }
 0x13b   :  { %v375_v4 = vpop.f32.mrf.mxu0  ;;  %v455_v22 = vpop.f32.mrf.mxu1 }
 0x13c   :  { %908 = vmatprep.mubr.bf16.mxu1 %v485_v2  ;;  %1091 = vmatprep.mubr.bf16.mxu0 %v485_v2 }
 0x13d   :  { %v377_v6 = vpop.f32.mrf.mxu0  ;;  %909 = vmatmul.mubr.bf16.gmra.mxu1 %v484_v3  ;;  %1092 = vmatmul.mubr.bf16.gmra.mxu0 %v484_v3  ;;  %v457_v34 = vpop.f32.mrf.mxu1 }
 0x13f   :  { %v379_v7 = vpop.f32.mrf.mxu0  ;;  %v459_v28 = vpop.f32.mrf.mxu1 }
 0x140   :  { %v486_v11 = vpack.c.bf16 %v379_v7, %v375_v4  ;;  %v502_v47 = vpack.c.bf16 %v459_v28, %v455_v22 }
 0x141   :  { %v381_v9 = vpop.f32.mrf.mxu0  ;;  %v461_v36 = vpop.f32.mrf.mxu1 }
 0x142   :  { %v487_v10 = vpack.c.bf16 %v381_v9, %v377_v6  ;;  %v503_v42 = vpack.c.bf16 %v461_v36, %v457_v34 }
 0x143   :  { %v385_v12 = vpop.f32.mrf.mxu0  ;;  %v465_v40 = vpop.f32.mrf.mxu1 }
 0x144   :  { %918 = vmatprep.mubr.bf16.mxu1 %v487_v10  ;;  %1099 = vmatprep.mubr.bf16.mxu0 %v487_v10 }
 0x145   :  { %v387_v14 = vpop.f32.mrf.mxu0  ;;  %919 = vmatmul.mubr.bf16.gmra.mxu1 %v486_v11  ;;  %1100 = vmatmul.mubr.bf16.gmra.mxu0 %v486_v11  ;;  %v467_v41 = vpop.f32.mrf.mxu1 }
 0x147   :  { %v389_v15 = vpop.f32.mrf.mxu0  ;;  %v469_v44 = vpop.f32.mrf.mxu1 }
 0x148   :  { %v488_v21 = vpack.c.bf16 %v389_v15, %v385_v12  ;;  %v504_v48 = vpack.c.bf16 %v469_v44, %v465_v40 }
 0x149   :  { %v391_v17 = vpop.f32.mrf.mxu0  ;;  %v471_v45 = vpop.f32.mrf.mxu1 }
 0x14a   :  { %v489_v0 = vpack.c.bf16 %v391_v17, %v387_v14  ;;  %v505_v46 = vpack.c.bf16 %v471_v45, %v467_v41 }
 0x14c   :  { %928 = vmatprep.mubr.bf16.mxu1 %v489_v0  ;;  %1107 = vmatprep.mubr.bf16.mxu0 %v489_v0 }
 0x14d   :  { %929 = vmatmul.mubr.bf16.gmra.mxu1 %v488_v21  ;;  %1108 = vmatmul.mubr.bf16.gmra.mxu0 %v488_v21 }
 0x14e   :  { %938 = vmatprep.mubr.bf16.mxu1 %v491_v19  ;;  %1115 = vmatprep.mubr.bf16.mxu0 %v491_v19 }
 0x155   :  { %939 = vmatmul.mubr.bf16.gmra.mxu1 %v490_v27  ;;  %1116 = vmatmul.mubr.bf16.gmra.mxu0 %v490_v27 }
 0x156   :  { %948 = vmatprep.mubr.bf16.mxu1 %v493_v26  ;;  %1123 = vmatprep.mubr.bf16.mxu0 %v493_v26 }
 0x15d   :  { %949 = vmatmul.mubr.bf16.gmra.mxu1 %v492_v30  ;;  %1124 = vmatmul.mubr.bf16.gmra.mxu0 %v492_v30 }
 0x15e   :  { %958 = vmatprep.mubr.bf16.mxu1 %v495_v24  ;;  %1131 = vmatprep.mubr.bf16.mxu0 %v495_v24 }
 0x165   :  { %959 = vmatmul.mubr.bf16.gmra.mxu1 %v494_v18  ;;  %1132 = vmatmul.mubr.bf16.gmra.mxu0 %v494_v18 }
 0x166   :  { %968 = vmatprep.mubr.bf16.mxu1 %v497_v33  ;;  %1139 = vmatprep.mubr.bf16.mxu0 %v497_v33 }
 0x16d   :  { %969 = vmatmul.mubr.bf16.gmra.mxu1 %v496_v37  ;;  %1140 = vmatmul.mubr.bf16.gmra.mxu0 %v496_v37 }
 0x16e   :  { %978 = vmatprep.mubr.bf16.mxu1 %v499_v35  ;;  %1147 = vmatprep.mubr.bf16.mxu0 %v499_v35 }
 0x175   :  { %979 = vmatmul.mubr.bf16.gmra.mxu1 %v498_v39  ;;  %1148 = vmatmul.mubr.bf16.gmra.mxu0 %v498_v39 }
 0x176   :  { %988 = vmatprep.mubr.bf16.mxu1 %v501_v38  ;;  %1155 = vmatprep.mubr.bf16.mxu0 %v501_v38 }
 0x17d   :  { %989 = vmatmul.mubr.bf16.gmra.mxu1 %v500_v43  ;;  %1156 = vmatmul.mubr.bf16.gmra.mxu0 %v500_v43 }
 0x17e   :  { %998 = vmatprep.mubr.bf16.mxu1 %v503_v42  ;;  %1163 = vmatprep.mubr.bf16.mxu0 %v503_v42 }
 0x185   :  { %999 = vmatmul.mubr.bf16.gmra.mxu1 %v502_v47  ;;  %1164 = vmatmul.mubr.bf16.gmra.mxu0 %v502_v47 }
 0x186   :  { %1008 = vmatprep.mubr.bf16.mxu1 %v505_v46  ;;  %1171 = vmatprep.mubr.bf16.mxu0 %v505_v46 }
 0x18d   :  { %1009 = vmatmul.mubr.bf16.gmra.mxu1 %v504_v48  ;;  %1172 = vmatmul.mubr.bf16.gmra.mxu0 %v504_v48 }
 0x1d5   :  { %v860_v49 = vpop.f32.mrf.mxu1  ;;  %v1806_v50 = vpop.f32.mrf.mxu0 }
 0x1d7   :  { %v862_v51 = vpop.f32.mrf.mxu1  ;;  %v1807_v52 = vpop.f32.mrf.mxu0 }
 0x1d8   :  { %v1726_v53 = vpack.c.bf16 %v862_v51, %v860_v49  ;;  %v1808_v54 = vadd.f32 %v1807_v52, %v1806_v50 }
 0x1d9   :  { %v864_v55 = vpop.f32.mrf.mxu1  ;;  %v1809_v56 = vpop.f32.mrf.mxu0 }
 0x1da   :  { %1500 = vst [vmem:[#allocation8] sm:$0xff] %v1726_v53  ;;  %v1727_v57 = vpack.c.bf16 %v1808_v54, %v1808_v54 }
 0x1db   :  { %v866_v58 = vpop.f32.mrf.mxu1  ;;  %v1810_v59 = vpop.f32.mrf.mxu0 }
 0x1dc   :  { %1501 = vst [vmem:[#allocation8 + $0x8] sm:$0xf] %v1727_v57  ;;  %v1728_v60 = vpack.c.bf16 %v866_v58, %v864_v55  ;;  %v1811_v61 = vadd.f32 %v1810_v59, %v1809_v56 }
 0x1dd   :  { %v870_v62 = vpop.f32.mrf.mxu1  ;;  %v1812_v63 = vpop.f32.mrf.mxu0 }
 0x1de   :  { %1502 = vst [vmem:[#allocation8 + $0xc] sm:$0xff] %v1728_v60  ;;  %v1729_v1 = vpack.c.bf16 %v1811_v61, %v1811_v61 }
 0x1df   :  { %v872_v2 = vpop.f32.mrf.mxu1  ;;  %v1813_v3 = vpop.f32.mrf.mxu0 }
 0x1e0   :  { %1503 = vst [vmem:[#allocation8 + $0x14] sm:$0xf] %v1729_v1  ;;  %v1730_v4 = vpack.c.bf16 %v872_v2, %v870_v62  ;;  %v1814_v5 = vadd.f32 %v1813_v3, %v1812_v63 }
 0x1e1   :  { %v874_v6 = vpop.f32.mrf.mxu1  ;;  %v1815_v7 = vpop.f32.mrf.mxu0 }
 0x1e2   :  { %1504 = vst [vmem:[#allocation8 + $0x18] sm:$0xff] %v1730_v4  ;;  %v1731_v8 = vpack.c.bf16 %v1814_v5, %v1814_v5 }
 0x1e3   :  { %v876_v9 = vpop.f32.mrf.mxu1  ;;  %v1816_v10 = vpop.f32.mrf.mxu0 }
 0x1e4   :  { %1505 = vst [vmem:[#allocation8 + $0x20] sm:$0xf] %v1731_v8  ;;  %v1732_v11 = vpack.c.bf16 %v876_v9, %v874_v6  ;;  %v1817_v12 = vadd.f32 %v1816_v10, %v1815_v7 }
 0x1e5   :  { %v880_v13 = vpop.f32.mrf.mxu1  ;;  %v1818_v14 = vpop.f32.mrf.mxu0 }
 0x1e6   :  { %1506 = vst [vmem:[#allocation8 + $0x24] sm:$0xff] %v1732_v11  ;;  %v1733_v15 = vpack.c.bf16 %v1817_v12, %v1817_v12 }
 0x1e7   :  { %v882_v16 = vpop.f32.mrf.mxu1  ;;  %v1819_v17 = vpop.f32.mrf.mxu0 }
 0x1e8   :  { %1507 = vst [vmem:[#allocation8 + $0x2c] sm:$0xf] %v1733_v15  ;;  %v1734_v0 = vpack.c.bf16 %v882_v16, %v880_v13  ;;  %v1820_v19 = vadd.f32 %v1819_v17, %v1818_v14 }
 0x1e9   :  { %v884_v21 = vpop.f32.mrf.mxu1  ;;  %v1821_v23 = vpop.f32.mrf.mxu0 }
 0x1ea   :  { %1508 = vst [vmem:[#allocation8 + $0x30] sm:$0xff] %v1734_v0  ;;  %v1735_v25 = vpack.c.bf16 %v1820_v19, %v1820_v19 }
 0x1eb   :  { %v886_v26 = vpop.f32.mrf.mxu1  ;;  %v1822_v27 = vpop.f32.mrf.mxu0 }
 0x1ec   :  { %1509 = vst [vmem:[#allocation8 + $0x38] sm:$0xf] %v1735_v25  ;;  %v1736_v29 = vpack.c.bf16 %v886_v26, %v884_v21  ;;  %v1823_v20 = vadd.f32 %v1822_v27, %v1821_v23 }
 0x1ed   :  { %v890_v24 = vpop.f32.mrf.mxu1  ;;  %v1824_v30 = vpop.f32.mrf.mxu0 }
 0x1ee   :  { %1510 = vst [vmem:[#allocation8 + $0x3c] sm:$0xff] %v1736_v29  ;;  %v1737_v32 = vpack.c.bf16 %v1823_v20, %v1823_v20 }
 0x1ef   :  { %v892_v31 = vpop.f32.mrf.mxu1  ;;  %v1825_v33 = vpop.f32.mrf.mxu0 }
 0x1f0   :  { %1511 = vst [vmem:[#allocation8 + $0x44] sm:$0xf] %v1737_v32  ;;  %v1738_v18 = vpack.c.bf16 %v892_v31, %v890_v24  ;;  %v1826_v22 = vadd.f32 %v1825_v33, %v1824_v30 }
 0x1f1   :  { %v894_v34 = vpop.f32.mrf.mxu1  ;;  %v1827_v35 = vpop.f32.mrf.mxu0 }
 0x1f2   :  { %1512 = vst [vmem:[#allocation8 + $0x48] sm:$0xff] %v1738_v18  ;;  %v1739_v37 = vpack.c.bf16 %v1826_v22, %v1826_v22 }
 0x1f3   :  { %v896_v28 = vpop.f32.mrf.mxu1  ;;  %v1828_v36 = vpop.f32.mrf.mxu0 }
 0x1f4   :  { %1513 = vst [vmem:[#allocation8 + $0x50] sm:$0xf] %v1739_v37  ;;  %v1740_v38 = vpack.c.bf16 %v896_v28, %v894_v34  ;;  %v1829_v39 = vadd.f32 %v1828_v36, %v1827_v35 }
 0x1f5   :  { %v900_v40 = vpop.f32.mrf.mxu1  ;;  %v1830_v41 = vpop.f32.mrf.mxu0 }
 0x1f6   :  { %1514 = vst [vmem:[#allocation8 + $0x54] sm:$0xff] %v1740_v38  ;;  %v1741_v42 = vpack.c.bf16 %v1829_v39, %v1829_v39 }
 0x1f7   :  { %v902_v43 = vpop.f32.mrf.mxu1  ;;  %v1831_v44 = vpop.f32.mrf.mxu0 }
 0x1f8   :  { %1515 = vst [vmem:[#allocation8 + $0x5c] sm:$0xf] %v1741_v42  ;;  %v1742_v45 = vpack.c.bf16 %v902_v43, %v900_v40  ;;  %v1832_v46 = vadd.f32 %v1831_v44, %v1830_v41 }
 0x1f9   :  { %v904_v47 = vpop.f32.mrf.mxu1  ;;  %v1833_v48 = vpop.f32.mrf.mxu0 }
 0x1fa   :  { %1516 = vst [vmem:[#allocation8 + $0x60] sm:$0xff] %v1742_v45  ;;  %v1743_v49 = vpack.c.bf16 %v1832_v46, %v1832_v46 }
 0x1fb   :  { %v906_v50 = vpop.f32.mrf.mxu1  ;;  %v1834_v51 = vpop.f32.mrf.mxu0 }
 0x1fc   :  { %1517 = vst [vmem:[#allocation8 + $0x68] sm:$0xf] %v1743_v49  ;;  %v1744_v52 = vpack.c.bf16 %v906_v50, %v904_v47  ;;  %v1835_v53 = vadd.f32 %v1834_v51, %v1833_v48 }
 0x1fd   :  { %v910_v54 = vpop.f32.mrf.mxu1  ;;  %v1836_v55 = vpop.f32.mrf.mxu0 }
 0x1fe   :  { %1518 = vst [vmem:[#allocation8 + $0x6c] sm:$0xff] %v1744_v52  ;;  %v1745_v56 = vpack.c.bf16 %v1835_v53, %v1835_v53 }
 0x1ff   :  { %v912_v57 = vpop.f32.mrf.mxu1  ;;  %v1837_v58 = vpop.f32.mrf.mxu0 }
 0x200   :  { %1519 = vst [vmem:[#allocation8 + $0x74] sm:$0xf] %v1745_v56  ;;  %v1746_v59 = vpack.c.bf16 %v912_v57, %v910_v54  ;;  %v1838_v60 = vadd.f32 %v1837_v58, %v1836_v55 }
 0x201   :  { %v914_v61 = vpop.f32.mrf.mxu1  ;;  %v1839_v62 = vpop.f32.mrf.mxu0 }
 0x202   :  { %1520 = vst [vmem:[#allocation8 + $0x78] sm:$0xff] %v1746_v59  ;;  %v1747_v63 = vpack.c.bf16 %v1838_v60, %v1838_v60 }
 0x203   :  { %v916_v1 = vpop.f32.mrf.mxu1  ;;  %v1840_v2 = vpop.f32.mrf.mxu0 }
 0x204   :  { %1521 = vst [vmem:[#allocation8 + $0x80] sm:$0xf] %v1747_v63  ;;  %v1748_v3 = vpack.c.bf16 %v916_v1, %v914_v61  ;;  %v1841_v4 = vadd.f32 %v1840_v2, %v1839_v62 }
 0x205   :  { %v920_v5 = vpop.f32.mrf.mxu1  ;;  %v1842_v6 = vpop.f32.mrf.mxu0 }
 0x206   :  { %1522 = vst [vmem:[#allocation8 + $0x84] sm:$0xff] %v1748_v3  ;;  %v1749_v7 = vpack.c.bf16 %v1841_v4, %v1841_v4 }
 0x207   :  { %v922_v8 = vpop.f32.mrf.mxu1  ;;  %v1843_v9 = vpop.f32.mrf.mxu0 }
 0x208   :  { %1523 = vst [vmem:[#allocation8 + $0x8c] sm:$0xf] %v1749_v7  ;;  %v1750_v10 = vpack.c.bf16 %v922_v8, %v920_v5  ;;  %v1844_v11 = vadd.f32 %v1843_v9, %v1842_v6 }
 0x209   :  { %v924_v12 = vpop.f32.mrf.mxu1  ;;  %v1845_v13 = vpop.f32.mrf.mxu0 }
 0x20a   :  { %1524 = vst [vmem:[#allocation8 + $0x90] sm:$0xff] %v1750_v10  ;;  %v1751_v14 = vpack.c.bf16 %v1844_v11, %v1844_v11 }
 0x20b   :  { %v926_v15 = vpop.f32.mrf.mxu1  ;;  %v1846_v16 = vpop.f32.mrf.mxu0 }
 0x20c   :  { %1525 = vst [vmem:[#allocation8 + $0x98] sm:$0xf] %v1751_v14  ;;  %v1752_v17 = vpack.c.bf16 %v926_v15, %v924_v12  ;;  %v1847_v0 = vadd.f32 %v1846_v16, %v1845_v13 }
 0x20d   :  { %v930_v19 = vpop.f32.mrf.mxu1  ;;  %v1848_v21 = vpop.f32.mrf.mxu0 }
 0x20e   :  { %1526 = vst [vmem:[#allocation8 + $0x9c] sm:$0xff] %v1752_v17  ;;  %v1753_v23 = vpack.c.bf16 %v1847_v0, %v1847_v0 }
 0x20f   :  { %v932_v25 = vpop.f32.mrf.mxu1  ;;  %v1849_v26 = vpop.f32.mrf.mxu0 }
 0x210   :  { %1527 = vst [vmem:[#allocation8 + $0xa4] sm:$0xf] %v1753_v23  ;;  %v1754_v27 = vpack.c.bf16 %v932_v25, %v930_v19  ;;  %v1850_v29 = vadd.f32 %v1849_v26, %v1848_v21 }
 0x211   :  { %v934_v20 = vpop.f32.mrf.mxu1  ;;  %v1851_v24 = vpop.f32.mrf.mxu0 }
 0x212   :  { %1528 = vst [vmem:[#allocation8 + $0xa8] sm:$0xff] %v1754_v27  ;;  %v1755_v30 = vpack.c.bf16 %v1850_v29, %v1850_v29 }
 0x213   :  { %v936_v32 = vpop.f32.mrf.mxu1  ;;  %v1852_v31 = vpop.f32.mrf.mxu0 }
 0x214   :  { %1529 = vst [vmem:[#allocation8 + $0xb0] sm:$0xf] %v1755_v30  ;;  %v1756_v33 = vpack.c.bf16 %v936_v32, %v934_v20  ;;  %v1853_v18 = vadd.f32 %v1852_v31, %v1851_v24 }
 0x215   :  { %v940_v22 = vpop.f32.mrf.mxu1  ;;  %v1854_v34 = vpop.f32.mrf.mxu0 }
 0x216   :  { %1530 = vst [vmem:[#allocation8 + $0xb4] sm:$0xff] %v1756_v33  ;;  %v1757_v35 = vpack.c.bf16 %v1853_v18, %v1853_v18 }
 0x217   :  { %v942_v37 = vpop.f32.mrf.mxu1  ;;  %v1855_v28 = vpop.f32.mrf.mxu0 }
 0x218   :  { %1531 = vst [vmem:[#allocation8 + $0xbc] sm:$0xf] %v1757_v35  ;;  %v1758_v36 = vpack.c.bf16 %v942_v37, %v940_v22  ;;  %v1856_v38 = vadd.f32 %v1855_v28, %v1854_v34 }
 0x219   :  { %v944_v39 = vpop.f32.mrf.mxu1  ;;  %v1857_v40 = vpop.f32.mrf.mxu0 }
 0x21a   :  { %1532 = vst [vmem:[#allocation8 + $0xc0] sm:$0xff] %v1758_v36  ;;  %v1759_v41 = vpack.c.bf16 %v1856_v38, %v1856_v38 }
 0x21b   :  { %v946_v42 = vpop.f32.mrf.mxu1  ;;  %v1858_v43 = vpop.f32.mrf.mxu0 }
 0x21c   :  { %1533 = vst [vmem:[#allocation8 + $0xc8] sm:$0xf] %v1759_v41  ;;  %v1760_v44 = vpack.c.bf16 %v946_v42, %v944_v39  ;;  %v1859_v45 = vadd.f32 %v1858_v43, %v1857_v40 }
 0x21d   :  { %v950_v46 = vpop.f32.mrf.mxu1  ;;  %v1860_v47 = vpop.f32.mrf.mxu0 }
 0x21e   :  { %1534 = vst [vmem:[#allocation8 + $0xcc] sm:$0xff] %v1760_v44  ;;  %v1761_v48 = vpack.c.bf16 %v1859_v45, %v1859_v45 }
 0x21f   :  { %v952_v49 = vpop.f32.mrf.mxu1  ;;  %v1861_v50 = vpop.f32.mrf.mxu0 }
 0x220   :  { %1535 = vst [vmem:[#allocation8 + $0xd4] sm:$0xf] %v1761_v48  ;;  %v1762_v51 = vpack.c.bf16 %v952_v49, %v950_v46  ;;  %v1862_v52 = vadd.f32 %v1861_v50, %v1860_v47 }
 0x221   :  { %v954_v53 = vpop.f32.mrf.mxu1  ;;  %v1863_v54 = vpop.f32.mrf.mxu0 }
 0x222   :  { %1536 = vst [vmem:[#allocation8 + $0xd8] sm:$0xff] %v1762_v51  ;;  %v1763_v55 = vpack.c.bf16 %v1862_v52, %v1862_v52 }
 0x223   :  { %v956_v56 = vpop.f32.mrf.mxu1  ;;  %v1864_v57 = vpop.f32.mrf.mxu0 }
 0x224   :  { %1537 = vst [vmem:[#allocation8 + $0xe0] sm:$0xf] %v1763_v55  ;;  %v1764_v58 = vpack.c.bf16 %v956_v56, %v954_v53  ;;  %v1865_v59 = vadd.f32 %v1864_v57, %v1863_v54 }
 0x225   :  { %v960_v60 = vpop.f32.mrf.mxu1  ;;  %v1866_v61 = vpop.f32.mrf.mxu0 }
 0x226   :  { %1538 = vst [vmem:[#allocation8 + $0xe4] sm:$0xff] %v1764_v58  ;;  %v1765_v62 = vpack.c.bf16 %v1865_v59, %v1865_v59 }
 0x227   :  { %v962_v63 = vpop.f32.mrf.mxu1  ;;  %v1867_v1 = vpop.f32.mrf.mxu0 }
 0x228   :  { %1539 = vst [vmem:[#allocation8 + $0xec] sm:$0xf] %v1765_v62  ;;  %v1766_v2 = vpack.c.bf16 %v962_v63, %v960_v60  ;;  %v1868_v3 = vadd.f32 %v1867_v1, %v1866_v61 }
 0x229   :  { %v964_v4 = vpop.f32.mrf.mxu1  ;;  %v1869_v5 = vpop.f32.mrf.mxu0 }
 0x22a   :  { %1540 = vst [vmem:[#allocation8 + $0xf0] sm:$0xff] %v1766_v2  ;;  %v1767_v6 = vpack.c.bf16 %v1868_v3, %v1868_v3 }
 0x22b   :  { %v966_v7 = vpop.f32.mrf.mxu1  ;;  %v1870_v8 = vpop.f32.mrf.mxu0 }
 0x22c   :  { %1541 = vst [vmem:[#allocation8 + $0xf8] sm:$0xf] %v1767_v6  ;;  %v1768_v9 = vpack.c.bf16 %v966_v7, %v964_v4  ;;  %v1871_v10 = vadd.f32 %v1870_v8, %v1869_v5 }
 0x22d   :  { %v970_v11 = vpop.f32.mrf.mxu1  ;;  %v1872_v12 = vpop.f32.mrf.mxu0 }
 0x22e   :  { %1542 = vst [vmem:[#allocation8 + $0xfc] sm:$0xff] %v1768_v9  ;;  %v1769_v13 = vpack.c.bf16 %v1871_v10, %v1871_v10 }
 0x22f   :  { %v972_v14 = vpop.f32.mrf.mxu1  ;;  %v1873_v15 = vpop.f32.mrf.mxu0 }
 0x230   :  { %1543 = vst [vmem:[#allocation8 + $0x104] sm:$0xf] %v1769_v13  ;;  %v1770_v16 = vpack.c.bf16 %v972_v14, %v970_v11  ;;  %v1874_v17 = vadd.f32 %v1873_v15, %v1872_v12 }
 0x231   :  { %v974_v0 = vpop.f32.mrf.mxu1  ;;  %v1875_v19 = vpop.f32.mrf.mxu0 }
 0x232   :  { %1544 = vst [vmem:[#allocation8 + $0x108] sm:$0xff] %v1770_v16  ;;  %v1771_v21 = vpack.c.bf16 %v1874_v17, %v1874_v17 }
 0x233   :  { %v976_v23 = vpop.f32.mrf.mxu1  ;;  %v1876_v25 = vpop.f32.mrf.mxu0 }
 0x234   :  { %1545 = vst [vmem:[#allocation8 + $0x110] sm:$0xf] %v1771_v21  ;;  %v1772_v26 = vpack.c.bf16 %v976_v23, %v974_v0  ;;  %v1877_v27 = vadd.f32 %v1876_v25, %v1875_v19 }
 0x235   :  { %v980_v29 = vpop.f32.mrf.mxu1  ;;  %v1878_v20 = vpop.f32.mrf.mxu0 }
 0x236   :  { %1546 = vst [vmem:[#allocation8 + $0x114] sm:$0xff] %v1772_v26  ;;  %v1773_v24 = vpack.c.bf16 %v1877_v27, %v1877_v27 }
 0x237   :  { %v982_v30 = vpop.f32.mrf.mxu1  ;;  %v1879_v32 = vpop.f32.mrf.mxu0 }
 0x238   :  { %1547 = vst [vmem:[#allocation8 + $0x11c] sm:$0xf] %v1773_v24  ;;  %v1774_v31 = vpack.c.bf16 %v982_v30, %v980_v29  ;;  %v1880_v33 = vadd.f32 %v1879_v32, %v1878_v20 }
 0x239   :  { %v984_v18 = vpop.f32.mrf.mxu1  ;;  %v1881_v22 = vpop.f32.mrf.mxu0 }
 0x23a   :  { %1548 = vst [vmem:[#allocation8 + $0x120] sm:$0xff] %v1774_v31  ;;  %v1775_v34 = vpack.c.bf16 %v1880_v33, %v1880_v33 }
 0x23b   :  { %v986_v35 = vpop.f32.mrf.mxu1  ;;  %v1882_v37 = vpop.f32.mrf.mxu0 }
 0x23c   :  { %1549 = vst [vmem:[#allocation8 + $0x128] sm:$0xf] %v1775_v34  ;;  %v1776_v28 = vpack.c.bf16 %v986_v35, %v984_v18  ;;  %v1883_v36 = vadd.f32 %v1882_v37, %v1881_v22 }
 0x23d   :  { %v990_v38 = vpop.f32.mrf.mxu1  ;;  %v1884_v39 = vpop.f32.mrf.mxu0 }
 0x23e   :  { %1550 = vst [vmem:[#allocation8 + $0x12c] sm:$0xff] %v1776_v28  ;;  %v1777_v40 = vpack.c.bf16 %v1883_v36, %v1883_v36 }
 0x23f   :  { %v992_v41 = vpop.f32.mrf.mxu1  ;;  %v1885_v42 = vpop.f32.mrf.mxu0 }
 0x240   :  { %1551 = vst [vmem:[#allocation8 + $0x134] sm:$0xf] %v1777_v40  ;;  %v1778_v43 = vpack.c.bf16 %v992_v41, %v990_v38  ;;  %v1886_v44 = vadd.f32 %v1885_v42, %v1884_v39 }
 0x241   :  { %v994_v45 = vpop.f32.mrf.mxu1  ;;  %v1887_v46 = vpop.f32.mrf.mxu0 }
 0x242   :  { %1552 = vst [vmem:[#allocation8 + $0x138] sm:$0xff] %v1778_v43  ;;  %v1779_v47 = vpack.c.bf16 %v1886_v44, %v1886_v44 }
 0x243   :  { %v996_v48 = vpop.f32.mrf.mxu1  ;;  %v1888_v49 = vpop.f32.mrf.mxu0 }
 0x244   :  { %1553 = vst [vmem:[#allocation8 + $0x140] sm:$0xf] %v1779_v47  ;;  %v1780_v50 = vpack.c.bf16 %v996_v48, %v994_v45  ;;  %v1889_v51 = vadd.f32 %v1888_v49, %v1887_v46 }
 0x245   :  { %v1000_v52 = vpop.f32.mrf.mxu1  ;;  %v1890_v53 = vpop.f32.mrf.mxu0 }
 0x246   :  { %1554 = vst [vmem:[#allocation8 + $0x144] sm:$0xff] %v1780_v50  ;;  %v1781_v54 = vpack.c.bf16 %v1889_v51, %v1889_v51 }
 0x247   :  { %v1002_v55 = vpop.f32.mrf.mxu1  ;;  %v1891_v56 = vpop.f32.mrf.mxu0 }
 0x248   :  { %1555 = vst [vmem:[#allocation8 + $0x14c] sm:$0xf] %v1781_v54  ;;  %v1782_v57 = vpack.c.bf16 %v1002_v55, %v1000_v52  ;;  %v1892_v58 = vadd.f32 %v1891_v56, %v1890_v53 }
 0x249   :  { %v1004_v59 = vpop.f32.mrf.mxu1  ;;  %v1893_v60 = vpop.f32.mrf.mxu0 }
 0x24a   :  { %1556 = vst [vmem:[#allocation8 + $0x150] sm:$0xff] %v1782_v57  ;;  %v1783_v61 = vpack.c.bf16 %v1892_v58, %v1892_v58 }
 0x24b   :  { %v1006_v62 = vpop.f32.mrf.mxu1  ;;  %v1894_v63 = vpop.f32.mrf.mxu0 }
 0x24c   :  { %1557 = vst [vmem:[#allocation8 + $0x158] sm:$0xf] %v1783_v61  ;;  %v1784_v1 = vpack.c.bf16 %v1006_v62, %v1004_v59  ;;  %v1895_v2 = vadd.f32 %v1894_v63, %v1893_v60 }
 0x24d   :  { %v1010_v3 = vpop.f32.mrf.mxu1  ;;  %v1896_v4 = vpop.f32.mrf.mxu0 }
 0x24e   :  { %1558 = vst [vmem:[#allocation8 + $0x15c] sm:$0xff] %v1784_v1  ;;  %v1785_v5 = vpack.c.bf16 %v1895_v2, %v1895_v2 }
 0x24f   :  { %v1012_v6 = vpop.f32.mrf.mxu1  ;;  %v1897_v7 = vpop.f32.mrf.mxu0 }
 0x250   :  { %1559 = vst [vmem:[#allocation8 + $0x164] sm:$0xf] %v1785_v5  ;;  %v1786_v8 = vpack.c.bf16 %v1012_v6, %v1010_v3  ;;  %v1898_v9 = vadd.f32 %v1897_v7, %v1896_v4 }
 0x251   :  { %v1014_v10 = vpop.f32.mrf.mxu1  ;;  %v1899_v11 = vpop.f32.mrf.mxu0 }
 0x252   :  { %1560 = vst [vmem:[#allocation8 + $0x168] sm:$0xff] %v1786_v8  ;;  %v1787_v12 = vpack.c.bf16 %v1898_v9, %v1898_v9 }
 0x253   :  { %v1016_v13 = vpop.f32.mrf.mxu1  ;;  %v1900_v14 = vpop.f32.mrf.mxu0 }
 0x254   :  { %1561 = vst [vmem:[#allocation8 + $0x170] sm:$0xf] %v1787_v12  ;;  %v1788_v15 = vpack.c.bf16 %v1016_v13, %v1014_v10  ;;  %v1901_v16 = vadd.f32 %v1900_v14, %v1899_v11 }
 0x256   :  { %1562 = vst [vmem:[#allocation8 + $0x174] sm:$0xff] %v1788_v15  ;;  %v1789_v17 = vpack.c.bf16 %v1901_v16, %v1901_v16 }
 0x258   :  { %1563 = vst [vmem:[#allocation8 + $0x17c] sm:$0xf] %v1789_v17 }
 0x259   :  { %2104 = shalt.err (!%p2101_p5)
}
 0x25a   :  { %1575 = dma.vmem_to_hbm [thread:$0]  %s1570_s2, 6144, %s2223_s3, [#allocation4], %s2126_s28, %s2126_s28, %s2127_s29  }
 0x25b   :  { %2117 = dma.done.wait [#allocation4], 6144  }
 0x25c   :  { %2118 = vsyncadd [#allocation4], 4294961152 }
 0x25d   :  { %1579 = vsyncpa [#allocation3], 1 }
 0x25e   :  { %1580 = vsyncpa [#allocation6], 1 }
 0x25f   :  { %1581 = vsyncpa [#allocation4], 1 }

// kernel: _tiled_matmul.1
= control target key start
LH: loop header
LB: loop body
LE: loop exit
PB: predicated region body
PF: predicated region fallthrough
CT: control target
= control target key end

     0   :  { %7 = vsyncpa [#allocation4], 0  ;;  %s2194_s0 = inlined_call_operand.hbm [shape: bf16[512,256], index: 0, kind: input, shape index: {}]   ;;  %s2195_s1 = inlined_call_operand.hbm [shape: bf16[256,128], index: 1, kind: input, shape index: {}]   ;;  %s2196_s2 = inlined_call_operand.hbm [shape: bf16[512,128], index: 2, kind: output, shape index: {}]  }
   0x1   :  { %8 = vsyncpa [#allocation7], 0 }
   0x2   :  { %9 = vsyncpa [#allocation5], 0  ;;  %s2124_s9 = smov [#allocation3]  }
   0x3   :  { %s15_s10 = sshll.u32 %s2124_s9, 4  ;;  %s16_s10 = int_to_ptr.vmem [resolvable:$true] %s15_s10 }
   0x4   :  { %s2066_s11 = scalar_lea.vmem %s16_s10, 8192  ;;  %p2071_p1 = scmp.lt.s32.totalorder %s16_s10, %s16_s10 }
   0x5   :  { %p2067_p0 = scmp.ne.s32.totalorder %s16_s10, %s2066_s11  ;;  %p2072_p2 = scmp.lt.s32.totalorder %s2066_s11, %s2066_s11 }
   0x7   :  { %p2073_p3 = por %p2072_p2, %p2071_p1 }
   0x9   :  { %p2074_p4 = pnand %p2073_p3, %p2067_p0 }
   0xb   :  { %2077 = shalt.err (!%p2074_p4)
}
   0xc   :  { %s2125_s12 = smov 128   ;;  %s2126_s13 = smov 8  }
   0xd   :  { %21 = dma.hbm_to_vmem [thread:$0]  %s2194_s0, 8192, %s16_s10, [#allocation4], %s2125_s12, %s2125_s12, %s2126_s13  }
   0xe   :  { %s2127_s16 = smov [#allocation6]  }
   0xf   :  { %s27_s17 = sshll.u32 %s2127_s16, 4  ;;  %s28_s17 = int_to_ptr.vmem [resolvable:$true] %s27_s17 }
  0x10   :  { %s2086_s18 = scalar_lea.vmem %s28_s17, 2048  ;;  %p2091_p6 = scmp.lt.s32.totalorder %s28_s17, %s28_s17 }
  0x11   :  { %p2087_p5 = scmp.ne.s32.totalorder %s28_s17, %s2086_s18  ;;  %p2092_p7 = scmp.lt.s32.totalorder %s2086_s18, %s2086_s18 }
  0x13   :  { %p2093_p8 = por %p2092_p7, %p2091_p6 }
  0x15   :  { %p2094_p9 = pnand %p2093_p8, %p2087_p5 }
  0x17   :  { %2097 = shalt.err (!%p2094_p9)
}
  0x18   :  { %s2128_s19 = smov 64   ;;  %s2129_s20 = smov 4  }
  0x19   :  { %33 = dma.hbm_to_vmem [thread:$0]  %s2195_s1, 2048, %s28_s17, [#allocation7], %s2128_s19, %s2128_s19, %s2129_s20  }
  0x1a   :  { %2118 = dma.done.wait [#allocation4], 8192  }
  0x1b   :  { %2119 = vsyncadd [#allocation4], 4294959104 }
  0x1c   :  { %2120 = dma.done.wait [#allocation7], 2048  }
  0x1d   :  { %2121 = vsyncadd [#allocation7], 4294965248  ;;  %v2130_v0 = vmov 0   ;;  %v1946_v1 = vld [vmem:[#allocation6 + $0x38] sm:$0xff]   ;;  %v1947_v2 = vld [vmem:[#allocation6 + $0x30] sm:$0xff]   ;;  %s2131_s0 = smov [#allocation8]  }
  0x1e   :  { %685 = vmatprep.subr.bf16.mxu0 %v2130_v0  ;;  %1906 = vmatprep.subr.bf16.mxu1 %v2130_v0  ;;  %v1948_v3 = vld [vmem:[#allocation6 + $0x28] sm:$0xff]   ;;  %v1949_v4 = vld [vmem:[#allocation6 + $0x20] sm:$0xff]   ;;  %v1950_v5 = vld [vmem:[#allocation6 + $0x18] sm:$0xff]   ;;  %s1494_s1 = sshll.u32 %s2131_s0, 4  ;;  %s1495_s1 = int_to_ptr.vmem [resolvable:$true] %s1494_s1 }
  0x1f   :  { %686 = vmatpush1.bf16.msra.mxu0 %v1946_v1  ;;  %1922 = vmatpush1.bf16.msra.mxu1 %v1946_v1  ;;  %v1964_v6 = vld [vmem:[#allocation3 + $0x4] ss:$8 sps:$4 sm:$0xff]   ;;  %v1951_v7 = vld [vmem:[#allocation6 + $0x10] sm:$0xff]   ;;  %v1954_v11 = vld [vmem:[#allocation6 + $0x78] sm:$0xff]   ;;  %s2098_s23 = scalar_lea.vmem %s1495_s1, 4096  ;;  %p2103_p11 = scmp.lt.s32.totalorder %s1495_s1, %s1495_s1 }
  0x20   :  { %687 = vmatprep.subr.bf16.mxu0 %v2130_v0  ;;  %1907 = vmatprep.subr.bf16.mxu1 %v2130_v0  ;;  %v1967_v8 = vld [vmem:[#allocation3 + $0x104] ss:$8 sps:$4 sm:$0xff]   ;;  %v1955_v12 = vld [vmem:[#allocation6 + $0x70] sm:$0xff]   ;;  %v1958_v15 = vld [vmem:[#allocation6 + $0x58] sm:$0xff]   ;;  %p2099_p10 = scmp.ne.s32.totalorder %s1495_s1, %s2098_s23  ;;  %p2104_p12 = scmp.lt.s32.totalorder %s2098_s23, %s2098_s23 }
  0x21   :  { %717 = vmatprep.mubr.bf16.mxu0 %v1964_v6  ;;  %845 = vmatprep.mubr.bf16.mxu1 %v1967_v8  ;;  %v1952_v9 = vld [vmem:[#allocation6 + $0x8] sm:$0xff]   ;;  %v1953_v10 = vld [vmem:[#allocation6] sm:$0xff]   ;;  %v1959_v16 = vld [vmem:[#allocation6 + $0x50] sm:$0xff]  }
  0x22   :  { %v1956_v13 = vld [vmem:[#allocation6 + $0x68] sm:$0xff]   ;;  %v1957_v14 = vld [vmem:[#allocation6 + $0x60] sm:$0xff]   ;;  %v1968_v21 = vld [vmem:[#allocation3 + $0x14] ss:$8 sps:$4 sm:$0xff]   ;;  %p2105_p13 = por %p2104_p12, %p2103_p11 }
  0x23   :  { %688 = vmatpush1.bf16.msra.mxu0 %v1947_v2  ;;  %1923 = vmatpush1.bf16.msra.mxu1 %v1947_v2  ;;  %v1960_v17 = vld [vmem:[#allocation6 + $0x48] sm:$0xff]   ;;  %v1961_v18 = vld [vmem:[#allocation6 + $0x40] sm:$0xff]   ;;  %v1970_v22 = vld [vmem:[#allocation3 + $0x114] ss:$8 sps:$4 sm:$0xff]  }
  0x24   :  { %689 = vmatprep.subr.bf16.mxu0 %v2130_v0  ;;  %1908 = vmatprep.subr.bf16.mxu1 %v2130_v0  ;;  %v1962_v19 = vld [vmem:[#allocation3] ss:$8 sps:$4 sm:$0xff]   ;;  %v1972_v23 = vld [vmem:[#allocation3 + $0x10] ss:$8 sps:$4 sm:$0xff]   ;;  %v1974_v25 = vld [vmem:[#allocation3 + $0x24] ss:$8 sps:$4 sm:$0xff]   ;;  %p2106_p0 = pnand %p2105_p13, %p2099_p10 }
  0x25   :  { %v1965_v20 = vld [vmem:[#allocation3 + $0x100] ss:$8 sps:$4 sm:$0xff]   ;;  %v1973_v24 = vld [vmem:[#allocation3 + $0x110] ss:$8 sps:$4 sm:$0xff]   ;;  %v1976_v26 = vld [vmem:[#allocation3 + $0x124] ss:$8 sps:$4 sm:$0xff]  }
  0x26   :  { %v1978_v27 = vld [vmem:[#allocation3 + $0x20] ss:$8 sps:$4 sm:$0xff]   ;;  %v1980_v29 = vld [vmem:[#allocation3 + $0x34] ss:$8 sps:$4 sm:$0xff]   ;;  %v1984_v31 = vld [vmem:[#allocation3 + $0x30] ss:$8 sps:$4 sm:$0xff]  }
  0x27   :  { %690 = vmatpush1.bf16.msra.mxu0 %v1948_v3  ;;  %1924 = vmatpush1.bf16.msra.mxu1 %v1948_v3  ;;  %v1979_v28 = vld [vmem:[#allocation3 + $0x120] ss:$8 sps:$4 sm:$0xff]   ;;  %v1982_v30 = vld [vmem:[#allocation3 + $0x134] ss:$8 sps:$4 sm:$0xff]   ;;  %v1985_v32 = vld [vmem:[#allocation3 + $0x130] ss:$8 sps:$4 sm:$0xff]  }
  0x28   :  { %691 = vmatprep.subr.bf16.mxu0 %v2130_v0  ;;  %1909 = vmatprep.subr.bf16.mxu1 %v2130_v0  ;;  %v1986_v33 = vld [vmem:[#allocation3 + $0x44] ss:$8 sps:$4 sm:$0xff]   ;;  %v1990_v35 = vld [vmem:[#allocation3 + $0x40] ss:$8 sps:$4 sm:$0xff]   ;;  %v1992_v37 = vld [vmem:[#allocation3 + $0x54] ss:$8 sps:$4 sm:$0xff]  }
  0x29   :  { %v1988_v34 = vld [vmem:[#allocation3 + $0x144] ss:$8 sps:$4 sm:$0xff]   ;;  %v1991_v36 = vld [vmem:[#allocation3 + $0x140] ss:$8 sps:$4 sm:$0xff]   ;;  %v1994_v38 = vld [vmem:[#allocation3 + $0x154] ss:$8 sps:$4 sm:$0xff]  }
  0x2a   :  { %v1996_v39 = vld [vmem:[#allocation3 + $0x50] ss:$8 sps:$4 sm:$0xff]   ;;  %v1998_v41 = vld [vmem:[#allocation3 + $0x64] ss:$8 sps:$4 sm:$0xff]   ;;  %v2002_v43 = vld [vmem:[#allocation3 + $0x60] ss:$8 sps:$4 sm:$0xff]  }
  0x2b   :  { %692 = vmatpush1.bf16.msra.mxu0 %v1949_v4  ;;  %1925 = vmatpush1.bf16.msra.mxu1 %v1949_v4  ;;  %v1997_v40 = vld [vmem:[#allocation3 + $0x150] ss:$8 sps:$4 sm:$0xff]   ;;  %v2000_v42 = vld [vmem:[#allocation3 + $0x164] ss:$8 sps:$4 sm:$0xff]   ;;  %v2003_v44 = vld [vmem:[#allocation3 + $0x160] ss:$8 sps:$4 sm:$0xff]  }
  0x2c   :  { %693 = vmatprep.subr.bf16.mxu0 %v2130_v0  ;;  %1910 = vmatprep.subr.bf16.mxu1 %v2130_v0  ;;  %v2004_v45 = vld [vmem:[#allocation3 + $0x74] ss:$8 sps:$4 sm:$0xff]   ;;  %v2008_v47 = vld [vmem:[#allocation3 + $0x70] ss:$8 sps:$4 sm:$0xff]   ;;  %v2010_v49 = vld [vmem:[#allocation3 + $0x84] ss:$8 sps:$4 sm:$0xff]  }
  0x2d   :  { %v2006_v46 = vld [vmem:[#allocation3 + $0x174] ss:$8 sps:$4 sm:$0xff]   ;;  %v2009_v48 = vld [vmem:[#allocation3 + $0x170] ss:$8 sps:$4 sm:$0xff]   ;;  %v2012_v50 = vld [vmem:[#allocation3 + $0x184] ss:$8 sps:$4 sm:$0xff]  }
  0x2e   :  { %v2014_v51 = vld [vmem:[#allocation3 + $0x80] ss:$8 sps:$4 sm:$0xff]   ;;  %v2016_v53 = vld [vmem:[#allocation3 + $0x94] ss:$8 sps:$4 sm:$0xff]   ;;  %v2020_v55 = vld [vmem:[#allocation3 + $0x90] ss:$8 sps:$4 sm:$0xff]  }
  0x2f   :  { %694 = vmatpush1.bf16.msra.mxu0 %v1950_v5  ;;  %1926 = vmatpush1.bf16.msra.mxu1 %v1950_v5  ;;  %v2015_v52 = vld [vmem:[#allocation3 + $0x180] ss:$8 sps:$4 sm:$0xff]   ;;  %v2018_v54 = vld [vmem:[#allocation3 + $0x194] ss:$8 sps:$4 sm:$0xff]   ;;  %v2021_v56 = vld [vmem:[#allocation3 + $0x190] ss:$8 sps:$4 sm:$0xff]  }
  0x30   :  { %695 = vmatprep.subr.bf16.mxu0 %v2130_v0  ;;  %1911 = vmatprep.subr.bf16.mxu1 %v2130_v0  ;;  %v2022_v57 = vld [vmem:[#allocation3 + $0xa4] ss:$8 sps:$4 sm:$0xff]   ;;  %v2026_v59 = vld [vmem:[#allocation3 + $0xa0] ss:$8 sps:$4 sm:$0xff]   ;;  %v2028_v61 = vld [vmem:[#allocation3 + $0xb4] ss:$8 sps:$4 sm:$0xff]  }
  0x31   :  { %v2024_v58 = vld [vmem:[#allocation3 + $0x1a4] ss:$8 sps:$4 sm:$0xff]   ;;  %v2027_v60 = vld [vmem:[#allocation3 + $0x1a0] ss:$8 sps:$4 sm:$0xff]   ;;  %v2030_v62 = vld [vmem:[#allocation3 + $0x1b4] ss:$8 sps:$4 sm:$0xff]  }
  0x32   :  { %v2032_v63 = vld [vmem:[#allocation3 + $0xb0] ss:$8 sps:$4 sm:$0xff]   ;;  %v2034_v1 = vld [vmem:[#allocation3 + $0xc4] ss:$8 sps:$4 sm:$0xff]   ;;  %v2038_v3 = vld [vmem:[#allocation3 + $0xc0] ss:$8 sps:$4 sm:$0xff]  }
  0x33   :  { %696 = vmatpush1.bf16.msra.mxu0 %v1951_v7  ;;  %1927 = vmatpush1.bf16.msra.mxu1 %v1951_v7  ;;  %v2036_v2 = vld [vmem:[#allocation3 + $0x1c4] ss:$8 sps:$4 sm:$0xff]   ;;  %v2039_v4 = vld [vmem:[#allocation3 + $0x1c0] ss:$8 sps:$4 sm:$0xff]   ;;  %v2040_v5 = vld [vmem:[#allocation3 + $0xd4] ss:$8 sps:$4 sm:$0xff]  }
  0x34   :  { %697 = vmatprep.subr.bf16.mxu0 %v2130_v0  ;;  %1912 = vmatprep.subr.bf16.mxu1 %v2130_v0  ;;  %v2042_v6 = vld [vmem:[#allocation3 + $0x1d4] ss:$8 sps:$4 sm:$0xff]   ;;  %v2044_v7 = vld [vmem:[#allocation3 + $0xd0] ss:$8 sps:$4 sm:$0xff]  }
  0x35   :  { %v2045_v8 = vld [vmem:[#allocation3 + $0x1d0] ss:$8 sps:$4 sm:$0xff]  }
  0x37   :  { %698 = vmatpush1.bf16.msra.mxu0 %v1952_v9  ;;  %1928 = vmatpush1.bf16.msra.mxu1 %v1952_v9  ;;  %v2046_v9 = vld [vmem:[#allocation3 + $0xe4] ss:$8 sps:$4 sm:$0xff]  }
  0x38   :  { %699 = vmatprep.subr.bf16.mxu0 %v2130_v0  ;;  %1913 = vmatprep.subr.bf16.mxu1 %v2130_v0 }
  0x3b   :  { %700 = vmatpush1.bf16.msra.mxu0 %v1953_v10  ;;  %1929 = vmatpush1.bf16.msra.mxu1 %v1953_v10  ;;  %v2048_v10 = vld [vmem:[#allocation3 + $0x1e4] ss:$8 sps:$4 sm:$0xff]  }
  0x3c   :  { %701 = vmatprep.subr.bf16.mxu0 %v2130_v0  ;;  %1914 = vmatprep.subr.bf16.mxu1 %v2130_v0 }
  0x3f   :  { %702 = vmatpush2.bf16.msra.mxu0 %v1954_v11  ;;  %1930 = vmatpush2.bf16.msra.mxu1 %v1954_v11  ;;  %v2050_v11 = vld [vmem:[#allocation3 + $0xe0] ss:$8 sps:$4 sm:$0xff]  }
  0x40   :  { %703 = vmatprep.subr.bf16.mxu0 %v2130_v0  ;;  %1915 = vmatprep.subr.bf16.mxu1 %v2130_v0 }
  0x43   :  { %704 = vmatpush2.bf16.msra.mxu0 %v1955_v12  ;;  %1931 = vmatpush2.bf16.msra.mxu1 %v1955_v12  ;;  %v2051_v12 = vld [vmem:[#allocation3 + $0x1e0] ss:$8 sps:$4 sm:$0xff]  }
  0x44   :  { %705 = vmatprep.subr.bf16.mxu0 %v2130_v0  ;;  %1916 = vmatprep.subr.bf16.mxu1 %v2130_v0 }
  0x47   :  { %706 = vmatpush2.bf16.msra.mxu0 %v1956_v13  ;;  %1932 = vmatpush2.bf16.msra.mxu1 %v1956_v13  ;;  %v2052_v13 = vld [vmem:[#allocation3 + $0xf4] ss:$8 sps:$4 sm:$0xff]  }
  0x48   :  { %707 = vmatprep.subr.bf16.mxu0 %v2130_v0  ;;  %1917 = vmatprep.subr.bf16.mxu1 %v2130_v0 }
  0x4b   :  { %708 = vmatpush2.bf16.msra.mxu0 %v1957_v14  ;;  %1933 = vmatpush2.bf16.msra.mxu1 %v1957_v14  ;;  %v2054_v14 = vld [vmem:[#allocation3 + $0x1f4] ss:$8 sps:$4 sm:$0xff]  }
  0x4c   :  { %709 = vmatprep.subr.bf16.mxu0 %v2130_v0  ;;  %1918 = vmatprep.subr.bf16.mxu1 %v2130_v0 }
  0x4f   :  { %710 = vmatpush2.bf16.msra.mxu0 %v1958_v15  ;;  %1934 = vmatpush2.bf16.msra.mxu1 %v1958_v15  ;;  %v2056_v15 = vld [vmem:[#allocation3 + $0xf0] ss:$8 sps:$4 sm:$0xff]  }
  0x50   :  { %711 = vmatprep.subr.bf16.mxu0 %v2130_v0  ;;  %1919 = vmatprep.subr.bf16.mxu1 %v2130_v0 }
  0x53   :  { %712 = vmatpush2.bf16.msra.mxu0 %v1959_v16  ;;  %1935 = vmatpush2.bf16.msra.mxu1 %v1959_v16  ;;  %v2057_v16 = vld [vmem:[#allocation3 + $0x1f0] ss:$8 sps:$4 sm:$0xff]  }
  0x54   :  { %713 = vmatprep.subr.bf16.mxu0 %v2130_v0  ;;  %1920 = vmatprep.subr.bf16.mxu1 %v2130_v0 }
  0x57   :  { %714 = vmatpush2.bf16.msra.mxu0 %v1960_v17  ;;  %1936 = vmatpush2.bf16.msra.mxu1 %v1960_v17 }
  0x58   :  { %715 = vmatprep.subr.bf16.mxu0 %v2130_v0  ;;  %1921 = vmatprep.subr.bf16.mxu1 %v2130_v0  ;;  %v2033_v0 = vld [vmem:[#allocation3 + $0x1b0] ss:$8 sps:$4 sm:$0xff]  }
  0x5b   :  { %716 = vmatpush2.bf16.msra.mxu0 %v1961_v18  ;;  %1937 = vmatpush2.bf16.msra.mxu1 %v1961_v18 }
  0x5e   :  { %718 = vmatmul.mubr.bf16.vlgmr.msra.gmra.mxu0 %v1962_v19  ;;  %846 = vmatmul.mubr.bf16.vlgmr.msra.gmra.mxu1 %v1965_v20 }
  0x5f   :  { %725 = vmatprep.mubr.bf16.mxu0 %v1968_v21  ;;  %853 = vmatprep.mubr.bf16.mxu1 %v1970_v22 }
  0x66   :  { %726 = vmatmul.mubr.bf16.gmra.mxu0 %v1972_v23  ;;  %854 = vmatmul.mubr.bf16.gmra.mxu1 %v1973_v24 }
  0x67   :  { %733 = vmatprep.mubr.bf16.mxu0 %v1974_v25  ;;  %861 = vmatprep.mubr.bf16.mxu1 %v1976_v26 }
  0x6e   :  { %734 = vmatmul.mubr.bf16.gmra.mxu0 %v1978_v27  ;;  %862 = vmatmul.mubr.bf16.gmra.mxu1 %v1979_v28 }
  0x6f   :  { %741 = vmatprep.mubr.bf16.mxu0 %v1980_v29  ;;  %869 = vmatprep.mubr.bf16.mxu1 %v1982_v30 }
  0x76   :  { %742 = vmatmul.mubr.bf16.gmra.mxu0 %v1984_v31  ;;  %870 = vmatmul.mubr.bf16.gmra.mxu1 %v1985_v32 }
  0x77   :  { %749 = vmatprep.mubr.bf16.mxu0 %v1986_v33  ;;  %877 = vmatprep.mubr.bf16.mxu1 %v1988_v34 }
  0x7e   :  { %750 = vmatmul.mubr.bf16.gmra.mxu0 %v1990_v35  ;;  %878 = vmatmul.mubr.bf16.gmra.mxu1 %v1991_v36 }
  0x7f   :  { %757 = vmatprep.mubr.bf16.mxu0 %v1992_v37  ;;  %885 = vmatprep.mubr.bf16.mxu1 %v1994_v38 }
  0x86   :  { %758 = vmatmul.mubr.bf16.gmra.mxu0 %v1996_v39  ;;  %886 = vmatmul.mubr.bf16.gmra.mxu1 %v1997_v40 }
  0x87   :  { %765 = vmatprep.mubr.bf16.mxu0 %v1998_v41  ;;  %893 = vmatprep.mubr.bf16.mxu1 %v2000_v42 }
  0x8e   :  { %766 = vmatmul.mubr.bf16.gmra.mxu0 %v2002_v43  ;;  %894 = vmatmul.mubr.bf16.gmra.mxu1 %v2003_v44 }
  0x8f   :  { %773 = vmatprep.mubr.bf16.mxu0 %v2004_v45  ;;  %901 = vmatprep.mubr.bf16.mxu1 %v2006_v46 }
  0x96   :  { %774 = vmatmul.mubr.bf16.gmra.mxu0 %v2008_v47  ;;  %902 = vmatmul.mubr.bf16.gmra.mxu1 %v2009_v48 }
  0x97   :  { %781 = vmatprep.mubr.bf16.mxu0 %v2010_v49  ;;  %909 = vmatprep.mubr.bf16.mxu1 %v2012_v50 }
  0x9e   :  { %782 = vmatmul.mubr.bf16.gmra.mxu0 %v2014_v51  ;;  %910 = vmatmul.mubr.bf16.gmra.mxu1 %v2015_v52 }
  0x9f   :  { %789 = vmatprep.mubr.bf16.mxu0 %v2016_v53  ;;  %917 = vmatprep.mubr.bf16.mxu1 %v2018_v54 }
  0xa6   :  { %790 = vmatmul.mubr.bf16.gmra.mxu0 %v2020_v55  ;;  %918 = vmatmul.mubr.bf16.gmra.mxu1 %v2021_v56 }
  0xa7   :  { %797 = vmatprep.mubr.bf16.mxu0 %v2022_v57  ;;  %925 = vmatprep.mubr.bf16.mxu1 %v2024_v58 }
  0xae   :  { %798 = vmatmul.mubr.bf16.gmra.mxu0 %v2026_v59  ;;  %926 = vmatmul.mubr.bf16.gmra.mxu1 %v2027_v60 }
  0xaf   :  { %805 = vmatprep.mubr.bf16.mxu0 %v2028_v61  ;;  %933 = vmatprep.mubr.bf16.mxu1 %v2030_v62 }
  0xb6   :  { %806 = vmatmul.mubr.bf16.gmra.mxu0 %v2032_v63  ;;  %934 = vmatmul.mubr.bf16.gmra.mxu1 %v2033_v0 }
  0xb7   :  { %813 = vmatprep.mubr.bf16.mxu0 %v2034_v1  ;;  %941 = vmatprep.mubr.bf16.mxu1 %v2036_v2 }
  0xbe   :  { %814 = vmatmul.mubr.bf16.gmra.mxu0 %v2038_v3  ;;  %942 = vmatmul.mubr.bf16.gmra.mxu1 %v2039_v4 }
  0xbf   :  { %821 = vmatprep.mubr.bf16.mxu0 %v2040_v5  ;;  %949 = vmatprep.mubr.bf16.mxu1 %v2042_v6 }
  0xc6   :  { %822 = vmatmul.mubr.bf16.gmra.mxu0 %v2044_v7  ;;  %950 = vmatmul.mubr.bf16.gmra.mxu1 %v2045_v8 }
  0xc7   :  { %829 = vmatprep.mubr.bf16.mxu0 %v2046_v9  ;;  %957 = vmatprep.mubr.bf16.mxu1 %v2048_v10 }
  0xce   :  { %830 = vmatmul.mubr.bf16.gmra.mxu0 %v2050_v11  ;;  %958 = vmatmul.mubr.bf16.gmra.mxu1 %v2051_v12 }
  0xcf   :  { %837 = vmatprep.mubr.bf16.mxu0 %v2052_v13  ;;  %965 = vmatprep.mubr.bf16.mxu1 %v2054_v14 }
  0xd6   :  { %838 = vmatmul.mubr.bf16.gmra.mxu0 %v2056_v15  ;;  %966 = vmatmul.mubr.bf16.gmra.mxu1 %v2057_v16 }
 0x11e   :  { %v719_v17 = vpop.f32.mrf.mxu0  ;;  %v847_v18 = vpop.f32.mrf.mxu1 }
 0x120   :  { %v721_v19 = vpop.f32.mrf.mxu0  ;;  %v849_v20 = vpop.f32.mrf.mxu1 }
 0x122   :  { %v722_v21 = vpop.f32.mrf.mxu0  ;;  %v850_v22 = vpop.f32.mrf.mxu1 }
 0x123   :  { %v1718_v23 = vpack.c.bf16 %v722_v21, %v719_v17  ;;  %v1798_v24 = vpack.c.bf16 %v850_v22, %v847_v18 }
 0x124   :  { %v724_v25 = vpop.f32.mrf.mxu0  ;;  %v852_v26 = vpop.f32.mrf.mxu1 }
 0x125   :  { %1719 = vst [vmem:[#allocation8] sm:$0xff] %v1718_v23   ;;  %1890 = vst [vmem:[#allocation8 + $0x80] sm:$0xff] %v1798_v24  }
 0x126   :  { %v727_v27 = vpop.f32.mrf.mxu0  ;;  %v855_v28 = vpop.f32.mrf.mxu1 }
 0x128   :  { %v729_v29 = vpop.f32.mrf.mxu0  ;;  %v857_v30 = vpop.f32.mrf.mxu1 }
 0x12a   :  { %v730_v31 = vpop.f32.mrf.mxu0  ;;  %v858_v32 = vpop.f32.mrf.mxu1 }
 0x12b   :  { %v1723_v33 = vpack.c.bf16 %v730_v31, %v727_v27  ;;  %v1803_v34 = vpack.c.bf16 %v858_v32, %v855_v28 }
 0x12c   :  { %v732_v35 = vpop.f32.mrf.mxu0  ;;  %v860_v36 = vpop.f32.mrf.mxu1 }
 0x12d   :  { %1875 = vst [vmem:[#allocation8 + $0x8] sm:$0xff] %v1723_v33   ;;  %1891 = vst [vmem:[#allocation8 + $0x88] sm:$0xff] %v1803_v34  }
 0x12e   :  { %v735_v37 = vpop.f32.mrf.mxu0  ;;  %v863_v38 = vpop.f32.mrf.mxu1 }
 0x130   :  { %v737_v39 = vpop.f32.mrf.mxu0  ;;  %v865_v40 = vpop.f32.mrf.mxu1 }
 0x132   :  { %v738_v41 = vpop.f32.mrf.mxu0  ;;  %v866_v42 = vpop.f32.mrf.mxu1 }
 0x133   :  { %v1728_v43 = vpack.c.bf16 %v738_v41, %v735_v37  ;;  %v1808_v44 = vpack.c.bf16 %v866_v42, %v863_v38 }
 0x134   :  { %v740_v45 = vpop.f32.mrf.mxu0  ;;  %v868_v46 = vpop.f32.mrf.mxu1 }
 0x135   :  { %1876 = vst [vmem:[#allocation8 + $0x10] sm:$0xff] %v1728_v43   ;;  %1892 = vst [vmem:[#allocation8 + $0x90] sm:$0xff] %v1808_v44  }
 0x136   :  { %v743_v47 = vpop.f32.mrf.mxu0  ;;  %v871_v48 = vpop.f32.mrf.mxu1 }
 0x138   :  { %v745_v49 = vpop.f32.mrf.mxu0  ;;  %v873_v50 = vpop.f32.mrf.mxu1 }
 0x13a   :  { %v746_v51 = vpop.f32.mrf.mxu0  ;;  %v874_v52 = vpop.f32.mrf.mxu1 }
 0x13b   :  { %v1733_v53 = vpack.c.bf16 %v746_v51, %v743_v47  ;;  %v1813_v54 = vpack.c.bf16 %v874_v52, %v871_v48 }
 0x13c   :  { %v748_v55 = vpop.f32.mrf.mxu0  ;;  %v876_v56 = vpop.f32.mrf.mxu1 }
 0x13d   :  { %1877 = vst [vmem:[#allocation8 + $0x18] sm:$0xff] %v1733_v53   ;;  %1893 = vst [vmem:[#allocation8 + $0x98] sm:$0xff] %v1813_v54  }
 0x13e   :  { %v751_v57 = vpop.f32.mrf.mxu0  ;;  %v879_v58 = vpop.f32.mrf.mxu1 }
 0x140   :  { %v753_v59 = vpop.f32.mrf.mxu0  ;;  %v881_v60 = vpop.f32.mrf.mxu1 }
 0x142   :  { %v754_v61 = vpop.f32.mrf.mxu0  ;;  %v882_v62 = vpop.f32.mrf.mxu1 }
 0x143   :  { %v1738_v63 = vpack.c.bf16 %v754_v61, %v751_v57  ;;  %v1818_v0 = vpack.c.bf16 %v882_v62, %v879_v58 }
 0x144   :  { %v756_v1 = vpop.f32.mrf.mxu0  ;;  %v884_v2 = vpop.f32.mrf.mxu1 }
 0x145   :  { %1878 = vst [vmem:[#allocation8 + $0x20] sm:$0xff] %v1738_v63   ;;  %1894 = vst [vmem:[#allocation8 + $0xa0] sm:$0xff] %v1818_v0  }
 0x146   :  { %v759_v3 = vpop.f32.mrf.mxu0  ;;  %v887_v4 = vpop.f32.mrf.mxu1 }
 0x148   :  { %v761_v5 = vpop.f32.mrf.mxu0  ;;  %v889_v6 = vpop.f32.mrf.mxu1 }
 0x14a   :  { %v762_v7 = vpop.f32.mrf.mxu0  ;;  %v890_v8 = vpop.f32.mrf.mxu1 }
 0x14b   :  { %v1743_v9 = vpack.c.bf16 %v762_v7, %v759_v3  ;;  %v1823_v10 = vpack.c.bf16 %v890_v8, %v887_v4 }
 0x14c   :  { %v764_v11 = vpop.f32.mrf.mxu0  ;;  %v892_v12 = vpop.f32.mrf.mxu1 }
 0x14d   :  { %1879 = vst [vmem:[#allocation8 + $0x28] sm:$0xff] %v1743_v9   ;;  %1895 = vst [vmem:[#allocation8 + $0xa8] sm:$0xff] %v1823_v10  }
 0x14e   :  { %v767_v13 = vpop.f32.mrf.mxu0  ;;  %v895_v14 = vpop.f32.mrf.mxu1 }
 0x150   :  { %v769_v15 = vpop.f32.mrf.mxu0  ;;  %v897_v16 = vpop.f32.mrf.mxu1 }
 0x152   :  { %v770_v17 = vpop.f32.mrf.mxu0  ;;  %v898_v18 = vpop.f32.mrf.mxu1 }
 0x153   :  { %v1748_v19 = vpack.c.bf16 %v770_v17, %v767_v13  ;;  %v1828_v20 = vpack.c.bf16 %v898_v18, %v895_v14 }
 0x154   :  { %v772_v21 = vpop.f32.mrf.mxu0  ;;  %v900_v22 = vpop.f32.mrf.mxu1 }
 0x155   :  { %1880 = vst [vmem:[#allocation8 + $0x30] sm:$0xff] %v1748_v19   ;;  %1896 = vst [vmem:[#allocation8 + $0xb0] sm:$0xff] %v1828_v20  }
 0x156   :  { %v775_v23 = vpop.f32.mrf.mxu0  ;;  %v903_v24 = vpop.f32.mrf.mxu1 }
 0x158   :  { %v777_v25 = vpop.f32.mrf.mxu0  ;;  %v905_v26 = vpop.f32.mrf.mxu1 }
 0x15a   :  { %v778_v27 = vpop.f32.mrf.mxu0  ;;  %v906_v28 = vpop.f32.mrf.mxu1 }
 0x15b   :  { %v1753_v29 = vpack.c.bf16 %v778_v27, %v775_v23  ;;  %v1833_v30 = vpack.c.bf16 %v906_v28, %v903_v24 }
 0x15c   :  { %v780_v31 = vpop.f32.mrf.mxu0  ;;  %v908_v32 = vpop.f32.mrf.mxu1 }
 0x15d   :  { %1881 = vst [vmem:[#allocation8 + $0x38] sm:$0xff] %v1753_v29   ;;  %1897 = vst [vmem:[#allocation8 + $0xb8] sm:$0xff] %v1833_v30  }
 0x15e   :  { %v783_v33 = vpop.f32.mrf.mxu0  ;;  %v911_v34 = vpop.f32.mrf.mxu1 }
 0x160   :  { %v785_v35 = vpop.f32.mrf.mxu0  ;;  %v913_v36 = vpop.f32.mrf.mxu1 }
 0x162   :  { %v786_v37 = vpop.f32.mrf.mxu0  ;;  %v914_v38 = vpop.f32.mrf.mxu1 }
 0x163   :  { %v1758_v39 = vpack.c.bf16 %v786_v37, %v783_v33  ;;  %v1838_v40 = vpack.c.bf16 %v914_v38, %v911_v34 }
 0x164   :  { %v788_v41 = vpop.f32.mrf.mxu0  ;;  %v916_v42 = vpop.f32.mrf.mxu1 }
 0x165   :  { %1882 = vst [vmem:[#allocation8 + $0x40] sm:$0xff] %v1758_v39   ;;  %1898 = vst [vmem:[#allocation8 + $0xc0] sm:$0xff] %v1838_v40  }
 0x166   :  { %v791_v43 = vpop.f32.mrf.mxu0  ;;  %v919_v44 = vpop.f32.mrf.mxu1 }
 0x168   :  { %v793_v45 = vpop.f32.mrf.mxu0  ;;  %v921_v46 = vpop.f32.mrf.mxu1 }
 0x16a   :  { %v794_v47 = vpop.f32.mrf.mxu0  ;;  %v922_v48 = vpop.f32.mrf.mxu1 }
 0x16b   :  { %v1763_v49 = vpack.c.bf16 %v794_v47, %v791_v43  ;;  %v1843_v50 = vpack.c.bf16 %v922_v48, %v919_v44 }
 0x16c   :  { %v796_v51 = vpop.f32.mrf.mxu0  ;;  %v924_v52 = vpop.f32.mrf.mxu1 }
 0x16d   :  { %1883 = vst [vmem:[#allocation8 + $0x48] sm:$0xff] %v1763_v49   ;;  %1899 = vst [vmem:[#allocation8 + $0xc8] sm:$0xff] %v1843_v50  }
 0x16e   :  { %v799_v53 = vpop.f32.mrf.mxu0  ;;  %v927_v54 = vpop.f32.mrf.mxu1 }
 0x170   :  { %v801_v55 = vpop.f32.mrf.mxu0  ;;  %v929_v56 = vpop.f32.mrf.mxu1 }
 0x172   :  { %v802_v57 = vpop.f32.mrf.mxu0  ;;  %v930_v58 = vpop.f32.mrf.mxu1 }
 0x173   :  { %v1768_v59 = vpack.c.bf16 %v802_v57, %v799_v53  ;;  %v1848_v60 = vpack.c.bf16 %v930_v58, %v927_v54 }
 0x174   :  { %v804_v61 = vpop.f32.mrf.mxu0  ;;  %v932_v62 = vpop.f32.mrf.mxu1 }
 0x175   :  { %1884 = vst [vmem:[#allocation8 + $0x50] sm:$0xff] %v1768_v59   ;;  %1900 = vst [vmem:[#allocation8 + $0xd0] sm:$0xff] %v1848_v60  }
 0x176   :  { %v807_v63 = vpop.f32.mrf.mxu0  ;;  %v935_v0 = vpop.f32.mrf.mxu1 }
 0x178   :  { %v809_v1 = vpop.f32.mrf.mxu0  ;;  %v937_v2 = vpop.f32.mrf.mxu1 }
 0x17a   :  { %v810_v3 = vpop.f32.mrf.mxu0  ;;  %v938_v4 = vpop.f32.mrf.mxu1 }
 0x17b   :  { %v1773_v5 = vpack.c.bf16 %v810_v3, %v807_v63  ;;  %v1853_v6 = vpack.c.bf16 %v938_v4, %v935_v0 }
 0x17c   :  { %v812_v7 = vpop.f32.mrf.mxu0  ;;  %v940_v8 = vpop.f32.mrf.mxu1 }
 0x17d   :  { %1885 = vst [vmem:[#allocation8 + $0x58] sm:$0xff] %v1773_v5   ;;  %1901 = vst [vmem:[#allocation8 + $0xd8] sm:$0xff] %v1853_v6  }
 0x17e   :  { %v815_v9 = vpop.f32.mrf.mxu0  ;;  %v943_v10 = vpop.f32.mrf.mxu1 }
 0x180   :  { %v817_v11 = vpop.f32.mrf.mxu0  ;;  %v945_v12 = vpop.f32.mrf.mxu1 }
 0x182   :  { %v818_v13 = vpop.f32.mrf.mxu0  ;;  %v946_v14 = vpop.f32.mrf.mxu1 }
 0x183   :  { %v1778_v15 = vpack.c.bf16 %v818_v13, %v815_v9  ;;  %v1858_v16 = vpack.c.bf16 %v946_v14, %v943_v10 }
 0x184   :  { %v820_v17 = vpop.f32.mrf.mxu0  ;;  %v948_v18 = vpop.f32.mrf.mxu1 }
 0x185   :  { %1886 = vst [vmem:[#allocation8 + $0x60] sm:$0xff] %v1778_v15   ;;  %1902 = vst [vmem:[#allocation8 + $0xe0] sm:$0xff] %v1858_v16  }
 0x186   :  { %v823_v19 = vpop.f32.mrf.mxu0  ;;  %v951_v20 = vpop.f32.mrf.mxu1 }
 0x188   :  { %v825_v21 = vpop.f32.mrf.mxu0  ;;  %v953_v22 = vpop.f32.mrf.mxu1 }
 0x18a   :  { %v826_v23 = vpop.f32.mrf.mxu0  ;;  %v954_v24 = vpop.f32.mrf.mxu1 }
 0x18b   :  { %v1783_v25 = vpack.c.bf16 %v826_v23, %v823_v19  ;;  %v1863_v26 = vpack.c.bf16 %v954_v24, %v951_v20 }
 0x18c   :  { %v828_v27 = vpop.f32.mrf.mxu0  ;;  %v956_v28 = vpop.f32.mrf.mxu1 }
 0x18d   :  { %1887 = vst [vmem:[#allocation8 + $0x68] sm:$0xff] %v1783_v25   ;;  %1903 = vst [vmem:[#allocation8 + $0xe8] sm:$0xff] %v1863_v26  }
 0x18e   :  { %v831_v29 = vpop.f32.mrf.mxu0  ;;  %v959_v30 = vpop.f32.mrf.mxu1 }
 0x190   :  { %v833_v31 = vpop.f32.mrf.mxu0  ;;  %v961_v32 = vpop.f32.mrf.mxu1 }
 0x192   :  { %v834_v33 = vpop.f32.mrf.mxu0  ;;  %v962_v34 = vpop.f32.mrf.mxu1 }
 0x193   :  { %v1788_v35 = vpack.c.bf16 %v834_v33, %v831_v29  ;;  %v1868_v36 = vpack.c.bf16 %v962_v34, %v959_v30 }
 0x194   :  { %v836_v37 = vpop.f32.mrf.mxu0  ;;  %v964_v38 = vpop.f32.mrf.mxu1 }
 0x195   :  { %1888 = vst [vmem:[#allocation8 + $0x70] sm:$0xff] %v1788_v35   ;;  %1904 = vst [vmem:[#allocation8 + $0xf0] sm:$0xff] %v1868_v36  }
 0x196   :  { %v839_v39 = vpop.f32.mrf.mxu0  ;;  %v967_v40 = vpop.f32.mrf.mxu1 }
 0x198   :  { %v841_v41 = vpop.f32.mrf.mxu0  ;;  %v969_v42 = vpop.f32.mrf.mxu1 }
 0x19a   :  { %v842_v43 = vpop.f32.mrf.mxu0  ;;  %v970_v44 = vpop.f32.mrf.mxu1 }
 0x19b   :  { %v1793_v45 = vpack.c.bf16 %v842_v43, %v839_v39  ;;  %v1873_v46 = vpack.c.bf16 %v970_v44, %v967_v40 }
 0x19c   :  { %v844_v47 = vpop.f32.mrf.mxu0  ;;  %v972_v48 = vpop.f32.mrf.mxu1 }
 0x19d   :  { %1889 = vst [vmem:[#allocation8 + $0x78] sm:$0xff] %v1793_v45   ;;  %1905 = vst [vmem:[#allocation8 + $0xf8] sm:$0xff] %v1873_v46  }
 0x19e   :  { %2109 = shalt.err (!%p2106_p0)
}
 0x19f   :  { %1500 = dma.vmem_to_hbm [thread:$0]  %s1495_s1, 4096, %s2196_s2, [#allocation5], %s2128_s19, %s2128_s19, %s2129_s20  }
 0x1a0   :  { %2122 = dma.done.wait [#allocation5], 4096  }
 0x1a1   :  { %2123 = vsyncadd [#allocation5], 4294963200 }
 0x1a2   :  { %1504 = vsyncpa [#allocation4], 1 }
 0x1a3   :  { %1505 = vsyncpa [#allocation7], 1 }
 0x1a4   :  { %1506 = vsyncpa [#allocation5], 1 }

</bundles_post_ra>
